<compile_context>
chip_gen: v5e
topology: v5e:2x2
jax: 0.10.0
libtpu: 0.0.40
codegen_flags: <defaults>
</compile_context>

<pallas_src>
import functools

import jax
import jax.numpy as jnp
from jax.experimental import pallas as pl
from jax.experimental.pallas import tpu as pltpu

# ----------------------------- model constants (fixed by the torch module) ---
PATCH_SIZE = 4
EMBED_DIM = 192
NUM_HEADS = 3
FFN_DIM = EMBED_DIM * 4
NUM_LAYERS = 4
NUM_CLASSES = 10          # constructor arg (module default is 1)
HEAD_OUT_PAD = 128        # lane-dense padding of the head output


def _round_up(x, m):
    return ((x + m - 1) // m) * m


# ----------------------------- shared math helpers (kernel AND reference) ----
def _matmul_bf16(lhs, rhs):
    """MXU matmul: bf16 operands, f32 accumulation."""
    return jnp.dot(lhs.astype(jnp.bfloat16), rhs.astype(jnp.bfloat16),
                   preferred_element_type=jnp.float32)


def _layer_norm(v, g, b):
    mu = jnp.mean(v, axis=-1, keepdims=True)
    d = v - mu
    var = jnp.mean(d * d, axis=-1, keepdims=True)
    return d * jax.lax.rsqrt(var + 1e-5) * g + b


def _gelu(v):
    # tanh-approx GELU (see TODO above re exact erf).
    c = 0.7978845608028654  # sqrt(2/pi)
    return 0.5 * v * (1.0 + jnp.tanh(c * (v + 0.044715 * v * v * v)))


# ----------------------------- host-side layout glue -------------------------
def _preprocess_input(x):
    # BaseModel/TinyViT preprocess_input: add channel dim if input is (B, H, W).
    if x.ndim == 3:
        x = x[:, None, :, :]
    return x


def _patchify(x_nchw, patch):
    """(B, C, H, W) -> (B, num_patches, C*patch*patch), matching Conv2d(k=s=patch)
    followed by flatten(2).transpose(1, 2)."""
    b, c, h, w = x_nchw.shape
    hp, wp = h // patch, w // patch
    x = x_nchw.reshape(b, c, hp, patch, wp, patch)
    x = x.transpose(0, 2, 4, 1, 3, 5)               # (B, hp, wp, C, p, p)
    return x.reshape(b, hp * wp, c * patch * patch)


# ----------------------------- the layer-pipelined Pallas kernel -------------
def _tinyvit_kernel(patches_ref, w_pe_ref, pos_full_ref,
                    wqkv_ref, bqkv_ref, wo_ref, bo_ref,
                    ln1_g_ref, ln1_b_ref, w1_ref, b1_ref, w2_ref, b2_ref,
                    ln2_g_ref, ln2_b_ref, w_head_ref, b_head_ref,
                    out_ref, x_scratch, *, s_pad, s_real):
    layer = pl.program_id(0)
    n_layers = pl.num_programs(0)
    rows, d = x_scratch.shape            # rows = B * s_pad, d = 192
    b_sz = rows // s_pad
    hd = d // NUM_HEADS
    scale = 1.0 / float(hd) ** 0.5

    # ---- layer 0: patch embed (one aligned matmul) + cls/pos/bias slab -------
    @pl.when(layer == 0)
    def _():
        x_scratch[...] = (_matmul_bf16(patches_ref[...], w_pe_ref[...])
                          + pos_full_ref[...])

    x = x_scratch[...]                                   # (rows, d) f32

    # ---- multi-head self-attention (post-norm encoder layer) -----------------
    qkv = (_matmul_bf16(x, wqkv_ref[...]) + bqkv_ref[...]).astype(jnp.bfloat16)
    qkv3 = qkv.reshape(b_sz, s_pad, 3 * d)               # (B, S_pad, 3D) bf16

    col = jax.lax.broadcasted_iota(jnp.int32, (s_pad, s_pad), 1)
    key_ok = col < s_real                                # mask padded key columns

    heads = []
    for h in range(NUM_HEADS):
        c = h * hd
        q = qkv3[:, :, c:c + hd]                         # (B, S_pad, hd)
        k = qkv3[:, :, d + c:d + c + hd]
        v = qkv3[:, :, 2 * d + c:2 * d + c + hd]
        s = jax.lax.dot_general(q, k, (((2,), (2,)), ((0,), (0,))),
                                preferred_element_type=jnp.float32) * scale
        s = jnp.where(key_ok, s, -1e30)
        s = s - jnp.max(s, axis=-1, keepdims=True)
        p = jnp.exp(s)
        p = p * pl.reciprocal(jnp.sum(p, axis=-1, keepdims=True), approx=True)
        o = jax.lax.dot_general(p.astype(jnp.bfloat16), v,
                                (((2,), (1,)), ((0,), (0,))),
                                preferred_element_type=jnp.float32)
        heads.append(o.astype(jnp.bfloat16))

    attn = jnp.concatenate(heads, axis=-1).reshape(rows, d)      # bf16
    attn = _matmul_bf16(attn, wo_ref[...]) + bo_ref[...]         # single K=192 matmul
    x = _layer_norm(x + attn, ln1_g_ref[...], ln1_b_ref[...])

    # ---- feed-forward ---------------------------------------------------------
    h1 = _gelu(_matmul_bf16(x, w1_ref[...]) + b1_ref[...]).astype(jnp.bfloat16)
    ffn = _matmul_bf16(h1, w2_ref[...]) + b2_ref[...]
    x = _layer_norm(x + ffn, ln2_g_ref[...], ln2_b_ref[...])

    x_scratch[...] = x

    # ---- last layer: classification head, one aligned lane-dense store -------
    @pl.when(layer == n_layers - 1)
    def _():
        out_ref[...] = _matmul_bf16(x, w_head_ref[...]) + b_head_ref[...]


def tinyvit_forward(x_img, params):
    """Fused, layer-pipelined Pallas forward of TinyViTEMNIST (inference)."""
    x_img = _preprocess_input(x_img)
    patches = _patchify(x_img, PATCH_SIZE)               # (B, P, C*p*p) f32
    b_sz, n_patch, kp = patches.shape
    s_real, d = params['pos'].shape
    assert s_real == n_patch + 1
    f = params['w1'].shape[-1]
    n_layers = params['wqkv'].shape[0]

    s_pad = _round_up(max(s_real, 16), 16)               # 17 -> 32 (bf16-pack aligned)
    rows = b_sz * s_pad

    # Host-side layout plumbing (zero-cost semantics): zero-padded per-image patch
    # slabs, and one additive slab = [cls+pos[0]; pos[1:]+conv_bias; zeros].
    patches_pad = jnp.zeros((b_sz, s_pad, kp), jnp.float32)
    patches_pad = patches_pad.at[:, 1:1 + n_patch, :].set(patches)
    patches_pad = patches_pad.reshape(rows, kp)

    pos_slab = jnp.zeros((s_pad, d), jnp.float32)
    pos_slab = pos_slab.at[0:1, :].set(params['cls'] + params['pos'][0:1, :])
    pos_slab = pos_slab.at[1:s_real, :].set(params['pos'][1:, :] + params['b_pe'])
    pos_full = jnp.tile(pos_slab, (b_sz, 1))             # (rows, d)

    const2 = lambda l: (0, 0)
    perlayer = lambda l: (l, 0, 0)

    grid_spec = pltpu.PrefetchScalarGridSpec(
        num_scalar_prefetch=0,
        grid=(n_layers,),
        in_specs=[
            pl.BlockSpec((rows, kp), const2),            # patches_pad     (resident)
            pl.BlockSpec((kp, d), const2),               # w_pe            (resident)
            pl.BlockSpec((rows, d), const2),             # pos_full        (resident)
            pl.BlockSpec((None, d, 3 * d), perlayer),    # wqkv[l]   (streamed/layer)
            pl.BlockSpec((None, 1, 3 * d), perlayer),    # bqkv[l]
            pl.BlockSpec((None, d, d), perlayer),        # wo[l]
            pl.BlockSpec((None, 1, d), perlayer),        # bo[l]
            pl.BlockSpec((None, 1, d), perlayer),        # ln1_g[l]
            pl.BlockSpec((None, 1, d), perlayer),        # ln1_b[l]
            pl.BlockSpec((None, d, f), perlayer),        # w1[l]
            pl.BlockSpec((None, 1, f), perlayer),        # b1[l]
            pl.BlockSpec((None, f, d), perlayer),        # w2[l]
            pl.BlockSpec((None, 1, d), perlayer),        # b2[l]
            pl.BlockSpec((None, 1, d), perlayer),        # ln2_g[l]
            pl.BlockSpec((None, 1, d), perlayer),        # ln2_b[l]
            pl.BlockSpec((d, HEAD_OUT_PAD), const2),     # w_head          (resident)
            pl.BlockSpec((1, HEAD_OUT_PAD), const2),     # b_head          (resident)
        ],
        out_specs=pl.BlockSpec((rows, HEAD_OUT_PAD), const2),
        scratch_shapes=[pltpu.VMEM((rows, d), jnp.float32)],   # residual stream
    )

    kernel = functools.partial(_tinyvit_kernel, s_pad=s_pad, s_real=s_real)
    out_padded = pl.pallas_call(
        kernel,
        out_shape=jax.ShapeDtypeStruct((rows, HEAD_OUT_PAD), jnp.float32),
        grid_spec=grid_spec,
        compiler_params=pltpu.CompilerParams(dimension_semantics=("arbitrary",)),
    )(patches_pad, params['w_pe'], pos_full,
      params['wqkv'], params['bqkv'], params['wo'], params['bo'],
      params['ln1_g'], params['ln1_b'], params['w1'], params['b1'],
      params['w2'], params['b2'], params['ln2_g'], params['ln2_b'],
      params['w_head'], params['b_head'])

    # cls token sits at row 0 of every per-image S_pad slab.
    return out_padded.reshape(b_sz, s_pad, HEAD_OUT_PAD)[:, 0, :NUM_CLASSES]


# ----------------------------- plain-JAX reference (no padding / masking) ----
def tinyvit_reference(x_img, params):
    x_img = _preprocess_input(x_img)
    patches = _patchify(x_img, PATCH_SIZE)
    b_sz = patches.shape[0]
    s_real, d = params['pos'].shape
    n_layers = params['wqkv'].shape[0]
    hd = d // NUM_HEADS
    scale = 1.0 / float(hd) ** 0.5

    outs = []
    for b in range(b_sz):
        tok = _matmul_bf16(patches[b], params['w_pe']) + params['b_pe']
        x = jnp.concatenate([params['cls'] + params['pos'][0:1, :],
                             tok + params['pos'][1:, :]], axis=0)   # (S, D)
        for l in range(n_layers):
            qkv = _matmul_bf16(x, params['wqkv'][l]) + params['bqkv'][l]
            heads = []
            for h in range(NUM_HEADS):
                c = h * hd
                q = qkv[:, c:c + hd]
                k = qkv[:, d + c:d + c + hd]
                v = qkv[:, 2 * d + c:2 * d + c + hd]
                s = jnp.dot(q.astype(jnp.bfloat16), k.astype(jnp.bfloat16).T,
                            preferred_element_type=jnp.float32) * scale
                p = jax.nn.softmax(s, axis=-1)
                heads.append(jnp.dot(p.astype(jnp.bfloat16), v.astype(jnp.bfloat16),
                                     preferred_element_type=jnp.float32))
            attn = (_matmul_bf16(jnp.concatenate(heads, axis=-1), params['wo'][l])
                    + params['bo'][l])
            x = _layer_norm(x + attn, params['ln1_g'][l], params['ln1_b'][l])
            h1 = _gelu(_matmul_bf16(x, params['w1'][l]) + params['b1'][l])
            ffn = _matmul_bf16(h1, params['w2'][l]) + params['b2'][l]
            x = _layer_norm(x + ffn, params['ln2_g'][l], params['ln2_b'][l])
        logits = _matmul_bf16(x[0:1, :], params['w_head']) + params['b_head']
        outs.append(logits[:, :NUM_CLASSES])
    return jnp.concatenate(outs, axis=0)


# ----------------------------- deterministic synthetic parameters ------------
def init_params(key, channels, seq_len, num_classes):
    kp = channels * PATCH_SIZE * PATCH_SIZE
    d, f, l, s = EMBED_DIM, FFN_DIM, NUM_LAYERS, seq_len
    assert num_classes <= HEAD_OUT_PAD
    keys = jax.random.split(key, 14)

    def nrm(k, shape, scl):
        return jax.random.normal(k, shape, jnp.float32) * scl

    p = {}
    p['w_pe'] = nrm(keys[0], (kp, d), kp ** -0.5).astype(jnp.bfloat16)
    p['b_pe'] = nrm(keys[1], (1, d), 0.02)
    # cls/pos are zero-init nn.Parameters in torch; random here so the test is
    # non-trivial (forward semantics are unchanged).
    p['cls'] = nrm(keys[2], (1, d), 0.02)
    p['pos'] = nrm(keys[3], (s, d), 0.02)
    p['wqkv'] = nrm(keys[4], (l, d, 3 * d), d ** -0.5).astype(jnp.bfloat16)
    p['bqkv'] = nrm(keys[5], (l, 1, 3 * d), 0.02)
    p['wo'] = nrm(keys[6], (l, d, d), d ** -0.5).astype(jnp.bfloat16)
    p['bo'] = nrm(keys[7], (l, 1, d), 0.02)
    p['ln1_g'] = jnp.ones((l, 1, d), jnp.float32)
    p['ln1_b'] = jnp.zeros((l, 1, d), jnp.float32)
    p['w1'] = nrm(keys[8], (l, d, f), d ** -0.5).astype(jnp.bfloat16)
    p['b1'] = nrm(keys[9], (l, 1, f), 0.02)
    p['w2'] = nrm(keys[10], (l, f, d), f ** -0.5).astype(jnp.bfloat16)
    p['b2'] = nrm(keys[11], (l, 1, d), 0.02)
    p['ln2_g'] = jnp.ones((l, 1, d), jnp.float32)
    p['ln2_b'] = jnp.zeros((l, 1, d), jnp.float32)
    w_head = nrm(keys[12], (d, num_classes), d ** -0.5)
    p['w_head'] = jnp.pad(
        w_head, ((0, 0), (0, HEAD_OUT_PAD - num_classes))).astype(jnp.bfloat16)
    b_head = nrm(keys[13], (1, num_classes), 0.02)
    p['b_head'] = jnp.pad(b_head, ((0, 0), (0, HEAD_OUT_PAD - num_classes)))
    return p


if __name__ == "__main__":
    # Small shapes consistent with the module: input_dim=(C,H,W)=(4,16,16),
    # patch_size=4 -> 16 patches -> seq_len 17, embed_dim 192, nhead 3, 4 layers.
    B, C, H, W = 2, 4, 16, 16
    assert H % PATCH_SIZE == 0 and W % PATCH_SIZE == 0
    num_patches = (H // PATCH_SIZE) * (W // PATCH_SIZE)
    seq_len = 1 + num_patches

    key = jax.random.PRNGKey(0)
    k_x, k_p = jax.random.split(key)
    x = jax.random.normal(k_x, (B, C, H, W), dtype=jnp.float32)
    params = init_params(k_p, C, seq_len, NUM_CLASSES)

    fwd = jax.jit(tinyvit_forward)
    out = fwd(x, params)
    jax.block_until_ready(out)

    ref = tinyvit_reference(x, params)
    assert out.shape == (B, NUM_CLASSES)
    max_diff = float(jnp.max(jnp.abs(out - ref)))
    # Kernel and reference differ only by the approx softmax reciprocal and
    # fp addition order; give a small margin on top of the bf16-matmul noise.
    assert jnp.allclose(out, ref, atol=2e-2, rtol=2e-2), max_diff

    print("KERNEL_OK")
</pallas_src>

<mosaic_0001>
module attributes {stable_mosaic.version = 11 : i64} {
  func.func @_tinyvit_kernel(%arg0: i32, %arg1: memref<64x64xf32, #tpu.memory_space<vmem>>, %arg2: memref<64x192xbf16, #tpu.memory_space<vmem>>, %arg3: memref<64x192xf32, #tpu.memory_space<vmem>>, %arg4: memref<1x192x576xbf16, #tpu.memory_space<vmem>>, %arg5: memref<1x1x576xf32, #tpu.memory_space<vmem>>, %arg6: memref<1x192x192xbf16, #tpu.memory_space<vmem>>, %arg7: memref<1x1x192xf32, #tpu.memory_space<vmem>>, %arg8: memref<1x1x192xf32, #tpu.memory_space<vmem>>, %arg9: memref<1x1x192xf32, #tpu.memory_space<vmem>>, %arg10: memref<1x192x768xbf16, #tpu.memory_space<vmem>>, %arg11: memref<1x1x768xf32, #tpu.memory_space<vmem>>, %arg12: memref<1x768x192xbf16, #tpu.memory_space<vmem>>, %arg13: memref<1x1x192xf32, #tpu.memory_space<vmem>>, %arg14: memref<1x1x192xf32, #tpu.memory_space<vmem>>, %arg15: memref<1x1x192xf32, #tpu.memory_space<vmem>>, %arg16: memref<192x128xbf16, #tpu.memory_space<vmem>>, %arg17: memref<1x128xf32, #tpu.memory_space<vmem>>, %arg18: memref<64x128xf32, #tpu.memory_space<vmem>>, %arg19: memref<64x192xf32, #tpu.memory_space<vmem>>) attributes {dimension_semantics = [#tpu.dimension_semantics<arbitrary>], iteration_bounds = array<i64: 4>, scalar_prefetch = 0 : i64, scratch_operands = 1 : i64, tpu.core_type = #tpu.core_type<tc>, window_params = [{pipeline_mode = #tpu.pipeline_mode<synchronous>, transform_indices = @transform_0, window_bounds = array<i64: 64, 64>}, {pipeline_mode = #tpu.pipeline_mode<synchronous>, transform_indices = @transform_1, window_bounds = array<i64: 64, 192>}, {pipeline_mode = #tpu.pipeline_mode<synchronous>, transform_indices = @transform_2, window_bounds = array<i64: 64, 192>}, {transform_indices = @transform_3, window_bounds = array<i64: 1, 192, 576>}, {transform_indices = @transform_4, window_bounds = array<i64: 1, 1, 576>}, {transform_indices = @transform_5, window_bounds = array<i64: 1, 192, 192>}, {transform_indices = @transform_6, window_bounds = array<i64: 1, 1, 192>}, {transform_indices = @transform_7, window_bounds = array<i64: 1, 1, 192>}, {transform_indices = @transform_8, window_bounds = array<i64: 1, 1, 192>}, {transform_indices = @transform_9, window_bounds = array<i64: 1, 192, 768>}, {transform_indices = @transform_10, window_bounds = array<i64: 1, 1, 768>}, {transform_indices = @transform_11, window_bounds = array<i64: 1, 768, 192>}, {transform_indices = @transform_12, window_bounds = array<i64: 1, 1, 192>}, {transform_indices = @transform_13, window_bounds = array<i64: 1, 1, 192>}, {transform_indices = @transform_14, window_bounds = array<i64: 1, 1, 192>}, {pipeline_mode = #tpu.pipeline_mode<synchronous>, transform_indices = @transform_15, window_bounds = array<i64: 192, 128>}, {pipeline_mode = #tpu.pipeline_mode<synchronous>, transform_indices = @transform_16, window_bounds = array<i64: 1, 128>}, {pipeline_mode = #tpu.pipeline_mode<synchronous>, transform_indices = @transform_17, window_bounds = array<i64: 64, 128>}]} {
    %c0_i32 = arith.constant 0 : i32
    %0 = arith.cmpi eq, %arg0, %c0_i32 : i32
    %1 = arith.extui %0 : i1 to i32
    %c0_i32_0 = arith.constant 0 : i32
    %2 = arith.cmpi ne, %1, %c0_i32_0 : i32
    scf.if %2 {
      %c0_76 = arith.constant 0 : index
      %c0_77 = arith.constant 0 : index
      %178 = vector.load %arg1[%c0_76, %c0_77] : memref<64x64xf32, #tpu.memory_space<vmem>>, vector<64x64xf32>
      %c0_78 = arith.constant 0 : index
      %c0_79 = arith.constant 0 : index
      %179 = vector.load %arg2[%c0_78, %c0_79] : memref<64x192xbf16, #tpu.memory_space<vmem>>, vector<64x192xbf16>
      %180 = arith.truncf %178 : vector<64x64xf32> to vector<64x64xbf16>
      %cst_80 = arith.constant dense<0.000000e+00> : vector<64x192xf32>
      %181 = tpu.matmul %180, %179, %cst_80 {dimension_numbers = #tpu.dot_dimension_numbers<[1], [0], [0], [1], [0, 0, 1, 1], [], []>} : vector<64x64xbf16>, vector<64x192xbf16>, vector<64x192xf32> -> vector<64x192xf32>
      %c0_81 = arith.constant 0 : index
      %c0_82 = arith.constant 0 : index
      %182 = vector.load %arg3[%c0_81, %c0_82] : memref<64x192xf32, #tpu.memory_space<vmem>>, vector<64x192xf32>
      %183 = arith.addf %181, %182 : vector<64x192xf32>
      %c0_83 = arith.constant 0 : index
      %c0_84 = arith.constant 0 : index
      %184 = vector.load %arg19[%c0_83, %c0_84] : memref<64x192xf32, #tpu.memory_space<vmem>>, vector<64x192xf32>
      tpu.vector_store %arg19[%c0_83, %c0_84], %183 {strides = array<i32>} : memref<64x192xf32, #tpu.memory_space<vmem>>, vector<64x192xf32>,
    } else {
    }
    %c0 = arith.constant 0 : index
    %c0_1 = arith.constant 0 : index
    %3 = vector.load %arg19[%c0, %c0_1] : memref<64x192xf32, #tpu.memory_space<vmem>>, vector<64x192xf32>
    %c0_2 = arith.constant 0 : index
    %c0_3 = arith.constant 0 : index
    %c0_4 = arith.constant 0 : index
    %4 = vector.load %arg4[%c0_2, %c0_3, %c0_4] : memref<1x192x576xbf16, #tpu.memory_space<vmem>>, vector<1x192x576xbf16>
    %5 = vector.shape_cast %4 : vector<1x192x576xbf16> to vector<192x576xbf16>
    %6 = arith.truncf %3 : vector<64x192xf32> to vector<64x192xbf16>
    %cst = arith.constant dense<0.000000e+00> : vector<64x576xf32>
    %7 = tpu.matmul %6, %5, %cst {dimension_numbers = #tpu.dot_dimension_numbers<[1], [0], [0], [1], [0, 0, 1, 1], [], []>} : vector<64x192xbf16>, vector<192x576xbf16>, vector<64x576xf32> -> vector<64x576xf32>
    %c0_5 = arith.constant 0 : index
    %c0_6 = arith.constant 0 : index
    %c0_7 = arith.constant 0 : index
    %8 = vector.load %arg5[%c0_5, %c0_6, %c0_7] : memref<1x1x576xf32, #tpu.memory_space<vmem>>, vector<1x1x576xf32>
    %9 = vector.shape_cast %8 : vector<1x1x576xf32> to vector<1x576xf32>
    %10 = vector.broadcast %9 : vector<1x576xf32> to vector<64x576xf32>
    %11 = arith.addf %7, %10 : vector<64x576xf32>
    %12 = arith.truncf %11 : vector<64x576xf32> to vector<64x576xbf16>
    %13 = vector.shape_cast %12 : vector<64x576xbf16> to vector<2x32x576xbf16>
    %14 = tpu.iota {dimensions = array<i32: 1>} : vector<32x32xi32>
    %c17_i32 = arith.constant 17 : i32
    %15 = vector.broadcast %c17_i32 : i32 to vector<32x32xi32>
    %16 = arith.cmpi slt, %14, %15 : vector<32x32xi32>
    %17 = vector.extract_strided_slice %13 {offsets = [0, 0, 0], sizes = [2, 32, 64], strides = [1, 1, 1]} : vector<2x32x576xbf16> to vector<2x32x64xbf16>
    %18 = vector.extract_strided_slice %13 {offsets = [0, 0, 192], sizes = [2, 32, 64], strides = [1, 1, 1]} : vector<2x32x576xbf16> to vector<2x32x64xbf16>
    %19 = vector.extract_strided_slice %13 {offsets = [0, 0, 384], sizes = [2, 32, 64], strides = [1, 1, 1]} : vector<2x32x576xbf16> to vector<2x32x64xbf16>
    %cst_8 = arith.constant dense<0.000000e+00> : vector<2x32x32xf32>
    %20 = tpu.matmul %17, %18, %cst_8 {dimension_numbers = #tpu.dot_dimension_numbers<[2], [2], [1], [1], [0, 0, 0, 1, 1, 1], [0], [0]>} : vector<2x32x64xbf16>, vector<2x32x64xbf16>, vector<2x32x32xf32> -> vector<2x32x32xf32>
    %cst_9 = arith.constant 1.250000e-01 : f32
    %21 = vector.broadcast %cst_9 : f32 to vector<2x32x32xf32>
    %22 = arith.mulf %20, %21 : vector<2x32x32xf32>
    %cst_10 = arith.constant -1.000000e+30 : f32
    %23 = vector.shape_cast %16 : vector<32x32xi1> to vector<1x32x32xi1>
    %24 = vector.broadcast %23 : vector<1x32x32xi1> to vector<2x32x32xi1>
    %25 = vector.broadcast %cst_10 : f32 to vector<2x32x32xf32>
    %26 = arith.select %24, %22, %25 : vector<2x32x32xi1>, vector<2x32x32xf32>
    %cst_11 = arith.constant dense<0xFF800000> : vector<2x32xf32>
    %27 = vector.multi_reduction <maximumf>, %26, %cst_11 [2] : vector<2x32x32xf32> to vector<2x32xf32>
    %28 = vector.shape_cast %27 : vector<2x32xf32> to vector<2x32x1xf32>
    %29 = vector.broadcast %28 : vector<2x32x1xf32> to vector<2x32x32xf32>
    %30 = arith.subf %26, %29 : vector<2x32x32xf32>
    %31 = math.exp %30 : vector<2x32x32xf32>
    %cst_12 = arith.constant dense<0.000000e+00> : vector<2x32xf32>
    %32 = vector.multi_reduction <add>, %31, %cst_12 [2] : vector<2x32x32xf32> to vector<2x32xf32>
    %33 = vector.shape_cast %32 : vector<2x32xf32> to vector<2x32x1xf32>
    %34 = tpu.reciprocal %33 {approx = true} : vector<2x32x1xf32> -> vector<2x32x1xf32>
    %35 = vector.broadcast %34 : vector<2x32x1xf32> to vector<2x32x32xf32>
    %36 = arith.mulf %31, %35 : vector<2x32x32xf32>
    %37 = arith.truncf %36 : vector<2x32x32xf32> to vector<2x32x32xbf16>
    %cst_13 = arith.constant dense<0.000000e+00> : vector<2x32x64xf32>
    %38 = tpu.matmul %37, %19, %cst_13 {dimension_numbers = #tpu.dot_dimension_numbers<[2], [1], [1], [2], [0, 0, 0, 1, 1, 2], [0], [0]>} : vector<2x32x32xbf16>, vector<2x32x64xbf16>, vector<2x32x64xf32> -> vector<2x32x64xf32>
    %39 = arith.truncf %38 : vector<2x32x64xf32> to vector<2x32x64xbf16>
    %40 = vector.extract_strided_slice %13 {offsets = [0, 0, 64], sizes = [2, 32, 64], strides = [1, 1, 1]} : vector<2x32x576xbf16> to vector<2x32x64xbf16>
    %41 = vector.extract_strided_slice %13 {offsets = [0, 0, 256], sizes = [2, 32, 64], strides = [1, 1, 1]} : vector<2x32x576xbf16> to vector<2x32x64xbf16>
    %42 = vector.extract_strided_slice %13 {offsets = [0, 0, 448], sizes = [2, 32, 64], strides = [1, 1, 1]} : vector<2x32x576xbf16> to vector<2x32x64xbf16>
    %cst_14 = arith.constant dense<0.000000e+00> : vector<2x32x32xf32>
    %43 = tpu.matmul %40, %41, %cst_14 {dimension_numbers = #tpu.dot_dimension_numbers<[2], [2], [1], [1], [0, 0, 0, 1, 1, 1], [0], [0]>} : vector<2x32x64xbf16>, vector<2x32x64xbf16>, vector<2x32x32xf32> -> vector<2x32x32xf32>
    %cst_15 = arith.constant 1.250000e-01 : f32
    %44 = vector.broadcast %cst_15 : f32 to vector<2x32x32xf32>
    %45 = arith.mulf %43, %44 : vector<2x32x32xf32>
    %cst_16 = arith.constant -1.000000e+30 : f32
    %46 = vector.shape_cast %16 : vector<32x32xi1> to vector<1x32x32xi1>
    %47 = vector.broadcast %46 : vector<1x32x32xi1> to vector<2x32x32xi1>
    %48 = vector.broadcast %cst_16 : f32 to vector<2x32x32xf32>
    %49 = arith.select %47, %45, %48 : vector<2x32x32xi1>, vector<2x32x32xf32>
    %cst_17 = arith.constant dense<0xFF800000> : vector<2x32xf32>
    %50 = vector.multi_reduction <maximumf>, %49, %cst_17 [2] : vector<2x32x32xf32> to vector<2x32xf32>
    %51 = vector.shape_cast %50 : vector<2x32xf32> to vector<2x32x1xf32>
    %52 = vector.broadcast %51 : vector<2x32x1xf32> to vector<2x32x32xf32>
    %53 = arith.subf %49, %52 : vector<2x32x32xf32>
    %54 = math.exp %53 : vector<2x32x32xf32>
    %cst_18 = arith.constant dense<0.000000e+00> : vector<2x32xf32>
    %55 = vector.multi_reduction <add>, %54, %cst_18 [2] : vector<2x32x32xf32> to vector<2x32xf32>
    %56 = vector.shape_cast %55 : vector<2x32xf32> to vector<2x32x1xf32>
    %57 = tpu.reciprocal %56 {approx = true} : vector<2x32x1xf32> -> vector<2x32x1xf32>
    %58 = vector.broadcast %57 : vector<2x32x1xf32> to vector<2x32x32xf32>
    %59 = arith.mulf %54, %58 : vector<2x32x32xf32>
    %60 = arith.truncf %59 : vector<2x32x32xf32> to vector<2x32x32xbf16>
    %cst_19 = arith.constant dense<0.000000e+00> : vector<2x32x64xf32>
    %61 = tpu.matmul %60, %42, %cst_19 {dimension_numbers = #tpu.dot_dimension_numbers<[2], [1], [1], [2], [0, 0, 0, 1, 1, 2], [0], [0]>} : vector<2x32x32xbf16>, vector<2x32x64xbf16>, vector<2x32x64xf32> -> vector<2x32x64xf32>
    %62 = arith.truncf %61 : vector<2x32x64xf32> to vector<2x32x64xbf16>
    %63 = vector.extract_strided_slice %13 {offsets = [0, 0, 128], sizes = [2, 32, 64], strides = [1, 1, 1]} : vector<2x32x576xbf16> to vector<2x32x64xbf16>
    %64 = vector.extract_strided_slice %13 {offsets = [0, 0, 320], sizes = [2, 32, 64], strides = [1, 1, 1]} : vector<2x32x576xbf16> to vector<2x32x64xbf16>
    %65 = vector.extract_strided_slice %13 {offsets = [0, 0, 512], sizes = [2, 32, 64], strides = [1, 1, 1]} : vector<2x32x576xbf16> to vector<2x32x64xbf16>
    %cst_20 = arith.constant dense<0.000000e+00> : vector<2x32x32xf32>
    %66 = tpu.matmul %63, %64, %cst_20 {dimension_numbers = #tpu.dot_dimension_numbers<[2], [2], [1], [1], [0, 0, 0, 1, 1, 1], [0], [0]>} : vector<2x32x64xbf16>, vector<2x32x64xbf16>, vector<2x32x32xf32> -> vector<2x32x32xf32>
    %cst_21 = arith.constant 1.250000e-01 : f32
    %67 = vector.broadcast %cst_21 : f32 to vector<2x32x32xf32>
    %68 = arith.mulf %66, %67 : vector<2x32x32xf32>
    %cst_22 = arith.constant -1.000000e+30 : f32
    %69 = vector.shape_cast %16 : vector<32x32xi1> to vector<1x32x32xi1>
    %70 = vector.broadcast %69 : vector<1x32x32xi1> to vector<2x32x32xi1>
    %71 = vector.broadcast %cst_22 : f32 to vector<2x32x32xf32>
    %72 = arith.select %70, %68, %71 : vector<2x32x32xi1>, vector<2x32x32xf32>
    %cst_23 = arith.constant dense<0xFF800000> : vector<2x32xf32>
    %73 = vector.multi_reduction <maximumf>, %72, %cst_23 [2] : vector<2x32x32xf32> to vector<2x32xf32>
    %74 = vector.shape_cast %73 : vector<2x32xf32> to vector<2x32x1xf32>
    %75 = vector.broadcast %74 : vector<2x32x1xf32> to vector<2x32x32xf32>
    %76 = arith.subf %72, %75 : vector<2x32x32xf32>
    %77 = math.exp %76 : vector<2x32x32xf32>
    %cst_24 = arith.constant dense<0.000000e+00> : vector<2x32xf32>
    %78 = vector.multi_reduction <add>, %77, %cst_24 [2] : vector<2x32x32xf32> to vector<2x32xf32>
    %79 = vector.shape_cast %78 : vector<2x32xf32> to vector<2x32x1xf32>
    %80 = tpu.reciprocal %79 {approx = true} : vector<2x32x1xf32> -> vector<2x32x1xf32>
    %81 = vector.broadcast %80 : vector<2x32x1xf32> to vector<2x32x32xf32>
    %82 = arith.mulf %77, %81 : vector<2x32x32xf32>
    %83 = arith.truncf %82 : vector<2x32x32xf32> to vector<2x32x32xbf16>
    %cst_25 = arith.constant dense<0.000000e+00> : vector<2x32x64xf32>
    %84 = tpu.matmul %83, %65, %cst_25 {dimension_numbers = #tpu.dot_dimension_numbers<[2], [1], [1], [2], [0, 0, 0, 1, 1, 2], [0], [0]>} : vector<2x32x32xbf16>, vector<2x32x64xbf16>, vector<2x32x64xf32> -> vector<2x32x64xf32>
    %85 = arith.truncf %84 : vector<2x32x64xf32> to vector<2x32x64xbf16>
    %86 = tpu.concatenate %39, %62, %85 in 2 : vector<2x32x64xbf16>, vector<2x32x64xbf16>, vector<2x32x64xbf16> -> vector<2x32x192xbf16>
    %87 = vector.shape_cast %86 : vector<2x32x192xbf16> to vector<64x192xbf16>
    %c0_26 = arith.constant 0 : index
    %c0_27 = arith.constant 0 : index
    %c0_28 = arith.constant 0 : index
    %88 = vector.load %arg6[%c0_26, %c0_27, %c0_28] : memref<1x192x192xbf16, #tpu.memory_space<vmem>>, vector<1x192x192xbf16>
    %89 = vector.shape_cast %88 : vector<1x192x192xbf16> to vector<192x192xbf16>
    %cst_29 = arith.constant dense<0.000000e+00> : vector<64x192xf32>
    %90 = tpu.matmul %87, %89, %cst_29 {dimension_numbers = #tpu.dot_dimension_numbers<[1], [0], [0], [1], [0, 0, 1, 1], [], []>} : vector<64x192xbf16>, vector<192x192xbf16>, vector<64x192xf32> -> vector<64x192xf32>
    %c0_30 = arith.constant 0 : index
    %c0_31 = arith.constant 0 : index
    %c0_32 = arith.constant 0 : index
    %91 = vector.load %arg7[%c0_30, %c0_31, %c0_32] : memref<1x1x192xf32, #tpu.memory_space<vmem>>, vector<1x1x192xf32>
    %92 = vector.shape_cast %91 : vector<1x1x192xf32> to vector<1x192xf32>
    %93 = vector.broadcast %92 : vector<1x192xf32> to vector<64x192xf32>
    %94 = arith.addf %90, %93 : vector<64x192xf32>
    %95 = arith.addf %3, %94 : vector<64x192xf32>
    %c0_33 = arith.constant 0 : index
    %c0_34 = arith.constant 0 : index
    %c0_35 = arith.constant 0 : index
    %96 = vector.load %arg8[%c0_33, %c0_34, %c0_35] : memref<1x1x192xf32, #tpu.memory_space<vmem>>, vector<1x1x192xf32>
    %97 = vector.shape_cast %96 : vector<1x1x192xf32> to vector<1x192xf32>
    %c0_36 = arith.constant 0 : index
    %c0_37 = arith.constant 0 : index
    %c0_38 = arith.constant 0 : index
    %98 = vector.load %arg9[%c0_36, %c0_37, %c0_38] : memref<1x1x192xf32, #tpu.memory_space<vmem>>, vector<1x1x192xf32>
    %99 = vector.shape_cast %98 : vector<1x1x192xf32> to vector<1x192xf32>
    %cst_39 = arith.constant dense<0.000000e+00> : vector<64xf32>
    %100 = vector.multi_reduction <add>, %95, %cst_39 [1] : vector<64x192xf32> to vector<64xf32>
    %101 = vector.shape_cast %100 : vector<64xf32> to vector<64x1xf32>
    %cst_40 = arith.constant 1.920000e+02 : f32
    %102 = vector.broadcast %cst_40 : f32 to vector<64x1xf32>
    %103 = arith.divf %101, %102 : vector<64x1xf32>
    %104 = vector.broadcast %103 : vector<64x1xf32> to vector<64x192xf32>
    %105 = arith.subf %95, %104 : vector<64x192xf32>
    %106 = arith.mulf %105, %105 : vector<64x192xf32>
    %cst_41 = arith.constant dense<0.000000e+00> : vector<64xf32>
    %107 = vector.multi_reduction <add>, %106, %cst_41 [1] : vector<64x192xf32> to vector<64xf32>
    %108 = vector.shape_cast %107 : vector<64xf32> to vector<64x1xf32>
    %cst_42 = arith.constant 1.920000e+02 : f32
    %109 = vector.broadcast %cst_42 : f32 to vector<64x1xf32>
    %110 = arith.divf %108, %109 : vector<64x1xf32>
    %cst_43 = arith.constant 9.99999974E-6 : f32
    %111 = vector.broadcast %cst_43 : f32 to vector<64x1xf32>
    %112 = arith.addf %110, %111 : vector<64x1xf32>
    %113 = math.rsqrt %112 : vector<64x1xf32>
    %114 = vector.broadcast %113 : vector<64x1xf32> to vector<64x192xf32>
    %115 = arith.mulf %105, %114 : vector<64x192xf32>
    %116 = vector.broadcast %97 : vector<1x192xf32> to vector<64x192xf32>
    %117 = arith.mulf %115, %116 : vector<64x192xf32>
    %118 = vector.broadcast %99 : vector<1x192xf32> to vector<64x192xf32>
    %119 = arith.addf %117, %118 : vector<64x192xf32>
    %c0_44 = arith.constant 0 : index
    %c0_45 = arith.constant 0 : index
    %c0_46 = arith.constant 0 : index
    %120 = vector.load %arg10[%c0_44, %c0_45, %c0_46] : memref<1x192x768xbf16, #tpu.memory_space<vmem>>, vector<1x192x768xbf16>
    %121 = vector.shape_cast %120 : vector<1x192x768xbf16> to vector<192x768xbf16>
    %122 = arith.truncf %119 : vector<64x192xf32> to vector<64x192xbf16>
    %cst_47 = arith.constant dense<0.000000e+00> : vector<64x768xf32>
    %123 = tpu.matmul %122, %121, %cst_47 {dimension_numbers = #tpu.dot_dimension_numbers<[1], [0], [0], [1], [0, 0, 1, 1], [], []>} : vector<64x192xbf16>, vector<192x768xbf16>, vector<64x768xf32> -> vector<64x768xf32>
    %c0_48 = arith.constant 0 : index
    %c0_49 = arith.constant 0 : index
    %c0_50 = arith.constant 0 : index
    %124 = vector.load %arg11[%c0_48, %c0_49, %c0_50] : memref<1x1x768xf32, #tpu.memory_space<vmem>>, vector<1x1x768xf32>
    %125 = vector.shape_cast %124 : vector<1x1x768xf32> to vector<1x768xf32>
    %126 = vector.broadcast %125 : vector<1x768xf32> to vector<64x768xf32>
    %127 = arith.addf %123, %126 : vector<64x768xf32>
    %cst_51 = arith.constant 5.000000e-01 : f32
    %128 = vector.broadcast %cst_51 : f32 to vector<64x768xf32>
    %129 = arith.mulf %128, %127 : vector<64x768xf32>
    %cst_52 = arith.constant 4.471500e-02 : f32
    %130 = vector.broadcast %cst_52 : f32 to vector<64x768xf32>
    %131 = arith.mulf %130, %127 : vector<64x768xf32>
    %132 = arith.mulf %131, %127 : vector<64x768xf32>
    %133 = arith.mulf %132, %127 : vector<64x768xf32>
    %134 = arith.addf %127, %133 : vector<64x768xf32>
    %cst_53 = arith.constant 0.797884583 : f32
    %135 = vector.broadcast %cst_53 : f32 to vector<64x768xf32>
    %136 = arith.mulf %135, %134 : vector<64x768xf32>
    %137 = math.tanh %136 : vector<64x768xf32>
    %cst_54 = arith.constant 1.000000e+00 : f32
    %138 = vector.broadcast %cst_54 : f32 to vector<64x768xf32>
    %139 = arith.addf %138, %137 : vector<64x768xf32>
    %140 = arith.mulf %129, %139 : vector<64x768xf32>
    %141 = arith.truncf %140 : vector<64x768xf32> to vector<64x768xbf16>
    %c0_55 = arith.constant 0 : index
    %c0_56 = arith.constant 0 : index
    %c0_57 = arith.constant 0 : index
    %142 = vector.load %arg12[%c0_55, %c0_56, %c0_57] : memref<1x768x192xbf16, #tpu.memory_space<vmem>>, vector<1x768x192xbf16>
    %143 = vector.shape_cast %142 : vector<1x768x192xbf16> to vector<768x192xbf16>
    %cst_58 = arith.constant dense<0.000000e+00> : vector<64x192xf32>
    %144 = tpu.matmul %141, %143, %cst_58 {dimension_numbers = #tpu.dot_dimension_numbers<[1], [0], [0], [1], [0, 0, 1, 1], [], []>} : vector<64x768xbf16>, vector<768x192xbf16>, vector<64x192xf32> -> vector<64x192xf32>
    %c0_59 = arith.constant 0 : index
    %c0_60 = arith.constant 0 : index
    %c0_61 = arith.constant 0 : index
    %145 = vector.load %arg13[%c0_59, %c0_60, %c0_61] : memref<1x1x192xf32, #tpu.memory_space<vmem>>, vector<1x1x192xf32>
    %146 = vector.shape_cast %145 : vector<1x1x192xf32> to vector<1x192xf32>
    %147 = vector.broadcast %146 : vector<1x192xf32> to vector<64x192xf32>
    %148 = arith.addf %144, %147 : vector<64x192xf32>
    %149 = arith.addf %119, %148 : vector<64x192xf32>
    %c0_62 = arith.constant 0 : index
    %c0_63 = arith.constant 0 : index
    %c0_64 = arith.constant 0 : index
    %150 = vector.load %arg14[%c0_62, %c0_63, %c0_64] : memref<1x1x192xf32, #tpu.memory_space<vmem>>, vector<1x1x192xf32>
    %151 = vector.shape_cast %150 : vector<1x1x192xf32> to vector<1x192xf32>
    %c0_65 = arith.constant 0 : index
    %c0_66 = arith.constant 0 : index
    %c0_67 = arith.constant 0 : index
    %152 = vector.load %arg15[%c0_65, %c0_66, %c0_67] : memref<1x1x192xf32, #tpu.memory_space<vmem>>, vector<1x1x192xf32>
    %153 = vector.shape_cast %152 : vector<1x1x192xf32> to vector<1x192xf32>
    %cst_68 = arith.constant dense<0.000000e+00> : vector<64xf32>
    %154 = vector.multi_reduction <add>, %149, %cst_68 [1] : vector<64x192xf32> to vector<64xf32>
    %155 = vector.shape_cast %154 : vector<64xf32> to vector<64x1xf32>
    %cst_69 = arith.constant 1.920000e+02 : f32
    %156 = vector.broadcast %cst_69 : f32 to vector<64x1xf32>
    %157 = arith.divf %155, %156 : vector<64x1xf32>
    %158 = vector.broadcast %157 : vector<64x1xf32> to vector<64x192xf32>
    %159 = arith.subf %149, %158 : vector<64x192xf32>
    %160 = arith.mulf %159, %159 : vector<64x192xf32>
    %cst_70 = arith.constant dense<0.000000e+00> : vector<64xf32>
    %161 = vector.multi_reduction <add>, %160, %cst_70 [1] : vector<64x192xf32> to vector<64xf32>
    %162 = vector.shape_cast %161 : vector<64xf32> to vector<64x1xf32>
    %cst_71 = arith.constant 1.920000e+02 : f32
    %163 = vector.broadcast %cst_71 : f32 to vector<64x1xf32>
    %164 = arith.divf %162, %163 : vector<64x1xf32>
    %cst_72 = arith.constant 9.99999974E-6 : f32
    %165 = vector.broadcast %cst_72 : f32 to vector<64x1xf32>
    %166 = arith.addf %164, %165 : vector<64x1xf32>
    %167 = math.rsqrt %166 : vector<64x1xf32>
    %168 = vector.broadcast %167 : vector<64x1xf32> to vector<64x192xf32>
    %169 = arith.mulf %159, %168 : vector<64x192xf32>
    %170 = vector.broadcast %151 : vector<1x192xf32> to vector<64x192xf32>
    %171 = arith.mulf %169, %170 : vector<64x192xf32>
    %172 = vector.broadcast %153 : vector<1x192xf32> to vector<64x192xf32>
    %173 = arith.addf %171, %172 : vector<64x192xf32>
    %c0_73 = arith.constant 0 : index
    %c0_74 = arith.constant 0 : index
    %174 = vector.load %arg19[%c0_73, %c0_74] : memref<64x192xf32, #tpu.memory_space<vmem>>, vector<64x192xf32>
    tpu.vector_store %arg19[%c0_73, %c0_74], %173 {strides = array<i32>} : memref<64x192xf32, #tpu.memory_space<vmem>>, vector<64x192xf32>,
    %c3_i32 = arith.constant 3 : i32
    %175 = arith.cmpi eq, %arg0, %c3_i32 : i32
    %176 = arith.extui %175 : i1 to i32
    %c0_i32_75 = arith.constant 0 : i32
    %177 = arith.cmpi ne, %176, %c0_i32_75 : i32
    scf.if %177 {
      %c0_76 = arith.constant 0 : index
      %c0_77 = arith.constant 0 : index
      %178 = vector.load %arg16[%c0_76, %c0_77] : memref<192x128xbf16, #tpu.memory_space<vmem>>, vector<192x128xbf16>
      %179 = arith.truncf %173 : vector<64x192xf32> to vector<64x192xbf16>
      %cst_78 = arith.constant dense<0.000000e+00> : vector<64x128xf32>
      %180 = tpu.matmul %179, %178, %cst_78 {dimension_numbers = #tpu.dot_dimension_numbers<[1], [0], [0], [1], [0, 0, 1, 1], [], []>} : vector<64x192xbf16>, vector<192x128xbf16>, vector<64x128xf32> -> vector<64x128xf32>
      %c0_79 = arith.constant 0 : index
      %c0_80 = arith.constant 0 : index
      %181 = vector.load %arg17[%c0_79, %c0_80] : memref<1x128xf32, #tpu.memory_space<vmem>>, vector<1x128xf32>
      %182 = vector.broadcast %181 : vector<1x128xf32> to vector<64x128xf32>
      %183 = arith.addf %180, %182 : vector<64x128xf32>
      %c0_81 = arith.constant 0 : index
      %c0_82 = arith.constant 0 : index
      %184 = vector.load %arg18[%c0_81, %c0_82] : memref<64x128xf32, #tpu.memory_space<vmem>>, vector<64x128xf32>
      tpu.vector_store %arg18[%c0_81, %c0_82], %183 {strides = array<i32>} : memref<64x128xf32, #tpu.memory_space<vmem>>, vector<64x128xf32>,
    } else {
    }
    return
  }
  func.func @transform_0(%arg0: i32) -> (i32, i32) {
    %c0_i32 = arith.constant 0 : i32
    %c0_i32_0 = arith.constant 0 : i32
    %c0_i32_1 = arith.constant 0 : i32
    return %c0_i32, %c0_i32_0 : i32, i32
  }
  func.func @transform_1(%arg0: i32) -> (i32, i32) {
    %c0_i32 = arith.constant 0 : i32
    %c0_i32_0 = arith.constant 0 : i32
    %c0_i32_1 = arith.constant 0 : i32
    return %c0_i32, %c0_i32_0 : i32, i32
  }
  func.func @transform_2(%arg0: i32) -> (i32, i32) {
    %c0_i32 = arith.constant 0 : i32
    %c0_i32_0 = arith.constant 0 : i32
    %c0_i32_1 = arith.constant 0 : i32
    return %c0_i32, %c0_i32_0 : i32, i32
  }
  func.func @transform_3(%arg0: i32) -> (i32, i32, i32) {
    %c0_i32 = arith.constant 0 : i32
    %c0_i32_0 = arith.constant 0 : i32
    %c0_i32_1 = arith.constant 0 : i32
    return %arg0, %c0_i32, %c0_i32_0 : i32, i32, i32
  }
  func.func @transform_4(%arg0: i32) -> (i32, i32, i32) {
    %c0_i32 = arith.constant 0 : i32
    %c0_i32_0 = arith.constant 0 : i32
    %c0_i32_1 = arith.constant 0 : i32
    return %arg0, %c0_i32, %c0_i32_0 : i32, i32, i32
  }
  func.func @transform_5(%arg0: i32) -> (i32, i32, i32) {
    %c0_i32 = arith.constant 0 : i32
    %c0_i32_0 = arith.constant 0 : i32
    %c0_i32_1 = arith.constant 0 : i32
    return %arg0, %c0_i32, %c0_i32_0 : i32, i32, i32
  }
  func.func @transform_6(%arg0: i32) -> (i32, i32, i32) {
    %c0_i32 = arith.constant 0 : i32
    %c0_i32_0 = arith.constant 0 : i32
    %c0_i32_1 = arith.constant 0 : i32
    return %arg0, %c0_i32, %c0_i32_0 : i32, i32, i32
  }
  func.func @transform_7(%arg0: i32) -> (i32, i32, i32) {
    %c0_i32 = arith.constant 0 : i32
    %c0_i32_0 = arith.constant 0 : i32
    %c0_i32_1 = arith.constant 0 : i32
    return %arg0, %c0_i32, %c0_i32_0 : i32, i32, i32
  }
  func.func @transform_8(%arg0: i32) -> (i32, i32, i32) {
    %c0_i32 = arith.constant 0 : i32
    %c0_i32_0 = arith.constant 0 : i32
    %c0_i32_1 = arith.constant 0 : i32
    return %arg0, %c0_i32, %c0_i32_0 : i32, i32, i32
  }
  func.func @transform_9(%arg0: i32) -> (i32, i32, i32) {
    %c0_i32 = arith.constant 0 : i32
    %c0_i32_0 = arith.constant 0 : i32
    %c0_i32_1 = arith.constant 0 : i32
    return %arg0, %c0_i32, %c0_i32_0 : i32, i32, i32
  }
  func.func @transform_10(%arg0: i32) -> (i32, i32, i32) {
    %c0_i32 = arith.constant 0 : i32
    %c0_i32_0 = arith.constant 0 : i32
    %c0_i32_1 = arith.constant 0 : i32
    return %arg0, %c0_i32, %c0_i32_0 : i32, i32, i32
  }
  func.func @transform_11(%arg0: i32) -> (i32, i32, i32) {
    %c0_i32 = arith.constant 0 : i32
    %c0_i32_0 = arith.constant 0 : i32
    %c0_i32_1 = arith.constant 0 : i32
    return %arg0, %c0_i32, %c0_i32_0 : i32, i32, i32
  }
  func.func @transform_12(%arg0: i32) -> (i32, i32, i32) {
    %c0_i32 = arith.constant 0 : i32
    %c0_i32_0 = arith.constant 0 : i32
    %c0_i32_1 = arith.constant 0 : i32
    return %arg0, %c0_i32, %c0_i32_0 : i32, i32, i32
  }
  func.func @transform_13(%arg0: i32) -> (i32, i32, i32) {
    %c0_i32 = arith.constant 0 : i32
    %c0_i32_0 = arith.constant 0 : i32
    %c0_i32_1 = arith.constant 0 : i32
    return %arg0, %c0_i32, %c0_i32_0 : i32, i32, i32
  }
  func.func @transform_14(%arg0: i32) -> (i32, i32, i32) {
    %c0_i32 = arith.constant 0 : i32
    %c0_i32_0 = arith.constant 0 : i32
    %c0_i32_1 = arith.constant 0 : i32
    return %arg0, %c0_i32, %c0_i32_0 : i32, i32, i32
  }
  func.func @transform_15(%arg0: i32) -> (i32, i32) {
    %c0_i32 = arith.constant 0 : i32
    %c0_i32_0 = arith.constant 0 : i32
    %c0_i32_1 = arith.constant 0 : i32
    return %c0_i32, %c0_i32_0 : i32, i32
  }
  func.func @transform_16(%arg0: i32) -> (i32, i32) {
    %c0_i32 = arith.constant 0 : i32
    %c0_i32_0 = arith.constant 0 : i32
    %c0_i32_1 = arith.constant 0 : i32
    return %c0_i32, %c0_i32_0 : i32, i32
  }
  func.func @transform_17(%arg0: i32) -> (i32, i32) {
    %c0_i32 = arith.constant 0 : i32
    %c0_i32_0 = arith.constant 0 : i32
    %c0_i32_1 = arith.constant 0 : i32
    return %c0_i32, %c0_i32_0 : i32, i32
  }
}

</mosaic_0001>

<bundles_post_ra>
// kernel: tinyvit_forward.1
= control target key start
LH: loop header
LB: loop body
LE: loop exit
PB: predicated region body
PF: predicated region fallthrough
CT: control target
= control target key end

     0   :  { %s7940_s24 = smov 0   ;;  %s10762_s0 = inlined_call_operand.vmem [shape: f32[64,64], index: 0, kind: input, shape index: {}]   ;;  %s10763_s1 = inlined_call_operand.vmem [shape: bf16[64,192], index: 1, kind: input, shape index: {}]   ;;  %s10764_s2 = inlined_call_operand.vmem [shape: f32[64,192], index: 2, kind: input, shape index: {}]   ;;  %s10765_s3 = inlined_call_operand.vmem [shape: bf16[4,192,576], index: 3, kind: input, shape index: {}]   ;;  %s10766_s4 = inlined_call_operand.vmem [shape: f32[4,1,576], index: 4, kind: input, shape index: {}]   ;;  %s10767_s5 = inlined_call_operand.vmem [shape: bf16[4,192,192], index: 5, kind: input, shape index: {}]   ;;  %s10768_s6 = inlined_call_operand.vmem [shape: f32[4,1,192], index: 6, kind: input, shape index: {}]   ;;  %s10769_s7 = inlined_call_operand.vmem [shape: f32[4,1,192], index: 7, kind: input, shape index: {}]   ;;  %s10770_s8 = inlined_call_operand.vmem [shape: f32[4,1,192], index: 8, kind: input, shape index: {}]   ;;  %s10771_s9 = inlined_call_operand.vmem [shape: bf16[4,192,768], index: 9, kind: input, shape index: {}]   ;;  %s10772_s10 = inlined_call_operand.vmem [shape: f32[4,1,768], index: 10, kind: input, shape index: {}]   ;;  %s10773_s11 = inlined_call_operand.vmem [shape: bf16[4,768,192], index: 11, kind: input, shape index: {}]   ;;  %s10774_s12 = inlined_call_operand.vmem [shape: f32[4,1,192], index: 12, kind: input, shape index: {}]   ;;  %s10775_s13 = inlined_call_operand.vmem [shape: f32[4,1,192], index: 13, kind: input, shape index: {}]   ;;  %s10776_s14 = inlined_call_operand.vmem [shape: f32[4,1,192], index: 14, kind: input, shape index: {}]   ;;  %s10777_s15 = inlined_call_operand.vmem [shape: bf16[192,128], index: 15, kind: input, shape index: {}]   ;;  %s10778_s16 = inlined_call_operand.vmem [shape: f32[1,128], index: 16, kind: input, shape index: {}]   ;;  %s10779_s17 = inlined_call_operand.vmem [shape: f32[64,128], index: 17, kind: output, shape index: {}]  }
   0x1   :  { %10793 = sst [smem:[#allocation10_spill]] %s10762_s0 }
   0x2   :  { %10794 = sst [smem:[#allocation11_spill]] %s10763_s1 }
   0x3   :  { %10795 = sst [smem:[#allocation12_spill]] %s10764_s2 }
   0x4   :  { %10796 = sst [smem:[#allocation13_spill]] %s10765_s3 }
   0x5   :  { %10797 = sst [smem:[#allocation14_spill]] %s10766_s4 }
   0x6   :  { %10798 = sst [smem:[#allocation15_spill]] %s10767_s5 }
   0x7   :  { %10799 = sst [smem:[#allocation16_spill]] %s10777_s15 }
   0x8   :  { %10800 = sst [smem:[#allocation17_spill]] %s10778_s16 }
   0x9   :  { %10801 = sst [smem:[#allocation18_spill]] %s10779_s17 }
   0xa LB: > { %10802 = sst [smem:[#allocation3_spill]] %s7846_s24  ;;  %s7946_s25 = sadd.s32 4294967295, %s7846_s24   ;;  %s7846_s24 = sphi %s7940_s24, %s27_s24  }
   0xb   : > { %10803 = sst [smem:[#allocation4_spill]] %s7946_s25  ;;  %p6097_p0 = scmp.ge.s32.totalorder %s7846_s24, 1 }
   0xc   : > { %p584_p1 = scmp.lt.s32.totalorder %s7846_s24, 5 }
   0xe   : > { %p585_p2 = pnand %p6097_p0, %p584_p1 }
  0x10   : > { %588 = sbr.rel (%p585_p2) target bundleno = 2732 (0xaac), region = 88 }
  0x15   : > { %p678_p3 = scmp.lt.s32.totalorder %s7946_s25, 3  ;;  %s10804_s3 = sld [smem:[#allocation13_spill]] }
  0x16   : > { %s10805_s4 = sld [smem:[#allocation14_spill]] }
  0x17   : > { %s679_s26 = scalar_select %p678_p3, %s7946_s25, 3 }
  0x18   : > { %s10806_s5 = sld [smem:[#allocation15_spill]] }
  0x19   : > { %s7580_s27 = smul.u32 480, %s679_s26  ;;  %s7952_s28 = sshll.u32 %s679_s26, 1 }
  0x1a   : > { %s7581_s29 = smul.u32 5, %s679_s26  ;;  %s725_s16 = scalar_lea.vmem %s10775_s13, %s7952_s28 }
  0x1b   : > { %s7961_s20 = scalar_lea.vmem %s10804_s3, %s7580_s27  ;;  %s7582_s21 = smul.u32 192, %s679_s26 }
  0x1c   : > { %s7966_s24 = scalar_lea.vmem %s10805_s4, %s7581_s29  ;;  %s7583_s19 = smul.u32 576, %s679_s26 }
  0x1d   : > { %s7584_s29 = smul.u32 6, %s679_s26  ;;  %s729_s3 = scalar_lea.vmem %s10776_s14, %s7952_s28 }
  0x1e   : > { %s7975_s0 = scalar_lea.vmem %s10806_s5, %s7582_s21  ;;  %s7992_s2 = scalar_lea.vmem %s10771_s9, %s7583_s19 }
  0x1f   : > { %s7585_s25 = smul.u32 768, %s679_s26  ;;  %s7997_s18 = scalar_lea.vmem %s10772_s10, %s7584_s29 }
  0x20   : > { %s10807_s23 = sld [smem:[#allocation4_spill]] }
  0x21   : > { %s8006_s4 = scalar_lea.vmem %s10773_s11, %s7585_s25 }
  0x26   : > { %p6108_p4 = scmp.ne.s32.totalorder %s10807_s23, 0 }
  0x27   : > { %s10808_s26 = sld [smem:[#allocation11_spill]] (!%p6108_p4) }
  0x28   : > { %734 = sbr.rel (%p6108_p4) target bundleno = 223 (0xdf), region = 92  ;;  %s10809_s1 = sld [smem:[#allocation10_spill]] (!%p6108_p4) }
  0x29   : > { %s10810_s29 = sld [smem:[#allocation12_spill]] (!%p6108_p4) }
  0x2d   : > { %v6135_v0 = vld [vmem:[%s10808_s26 + $0x30] sm:$0xf]  ;;  %v7295_v1 = vld [vmem:[%s10808_s26 + $0x34] sm:$0xf0]  ;;  %v7294_v2 = vld [vmem:[%s10808_s26 + $0x34] sm:$0xf] }
  0x2e   : > { %v6136_v3 = vor.u32 %v7295_v1, %v6135_v0  ;;  %v6137_v4 = vld [vmem:[%s10808_s26 + $0x38] sm:$0xf0]  ;;  %v6127_v5 = vld [vmem:[%s10808_s26 + $0x20] sm:$0xf]  ;;  %v7293_v6 = vld [vmem:[%s10808_s26 + $0x24] sm:$0xf0] }
  0x2f   : > { %v6140_v7 = vor.u32 %v7294_v2, %v6137_v4  ;;  %v7292_v8 = vld [vmem:[%s10808_s26 + $0x24] sm:$0xf]  ;;  %v6129_v9 = vld [vmem:[%s10808_s26 + $0x28] sm:$0xf0]  ;;  %v6128_v10 = vor.u32 %v7293_v6, %v6127_v5  ;;  %v6119_v12 = vld [vmem:[%s10808_s26 + $0x10] sm:$0xf] }
  0x30   : > { %828 = vmatpush.bf16.msra.mxu0 %v6136_v3  ;;  %7560 = vmatpush.bf16.msra.mxu2 %v6136_v3  ;;  %v6132_v11 = vor.u32 %v7292_v8, %v6129_v9  ;;  %v7291_v13 = vld [vmem:[%s10808_s26 + $0x14] sm:$0xf0]  ;;  %v7290_v14 = vld [vmem:[%s10808_s26 + $0x14] sm:$0xf]  ;;  %v6121_v15 = vld [vmem:[%s10808_s26 + $0x18] sm:$0xf0] }
  0x31   : > { %857 = vmatpush.bf16.msra.mxu1 %v6140_v7  ;;  %7564 = vmatpush.bf16.msra.mxu3 %v6140_v7  ;;  %v6120_v16 = vor.u32 %v7291_v13, %v6119_v12  ;;  %v6124_v17 = vor.u32 %v7290_v14, %v6121_v15  ;;  %v6111_v18 = vld [vmem:[%s10808_s26] sm:$0xf]  ;;  %v7289_v19 = vld [vmem:[%s10808_s26 + $0x4] sm:$0xf0]  ;;  %v7288_v20 = vld [vmem:[%s10808_s26 + $0x4] sm:$0xf] }
  0x32   : > { %v6113_v21 = vld [vmem:[%s10808_s26 + $0x8] sm:$0xf0]  ;;  %v735_v22 = vld [vmem:[%s10809_s1] sm:$0xff]  ;;  %v6112_v23 = vor.u32 %v7289_v19, %v6111_v18  ;;  %vm811_vm0 = vcmask 523264   ;;  %v737_v30 = vld [vmem:[%s10809_s1 + $0x10] sm:$0xff] }
  0x33   : > { %v736_v24 = vld [vmem:[%s10809_s1 + $0x8] sm:$0xff]  ;;  %v739_v25 = vld [vmem:[%s10809_s1 + $0x20] sm:$0xff]  ;;  %v6116_v27 = vor.u32 %v7288_v20, %v6113_v21  ;;  %v738_v31 = vld [vmem:[%s10809_s1 + $0x18] sm:$0xff] }
  0x34   : > { %829 = vmatpush.bf16.msra.mxu0 %v6128_v10  ;;  %7561 = vmatpush.bf16.msra.mxu2 %v6128_v10  ;;  %v740_v26 = vld [vmem:[%s10809_s1 + $0x28] sm:$0xff]  ;;  %v751_v28 = vpack.c.bf16 %v736_v24, %v735_v22  ;;  %v741_v32 = vld [vmem:[%s10809_s1 + $0x30] sm:$0xff]  ;;  %v742_v33 = vld [vmem:[%s10809_s1 + $0x38] sm:$0xff]  ;;  %v752_v34 = vpack.c.bf16 %v738_v31, %v737_v30 }
  0x35   : > { %858 = vmatpush.bf16.msra.mxu1 %v6132_v11  ;;  %7565 = vmatpush.bf16.msra.mxu3 %v6132_v11  ;;  %v753_v29 = vpack.c.bf16 %v740_v26, %v739_v25  ;;  %v754_v35 = vpack.c.bf16 %v742_v33, %v741_v32  ;;  %v755_v36 = vld [vmem:[%s10810_s29] sm:$0xff]  ;;  %v756_v37 = vld [vmem:[%s10810_s29 + $0x8] sm:$0xff]  ;;  %v757_v45 = vld [vmem:[%s10810_s29 + $0x10] sm:$0xff] }
  0x36   : > { %v763_v42 = vld [vmem:[%s10810_s29 + $0x40] sm:$0xff]  ;;  %v764_v43 = vld [vmem:[%s10810_s29 + $0x48] sm:$0xff]  ;;  %v758_v48 = vld [vmem:[%s10810_s29 + $0x18] sm:$0xff] }
  0x37   : > { %v765_v54 = vld [vmem:[%s10810_s29 + $0x50] sm:$0xff]  ;;  %v766_v55 = vld [vmem:[%s10810_s29 + $0x58] sm:$0xff]  ;;  %v759_v57 = vld [vmem:[%s10810_s29 + $0x20] sm:$0xff] }
  0x38   : > { %830 = vmatpush.bf16.msra.mxu0 %v6120_v16  ;;  %7562 = vmatpush.bf16.msra.mxu2 %v6120_v16  ;;  %v760_v60 = vld [vmem:[%s10810_s29 + $0x28] sm:$0xff]  ;;  %v767_v2 = vld [vmem:[%s10810_s29 + $0x60] sm:$0xff]  ;;  %v761_v5 = vld [vmem:[%s10810_s29 + $0x30] sm:$0xff] }
  0x39   : > { %859 = vmatpush.bf16.msra.mxu1 %v6124_v17  ;;  %7566 = vmatpush.bf16.msra.mxu3 %v6124_v17  ;;  %v768_v3 = vld [vmem:[%s10810_s29 + $0x68] sm:$0xff]  ;;  %v762_v8 = vld [vmem:[%s10810_s29 + $0x38] sm:$0xff]  ;;  %v769_v14 = vld [vmem:[%s10810_s29 + $0x70] sm:$0xff] }
  0x3a   : > { %v770_v15 = vld [vmem:[%s10810_s29 + $0x78] sm:$0xff] }
  0x3c   : > { %831 = vmatpush.bf16.msra.mxu0 %v6112_v23  ;;  %7563 = vmatpush.bf16.msra.mxu2 %v6112_v23 }
  0x3d   : > { %860 = vmatpush.bf16.msra.mxu1 %v6116_v27  ;;  %7567 = vmatpush.bf16.msra.mxu3 %v6116_v27 }
  0x3f   : > { %6141 = vmatmul.msk.bf16.vlgmr.msra.gmra.mxu0 %vm811_vm0, %v751_v28  ;;  %6143 = vmatmul.msk.bf16.vlgmr.msra.gmra.mxu2 %vm811_vm0, %v753_v29 }
  0x40   : > { %6145 = vmatmul.msk.bf16.vlgmr.msra.gmra.mxu1 %vm811_vm0, %v751_v28  ;;  %6147 = vmatmul.msk.bf16.vlgmr.msra.gmra.mxu3 %vm811_vm0, %v753_v29 }
  0x4f   : > { %6142 = vmatmul.msk.bf16.gmra.mxu0 %vm811_vm0, %v752_v34  ;;  %6144 = vmatmul.msk.bf16.gmra.mxu2 %vm811_vm0, %v754_v35 }
  0x50   : > { %6146 = vmatmul.msk.bf16.gmra.mxu1 %vm811_vm0, %v752_v34  ;;  %6148 = vmatmul.msk.bf16.gmra.mxu3 %vm811_vm0, %v754_v35 }
  0xbc   : > { %v833_v38 = vpop.f32.mrf.mxu0 }
  0xbd   : > { %v834_v39 = vadd.f32 %v833_v38, %v755_v36  ;;  %v862_v40 = vpop.f32.mrf.mxu1 }
  0xbe   : > { %v863_v41 = vadd.f32 %v862_v40, %v756_v37 }
  0xbf   : > { %882 = vst [vmem:[#allocation2] sm:$0xff] %v834_v39 }
  0xc0   : > { %883 = vst.msk [vmem:[#allocation2 + $0x8] sm:$0xff] %vm811_vm0, %v863_v41 }
  0xc2   : > { %v843_v44 = vpop.f32.mrf.mxu2 }
  0xc3   : > { %v844_v46 = vadd.f32 %v843_v44, %v763_v42  ;;  %v872_v47 = vpop.f32.mrf.mxu3 }
  0xc4   : > { %v873_v49 = vadd.f32 %v872_v47, %v764_v43  ;;  %v835_v50 = vpop.f32.mrf.mxu0 }
  0xc5   : > { %890 = vst [vmem:[#allocation2 + $0x40] sm:$0xff] %v844_v46  ;;  %v836_v51 = vadd.f32 %v835_v50, %v757_v45  ;;  %v864_v52 = vpop.f32.mrf.mxu1 }
  0xc6   : > { %891 = vst.msk [vmem:[#allocation2 + $0x48] sm:$0xff] %vm811_vm0, %v873_v49  ;;  %v865_v53 = vadd.f32 %v864_v52, %v758_v48 }
  0xc7   : > { %884 = vst [vmem:[#allocation2 + $0x10] sm:$0xff] %v836_v51 }
  0xc8   : > { %885 = vst.msk [vmem:[#allocation2 + $0x18] sm:$0xff] %vm811_vm0, %v865_v53 }
  0xca   : > { %v845_v56 = vpop.f32.mrf.mxu2 }
  0xcb   : > { %v846_v58 = vadd.f32 %v845_v56, %v765_v54  ;;  %v874_v59 = vpop.f32.mrf.mxu3 }
  0xcc   : > { %v875_v61 = vadd.f32 %v874_v59, %v766_v55  ;;  %v838_v62 = vpop.f32.mrf.mxu0 }
  0xcd   : > { %892 = vst [vmem:[#allocation2 + $0x50] sm:$0xff] %v846_v58  ;;  %v839_v63 = vadd.f32 %v838_v62, %v759_v57  ;;  %v867_v0 = vpop.f32.mrf.mxu1 }
  0xce   : > { %893 = vst.msk [vmem:[#allocation2 + $0x58] sm:$0xff] %vm811_vm0, %v875_v61  ;;  %v868_v1 = vadd.f32 %v867_v0, %v760_v60 }
  0xcf   : > { %886 = vst [vmem:[#allocation2 + $0x20] sm:$0xff] %v839_v63 }
  0xd0   : > { %887 = vst.msk [vmem:[#allocation2 + $0x28] sm:$0xff] %vm811_vm0, %v868_v1 }
  0xd2   : > { %v848_v4 = vpop.f32.mrf.mxu2 }
  0xd3   : > { %v849_v6 = vadd.f32 %v848_v4, %v767_v2  ;;  %v877_v7 = vpop.f32.mrf.mxu3 }
  0xd4   : > { %v878_v9 = vadd.f32 %v877_v7, %v768_v3  ;;  %v840_v10 = vpop.f32.mrf.mxu0 }
  0xd5   : > { %894 = vst [vmem:[#allocation2 + $0x60] sm:$0xff] %v849_v6  ;;  %v841_v11 = vadd.f32 %v840_v10, %v761_v5  ;;  %v869_v12 = vpop.f32.mrf.mxu1 }
  0xd6   : > { %895 = vst.msk [vmem:[#allocation2 + $0x68] sm:$0xff] %vm811_vm0, %v878_v9  ;;  %v870_v13 = vadd.f32 %v869_v12, %v762_v8 }
  0xd7   : > { %888 = vst [vmem:[#allocation2 + $0x30] sm:$0xff] %v841_v11 }
  0xd8   : > { %889 = vst.msk [vmem:[#allocation2 + $0x38] sm:$0xff] %vm811_vm0, %v870_v13 }
  0xda   : > { %v850_v16 = vpop.f32.mrf.mxu2 }
  0xdb   : > { %v851_v17 = vadd.f32 %v850_v16, %v769_v14  ;;  %v879_v18 = vpop.f32.mrf.mxu3 }
  0xdc   : > { %v880_v19 = vadd.f32 %v879_v18, %v770_v15 }
  0xdd   : > { %896 = vst [vmem:[#allocation2 + $0x70] sm:$0xff] %v851_v17 }
  0xde   : > { %897 = vst.msk [vmem:[#allocation2 + $0x78] sm:$0xff] %vm811_vm0, %v880_v19 }
  0xdf PF: > { %v6291_v20 = vld [vmem:[%s7961_s20 + $0x118] sm:$0xf]  ;;  %v7333_v21 = vld [vmem:[%s7961_s20 + $0x128] sm:$0xf0]  ;;  %v7331_v22 = vld [vmem:[%s7961_s20 + $0x11c] sm:$0xf]  ;;  %s10811_s21 = scalar_lea.vmem %s10768_s6, %s7952_s28  ;;  %s10813_s25 = scalar_lea.vmem %s10769_s7, %s7952_s28 }
  0xe0   : > { %v6292_v23 = vor.u32 %v7333_v21, %v6291_v20  ;;  %v6293_v24 = vld [vmem:[%s7961_s20 + $0x12c] sm:$0xf0]  ;;  %v7328_v26 = vld [vmem:[%s7961_s20 + $0x100] sm:$0xf0]  ;;  %v7326_v28 = vld [vmem:[%s7961_s20 + $0xf4] sm:$0xf]  ;;  %s10814_s15 = scalar_lea.vmem %s10770_s8, %s7952_s28  ;;  %s10819_s19 = scalar_lea.vmem %s10774_s12, %s7952_s28 }
  0xe1   : > { %v6271_v25 = vld [vmem:[%s7961_s20 + $0xf0] sm:$0xf]  ;;  %v6296_v27 = vor.u32 %v7331_v22, %v6293_v24  ;;  %v6273_v29 = vld [vmem:[%s7961_s20 + $0x104] sm:$0xf0]  ;;  %v7323_v33 = vld [vmem:[%s7961_s20 + $0xd8] sm:$0xf0] }
  0xe2   : > { %1331 = vmatpush.bf16.msra.mxu0 %v6292_v23  ;;  %v6272_v30 = vor.u32 %v7328_v26, %v6271_v25  ;;  %v6251_v31 = vld [vmem:[%s7961_s20 + $0xc8] sm:$0xf]  ;;  %v6276_v32 = vor.u32 %v7326_v28, %v6273_v29  ;;  %v7351_v34 = vld [vmem:[%s7961_s20 + $0x1bc] sm:$0xf]  ;;  %v6373_v35 = vld [vmem:[%s7961_s20 + $0x1cc] sm:$0xf0] }
  0xe3   : > { %1389 = vmatpush.bf16.msra.mxu2 %v6296_v27  ;;  %v7321_v36 = vld [vmem:[%s7961_s20 + $0xcc] sm:$0xf]  ;;  %v6253_v37 = vld [vmem:[%s7961_s20 + $0xdc] sm:$0xf0]  ;;  %v6376_v38 = vor.u32 %v7351_v34, %v6373_v35  ;;  %v7346_v39 = vld [vmem:[%s7961_s20 + $0x194] sm:$0xf]  ;;  %v6252_v41 = vor.u32 %v7323_v33, %v6251_v31 }
  0xe4   : > { %v6353_v40 = vld [vmem:[%s7961_s20 + $0x1a4] sm:$0xf0]  ;;  %v6371_v43 = vld [vmem:[%s7961_s20 + $0x1b8] sm:$0xf]  ;;  %v7353_v44 = vld [vmem:[%s7961_s20 + $0x1c8] sm:$0xf0]  ;;  %v6256_v45 = vor.u32 %v7321_v36, %v6253_v37 }
  0xe5   : > { %1422 = vmatpush.bf16.msra.mxu3 %v6376_v38  ;;  %v6356_v42 = vor.u32 %v7346_v39, %v6353_v40  ;;  %v6231_v46 = vld [vmem:[%s7961_s20 + $0xa0] sm:$0xf]  ;;  %v7318_v47 = vld [vmem:[%s7961_s20 + $0xb0] sm:$0xf0]  ;;  %v6372_v48 = vor.u32 %v7353_v44, %v6371_v43  ;;  %v7341_v49 = vld [vmem:[%s7961_s20 + $0x16c] sm:$0xf] }
  0xe6   : > { %1332 = vmatpush.bf16.msra.mxu0 %v6272_v30  ;;  %v7316_v50 = vld [vmem:[%s7961_s20 + $0xa4] sm:$0xf]  ;;  %v6233_v51 = vld [vmem:[%s7961_s20 + $0xb4] sm:$0xf0]  ;;  %v6333_v52 = vld [vmem:[%s7961_s20 + $0x17c] sm:$0xf0]  ;;  %v6232_v55 = vor.u32 %v7318_v47, %v6231_v46 }
  0xe7   : > { %1390 = vmatpush.bf16.msra.mxu2 %v6276_v32  ;;  %1364 = vmatpush.bf16.msra.mxu1 %v6372_v48  ;;  %v6351_v53 = vld [vmem:[%s7961_s20 + $0x190] sm:$0xf]  ;;  %v7348_v54 = vld [vmem:[%s7961_s20 + $0x1a0] sm:$0xf0]  ;;  %v6211_v56 = vld [vmem:[%s7961_s20 + $0x78] sm:$0xf]  ;;  %v6336_v58 = vor.u32 %v7341_v49, %v6333_v52  ;;  %v6236_v60 = vor.u32 %v7316_v50, %v6233_v51 }
  0xe8   : > { %v7313_v57 = vld [vmem:[%s7961_s20 + $0x88] sm:$0xf0]  ;;  %v6352_v59 = vor.u32 %v7348_v54, %v6351_v53  ;;  %v7336_v61 = vld [vmem:[%s7961_s20 + $0x144] sm:$0xf]  ;;  %v6313_v62 = vld [vmem:[%s7961_s20 + $0x154] sm:$0xf0] }
  0xe9   : > { %1423 = vmatpush.bf16.msra.mxu3 %v6356_v42  ;;  %v6331_v63 = vld [vmem:[%s7961_s20 + $0x168] sm:$0xf]  ;;  %v7311_v0 = vld [vmem:[%s7961_s20 + $0x7c] sm:$0xf]  ;;  %v6213_v1 = vld [vmem:[%s7961_s20 + $0x8c] sm:$0xf0]  ;;  %v6212_v5 = vor.u32 %v7313_v57, %v6211_v56  ;;  %v6316_v6 = vor.u32 %v7336_v61, %v6313_v62 }
  0xea   : > { %1333 = vmatpush.bf16.msra.mxu0 %v6252_v41  ;;  %v7343_v2 = vld [vmem:[%s7961_s20 + $0x178] sm:$0xf0]  ;;  %v899_v4 = vld [vmem:[#allocation2 + $0x8] sm:$0xff]  ;;  %v6311_v8 = vld [vmem:[%s7961_s20 + $0x140] sm:$0xf]  ;;  %v6216_v10 = vor.u32 %v7311_v0, %v6213_v1  ;;  %vm1318_vm1 = vcmask 523264  }
  0xeb   : > { %1391 = vmatpush.bf16.msra.mxu2 %v6256_v45  ;;  %1365 = vmatpush.bf16.msra.mxu1 %v6352_v59  ;;  %v6332_v3 = vor.u32 %v7343_v2, %v6331_v63  ;;  %v901_v7 = vld [vmem:[#allocation2 + $0x18] sm:$0xff]  ;;  %v7338_v9 = vld [vmem:[%s7961_s20 + $0x150] sm:$0xf0]  ;;  %v6191_v11 = vld [vmem:[%s7961_s20 + $0x50] sm:$0xf]  ;;  %vm1784_vm3 = vcmask 261120  }
  0xec   : > { %v7308_v12 = vld [vmem:[%s7961_s20 + $0x60] sm:$0xf0]  ;;  %v7306_v13 = vld [vmem:[%s7961_s20 + $0x54] sm:$0xf]  ;;  %v6193_v14 = vld [vmem:[%s7961_s20 + $0x64] sm:$0xf0]  ;;  %v8185_v15 = vpack.c.bf16 %v901_v7, %v899_v4  ;;  %v6312_v16 = vor.u32 %v7338_v9, %v6311_v8 }
  0xed   : > { %1424 = vmatpush.bf16.msra.mxu3 %v6336_v58  ;;  %v6192_v17 = vor.u32 %v7308_v12, %v6191_v11  ;;  %v6196_v18 = vor.u32 %v7306_v13, %v6193_v14  ;;  %v6171_v19 = vld [vmem:[%s7961_s20 + $0x28] sm:$0xf]  ;;  %v7303_v20 = vld [vmem:[%s7961_s20 + $0x38] sm:$0xf0]  ;;  %v7301_v21 = vld [vmem:[%s7961_s20 + $0x2c] sm:$0xf] }
  0xee   : > { %1334 = vmatpush.bf16.msra.mxu0 %v6232_v55  ;;  %v6173_v22 = vld [vmem:[%s7961_s20 + $0x3c] sm:$0xf0]  ;;  %v6172_v23 = vor.u32 %v7303_v20, %v6171_v19  ;;  %v7298_v26 = vld [vmem:[%s7961_s20 + $0x10] sm:$0xf0]  ;;  %v7296_v27 = vld [vmem:[%s7961_s20 + $0x4] sm:$0xf] }
  0xef   : > { %1392 = vmatpush.bf16.msra.mxu2 %v6236_v60  ;;  %1366 = vmatpush.bf16.msra.mxu1 %v6332_v3  ;;  %v6176_v24 = vor.u32 %v7301_v21, %v6173_v22  ;;  %v6151_v25 = vld [vmem:[%s7961_s20] sm:$0xf]  ;;  %v6153_v28 = vld [vmem:[%s7961_s20 + $0x14] sm:$0xf0]  ;;  %v900_v31 = vld [vmem:[#allocation2 + $0x10] sm:$0xff]  ;;  %s10825_s28 = sld [smem:[#allocation4_spill]] }
  0xf0   : > { %v6152_v29 = vor.u32 %v7298_v26, %v6151_v25  ;;  %v898_v30 = vld [vmem:[#allocation2] sm:$0xff]  ;;  %v6156_v32 = vor.u32 %v7296_v27, %v6153_v28  ;;  %v903_v34 = vld [vmem:[#allocation2 + $0x28] sm:$0xff]  ;;  %v905_v35 = vld [vmem:[#allocation2 + $0x38] sm:$0xff] }
  0xf1   : > { %1425 = vmatpush.bf16.msra.mxu3 %v6316_v6  ;;  %v8199_v33 = vpack.c.bf16 %v900_v31, %v898_v30  ;;  %v8202_v36 = vpack.c.bf16 %v905_v35, %v903_v34  ;;  %v6299_v37 = vld [vmem:[%s7961_s20 + $0x120] sm:$0xf]  ;;  %v7334_v38 = vld [vmem:[%s7961_s20 + $0x130] sm:$0xf0]  ;;  %v7332_v39 = vld [vmem:[%s7961_s20 + $0x124] sm:$0xf] }
  0xf2   : > { %1335 = vmatpush.bf16.msra.mxu0 %v6212_v5  ;;  %v6300_v40 = vor.u32 %v7334_v38, %v6299_v37  ;;  %v6301_v41 = vld [vmem:[%s7961_s20 + $0x134] sm:$0xf0]  ;;  %v7329_v43 = vld [vmem:[%s7961_s20 + $0x108] sm:$0xf0]  ;;  %v7327_v45 = vld [vmem:[%s7961_s20 + $0xfc] sm:$0xf] }
  0xf3   : > { %1393 = vmatpush.bf16.msra.mxu2 %v6216_v10  ;;  %1367 = vmatpush.bf16.msra.mxu1 %v6312_v16  ;;  %v6279_v42 = vld [vmem:[%s7961_s20 + $0xf8] sm:$0xf]  ;;  %v6304_v44 = vor.u32 %v7332_v39, %v6301_v41  ;;  %v6281_v46 = vld [vmem:[%s7961_s20 + $0x10c] sm:$0xf0]  ;;  %v7324_v50 = vld [vmem:[%s7961_s20 + $0xe0] sm:$0xf0] }
  0xf4   : > { %6393 = vmatmul.msk.bf16.vlgmr.msra.gmra.mxu3 %vm1318_vm1, %v8185_v15  ;;  %v6280_v47 = vor.u32 %v7329_v43, %v6279_v42  ;;  %v6284_v48 = vor.u32 %v7327_v45, %v6281_v46  ;;  %v6259_v49 = vld [vmem:[%s7961_s20 + $0xd0] sm:$0xf]  ;;  %v7322_v51 = vld [vmem:[%s7961_s20 + $0xd4] sm:$0xf]  ;;  %v6261_v52 = vld [vmem:[%s7961_s20 + $0xe4] sm:$0xf0] }
  0xf5   : > { %v6260_v53 = vor.u32 %v7324_v50, %v6259_v49  ;;  %v902_v54 = vld [vmem:[#allocation2 + $0x20] sm:$0xff]  ;;  %v904_v55 = vld [vmem:[#allocation2 + $0x30] sm:$0xff]  ;;  %v6264_v56 = vor.u32 %v7322_v51, %v6261_v52  ;;  %v907_v58 = vld [vmem:[#allocation2 + $0x48] sm:$0xff]  ;;  %p7233_p5 = scmp.ne.s32.totalorder %s10825_s28, 3 }
  0xf6   : > { %1336 = vmatpush.bf16.msra.mxu0 %v6192_v17  ;;  %6389 = vmatmul.msk.bf16.vlgmr.msra.gmra.mxu1 %vm1318_vm1, %v8185_v15  ;;  %v8221_v57 = vpack.c.bf16 %v904_v55, %v902_v54  ;;  %v909_v59 = vld [vmem:[#allocation2 + $0x58] sm:$0xff]  ;;  %v6239_v60 = vld [vmem:[%s7961_s20 + $0xa8] sm:$0xf]  ;;  %v6379_v62 = vld [vmem:[%s7961_s20 + $0x1c0] sm:$0xf]  ;;  %s10827_s23 = sld [smem:[#allocation17_spill]] (!%p7233_p5) }
  0xf7   : > { %1394 = vmatpush.bf16.msra.mxu2 %v6196_v18  ;;  %1447 = vmatpush.bf16.msrb.mxu1 %v6300_v40  ;;  %v7319_v61 = vld [vmem:[%s7961_s20 + $0xb8] sm:$0xf0]  ;;  %v8227_v63 = vpack.c.bf16 %v909_v59, %v907_v58  ;;  %v7354_v1 = vld [vmem:[%s7961_s20 + $0x1d0] sm:$0xf0]  ;;  %v7317_v2 = vld [vmem:[%s7961_s20 + $0xac] sm:$0xf] }
  0xf8   : > { %v6240_v0 = vor.u32 %v7319_v61, %v6239_v60  ;;  %v6241_v3 = vld [vmem:[%s7961_s20 + $0xbc] sm:$0xf0]  ;;  %v6380_v4 = vor.u32 %v7354_v1, %v6379_v62  ;;  %v7352_v6 = vld [vmem:[%s7961_s20 + $0x1c4] sm:$0xf]  ;;  %v6381_v7 = vld [vmem:[%s7961_s20 + $0x1d4] sm:$0xf0] }
  0xf9   : > { %v6244_v5 = vor.u32 %v7317_v2, %v6241_v3  ;;  %v6219_v8 = vld [vmem:[%s7961_s20 + $0x80] sm:$0xf]  ;;  %v6384_v9 = vor.u32 %v7352_v6, %v6381_v7  ;;  %v7314_v10 = vld [vmem:[%s7961_s20 + $0x90] sm:$0xf0]  ;;  %v6359_v11 = vld [vmem:[%s7961_s20 + $0x198] sm:$0xf] }
  0xfa   : > { %1337 = vmatpush.bf16.msra.mxu0 %v6172_v23  ;;  %v7349_v12 = vld [vmem:[%s7961_s20 + $0x1a8] sm:$0xf0]  ;;  %1480 = vmatpush.bf16.msrb.mxu3 %v6380_v4  ;;  %v6220_v13 = vor.u32 %v7314_v10, %v6219_v8  ;;  %v7312_v16 = vld [vmem:[%s7961_s20 + $0x84] sm:$0xf]  ;;  %v6221_v17 = vld [vmem:[%s7961_s20 + $0x94] sm:$0xf0] }
  0xfb   : > { %1395 = vmatpush.bf16.msra.mxu2 %v6176_v24  ;;  %1448 = vmatpush.bf16.msrb.mxu1 %v6280_v47  ;;  %v6360_v14 = vor.u32 %v7349_v12, %v6359_v11  ;;  %v7347_v18 = vld [vmem:[%s7961_s20 + $0x19c] sm:$0xf]  ;;  %v6224_v19 = vor.u32 %v7312_v16, %v6221_v17  ;;  %v6361_v20 = vld [vmem:[%s7961_s20 + $0x1ac] sm:$0xf0]  ;;  %v6199_v21 = vld [vmem:[%s7961_s20 + $0x58] sm:$0xf] }
  0xfc   : > { %v7309_v22 = vld [vmem:[%s7961_s20 + $0x68] sm:$0xf0]  ;;  %v6364_v23 = vor.u32 %v7347_v18, %v6361_v20  ;;  %v6339_v24 = vld [vmem:[%s7961_s20 + $0x170] sm:$0xf]  ;;  %v7344_v25 = vld [vmem:[%s7961_s20 + $0x180] sm:$0xf0] }
  0xfd   : > { %v7307_v26 = vld [vmem:[%s7961_s20 + $0x5c] sm:$0xf]  ;;  %v6200_v27 = vor.u32 %v7309_v22, %v6199_v21  ;;  %v6201_v28 = vld [vmem:[%s7961_s20 + $0x6c] sm:$0xf0]  ;;  %v6341_v30 = vld [vmem:[%s7961_s20 + $0x184] sm:$0xf0]  ;;  %v6340_v31 = vor.u32 %v7344_v25, %v6339_v24 }
  0xfe   : > { %1338 = vmatpush.bf16.msra.mxu0 %v6152_v29  ;;  %v7342_v29 = vld [vmem:[%s7961_s20 + $0x174] sm:$0xf]  ;;  %1481 = vmatpush.bf16.msrb.mxu3 %v6360_v14  ;;  %v7304_v34 = vld [vmem:[%s7961_s20 + $0x40] sm:$0xf0]  ;;  %v6204_v37 = vor.u32 %v7307_v26, %v6201_v28  ;;  %v6319_v39 = vld [vmem:[%s7961_s20 + $0x148] sm:$0xf] }
  0xff   : > { %1396 = vmatpush.bf16.msra.mxu2 %v6156_v32  ;;  %1449 = vmatpush.bf16.msrb.mxu1 %v6260_v53  ;;  %v6179_v32 = vld [vmem:[%s7961_s20 + $0x30] sm:$0xf]  ;;  %v906_v35 = vld [vmem:[#allocation2 + $0x40] sm:$0xff]  ;;  %v6344_v38 = vor.u32 %v7342_v29, %v6341_v30  ;;  %v7339_v40 = vld [vmem:[%s7961_s20 + $0x158] sm:$0xf0] }
 0x100   : > { %v908_v41 = vld [vmem:[#allocation2 + $0x50] sm:$0xff]  ;;  %v7337_v42 = vld [vmem:[%s7961_s20 + $0x14c] sm:$0xf]  ;;  %v6321_v43 = vld [vmem:[%s7961_s20 + $0x15c] sm:$0xf0]  ;;  %v6320_v47 = vor.u32 %v7339_v40, %v6319_v39 }
 0x101   : > { %1339 = vmatmul.bf16.vlgmr.msra.gmra.mxu0 %v8199_v33  ;;  %v7302_v45 = vld [vmem:[%s7961_s20 + $0x34] sm:$0xf]  ;;  %v6181_v46 = vld [vmem:[%s7961_s20 + $0x44] sm:$0xf0]  ;;  %v6324_v49 = vor.u32 %v7337_v42, %v6321_v43  ;;  %v913_v51 = vld [vmem:[#allocation2 + $0x78] sm:$0xff] }
 0x102   : > { %1397 = vmatmul.bf16.vlgmr.msra.gmra.mxu2 %v8199_v33  ;;  %1505 = vmatpush.bf16.msrb.mxu0 %v6304_v44  ;;  %v6180_v44 = vor.u32 %v7304_v34, %v6179_v32  ;;  %v911_v50 = vld [vmem:[#allocation2 + $0x68] sm:$0xff]  ;;  %v6184_v52 = vor.u32 %v7302_v45, %v6181_v46  ;;  %v7299_v54 = vld [vmem:[%s7961_s20 + $0x18] sm:$0xf0]  ;;  %v6161_v59 = vld [vmem:[%s7961_s20 + $0x1c] sm:$0xf0] }
 0x103   : > { %1450 = vmatpush.bf16.msrb.mxu1 %v6240_v0  ;;  %1538 = vmatpush.bf16.msrb.mxu2 %v6384_v9  ;;  %v6159_v53 = vld [vmem:[%s7961_s20 + $0x8] sm:$0xf]  ;;  %v7297_v55 = vld [vmem:[%s7961_s20 + $0xc] sm:$0xf]  ;;  %v910_v61 = vld [vmem:[#allocation2 + $0x60] sm:$0xff] }
 0x104   : > { %6394 = vmatmul.msk.bf16.gmra.mxu3 %vm1318_vm1, %v8202_v36  ;;  %v6160_v58 = vor.u32 %v7299_v54, %v6159_v53  ;;  %v6164_v60 = vor.u32 %v7297_v55, %v6161_v59  ;;  %v912_v62 = vld [vmem:[#allocation2 + $0x70] sm:$0xff]  ;;  %v8306_v3 = vld [vmem:[%s7966_s24] sm:$0x1f]  ;;  %s7848_s24 = smov 64  }
 0x105   : > { %1482 = vmatpush.bf16.msrb.mxu3 %v6340_v31  ;;  %v8277_v0 = vpack.c.bf16 %v912_v62, %v910_v61  ;;  %v8313_v9 = vperm.slane %v8306_v3, 1  ;;  %v7330_v59 = vld [vmem:[%s7961_s20 + $0x110] sm:$0xf0] }
 0x106   : > { %6390 = vmatmul.msk.bf16.gmra.mxu1 %vm1318_vm1, %v8202_v36  ;;  %1506 = vmatpush.bf16.msrb.mxu0 %v6284_v48  ;;  %v8263_v48 = vpack.c.bf16 %v908_v41, %v906_v35 }
 0x107   : > { %1451 = vmatpush.bf16.msrb.mxu1 %v6220_v13  ;;  %1539 = vmatpush.bf16.msrb.mxu2 %v6364_v23 }
 0x109   : > { %1483 = vmatpush.bf16.msrb.mxu3 %v6320_v47  ;;  %v6307_v47 = vld [vmem:[%s7961_s20 + $0x128] sm:$0xf] }
 0x10a   : > { %1507 = vmatpush.bf16.msrb.mxu0 %v6264_v56  ;;  %v8269_v56 = vpack.c.bf16 %v913_v51, %v911_v50 }
 0x10b   : > { %1452 = vmatpush.bf16.msrb.mxu1 %v6200_v27  ;;  %1540 = vmatpush.bf16.msrb.mxu2 %v6344_v38 }
 0x10e   : > { %1508 = vmatpush.bf16.msrb.mxu0 %v6244_v5  ;;  %v8309_v5 = vperm.slane %v8306_v3, 0 }
 0x10f   : > { %1453 = vmatpush.bf16.msrb.mxu1 %v6180_v44  ;;  %1541 = vmatpush.bf16.msrb.mxu2 %v6324_v49  ;;  %v7335_v49 = vld [vmem:[%s7961_s20 + $0x138] sm:$0xf0] }
 0x111   : > { %1344 = vmatmul.bf16.gmra.mxu0 %v8221_v57 }
 0x112   : > { %1402 = vmatmul.bf16.gmra.mxu2 %v8221_v57  ;;  %1509 = vmatpush.bf16.msrb.mxu0 %v6224_v19 }
 0x113   : > { %1454 = vmatpush.bf16.msrb.mxu1 %v6160_v58  ;;  %v6287_v58 = vld [vmem:[%s7961_s20 + $0x100] sm:$0xf] }
 0x114   : > { %6395 = vmatmul.msk.bf16.gmra.mxu3 %vm1318_vm1, %v8227_v63 }
 0x116   : > { %6391 = vmatmul.msk.bf16.gmra.mxu1 %vm1318_vm1, %v8227_v63  ;;  %1510 = vmatpush.bf16.msrb.mxu0 %v6204_v37 }
 0x11a   : > { %1511 = vmatpush.bf16.msrb.mxu0 %v6184_v52  ;;  %v6308_v52 = vor.u32 %v7335_v49, %v6307_v47 }
 0x11c   : > { %1563 = vmatpush.bf16.msra.mxu1 %v6308_v52 }
 0x11e   : > { %1512 = vmatpush.bf16.msrb.mxu0 %v6164_v60 }
 0x121   : > { %1349 = vmatmul.bf16.gmra.mxu0 %v8263_v48 }
 0x122   : > { %1407 = vmatmul.bf16.gmra.mxu2 %v8263_v48 }
 0x124   : > { %6396 = vmatmul.msk.bf16.gmra.mxu3 %vm1318_vm1, %v8269_v56 }
 0x126   : > { %6392 = vmatmul.msk.bf16.gmra.mxu1 %vm1318_vm1, %v8269_v56 }
 0x131   : > { %1354 = vmatmul.bf16.gmra.mxu0 %v8277_v0 }
 0x132   : > { %1412 = vmatmul.bf16.gmra.mxu2 %v8277_v0 }
 0x134   : > { %6397 = vmatmul.msk.bf16.vlgmr.msrb.gmra.mxu3 %vm1318_vm1, %v8185_v15 }
 0x136   : > { %1455 = vmatmul.bf16.vlgmr.msrb.gmra.mxu1 %v8199_v33 }
 0x141   : > { %1513 = vmatmul.bf16.vlgmr.msrb.gmra.mxu0 %v8199_v33 }
 0x142   : > { %6401 = vmatmul.msk.bf16.vlgmr.msrb.gmra.mxu2 %vm1318_vm1, %v8185_v15 }
 0x144   : > { %6398 = vmatmul.msk.bf16.gmra.mxu3 %vm1318_vm1, %v8202_v36 }
 0x146   : > { %1460 = vmatmul.bf16.gmra.mxu1 %v8221_v57 }
 0x151   : > { %1518 = vmatmul.bf16.gmra.mxu0 %v8221_v57 }
 0x152   : > { %6402 = vmatmul.msk.bf16.gmra.mxu2 %vm1318_vm1, %v8202_v36 }
 0x154   : > { %6399 = vmatmul.msk.bf16.gmra.mxu3 %vm1318_vm1, %v8227_v63 }
 0x156   : > { %1465 = vmatmul.bf16.gmra.mxu1 %v8263_v48 }
 0x161   : > { %1523 = vmatmul.bf16.gmra.mxu0 %v8263_v48 }
 0x162   : > { %6403 = vmatmul.msk.bf16.gmra.mxu2 %vm1318_vm1, %v8227_v63 }
 0x164   : > { %6400 = vmatmul.msk.bf16.gmra.mxu3 %vm1318_vm1, %v8269_v56 }
 0x166   : > { %1470 = vmatmul.bf16.gmra.mxu1 %v8277_v0 }
 0x171   : > { %1528 = vmatmul.bf16.gmra.mxu0 %v8277_v0 }
 0x172   : > { %6404 = vmatmul.msk.bf16.gmra.mxu2 %vm1318_vm1, %v8269_v56 }
 0x173   : > { %v1369_v1 = vpop.f32.mrf.mxu1 }
 0x177   : > { %v1427_v2 = vpop.f32.mrf.mxu3 }
 0x17b   : > { %v1371_v4 = vpop.f32.mrf.mxu1 }
 0x17e   : > { %v1340_v6 = vpop.f32.mrf.mxu0 }
 0x17f   : > { %v1429_v7 = vpop.f32.mrf.mxu3  ;;  %v1341_v8 = vadd.f32 %v1340_v6, %v8309_v5 }
 0x181   : > { %v1370_v12 = vadd.f32 %v1369_v1, %v1341_v8  ;;  %v6288_v1 = vor.u32 %v7330_v59, %v6287_v58  ;;  %v7325_v8 = vld [vmem:[%s7961_s20 + $0xe8] sm:$0xf0]  ;;  %v7310_v58 = vld [vmem:[%s7961_s20 + $0x70] sm:$0xf0]  ;;  %v6347_v59 = vld [vmem:[%s7961_s20 + $0x178] sm:$0xf] }
 0x183   : > { %v1374_v11 = vpop.f32.mrf.mxu1  ;;  %1564 = vmatpush.bf16.msra.mxu1 %v6288_v1 }
 0x185   : > { %v1398_v10 = vpop.f32.mrf.mxu2 }
 0x186   : > { %v1399_v13 = vadd.f32 %v1398_v10, %v8313_v9  ;;  %v1342_v14 = vpop.f32.mrf.mxu0 }
 0x187   : > { %v1432_v17 = vpop.f32.mrf.mxu3  ;;  %v1343_v19 = vadd.f32 %v1342_v14, %v8309_v5 }
 0x188   : > { %v1428_v16 = vadd.f32 %v1427_v2, %v1399_v13 }
 0x189   : > { %v1372_v24 = vadd.f32 %v1371_v4, %v1343_v19 }
 0x18a   : > { %v8316_v18 = vpack.c.bf16 %v1428_v16, %v1370_v12 }
 0x18b   : > { %v1376_v21 = vpop.f32.mrf.mxu1 }
 0x18c   : > { %1652 = vrot.lane.b32.xlu1 %v8316_v18, %s7848_s24  ;;  %v2303_v27 = vrot.slane %v8316_v18, 4 }
 0x18d   : > { %v1400_v20 = vpop.f32.mrf.mxu2 }
 0x18e   : > { %v1401_v22 = vadd.f32 %v1400_v20, %v8313_v9  ;;  %v1345_v23 = vpop.f32.mrf.mxu0  ;;  %v8329_v34 = vunpack.c.l.b16 %v2303_v27 }
 0x18f   : > { %v1434_v26 = vpop.f32.mrf.mxu3  ;;  %v1346_v28 = vadd.f32 %v1345_v23, %v8309_v5  ;;  %v6387_v23 = vld [vmem:[%s7961_s20 + $0x1c8] sm:$0xf] }
 0x190   : > { %v1430_v25 = vadd.f32 %v1429_v7, %v1401_v22  ;;  %v6267_v7 = vld [vmem:[%s7961_s20 + $0xd8] sm:$0xf]  ;;  %v7320_v22 = vld [vmem:[%s7961_s20 + $0xc0] sm:$0xf0] }
 0x191   : > { %v1375_v35 = vadd.f32 %v1374_v11, %v1346_v28  ;;  %v6268_v16 = vor.u32 %v7325_v8, %v6267_v7  ;;  %v6187_v8 = vld [vmem:[%s7961_s20 + $0x38] sm:$0xf] }
 0x192   : > { %v8324_v29 = vpack.c.bf16 %v1430_v25, %v1372_v24 }
 0x193   : > { %v1379_v32 = vpop.f32.mrf.mxu1  ;;  %1565 = vmatpush.bf16.msra.mxu1 %v6268_v16 }
 0x194   : > { %v2304_v30 = vrot.slane %v8324_v29, 4  ;;  %1654 = vrot.lane.b32.xlu1 %v8324_v29, %s7848_s24 }
 0x195   : > { %v1403_v31 = vpop.f32.mrf.mxu2 }
 0x196   : > { %v8331_v37 = vunpack.c.l.b16 %v2304_v30  ;;  %v1404_v38 = vadd.f32 %v1403_v31, %v8313_v9  ;;  %v1347_v39 = vpop.f32.mrf.mxu0 }
 0x197   : > { %v1437_v42 = vpop.f32.mrf.mxu3  ;;  %v1348_v44 = vadd.f32 %v1347_v39, %v8309_v5 }
 0x198   : > { %v2311_v40 = vpack.c.b16 %v8331_v37, %v8329_v34  ;;  %v1433_v41 = vadd.f32 %v1432_v17, %v1404_v38  ;;  %v6367_v38 = vld [vmem:[%s7961_s20 + $0x1a0] sm:$0xf] }
 0x199   : > { %v1377_v53 = vadd.f32 %v1376_v21, %v1348_v44  ;;  %v6247_v21 = vld [vmem:[%s7961_s20 + $0xb0] sm:$0xf] }
 0x19a   : > { %v8336_v43 = vpack.c.bf16 %v1433_v41, %v1375_v35  ;;  %v6248_v25 = vor.u32 %v7320_v22, %v6247_v21  ;;  %v7315_v35 = vld [vmem:[%s7961_s20 + $0x98] sm:$0xf0] }
 0x19b   : > { %v1381_v46 = vpop.f32.mrf.mxu1 }
 0x19c   : > { %1656 = vrot.lane.b32.xlu0 %v8336_v43, %s7848_s24  ;;  %v2305_v60 = vrot.slane %v8336_v43, 4  ;;  %1566 = vmatpush.bf16.msra.mxu1 %v6248_v25  ;;  %v1666_v52 = vunpack.c.l.b16 %v8336_v43 }
 0x19d   : > { %v1405_v45 = vpop.f32.mrf.mxu2 }
 0x19e   : > { %v1406_v50 = vadd.f32 %v1405_v45, %v8313_v9  ;;  %v1350_v51 = vpop.f32.mrf.mxu0  ;;  %v8353_v10 = vunpack.c.l.b16 %v2305_v60  ;;  %v7350_v45 = vld [vmem:[%s7961_s20 + $0x1b0] sm:$0xf0] }
 0x19f   : > { %v1439_v55 = vpop.f32.mrf.mxu3  ;;  %v1351_v61 = vadd.f32 %v1350_v51, %v8309_v5  ;;  %v6368_v47 = vor.u32 %v7350_v45, %v6367_v38  ;;  %v7300_v38 = vld [vmem:[%s7961_s20 + $0x20] sm:$0xf0] }
 0x1a0   : > { %v1435_v54 = vadd.f32 %v1434_v26, %v1406_v50  ;;  %v7355_v26 = vld [vmem:[%s7961_s20 + $0x1d8] sm:$0xf0] }
 0x1a1   : > { %v1380_v11 = vadd.f32 %v1379_v32, %v1351_v61  ;;  %v6388_v27 = vor.u32 %v7355_v26, %v6387_v23  ;;  %v6227_v32 = vld [vmem:[%s7961_s20 + $0x88] sm:$0xf]  ;;  %v7340_v23 = vld [vmem:[%s7961_s20 + $0x160] sm:$0xf0] }
 0x1a2   : > { %v1630_v62 = vpack.c.bf16 %v1435_v54, %v1377_v53  ;;  %v6228_v44 = vor.u32 %v7315_v35, %v6227_v32  ;;  %v6207_v54 = vld [vmem:[%s7961_s20 + $0x60] sm:$0xf]  ;;  %v6167_v35 = vld [vmem:[%s7961_s20 + $0x10] sm:$0xf] }
 0x1a3   : > { %v8349_v6 = vpop.f32.mrf.mxu1  ;;  %1596 = vmatpush.bf16.msra.mxu3 %v6388_v27  ;;  %v6208_v1 = vor.u32 %v7310_v58, %v6207_v54 }
 0x1a4   : > { %v2306_v2 = vrot.slane %v1630_v62, 4  ;;  %1658 = vrot.lane.b32.xlu0 %v1630_v62, %s7848_s24  ;;  %1567 = vmatpush.bf16.msra.mxu1 %v6228_v44 }
 0x1a5   : > { %v1408_v4 = vpop.f32.mrf.mxu2 }
 0x1a6   : > { %v8355_v12 = vunpack.c.l.b16 %v2306_v2  ;;  %v1409_v13 = vadd.f32 %v1408_v4, %v8313_v9  ;;  %v1352_v14 = vpop.f32.mrf.mxu0  ;;  %v7345_v2 = vld [vmem:[%s7961_s20 + $0x188] sm:$0xf0] }
 0x1a7   : > { %v1442_v19 = vpop.f32.mrf.mxu3  ;;  %v1353_v28 = vadd.f32 %v1352_v14, %v8309_v5  ;;  %1597 = vmatpush.bf16.msra.mxu3 %v6368_v47  ;;  %v8413_v47 = vperm.slane %v8306_v3, 2 }
 0x1a8   : > { %v1438_v17 = vadd.f32 %v1437_v42, %v1409_v13  ;;  %v2312_v20 = vpack.c.b16 %v8355_v12, %v8353_v10  ;;  %v1667_v42 = vunpack.c.l.b16 %v1630_v62  ;;  %1568 = vmatpush.bf16.msra.mxu1 %v6208_v1  ;;  %v6327_v13 = vld [vmem:[%s7961_s20 + $0x150] sm:$0xf] }
 0x1a9   : > { %v1382_v50 = vadd.f32 %v1381_v46, %v1353_v28  ;;  %v6348_v46 = vor.u32 %v7345_v2, %v6347_v59  ;;  %v6328_v26 = vor.u32 %v7340_v23, %v6327_v13 }
 0x1aa   : > { %v8363_v24 = vpack.c.bf16 %v1438_v17, %v1380_v11  ;;  %v8382_v62 = vpack.c.b16 %v1667_v42, %v1666_v52  ;;  %v7305_v11 = vld [vmem:[%s7961_s20 + $0x48] sm:$0xf0]  ;;  %s10826_s20 = sld [smem:[#allocation16_spill]] (!%p7233_p5) }
 0x1ab   : > { %v8369_v31 = vpop.f32.mrf.mxu1  ;;  %1598 = vmatpush.bf16.msra.mxu3 %v6348_v46  ;;  %v6188_v25 = vor.u32 %v7305_v11, %v6187_v8  ;;  %v1665_v46 = vunpack.c.l.b16 %v8324_v29 }
 0x1ac   : > { %1711 = vrot.lane.b32.xlu0 %v8363_v24, %s7848_s24  ;;  %v2348_v49 = vrot.slane %v8363_v24, 4 }
 0x1ad   : > { %v1410_v30 = vpop.f32.mrf.mxu2  ;;  %1569 = vmatpush.bf16.msra.mxu1 %v6188_v25 }
 0x1ae   : > { %v1411_v39 = vadd.f32 %v1410_v30, %v8313_v9  ;;  %v1355_v41 = vpop.f32.mrf.mxu0  ;;  %v8388_v43 = vunpack.c.l.b16 %v2348_v49  ;;  %v1723_v30 = vunpack.c.l.b16 %v8363_v24 }
 0x1af   : > { %v1444_v53 = vpop.f32.mrf.mxu3  ;;  %v1356_v61 = vadd.f32 %v1355_v41, %v8309_v5  ;;  %1599 = vmatpush.bf16.msra.mxu3 %v6328_v26  ;;  %v6168_v41 = vor.u32 %v7300_v38, %v6167_v35 }
 0x1b0   : > { %v1440_v51 = vadd.f32 %v1439_v55, %v1411_v39 }
 0x1b1   : > { %v1385_v16 = vadd.f32 %v8349_v6, %v1356_v61  ;;  %1570 = vmatpush.bf16.msra.mxu1 %v6168_v41 }
 0x1b2   : > { %v1636_v60 = vpack.c.bf16 %v1440_v51, %v1382_v50  ;;  %6405 = vmatmul.msk.bf16.vlgmr.msra.gmra.mxu3 %vm1318_vm1, %v8185_v15  ;;  %v8417_v50 = vperm.slane %v8306_v3, 3 }
 0x1b3   : > { %v1456_v7 = vpop.f32.mrf.mxu1 }
 0x1b4   : > { %v2349_v55 = vrot.slane %v1636_v60, 4  ;;  %1993 = vrot.lane.b32.xlu0 %v8382_v62, %s7848_s24  ;;  %1713 = vrot.lane.b32.xlu1 %v1636_v60, %s7848_s24  ;;  %v1724_v22 = vunpack.c.l.b16 %v1636_v60  ;;  %v1457_v58 = vadd.f32 %v1456_v7, %v8413_v47 }
 0x1b5   : > { %v1413_v4 = vpop.f32.mrf.mxu2  ;;  %1571 = vmatmul.bf16.vlgmr.msra.gmra.mxu1 %v8199_v33 }
 0x1b6   : > { %v8393_v14 = vunpack.c.l.b16 %v2349_v55  ;;  %v1414_v17 = vadd.f32 %v1413_v4, %v8313_v9  ;;  %v1357_v21 = vpop.f32.mrf.mxu0  ;;  %v8403_v6 = vpack.c.b16 %v1724_v22, %v1723_v30  ;;  %v1664_v55 = vunpack.c.l.b16 %v8316_v18 }
 0x1b7   : > { %v1485_v32 = vpop.f32.mrf.mxu3  ;;  %v1358_v42 = vadd.f32 %v1357_v21, %v8309_v5 }
 0x1b8   : > { %v2356_v27 = vpack.c.b16 %v8393_v14, %v8388_v43  ;;  %v1443_v28 = vadd.f32 %v1442_v19, %v1414_v17  ;;  %v1486_v4 = vadd.f32 %v1485_v32, %v1457_v58  ;;  %v8437_v17 = vpack.c.b16 %v1665_v46, %v1664_v55 }
 0x1b9   : > { %v1387_v49 = vadd.f32 %v8369_v31, %v1358_v42 }
 0x1ba   : > { %v1639_v39 = vpack.c.bf16 %v1443_v28, %v1385_v16 }
 0x1bb   : > { %v1458_v19 = vpop.f32.mrf.mxu1 }
 0x1bc   : > { %1715 = vrot.lane.b32.xlu2 %v1639_v39, %s7848_s24  ;;  %2032 = vrot.lane.b32.xlu1 %v8403_v6, %s7848_s24  ;;  %v2350_v52 = vrot.slane %v1639_v39, 4  ;;  %v1725_v59 = vunpack.c.l.b16 %v1639_v39  ;;  %v1459_v8 = vadd.f32 %v1458_v19, %v8413_v47 }
 0x1bd   : > { %v1415_v44 = vpop.f32.mrf.mxu2 }
 0x1be   : > { %v1416_v24 = vadd.f32 %v1415_v44, %v8313_v9  ;;  %v1514_v45 = vpop.f32.mrf.mxu0 }
 0x1bf   : > { %v1487_v51 = vpop.f32.mrf.mxu3  ;;  %v1515_v9 = vadd.f32 %v1514_v45, %v8417_v50 }
 0x1c0   : > { %v1445_v5 = vadd.f32 %v1444_v53, %v1416_v24  ;;  %v8423_v53 = vunpack.c.l.b16 %v2350_v52  ;;  %v1488_v18 = vadd.f32 %v1487_v51, %v1459_v8 }
 0x1c2   : > { %v1642_v54 = vpack.c.bf16 %v1445_v5, %v1387_v49  ;;  %6406 = vmatmul.msk.bf16.gmra.mxu3 %vm1318_vm1, %v8202_v36 }
 0x1c3   : > { %v1461_v31 = vpop.f32.mrf.mxu1 }
 0x1c4   : > { %v2351_v15 = vrot.slane %v1642_v54, 4  ;;  %1717 = vrot.lane.b32.xlu2 %v1642_v54, %s7848_s24  ;;  %v1726_v60 = vunpack.c.l.b16 %v1642_v54  ;;  %v1462_v30 = vadd.f32 %v1461_v31, %v8413_v47 }
 0x1c5   : > { %v1543_v61 = vpop.f32.mrf.mxu2  ;;  %1576 = vmatmul.bf16.gmra.mxu1 %v8221_v57 }
 0x1c6   : > { %v8425_v1 = vunpack.c.l.b16 %v2351_v15  ;;  %v8427_v2 = vpack.c.b16 %v1726_v60, %v1725_v59  ;;  %v1516_v33 = vpop.f32.mrf.mxu0  ;;  %v1544_v7 = vadd.f32 %v1543_v61, %v1515_v9 }
 0x1c7   : > { %v1490_v11 = vpop.f32.mrf.mxu3  ;;  %v1517_v16 = vadd.f32 %v1516_v33, %v8417_v50 }
 0x1c8   : > { %2034 = vrot.lane.b32.xlu1 %v8427_v2, %s7848_s24  ;;  %v2357_v13 = vpack.c.b16 %v8425_v1, %v8423_v53  ;;  %v8439_v21 = vpack.c.bf16 %v1544_v7, %v1486_v4  ;;  %v1491_v44 = vadd.f32 %v1490_v11, %v1462_v30 }
 0x1ca   : > { %v1885_v26 = vrot.slane %v8439_v21, 4  ;;  %v1995_v32 = vunpack.c.l.b16 %v8439_v21 }
 0x1cb   : > { %v1463_v22 = vpop.f32.mrf.mxu1 }
 0x1cc   : > { %1991 = vrot.lane.b32.xlu2 %v8437_v17, %s7848_s24  ;;  %v8450_v42 = vunpack.c.l.b16 %v1885_v26  ;;  %v1464_v52 = vadd.f32 %v1463_v22, %v8413_v47 }
 0x1cd   : > { %v1545_v29 = vpop.f32.mrf.mxu2 }
 0x1ce   : > { %v1546_v23 = vadd.f32 %v1545_v29, %v1517_v16  ;;  %v1519_v25 = vpop.f32.mrf.mxu0 }
 0x1cf   : > { %v1492_v35 = vpop.f32.mrf.mxu3  ;;  %v1520_v38 = vadd.f32 %v1519_v25, %v8417_v50 }
 0x1d0   : > { %v1625_v28 = vpack.c.bf16 %v1546_v23, %v1488_v18  ;;  %v1493_v15 = vadd.f32 %v1492_v35, %v1464_v52 }
 0x1d2   : > { %v1996_v39 = vunpack.c.l.b16 %v1625_v28  ;;  %v1886_v41 = vrot.slane %v1625_v28, 4  ;;  %6407 = vmatmul.msk.bf16.gmra.mxu3 %vm1318_vm1, %v8227_v63 }
 0x1d3   : > { %v1466_v57 = vpop.f32.mrf.mxu1 }
 0x1d4   : > { %v1999_v36 = vpack.c.b16 %v1996_v39, %v1995_v32  ;;  %v8452_v19 = vunpack.c.l.b16 %v1886_v41  ;;  %v1467_v63 = vadd.f32 %v1466_v57, %v8413_v47 }
 0x1d5   : > { %v1548_v24 = vpop.f32.mrf.mxu2  ;;  %1581 = vmatmul.bf16.gmra.mxu1 %v8263_v48 }
 0x1d6   : > { %v1549_v45 = vadd.f32 %v1548_v24, %v1520_v38  ;;  %2313 = vrot.lane.b32.xlu0 %v1999_v36, %s7848_s24  ;;  %v1521_v49 = vpop.f32.mrf.mxu0  ;;  %v1903_v5 = vpack.c.b16 %v8452_v19, %v8450_v42 }
 0x1d7   : > { %v1522_v54 = vadd.f32 %v1521_v49, %v8417_v50  ;;  %v1495_v58 = vpop.f32.mrf.mxu3 }
 0x1d8   : > { %v1628_v51 = vpack.c.bf16 %v1549_v45, %v1491_v44  ;;  %v1496_v25 = vadd.f32 %v1495_v58, %v1467_v63  ;;  %v2008_v44 = vsel %vm1318_vm1, %v1999_v36, 0 }
 0x1da   : > { %2189 = vrot.lane.b32.xlu1 %v1628_v51, %s7848_s24  ;;  %v1887_v59 = vrot.slane %v1628_v51, 4  ;;  %v1997_v33 = vunpack.c.l.b16 %v1628_v51 }
 0x1db   : > { %v1468_v46 = vpop.f32.mrf.mxu1 }
 0x1dc   : > { %v8465_v55 = vunpack.c.l.b16 %v1887_v59 }
 0x1dd   : > { %v1550_v9 = vpop.f32.mrf.mxu2 }
 0x1de   : > { %v1551_v60 = vadd.f32 %v1550_v9, %v1522_v54  ;;  %v1524_v61 = vpop.f32.mrf.mxu0 }
 0x1df   : > { %v1525_v11 = vadd.f32 %v1524_v61, %v8417_v50  ;;  %v1497_v29 = vpop.f32.mrf.mxu3 }
 0x1e0   : > { %v8462_v31 = vpack.c.bf16 %v1551_v60, %v1493_v15 }
 0x1e2   : > { %v1888_v4 = vrot.slane %v8462_v31, 4  ;;  %2187 = vrot.lane.b32.xlu1 %v1625_v28, %s7848_s24  ;;  %v1998_v7 = vunpack.c.l.b16 %v8462_v31  ;;  %v1469_v28 = vadd.f32 %v1468_v46, %v8413_v47  ;;  %6408 = vmatmul.msk.bf16.gmra.mxu3 %vm1318_vm1, %v8269_v56 }
 0x1e3   : > { %v1471_v32 = vpop.f32.mrf.mxu1 }
 0x1e4   : > { %v8470_v8 = vunpack.c.l.b16 %v1888_v4  ;;  %v2000_v16 = vpack.c.b16 %v1998_v7, %v1997_v33  ;;  %v1498_v38 = vadd.f32 %v1497_v29, %v1469_v28  ;;  %v1472_v52 = vadd.f32 %v1471_v32, %v8413_v47 }
 0x1e5   : > { %v1553_v18 = vpop.f32.mrf.mxu2  ;;  %1586 = vmatmul.bf16.gmra.mxu1 %v8277_v0 }
 0x1e6   : > { %2315 = vrot.lane.b32.xlu2 %v2000_v16, %s7848_s24  ;;  %v2011_v48 = vsel %vm1318_vm1, %v2000_v16, 0  ;;  %v1526_v22 = vpop.f32.mrf.mxu0  ;;  %v1904_v23 = vpack.c.b16 %v8470_v8, %v8465_v55  ;;  %v1554_v26 = vadd.f32 %v1553_v18, %v1525_v11 }
 0x1e7   : > { %2019 = vmatpush.bf16.xpose.msrb.mxu1 %v2011_v48  ;;  %v1527_v30 = vadd.f32 %v1526_v22, %v8417_v50  ;;  %v1500_v45 = vpop.f32.mrf.mxu3 }
 0x1e8   : > { %v8480_v35 = vpack.c.bf16 %v1554_v26, %v1496_v25  ;;  %v1501_v9 = vadd.f32 %v1500_v45, %v1472_v52 }
 0x1ea   : > { %v2036_v57 = vunpack.c.l.b16 %v8480_v35 }
 0x1eb   : > { %v1473_v15 = vpop.f32.mrf.mxu1 }
 0x1ec   : > { %v1474_v60 = vadd.f32 %v1473_v15, %v8413_v47 }
 0x1ed   : > { %v1555_v39 = vpop.f32.mrf.mxu2 }
 0x1ee   : > { %v1556_v41 = vadd.f32 %v1555_v39, %v1527_v30  ;;  %v1529_v24 = vpop.f32.mrf.mxu0 }
 0x1ef   : > { %2020 = vmatpush.bf16.xpose.msrb.mxu1 %v2008_v44  ;;  %v1530_v54 = vadd.f32 %v1529_v24, %v8417_v50  ;;  %v1502_v61 = vpop.f32.mrf.mxu3 }
 0x1f0   : > { %v8485_v49 = vpack.c.bf16 %v1556_v41, %v1498_v38  ;;  %v1503_v46 = vadd.f32 %v1502_v61, %v1474_v60 }
 0x1f2   : > { %v2037_v51 = vunpack.c.l.b16 %v8485_v49 }
 0x1f4   : > { %v2040_v58 = vpack.c.b16 %v2037_v51, %v2036_v57 }
 0x1f5   : > { %v1558_v56 = vpop.f32.mrf.mxu2 }
 0x1f6   : > { %2358 = vrot.lane.b32.xlu0 %v2040_v58, %s7848_s24  ;;  %v1531_v36 = vpop.f32.mrf.mxu0  ;;  %v1559_v59 = vadd.f32 %v1558_v56, %v1530_v54 }
 0x1f7   : > { %v1532_v33 = vadd.f32 %v1531_v36, %v8417_v50  ;;  %v2049_v50 = vsel %vm1318_vm1, %v2040_v58, 0 }
 0x1f8   : > { %v1640_v0 = vpack.c.bf16 %v1559_v59, %v1501_v9 }
 0x1fa   : > { %v2038_v11 = vunpack.c.l.b16 %v1640_v0  ;;  %v1938_v36 = vrot.slane %v1640_v0, 4 }
 0x1fd   : > { %v1560_v4 = vpop.f32.mrf.mxu2 }
 0x1fe   : > { %v1561_v7 = vadd.f32 %v1560_v4, %v1532_v33  ;;  %2185 = vrot.lane.b32.xlu0 %v8439_v21, %s7848_s24  ;;  %v1653_v29 = vpop.permute.xlu1 %1652 }
 0x1ff   : > { %v1660_v39 = vrot.slane %v1653_v29, 4 }
 0x200   : > { %v8497_v63 = vpack.c.bf16 %v1561_v7, %v1503_v46  ;;  %v1937_v7 = vrot.slane %v8485_v49, 4 }
 0x202   : > { %v2039_v16 = vunpack.c.l.b16 %v8497_v63  ;;  %v1939_v9 = vrot.slane %v8497_v63, 4 }
 0x204   : > { %v2041_v18 = vpack.c.b16 %v2039_v16, %v2038_v11  ;;  %v1952_v11 = vunpack.c.l.b16 %v1938_v36  ;;  %v1953_v16 = vunpack.c.l.b16 %v1939_v9 }
 0x206   : > { %2360 = vrot.lane.b32.xlu2 %v2041_v18, %s7848_s24  ;;  %v2052_v47 = vsel %vm1318_vm1, %v2041_v18, 0  ;;  %v1655_v21 = vpop.permute.xlu1 %1654  ;;  %v1955_v8 = vpack.c.b16 %v1953_v16, %v1952_v11 }
 0x207   : > { %2060 = vmatpush.bf16.xpose.msrb.mxu3 %v2052_v47  ;;  %v1661_v30 = vrot.slane %v1655_v21, 4 }
 0x209   : > { %v1671_v44 = vunpack.c.l.b16 %v1661_v30 }
 0x20e   : > { %v1657_v48 = vpop.permute.xlu0 %1656  ;;  %2191 = vrot.lane.b32.xlu2 %v8462_v31, %s7848_s24  ;;  %v1670_v31 = vunpack.c.l.b16 %v1660_v39 }
 0x20f   : > { %2061 = vmatpush.bf16.xpose.msrb.mxu3 %v2049_v50  ;;  %v1662_v22 = vrot.slane %v1657_v48, 4  ;;  %v1951_v50 = vunpack.c.l.b16 %v1937_v7 }
 0x210   : > { %v1674_v52 = vpack.c.b16 %v1671_v44, %v1670_v31 }
 0x211   : > { %v1672_v32 = vunpack.c.l.b16 %v1662_v22 }
 0x212   : > { %v1683_v61 = vsel %vm1318_vm1, %v1674_v52, 0 }
 0x216   : > { %v1716_v25 = vpop.permute.xlu2 %1715  ;;  %v1659_v26 = vpop.permute.xlu0 %1658  ;;  %2244 = vrot.lane.b32.xlu2 %v1640_v0, %s7848_s24  ;;  %v1936_v0 = vrot.slane %v8480_v35, 4 }
 0x217   : > { %v1663_v28 = vrot.slane %v1659_v26, 4  ;;  %v1721_v24 = vrot.slane %v1716_v25, 4  ;;  %v8531_v26 = vperm.slane %v8306_v3, 4 }
 0x219   : > { %v1673_v38 = vunpack.c.l.b16 %v1663_v28  ;;  %v1731_v54 = vunpack.c.l.b16 %v1721_v24 }
 0x21b   : > { %v1675_v41 = vpack.c.b16 %v1673_v38, %v1672_v32 }
 0x21d   : > { %v1686_v45 = vsel %vm1318_vm1, %v1675_v41, 0 }
 0x21e   : > { %v1718_v57 = vpop.permute.xlu2 %1717  ;;  %1694 = vmatpush.bf16.xpose.msra.mxu0 %v1686_v45  ;;  %v1712_v56 = vpop.permute.xlu0 %1711 }
 0x21f   : > { %v1722_v51 = vrot.slane %v1718_v57, 4  ;;  %v1719_v59 = vrot.slane %v1712_v56, 4 }
 0x221   : > { %v1732_v58 = vunpack.c.l.b16 %v1722_v51  ;;  %v1729_v18 = vunpack.c.l.b16 %v1719_v59 }
 0x223   : > { %v1734_v15 = vpack.c.b16 %v1732_v58, %v1731_v54 }
 0x225   : > { %v1745_v60 = vsel %vm1318_vm1, %v1734_v15, 0 }
 0x226   : > { %1753 = vmatpush.bf16.xpose.msra.mxu2 %v1745_v60  ;;  %1695 = vmatpush.bf16.xpose.msra.mxu0 %v1683_v61  ;;  %v1714_v33 = vpop.permute.xlu1 %1713  ;;  %v1992_v4 = vpop.permute.xlu2 %1991 }
 0x227   : > { %v1720_v46 = vrot.slane %v1714_v33, 4  ;;  %6417 = vmatmul.msk.bf16.vlgmr.msrb.gmra.mxu1 %vm1318_vm1, %v1992_v4  ;;  %v1994_v42 = vpop.permute.xlu0 %1993 }
 0x229   : > { %v1730_v47 = vunpack.c.l.b16 %v1720_v46 }
 0x22b   : > { %v1733_v29 = vpack.c.b16 %v1730_v47, %v1729_v18 }
 0x22d   : > { %6409 = vmatmul.msk.bf16.vlgmr.msra.gmra.mxu0 %vm1318_vm1, %v8437_v17  ;;  %v1742_v55 = vsel %vm1318_vm1, %v1733_v29, 0  ;;  %v1645_v29 = vlaneseq }
 0x22e   : > { %1919 = vmatpush.bf16.msrb.mxu0 %v1904_v23  ;;  %v1950_v23 = vunpack.c.l.b16 %v1936_v0  ;;  %1754 = vmatpush.bf16.xpose.msra.mxu2 %v1742_v55  ;;  %v2033_v48 = vpop.permute.xlu1 %2032 }
 0x22f   : > { %6419 = vmatmul.msk.bf16.vlgmr.msrb.gmra.mxu3 %vm1318_vm1, %v2033_v48  ;;  %v8580_v55 = vand.u32 127, %v1645_v29 }
 0x230   : > { %v1954_v21 = vpack.c.b16 %v1951_v50, %v1950_v23 }
 0x231   : > { %vm1647_vm2 = vcmp.lt.s32.totalorder %v8580_v55, 17 }
 0x232   : > { %1920 = vmatpush.bf16.msrb.mxu0 %v1903_v5  ;;  %v1572_v17 = vpop.f32.mrf.mxu1 }
 0x235   : > { %6411 = vmatmul.msk.bf16.vlgmr.msra.gmra.mxu2 %vm1318_vm1, %v8403_v6  ;;  %v1601_v22 = vpop.f32.mrf.mxu3  ;;  %v1573_v6 = vadd.f32 %v1572_v17, %v8531_v26 }
 0x236   : > { %1970 = vmatpush.bf16.msrb.mxu2 %v1955_v8 }
 0x237   : > { %6418 = vmatmul.msk.bf16.gmra.mxu1 %vm1318_vm1, %v1994_v42  ;;  %v8538_v30 = vadd.f32 %v1601_v22, %v1573_v6 }
 0x23a   : > { %1971 = vmatpush.bf16.msrb.mxu2 %v1954_v21  ;;  %v2035_v19 = vpop.permute.xlu1 %2034  ;;  %v8536_v28 = vpop.f32.mrf.mxu1 }
 0x23d   : > { %6410 = vmatmul.msk.bf16.gmra.mxu0 %vm1318_vm1, %v8382_v62  ;;  %v8540_v32 = vpop.f32.mrf.mxu3 }
 0x23f   : > { %6420 = vmatmul.msk.bf16.gmra.mxu3 %vm1318_vm1, %v2035_v19 }
 0x240   : > { %v2316_v5 = vpop.permute.xlu2 %2315 }
 0x241   : > { %v2327_v25 = vsel %vm1318_vm1, %v2316_v5, 0 }
 0x242   : > { %2335 = vmatpush.bf16.xpose.msra.mxu1 %v2327_v25  ;;  %v1577_v39 = vpop.f32.mrf.mxu1 }
 0x243   : > { %v1578_v3 = vadd.f32 %v1577_v39, %v8531_v26 }
 0x245   : > { %6412 = vmatmul.msk.bf16.gmra.mxu2 %vm1318_vm1, %v8427_v2  ;;  %v1606_v41 = vpop.f32.mrf.mxu3 }
 0x246   : > { %v8550_v44 = vadd.f32 %v1606_v41, %v1578_v3 }
 0x248   : > { %v2314_v62 = vpop.permute.xlu0 %2313 }
 0x249   : > { %v2324_v38 = vsel %vm1318_vm1, %v2314_v62, 0 }
 0x24a   : > { %2336 = vmatpush.bf16.xpose.msra.mxu1 %v2324_v38  ;;  %v8548_v2 = vpop.f32.mrf.mxu1 }
 0x24c   : > { %v2190_v37 = vpop.permute.xlu1 %2189 }
 0x24d   : > { %v8552_v24 = vpop.f32.mrf.mxu3  ;;  %v2195_v52 = vrot.slane %v2190_v37, 4 }
 0x24f   : > { %v2209_v15 = vunpack.c.l.b16 %v2195_v52 }
 0x251   : > { %6425 = vmatmul.msk.bf16.vlgmr.msra.gmra.mxu1 %vm1318_vm1, %v2311_v40 }
 0x252   : > { %v1582_v45 = vpop.f32.mrf.mxu1 }
 0x253   : > { %v1583_v34 = vadd.f32 %v1582_v45, %v8531_v26 }
 0x254   : > { %v2188_v12 = vpop.permute.xlu1 %2187 }
 0x255   : > { %v1611_v31 = vpop.f32.mrf.mxu3  ;;  %v2194_v33 = vrot.slane %v2188_v12, 4 }
 0x256   : > { %v8560_v40 = vadd.f32 %v1611_v31, %v1583_v34 }
 0x257   : > { %v2208_v11 = vunpack.c.l.b16 %v2194_v33 }
 0x25a   : > { %v8562_v54 = vpop.f32.mrf.mxu1 }
 0x25d   : > { %v8565_v59 = vpop.f32.mrf.mxu3 }
 0x260   : > { %v2361_v57 = vpop.permute.xlu2 %2360 }
 0x261   : > { %v2372_v51 = vsel %vm1318_vm1, %v2361_v57, 0  ;;  %6426 = vmatmul.msk.bf16.gmra.mxu1 %vm1318_vm1, %v2312_v20 }
 0x262   : > { %2380 = vmatpush.bf16.xpose.msra.mxu3 %v2372_v51  ;;  %v1587_v60 = vpop.f32.mrf.mxu1 }
 0x263   : > { %v1588_v61 = vadd.f32 %v1587_v60, %v8531_v26 }
 0x265   : > { %v1616_v0 = vpop.f32.mrf.mxu3 }
 0x266   : > { %v8572_v7 = vadd.f32 %v1616_v0, %v1588_v61 }
 0x268   : > { %v2359_v58 = vpop.permute.xlu0 %2358  ;;  %v2192_v56 = vpop.permute.xlu2 %2191 }
 0x269   : > { %v2369_v36 = vsel %vm1318_vm1, %v2359_v58, 0  ;;  %v2196_v9 = vrot.slane %v2192_v56, 4 }
 0x26a   : > { %2381 = vmatpush.bf16.xpose.msra.mxu3 %v2369_v36  ;;  %v8578_v47 = vpop.f32.mrf.mxu1 }
 0x26b   : > { %v2210_v10 = vunpack.c.l.b16 %v2196_v9 }
 0x26d   : > { %v2212_v20 = vpack.c.b16 %v2210_v10, %v2209_v15  ;;  %v8589_v53 = vpop.f32.mrf.mxu3 }
 0x26f   : > { %2227 = vmatpush.bf16.msra.mxu0 %v2212_v20 }
 0x270   : > { %v2186_v46 = vpop.permute.xlu0 %2185 }
 0x271   : > { %v2193_v4 = vrot.slane %v2186_v46, 4  ;;  %6427 = vmatmul.msk.bf16.vlgmr.msra.gmra.mxu3 %vm1318_vm1, %v2356_v27 }
 0x273   : > { %v2207_v16 = vunpack.c.l.b16 %v2193_v4 }
 0x275   : > { %v2211_v18 = vpack.c.b16 %v2208_v11, %v2207_v16 }
 0x277   : > { %2228 = vmatpush.bf16.msra.mxu0 %v2211_v18 }
 0x281   : > { %6428 = vmatmul.msk.bf16.gmra.mxu3 %vm1318_vm1, %v2357_v13 }
 0x2a4   : > { %v2022_v43 = vpop.f32.mrf.mxu1 }
 0x2a5   : > { %v2073_v14 = vmul.f32 0.125, %v2022_v43 }
 0x2a7   : > { %v8585_v27 = vsel %vm1647_vm2, %v2073_v14, -1e+30 }
 0x2a8   : > { %v2089_v8 = vsel %vm1784_vm3, %v8585_v27, -inf }
 0x2a9   : > { %2090 = vmax.xlane.f32.xlu0 %v2089_v8 }
 0x2aa   : > { %v1697_v1 = vpop.f32.mrf.mxu0 }
 0x2ab   : > { %v1766_v6 = vmul.f32 0.125, %v1697_v1 }
 0x2ac   : > { %v2024_v13 = vpop.f32.mrf.mxu1 }
 0x2ad   : > { %v2074_v23 = vmul.f32 0.125, %v2024_v13  ;;  %v8611_v31 = vsel %vm1647_vm2, %v1766_v6, -1e+30 }
 0x2ae   : > { %v1785_v58 = vsel %vm1784_vm3, %v8611_v31, -inf }
 0x2af   : > { %v8593_v50 = vsel %vm1647_vm2, %v2074_v23, -1e+30 }
 0x2b0   : > { %v2092_v48 = vsel %vm1784_vm3, %v8593_v50, -inf }
 0x2b1   : > { %2093 = vmax.xlane.f32.xlu1 %v2092_v48 }
 0x2b2   : > { %v1699_v21 = vpop.f32.mrf.mxu0  ;;  %v2063_v42 = vpop.f32.mrf.mxu3 }
 0x2b3   : > { %v2077_v56 = vmul.f32 0.125, %v2063_v42  ;;  %v1767_v33 = vmul.f32 0.125, %v1699_v21 }
 0x2b4   : > { %v2027_v17 = vpop.f32.mrf.mxu1 }
 0x2b5   : > { %v2075_v19 = vmul.f32 0.125, %v2027_v17  ;;  %v8629_v12 = vsel %vm1647_vm2, %v2077_v56, -1e+30  ;;  %v8647_v29 = vsel %vm1647_vm2, %v1767_v33, -1e+30 }
 0x2b6   : > { %v2101_v60 = vsel %vm1784_vm3, %v8629_v12, -inf  ;;  %v1788_v14 = vsel %vm1784_vm3, %v8647_v29, -inf }
 0x2b7   : > { %v8599_v22 = vsel %vm1647_vm2, %v2075_v19, -1e+30 }
 0x2b8   : > { %v1756_v5 = vpop.f32.mrf.mxu2  ;;  %v2095_v25 = vsel %vm1784_vm3, %v8599_v22, -inf }
 0x2b9   : > { %2096 = vmax.xlane.f32.xlu1 %v2095_v25  ;;  %v1770_v15 = vmul.f32 0.125, %v1756_v5 }
 0x2ba   : > { %v2065_v62 = vpop.f32.mrf.mxu3  ;;  %v1702_v39 = vpop.f32.mrf.mxu0 }
 0x2bb   : > { %v2078_v38 = vmul.f32 0.125, %v2065_v62  ;;  %v1768_v51 = vmul.f32 0.125, %v1702_v39  ;;  %v8633_v20 = vsel %vm1647_vm2, %v1770_v15, -1e+30 }
 0x2bc   : > { %v2029_v41 = vpop.f32.mrf.mxu1  ;;  %v1797_v61 = vsel %vm1784_vm3, %v8633_v20, -inf }
 0x2bd   : > { %v8605_v3 = vsel %vm1647_vm2, %v2078_v38, -1e+30  ;;  %v2076_v45 = vmul.f32 0.125, %v2029_v41  ;;  %v8623_v9 = vsel %vm1647_vm2, %v1768_v51, -1e+30 }
 0x2be   : > { %v2104_v57 = vsel %vm1784_vm3, %v8605_v3, -inf  ;;  %v1791_v10 = vsel %vm1784_vm3, %v8623_v9, -inf }
 0x2bf   : > { %2105 = vmax.xlane.f32.xlu0 %v2104_v57  ;;  %v8615_v37 = vsel %vm1647_vm2, %v2076_v45, -1e+30 }
 0x2c0   : > { %v1758_v34 = vpop.f32.mrf.mxu2  ;;  %v2098_v52 = vsel %vm1784_vm3, %v8615_v37, -inf }
 0x2c1   : > { %2099 = vmax.xlane.f32.xlu2 %v2098_v52  ;;  %1786 = vmax.xlane.f32.xlu1 %v1785_v58  ;;  %v1771_v51 = vmul.f32 0.125, %v1758_v34 }
 0x2c2   : > { %v2068_v36 = vpop.f32.mrf.mxu3  ;;  %v1704_v42 = vpop.f32.mrf.mxu0 }
 0x2c3   : > { %v2079_v8 = vmul.f32 0.125, %v2068_v36  ;;  %v1769_v6 = vmul.f32 0.125, %v1704_v42  ;;  %v8683_v58 = vsel %vm1647_vm2, %v1771_v51, -1e+30 }
 0x2c4   : > { %v1800_v15 = vsel %vm1784_vm3, %v8683_v58, -inf }
 0x2c5   : > { %v8659_v21 = vsel %vm1647_vm2, %v2079_v8, -1e+30  ;;  %v8677_v45 = vsel %vm1647_vm2, %v1769_v6, -1e+30 }
 0x2c6   : > { %v2107_v5 = vsel %vm1784_vm3, %v8659_v21, -inf  ;;  %v1794_v57 = vsel %vm1784_vm3, %v8677_v45, -inf }
 0x2c7   : > { %1792 = vmax.xlane.f32.xlu0 %v1791_v10 }
 0x2c8   : > { %v1761_v46 = vpop.f32.mrf.mxu2 }
 0x2c9   : > { %2102 = vmax.xlane.f32.xlu2 %v2101_v60  ;;  %1798 = vmax.xlane.f32.xlu1 %v1797_v61  ;;  %v1772_v10 = vmul.f32 0.125, %v1761_v46 }
 0x2ca   : > { %v2070_v4 = vpop.f32.mrf.mxu3 }
 0x2cb   : > { %v2080_v0 = vmul.f32 0.125, %v2070_v4  ;;  %v8695_v34 = vsel %vm1647_vm2, %v1772_v10, -1e+30 }
 0x2cc   : > { %v1803_v61 = vsel %vm1784_vm3, %v8695_v34, -inf }
 0x2cd   : > { %v8641_v11 = vsel %vm1647_vm2, %v2080_v0, -1e+30 }
 0x2ce   : > { %v2338_v16 = vpop.f32.mrf.mxu1  ;;  %v2110_v18 = vsel %vm1784_vm3, %v8641_v11, -inf }
 0x2cf   : > { %v2393_v43 = vmul.f32 0.125, %v2338_v16  ;;  %2111 = vmax.xlane.f32.xlu0 %v2110_v18 }
 0x2d0   : > { %v1763_v13 = vpop.f32.mrf.mxu2 }
 0x2d1   : > { %1789 = vmax.xlane.f32.xlu2 %v1788_v14  ;;  %v8653_v1 = vsel %vm1647_vm2, %v2393_v43, -1e+30  ;;  %v1773_v17 = vmul.f32 0.125, %v1763_v13 }
 0x2d2   : > { %v2409_v48 = vsel %vm1784_vm3, %v8653_v1, -inf }
 0x2d3   : > { %v8671_v38 = vsel %vm1647_vm2, %v1773_v17, -1e+30 }
 0x2d4   : > { %v1806_v41 = vsel %vm1784_vm3, %v8671_v38, -inf }
 0x2d6   : > { %v2340_v23 = vpop.f32.mrf.mxu1 }
 0x2d7   : > { %v2394_v19 = vmul.f32 0.125, %v2340_v23  ;;  %2410 = vmax.xlane.f32.xlu0 %v2409_v48 }
 0x2d9   : > { %v8665_v25 = vsel %vm1647_vm2, %v2394_v19, -1e+30  ;;  %2108 = vmax.xlane.f32.xlu2 %v2107_v5 }
 0x2da   : > { %v2412_v62 = vsel %vm1784_vm3, %v8665_v25, -inf }
 0x2db   : > { %2413 = vmax.xlane.f32.xlu1 %v2412_v62 }
 0x2de   : > { %v2343_v39 = vpop.f32.mrf.mxu1 }
 0x2df   : > { %1807 = vmax.xlane.f32.xlu0 %v1806_v41  ;;  %v2395_v33 = vmul.f32 0.125, %v2343_v39  ;;  %v8717_v39 = vpop.permute.xlu2 %2244 }
 0x2e1   : > { %1795 = vmax.xlane.f32.xlu2 %v1794_v57  ;;  %v8701_v16 = vsel %vm1647_vm2, %v2395_v33, -1e+30 }
 0x2e2   : > { %v2415_v43 = vsel %vm1784_vm3, %v8701_v16, -inf }
 0x2e6   : > { %v2345_v52 = vpop.f32.mrf.mxu1 }
 0x2e7   : > { %v2396_v56 = vmul.f32 0.125, %v2345_v52 }
 0x2e9   : > { %v8689_v36 = vsel %vm1647_vm2, %v2396_v56, -1e+30  ;;  %1801 = vmax.xlane.f32.xlu2 %v1800_v15 }
 0x2ea   : > { %v2418_v60 = vsel %vm1784_vm3, %v8689_v36, -inf }
 0x2eb   : > { %2419 = vmax.xlane.f32.xlu0 %v2418_v60 }
 0x2f1   : > { %1804 = vmax.xlane.f32.xlu2 %v1803_v61 }
 0x2f4   : > { %v2383_v4 = vpop.f32.mrf.mxu3 }
 0x2f5   : > { %v2397_v0 = vmul.f32 0.125, %v2383_v4 }
 0x2f7   : > { %v8705_v46 = vsel %vm1647_vm2, %v2397_v0, -1e+30 }
 0x2f8   : > { %v2421_v18 = vsel %vm1784_vm3, %v8705_v46, -inf }
 0x2f9   : > { %2422 = vmax.xlane.f32.xlu1 %v2421_v18  ;;  %2416 = vmax.xlane.f32.xlu2 %v2415_v43 }
 0x2fc   : > { %v2385_v14 = vpop.f32.mrf.mxu3 }
 0x2fd   : > { %v2398_v62 = vmul.f32 0.125, %v2385_v14 }
 0x2ff   : > { %v8722_v57 = vsel %vm1647_vm2, %v2398_v62, -1e+30 }
 0x300   : > { %v2424_v15 = vsel %vm1784_vm3, %v8722_v57, -inf }
 0x304   : > { %v2388_v48 = vpop.f32.mrf.mxu3 }
 0x305   : > { %v2399_v10 = vmul.f32 0.125, %v2388_v48 }
 0x307   : > { %v8735_v14 = vsel %vm1647_vm2, %v2399_v10, -1e+30 }
 0x30c   : > { %v2390_v51 = vpop.f32.mrf.mxu3 }
 0x30d   : > { %v2400_v60 = vmul.f32 0.125, %v2390_v51 }
 0x31c   : > { %v2091_v8 = vpop.xlane.xlu0 %2090 }
 0x31d   : > { %v2113_v13 = vsub.f32 %v8585_v27, %v2091_v8  ;;  %v8739_v8 = vsel %vm1647_vm2, %v2400_v60, -1e+30 }
 0x31f   : > { %v2121_v23 = vmul.f32 1.442695, %v2113_v13 }
 0x321   : > { %7596 = vpow2.f32 %v2121_v23 }
 0x324   : > { %v2094_v42 = vpop.xlane.xlu1 %2093 }
 0x325   : > { %v2114_v17 = vsub.f32 %v8593_v50, %v2094_v42 }
 0x327   : > { %v8713_v19 = vpop.eup %7596  ;;  %v2123_v5 = vmul.f32 1.442695, %v2114_v17 }
 0x328   : > { %v2137_v6 = vsel %vm1784_vm3, %v8713_v19, 0.0 }
 0x329   : > { %7598 = vpow2.f32 %v2123_v5  ;;  %2138 = vadd.xlane.f32.xlu0 %v2137_v6 }
 0x32c   : > { %v2097_v41 = vpop.xlane.xlu1 %2096 }
 0x32d   : > { %v2115_v27 = vsub.f32 %v8599_v22, %v2097_v41 }
 0x32f   : > { %v8724_v50 = vpop.eup %7598  ;;  %v2125_v52 = vmul.f32 1.442695, %v2115_v27 }
 0x330   : > { %v2140_v56 = vsel %vm1784_vm3, %v8724_v50, 0.0 }
 0x331   : > { %7600 = vpow2.f32 %v2125_v52  ;;  %2141 = vadd.xlane.f32.xlu1 %v2140_v56  ;;  %2425 = vmax.xlane.f32.xlu0 %v2424_v15 }
 0x332   : > { %v2106_v22 = vpop.xlane.xlu0 %2105 }
 0x333   : > { %v2118_v61 = vsub.f32 %v8605_v3, %v2106_v22  ;;  %v2427_v3 = vsel %vm1784_vm3, %v8735_v14, -inf }
 0x334   : > { %v2100_v4 = vpop.xlane.xlu2 %2099  ;;  %v1787_v0 = vpop.xlane.xlu1 %1786 }
 0x335   : > { %v2131_v33 = vmul.f32 1.442695, %v2118_v61  ;;  %v2116_v18 = vsub.f32 %v8615_v37, %v2100_v4  ;;  %v1809_v43 = vsub.f32 %v8611_v31, %v1787_v0  ;;  %v2430_v37 = vsel %vm1784_vm3, %v8739_v8, -inf }
 0x337   : > { %v8741_v13 = vpop.eup %7600  ;;  %v2127_v23 = vmul.f32 1.442695, %v2116_v18  ;;  %v1817_v48 = vmul.f32 1.442695, %v1809_v43  ;;  %7602 = vpow2.f32 %v2131_v33 }
 0x338   : > { %v2143_v31 = vsel %vm1784_vm3, %v8741_v13, 0.0 }
 0x339   : > { %7604 = vpow2.f32 %v2127_v23  ;;  %2428 = vmax.xlane.f32.xlu1 %v2427_v3  ;;  %2431 = vmax.xlane.f32.xlu0 %v2430_v37 }
 0x33a   : > { %7606 = vpow2.f32 %v1817_v48  ;;  %2144 = vadd.xlane.f32.xlu2 %v2143_v31  ;;  %v1793_v5 = vpop.xlane.xlu0 %1792 }
 0x33b   : > { %v1811_v10 = vsub.f32 %v8623_v9, %v1793_v5 }
 0x33c   : > { %v2103_v55 = vpop.xlane.xlu2 %2102  ;;  %v1799_v4 = vpop.xlane.xlu1 %1798 }
 0x33d   : > { %v2117_v42 = vsub.f32 %v8629_v12, %v2103_v55  ;;  %v8750_v17 = vpop.eup %7602  ;;  %v1821_v33 = vmul.f32 1.442695, %v1811_v10 }
 0x33e   : > { %v2152_v52 = vsel %vm1784_vm3, %v8750_v17, 0.0 }
 0x33f   : > { %v8752_v6 = vpop.eup %7604  ;;  %v2129_v62 = vmul.f32 1.442695, %v2117_v42 }
 0x340   : > { %v8754_v41 = vpop.eup %7606  ;;  %v2146_v27 = vsel %vm1784_vm3, %v8752_v6, 0.0 }
 0x341   : > { %7608 = vpow2.f32 %v2129_v62  ;;  %2147 = vadd.xlane.f32.xlu1 %v2146_v27  ;;  %v1833_v51 = vsel %vm1784_vm3, %v8754_v41, 0.0 }
 0x342   : > { %1834 = vadd.xlane.f32.xlu0 %v1833_v51  ;;  %2153 = vadd.xlane.f32.xlu2 %v2152_v52  ;;  %v8766_v22 = vpop.xlane.xlu0 %2111 }
 0x344   : > { %v1790_v12 = vpop.xlane.xlu2 %1789 }
 0x345   : > { %v1810_v56 = vsub.f32 %v8647_v29, %v1790_v12  ;;  %v1813_v29 = vsub.f32 %v8633_v20, %v1799_v4 }
 0x347   : > { %v8763_v15 = vpop.eup %7608  ;;  %v1819_v60 = vmul.f32 1.442695, %v1810_v56  ;;  %v1825_v23 = vmul.f32 1.442695, %v1813_v29 }
 0x348   : > { %v2149_v61 = vsel %vm1784_vm3, %v8763_v15, 0.0 }
 0x349   : > { %7610 = vpow2.f32 %v1819_v60 }
 0x34a   : > { %2150 = vadd.xlane.f32.xlu0 %v2149_v61  ;;  %7612 = vpow2.f32 %v1821_v33  ;;  %v2411_v9 = vpop.xlane.xlu0 %2410 }
 0x34b   : > { %7614 = vpow2.f32 %v1825_v23 }
 0x34c   : > { %v2109_v0 = vpop.xlane.xlu2 %2108 }
 0x34f   : > { %v8770_v18 = vpop.eup %7610 }
 0x350   : > { %v1836_v43 = vsel %vm1784_vm3, %v8770_v18, 0.0  ;;  %v8775_v3 = vpop.eup %7612 }
 0x351   : > { %1837 = vadd.xlane.f32.xlu1 %v1836_v43  ;;  %v1839_v55 = vsel %vm1784_vm3, %v8775_v3, 0.0  ;;  %v8780_v5 = vpop.eup %7614 }
 0x352   : > { %v1808_v42 = vpop.xlane.xlu0 %1807 }
 0x353   : > { %v1816_v51 = vsub.f32 %v8671_v38, %v1808_v42 }
 0x354   : > { %v1796_v48 = vpop.xlane.xlu2 %1795 }
 0x355   : > { %v1812_v37 = vsub.f32 %v8677_v45, %v1796_v48  ;;  %v1845_v45 = vsel %vm1784_vm3, %v8780_v5, 0.0  ;;  %v1831_v56 = vmul.f32 1.442695, %v1816_v51 }
 0x357   : > { %v1823_v31 = vmul.f32 1.442695, %v1812_v37 }
 0x359   : > { %7616 = vpow2.f32 %v1823_v31  ;;  %1840 = vadd.xlane.f32.xlu1 %v1839_v55 }
 0x35c   : > { %v1802_v20 = vpop.xlane.xlu2 %1801 }
 0x35d   : > { %v1814_v62 = vsub.f32 %v8683_v58, %v1802_v20 }
 0x35e   : > { %v2420_v48 = vpop.xlane.xlu0 %2419 }
 0x35f   : > { %v8783_v27 = vpop.eup %7616  ;;  %v1827_v52 = vmul.f32 1.442695, %v1814_v62 }
 0x360   : > { %v1842_v12 = vsel %vm1784_vm3, %v8783_v27, 0.0 }
 0x361   : > { %7618 = vpow2.f32 %v1827_v52  ;;  %1846 = vadd.xlane.f32.xlu1 %v1845_v45  ;;  %1843 = vadd.xlane.f32.xlu2 %v1842_v12  ;;  %v2120_v12 = vsub.f32 %v8641_v11, %v8766_v22 }
 0x362   : > { %7620 = vpow2.f32 %v1831_v56 }
 0x364   : > { %v1805_v10 = vpop.xlane.xlu2 %1804 }
 0x365   : > { %v1815_v60 = vsub.f32 %v8695_v34, %v1805_v10  ;;  %v2414_v34 = vpop.xlane.xlu1 %2413 }
 0x366   : > { %v2434_v23 = vsub.f32 %v8665_v25, %v2414_v34 }
 0x367   : > { %v8791_v61 = vpop.eup %7618  ;;  %v1829_v58 = vmul.f32 1.442695, %v1815_v60 }
 0x368   : > { %v1848_v38 = vsel %vm1784_vm3, %v8791_v61, 0.0  ;;  %v8795_v33 = vpop.eup %7620  ;;  %v2443_v37 = vmul.f32 1.442695, %v2434_v23 }
 0x369   : > { %7622 = vpow2.f32 %v1829_v58  ;;  %1849 = vadd.xlane.f32.xlu2 %v1848_v38  ;;  %v1854_v29 = vsel %vm1784_vm3, %v8795_v33, 0.0 }
 0x36a   : > { %7624 = vpow2.f32 %v2443_v37 }
 0x36c   : > { %v2417_v31 = vpop.xlane.xlu2 %2416 }
 0x36d   : > { %v2435_v55 = vsub.f32 %v8701_v16, %v2417_v31  ;;  %v2423_v42 = vpop.xlane.xlu1 %2422 }
 0x36e   : > { %v2437_v11 = vsub.f32 %v8705_v46, %v2423_v42 }
 0x36f   : > { %v8797_v4 = vpop.eup %7622  ;;  %v2445_v62 = vmul.f32 1.442695, %v2435_v55 }
 0x370   : > { %v1851_v43 = vsel %vm1784_vm3, %v8797_v4, 0.0  ;;  %v8814_v51 = vpop.eup %7624 }
 0x371   : > { %1855 = vadd.xlane.f32.xlu2 %v1854_v29  ;;  %1852 = vadd.xlane.f32.xlu0 %v1851_v43  ;;  %7626 = vpow2.f32 %v2445_v62  ;;  %v2460_v25 = vsel %vm1784_vm3, %v8814_v51, 0.0  ;;  %v2449_v43 = vmul.f32 1.442695, %v2437_v11 }
 0x377   : > { %v8824_v56 = vpop.eup %7626 }
 0x378   : > { %v2463_v60 = vsel %vm1784_vm3, %v8824_v56, 0.0 }
 0x37a   : > { %2246 = vrot.lane.b32.xlu1 %v8497_v63, %s7848_s24  ;;  %v2433_v63 = vsub.f32 %v8653_v1, %v2411_v9 }
 0x385   : > { %2240 = vrot.lane.b32.xlu0 %v8480_v35, %s7848_s24  ;;  %v2119_v35 = vsub.f32 %v8659_v21, %v2109_v0  ;;  %v2436_v21 = vsub.f32 %v8689_v36, %v2420_v48  ;;  %v2135_v0 = vmul.f32 1.442695, %v2120_v12 }
 0x387   : > { %v2133_v52 = vmul.f32 1.442695, %v2119_v35  ;;  %v2447_v58 = vmul.f32 1.442695, %v2436_v21 }
 0x389   : > { %2242 = vrot.lane.b32.xlu2 %v8485_v49, %s7848_s24  ;;  %v2441_v49 = vmul.f32 1.442695, %v2433_v63 }
 0x38b   : > { %7628 = vpow2.f32 %v2441_v49 }
 0x38c   : > { %7630 = vpow2.f32 %v2133_v52 }
 0x391   : > { %v8827_v10 = vpop.eup %7628 }
 0x392   : > { %v2457_v38 = vsel %vm1784_vm3, %v8827_v10, 0.0 }
 0x39c   : > { %v8811_v20 = vpop.xlane.xlu0 %2138 }
 0x3a4   : > { %v8819_v45 = vpop.xlane.xlu1 %2141  ;;  %2461 = vadd.xlane.f32.xlu1 %v2460_v25  ;;  %v2426_v16 = vpop.xlane.xlu0 %2425 }
 0x3a5   : > { %v2438_v1 = vsub.f32 %v8722_v57, %v2426_v16  ;;  %v8832_v57 = vpop.eup %7630 }
 0x3a6   : > { %v2155_v34 = vsel %vm1784_vm3, %v8832_v57, 0.0 }
 0x3a7   : > { %v2451_v9 = vmul.f32 1.442695, %v2438_v1  ;;  %v1580_v1 = vadd.f32 %v8548_v2, %v8531_v26  ;;  %v1629_v2 = vpack.c.bf16 %v8550_v44, %v8550_v44 }
 0x3a9   : > { %7632 = vpow2.f32 %v2451_v9 }
 0x3aa   : > { %7634 = vpow2.f32 %v2135_v0 }
 0x3ab   : > { %7636 = vpow2.f32 %v2447_v58  ;;  %v1609_v58 = vadd.f32 %v8552_v24, %v1580_v1 }
 0x3ac   : > { %2464 = vadd.xlane.f32.xlu1 %v2463_v60  ;;  %v2429_v22 = vpop.xlane.xlu1 %2428  ;;  %v2432_v23 = vpop.xlane.xlu0 %2431  ;;  %7638 = vpow2.f32 %v2449_v43  ;;  %v1575_v60 = vadd.f32 %v8536_v28, %v8531_v26  ;;  %v1623_v28 = vpack.c.bf16 %v8538_v30, %v8538_v30 }
 0x3ad   : > { %v2439_v29 = vsub.f32 %v8735_v14, %v2429_v22  ;;  %v2440_v31 = vsub.f32 %v8739_v8, %v2432_v23  ;;  %v8862_v16 = vpop.xlane.xlu2 %2144 }
 0x3af   : > { %2458 = vadd.xlane.f32.xlu0 %v2457_v38  ;;  %v8836_v36 = vpop.eup %7632  ;;  %v2453_v37 = vmul.f32 1.442695, %v2439_v29  ;;  %v2455_v42 = vmul.f32 1.442695, %v2440_v31  ;;  %v1604_v38 = vadd.f32 %v8540_v32, %v1575_v60  ;;  %v1632_v29 = vpack.c.bf16 %v1609_v58, %v1609_v58 }
 0x3b0   : > { %v8841_v48 = vpop.eup %7634  ;;  %v2472_v46 = vsel %vm1784_vm3, %v8836_v36, 0.0  ;;  %v2521_v31 = vunpack.c.l.b16 %v1629_v2 }
 0x3b1   : > { %v8846_v55 = vpop.eup %7636  ;;  %v2158_v14 = vsel %vm1784_vm3, %v8841_v48, 0.0  ;;  %7640 = vpow2.f32 %v2453_v37  ;;  %v1626_v24 = vpack.c.bf16 %v1604_v38, %v1604_v38 }
 0x3b2   : > { %2156 = vadd.xlane.f32.xlu2 %v2155_v34  ;;  %v2466_v63 = vsel %vm1784_vm3, %v8846_v55, 0.0  ;;  %v8852_v62 = vpop.eup %7638  ;;  %7642 = vpow2.f32 %v2455_v42 }
 0x3b3   : > { %v2469_v8 = vsel %vm1784_vm3, %v8852_v62, 0.0  ;;  %v2520_v44 = vunpack.c.l.b16 %v1626_v24 }
 0x3b4   : > { %2473 = vadd.xlane.f32.xlu1 %v2472_v46  ;;  %v8854_v35 = vpop.xlane.xlu1 %2147 }
 0x3b5   : > { %v1835_v49 = vpop.xlane.xlu0 %1834  ;;  %v8877_v34 = vpop.xlane.xlu2 %2153 }
 0x3b6   : > { %7644 = vrcp.f32 %v1835_v49 }
 0x3b7   : > { %2159 = vadd.xlane.f32.xlu0 %v2158_v14  ;;  %v8856_v25 = vpop.eup %7640 }
 0x3b8   : > { %v2475_v52 = vsel %vm1784_vm3, %v8856_v25, 0.0  ;;  %v8864_v12 = vpop.eup %7642 }
 0x3b9   : > { %v2478_v0 = vsel %vm1784_vm3, %v8864_v12, 0.0 }
 0x3ba   : > { %2467 = vadd.xlane.f32.xlu2 %v2466_v63  ;;  %v2519_v63 = vunpack.c.l.b16 %v1623_v28 }
 0x3bc   : > { %v7645_v21 = vpop.eup %7644  ;;  %v2523_v1 = vpack.c.b16 %v2520_v44, %v2519_v63 }
 0x3bd   : > { %v1865_v11 = vmul.f32 %v7645_v21, %v8754_v41  ;;  %v2522_v41 = vunpack.c.l.b16 %v1632_v29  ;;  %v2151_v21 = vpop.xlane.xlu0 %2150 }
 0x3bf   : > { %2470 = vadd.xlane.f32.xlu0 %v2469_v8  ;;  %v1873_v43 = vpack.c.bf16 %v1865_v11, %v1865_v11  ;;  %v2524_v49 = vpack.c.b16 %v2522_v41, %v2521_v31 }
 0x3c1   : > { %v1893_v14 = vunpack.c.l.b16 %v1873_v43 }
 0x3c2   : > { %2476 = vadd.xlane.f32.xlu2 %v2475_v52 }
 0x3c4   : > { %v1838_v9 = vpop.xlane.xlu1 %1837 }
 0x3c5   : > { %7646 = vrcp.f32 %v1838_v9 }
 0x3c7   : > { %2479 = vadd.xlane.f32.xlu0 %v2478_v0 }
 0x3cb   : > { %v7647_v22 = vpop.eup %7646 }
 0x3cc   : > { %v1866_v23 = vmul.f32 %v7647_v22, %v8770_v18  ;;  %v1841_v46 = vpop.xlane.xlu1 %1840 }
 0x3cd   : > { %7648 = vrcp.f32 %v1841_v46 }
 0x3ce   : > { %v1874_v37 = vpack.c.bf16 %v1866_v23, %v1866_v23 }
 0x3d0   : > { %v1894_v42 = vunpack.c.l.b16 %v1874_v37 }
 0x3d2   : > { %v1897_v32 = vpack.c.b16 %v1894_v42, %v1893_v14 }
 0x3d3   : > { %v7649_v18 = vpop.eup %7648 }
 0x3d4   : > { %v1847_v8 = vpop.xlane.xlu1 %1846  ;;  %6413 = vmatmul.msk.bf16.vlgmr.msrb.gmra.mxu0 %vm1784_vm3, %v1897_v32  ;;  %v1844_v52 = vpop.xlane.xlu2 %1843  ;;  %v1867_v30 = vmul.f32 %v7649_v18, %v8775_v3  ;;  %v2250_v32 = vrot.slane %v8717_v39, 4  ;;  %v1585_v39 = vadd.f32 %v8562_v54, %v8531_v26 }
 0x3d5   : > { %2539 = vmatpush.bf16.msrb.mxu0 %v2524_v49  ;;  %7650 = vrcp.f32 %v1844_v52  ;;  %v1590_v49 = vadd.f32 %v8578_v47, %v8531_v26 }
 0x3d6   : > { %7652 = vrcp.f32 %v1847_v8  ;;  %v1875_v11 = vpack.c.bf16 %v1867_v30, %v1867_v30  ;;  %v2264_v18 = vunpack.c.l.b16 %v2250_v32 }
 0x3d8   : > { %v1895_v2 = vunpack.c.l.b16 %v1875_v11 }
 0x3d9   : > { %2540 = vmatpush.bf16.msrb.mxu0 %v2523_v1 }
 0x3db   : > { %v7651_v9 = vpop.eup %7650 }
 0x3dc   : > { %v1850_v0 = vpop.xlane.xlu2 %1849  ;;  %v7653_v60 = vpop.eup %7652  ;;  %v1868_v58 = vmul.f32 %v7651_v9, %v8783_v27  ;;  %v1619_v9 = vadd.f32 %v8589_v53, %v1590_v49 }
 0x3dd   : > { %7654 = vrcp.f32 %v1850_v0  ;;  %v1869_v38 = vmul.f32 %v7653_v60, %v8780_v5 }
 0x3de   : > { %7656 = vrcp.f32 %v8819_v45  ;;  %v1876_v22 = vpack.c.bf16 %v1868_v58, %v1868_v58 }
 0x3df   : > { %7658 = vrcp.f32 %v8811_v20  ;;  %v1877_v46 = vpack.c.bf16 %v1869_v38, %v1869_v38  ;;  %v1644_v38 = vpack.c.bf16 %v1619_v9, %v1619_v9 }
 0x3e0   : > { %v1896_v29 = vunpack.c.l.b16 %v1876_v22  ;;  %v1641_v22 = vpack.c.bf16 %v8572_v7, %v8572_v7 }
 0x3e1   : > { %v1944_v31 = vunpack.c.l.b16 %v1877_v46  ;;  %v2569_v7 = vunpack.c.l.b16 %v1644_v38 }
 0x3e2   : > { %v1898_v23 = vpack.c.b16 %v1896_v29, %v1895_v2 }
 0x3e3   : > { %v7655_v43 = vpop.eup %7654 }
 0x3e4   : > { %v7657_v3 = vpop.eup %7656  ;;  %v1870_v37 = vmul.f32 %v7655_v43, %v8791_v61  ;;  %v1853_v28 = vpop.xlane.xlu0 %1852  ;;  %6414 = vmatmul.msk.bf16.gmra.mxu0 %vm1784_vm3, %v1898_v23  ;;  %v1635_v43 = vpack.c.bf16 %v8560_v40, %v8560_v40 }
 0x3e5   : > { %v1856_v24 = vpop.xlane.xlu2 %1855  ;;  %7660 = vrcp.f32 %v1853_v28  ;;  %v7659_v27 = vpop.eup %7658  ;;  %v2170_v20 = vmul.f32 %v7657_v3, %v8724_v50  ;;  %v2568_v3 = vunpack.c.l.b16 %v1641_v22 }
 0x3e6   : > { %v1878_v45 = vpack.c.bf16 %v1870_v37, %v1870_v37  ;;  %7662 = vrcp.f32 %v1856_v24  ;;  %v2169_v41 = vmul.f32 %v7659_v27, %v8713_v19 }
 0x3e7   : > { %v2178_v63 = vpack.c.bf16 %v2170_v20, %v2170_v20  ;;  %7664 = vrcp.f32 %v8854_v35 }
 0x3e8   : > { %v1945_v5 = vunpack.c.l.b16 %v1878_v45  ;;  %v2177_v8 = vpack.c.bf16 %v2169_v41, %v2169_v41  ;;  %7666 = vrcp.f32 %v8862_v16 }
 0x3e9   : > { %v2202_v1 = vunpack.c.l.b16 %v2178_v63  ;;  %7668 = vrcp.f32 %v2151_v21 }
 0x3ea   : > { %v1948_v14 = vpack.c.b16 %v1945_v5, %v1944_v31  ;;  %v2201_v0 = vunpack.c.l.b16 %v2177_v8  ;;  %7670 = vrcp.f32 %v8877_v34  ;;  %v2566_v34 = vunpack.c.l.b16 %v1635_v43 }
 0x3eb   : > { %v7661_v42 = vpop.eup %7660  ;;  %v2571_v31 = vpack.c.b16 %v2569_v7, %v2568_v3 }
 0x3ec   : > { %v7663_v61 = vpop.eup %7662  ;;  %v2247_v44 = vpop.permute.xlu1 %2246  ;;  %6415 = vmatmul.msk.bf16.vlgmr.msrb.gmra.mxu2 %vm1784_vm3, %v1948_v14  ;;  %v1871_v50 = vmul.f32 %v7661_v42, %v8797_v4  ;;  %v2205_v11 = vpack.c.b16 %v2202_v1, %v2201_v0 }
 0x3ed   : > { %v2251_v52 = vrot.slane %v2247_v44, 4  ;;  %v1872_v19 = vmul.f32 %v7663_v61, %v8795_v33  ;;  %v2243_v35 = vpop.permute.xlu2 %2242  ;;  %v7665_v4 = vpop.eup %7664  ;;  %v1614_v33 = vadd.f32 %v8565_v59, %v1585_v39 }
 0x3ee   : > { %v1879_v60 = vpack.c.bf16 %v1871_v50, %v1871_v50  ;;  %v7667_v26 = vpop.eup %7666  ;;  %v2249_v54 = vrot.slane %v2243_v35, 4  ;;  %v2172_v2 = vmul.f32 %v7665_v4, %v8752_v6 }
 0x3ef   : > { %v2265_v30 = vunpack.c.l.b16 %v2251_v52  ;;  %v1880_v58 = vpack.c.bf16 %v1872_v19, %v1872_v19  ;;  %v1638_v23 = vpack.c.bf16 %v1614_v33, %v1614_v33  ;;  %v2171_v21 = vmul.f32 %v7667_v26, %v8741_v13  ;;  %v7669_v24 = vpop.eup %7668 }
 0x3f0   : > { %v1946_v53 = vunpack.c.l.b16 %v1879_v60  ;;  %v2263_v46 = vunpack.c.l.b16 %v2249_v54  ;;  %v2180_v27 = vpack.c.bf16 %v2172_v2, %v2172_v2  ;;  %v7671_v6 = vpop.eup %7670  ;;  %v2173_v40 = vmul.f32 %v7669_v24, %v8763_v15 }
 0x3f1   : > { %v2267_v47 = vpack.c.b16 %v2265_v30, %v2264_v18  ;;  %v1947_v16 = vunpack.c.l.b16 %v1880_v58  ;;  %v2567_v20 = vunpack.c.l.b16 %v1638_v23  ;;  %v2179_v5 = vpack.c.bf16 %v2171_v21, %v2171_v21 }
 0x3f2   : > { %v2204_v41 = vunpack.c.l.b16 %v2180_v27  ;;  %v2174_v13 = vmul.f32 %v7671_v6, %v8750_v17  ;;  %v2181_v32 = vpack.c.bf16 %v2173_v40, %v2173_v40 }
 0x3f3   : > { %2282 = vmatpush.bf16.msra.mxu2 %v2267_v47  ;;  %v1949_v28 = vpack.c.b16 %v1947_v16, %v1946_v53  ;;  %v2203_v14 = vunpack.c.l.b16 %v2179_v5  ;;  %v2570_v42 = vpack.c.b16 %v2567_v20, %v2566_v34 }
 0x3f4   : > { %6421 = vmatmul.msk.bf16.vlgmr.msra.gmra.mxu0 %vm1784_vm3, %v2205_v11  ;;  %v2182_v61 = vpack.c.bf16 %v2174_v13, %v2174_v13  ;;  %v2256_v44 = vunpack.c.l.b16 %v2181_v32 }
 0x3f5   : > { %v2206_v63 = vpack.c.b16 %v2204_v41, %v2203_v14 }
 0x3f6   : > { %v2257_v49 = vunpack.c.l.b16 %v2182_v61 }
 0x3f7   : > { %v2241_v29 = vpop.permute.xlu0 %2240 }
 0x3f8   : > { %v2248_v59 = vrot.slane %v2241_v29, 4  ;;  %v2260_v8 = vpack.c.b16 %v2257_v49, %v2256_v44 }
 0x3fa   : > { %v2262_v37 = vunpack.c.l.b16 %v2248_v59 }
 0x3fc   : > { %v2266_v45 = vpack.c.b16 %v2263_v46, %v2262_v37  ;;  %6416 = vmatmul.msk.bf16.gmra.mxu2 %vm1784_vm3, %v1949_v28 }
 0x3fe   : > { %2283 = vmatpush.bf16.msra.mxu2 %v2266_v45 }
 0x402   : > { %2586 = vmatpush.bf16.msrb.mxu2 %v2571_v31 }
 0x404   : > { %6422 = vmatmul.msk.bf16.gmra.mxu0 %vm1784_vm3, %v2206_v63 }
 0x406   : > { %2587 = vmatpush.bf16.msrb.mxu2 %v2570_v42 }
 0x40c   : > { %6423 = vmatmul.msk.bf16.vlgmr.msra.gmra.mxu2 %vm1784_vm3, %v2260_v8 }
 0x417   : > { %v2462_v52 = vpop.xlane.xlu1 %2461 }
 0x418   : > { %7672 = vrcp.f32 %v2462_v52 }
 0x41e   : > { %v7673_v50 = vpop.eup %7672 }
 0x41f   : > { %v2490_v17 = vmul.f32 %v7673_v50, %v8814_v51  ;;  %v2465_v18 = vpop.xlane.xlu1 %2464 }
 0x421   : > { %v2498_v30 = vpack.c.bf16 %v2490_v17, %v2490_v17 }
 0x422   : > { %v2459_v15 = vpop.xlane.xlu0 %2458 }
 0x423   : > { %7674 = vrcp.f32 %v2459_v15  ;;  %v2510_v58 = vunpack.c.l.b16 %v2498_v30 }
 0x425   : > { %v2157_v19 = vpop.xlane.xlu2 %2156 }
 0x426   : > { %7676 = vrcp.f32 %v2157_v19 }
 0x427   : > { %v2474_v22 = vpop.xlane.xlu1 %2473 }
 0x429   : > { %v7675_v1 = vpop.eup %7674 }
 0x42a   : > { %v2489_v39 = vmul.f32 %v7675_v1, %v8827_v10  ;;  %v2160_v9 = vpop.xlane.xlu0 %2159 }
 0x42b   : > { %7678 = vrcp.f32 %v2160_v9 }
 0x42c   : > { %v7677_v0 = vpop.eup %7676  ;;  %v2497_v47 = vpack.c.bf16 %v2489_v39, %v2489_v39  ;;  %7680 = vrcp.f32 %v2465_v18 }
 0x42d   : > { %v2468_v60 = vpop.xlane.xlu2 %2467  ;;  %v2175_v35 = vmul.f32 %v7677_v0, %v8832_v57 }
 0x42e   : > { %v2509_v11 = vunpack.c.l.b16 %v2497_v47  ;;  %7682 = vrcp.f32 %v2468_v60  ;;  %v6523_v60 = vld [vmem:[%s7975_s0 + $0xb0] sm:$0xf] }
 0x42f   : > { %v2183_v51 = vpack.c.bf16 %v2175_v35, %v2175_v35 }
 0x430   : > { %v2513_v4 = vpack.c.b16 %v2510_v58, %v2509_v11  ;;  %v7379_v58 = vld [vmem:[%s7975_s0 + $0xb4] sm:$0xf0]  ;;  %v7378_v11 = vld [vmem:[%s7975_s0 + $0xb4] sm:$0xf] }
 0x431   : > { %v7679_v33 = vpop.eup %7678  ;;  %v2258_v57 = vunpack.c.l.b16 %v2183_v51  ;;  %v6525_v51 = vld [vmem:[%s7975_s0 + $0xb8] sm:$0xf0] }
 0x432   : > { %v2176_v38 = vmul.f32 %v7679_v33, %v8841_v48  ;;  %v2471_v26 = vpop.xlane.xlu0 %2470  ;;  %6429 = vmatmul.msk.bf16.vlgmr.msrb.gmra.mxu0 %vm1784_vm3, %v2513_v4  ;;  %v7681_v10 = vpop.eup %7680  ;;  %v6524_v33 = vor.u32 %v7379_v58, %v6523_v60  ;;  %v6477_v60 = vld [vmem:[%s7975_s0 + $0x58] sm:$0xf0] }
 0x433   : > { %7684 = vrcp.f32 %v2471_v26  ;;  %v2491_v2 = vmul.f32 %v7681_v10, %v8824_v56  ;;  %v7377_v26 = vld [vmem:[%s7975_s0 + $0xa4] sm:$0xf0]  ;;  %v7376_v10 = vld [vmem:[%s7975_s0 + $0xa4] sm:$0xf] }
 0x434   : > { %v7683_v54 = vpop.eup %7682  ;;  %v2184_v53 = vpack.c.bf16 %v2176_v38, %v2176_v38  ;;  %7686 = vrcp.f32 %v2474_v22  ;;  %v6528_v22 = vor.u32 %v7378_v11, %v6525_v51  ;;  %2886 = vmatpush.bf16.msrb.mxu3 %v6524_v33  ;;  %v6515_v38 = vld [vmem:[%s7975_s0 + $0xa0] sm:$0xf]  ;;  %v7364_v33 = vld [vmem:[%s7975_s0 + $0x44] sm:$0xf] }
 0x435   : > { %v2492_v16 = vmul.f32 %v7683_v54, %v8846_v55  ;;  %v2499_v3 = vpack.c.bf16 %v2491_v2, %v2491_v2  ;;  %v2477_v56 = vpop.xlane.xlu2 %2476  ;;  %v6516_v54 = vor.u32 %v7377_v26, %v6515_v38 }
 0x436   : > { %v2259_v29 = vunpack.c.l.b16 %v2184_v53  ;;  %2944 = vmatpush.bf16.msra.mxu2 %v6528_v22  ;;  %v6517_v53 = vld [vmem:[%s7975_s0 + $0xa8] sm:$0xf0] }
 0x437   : > { %v2500_v43 = vpack.c.bf16 %v2492_v16, %v2492_v16  ;;  %v2511_v46 = vunpack.c.l.b16 %v2499_v3  ;;  %v6520_v16 = vor.u32 %v7376_v10, %v6517_v53  ;;  %v6509_v3 = vld [vmem:[%s7975_s0 + $0x98] sm:$0xf0]  ;;  %v6469_v22 = vld [vmem:[%s7975_s0 + $0x48] sm:$0xf0]  ;;  %v6459_v10 = vld [vmem:[%s7975_s0 + $0x30] sm:$0xf] }
 0x438   : > { %v2261_v59 = vpack.c.b16 %v2259_v29, %v2258_v57  ;;  %2887 = vmatpush.bf16.msrb.mxu3 %v6516_v54  ;;  %v6507_v57 = vld [vmem:[%s7975_s0 + $0x90] sm:$0xf]  ;;  %v7375_v29 = vld [vmem:[%s7975_s0 + $0x94] sm:$0xf0]  ;;  %v6472_v38 = vor.u32 %v7364_v33, %v6469_v22  ;;  %v7362_v53 = vld [vmem:[%s7975_s0 + $0x34] sm:$0xf] }
 0x439   : > { %v7685_v23 = vpop.eup %7684  ;;  %v2512_v7 = vunpack.c.l.b16 %v2500_v43  ;;  %v7374_v43 = vld [vmem:[%s7975_s0 + $0x94] sm:$0xf]  ;;  %v7363_v54 = vld [vmem:[%s7975_s0 + $0x34] sm:$0xf0] }
 0x43a   : > { %6424 = vmatmul.msk.bf16.gmra.mxu2 %vm1784_vm3, %v2261_v59  ;;  %v7687_v48 = vpop.eup %7686  ;;  %v2493_v21 = vmul.f32 %v7685_v23, %v8852_v62  ;;  %v2480_v24 = vpop.xlane.xlu0 %2479  ;;  %v6508_v23 = vor.u32 %v7375_v29, %v6507_v57  ;;  %v6461_v57 = vld [vmem:[%s7975_s0 + $0x38] sm:$0xf0] }
 0x43b   : > { %v2494_v37 = vmul.f32 %v7687_v48, %v8836_v36  ;;  %v2514_v55 = vpack.c.b16 %v2512_v7, %v2511_v46  ;;  %7688 = vrcp.f32 %v2480_v24  ;;  %2945 = vmatpush.bf16.msra.mxu2 %v6520_v16  ;;  %v6512_v7 = vor.u32 %v7374_v43, %v6509_v3  ;;  %v7372_v24 = vld [vmem:[%s7975_s0 + $0x84] sm:$0xf] }
 0x43c   : > { %v2501_v28 = vpack.c.bf16 %v2493_v21, %v2493_v21  ;;  %7690 = vrcp.f32 %v2477_v56  ;;  %2888 = vmatpush.bf16.msrb.mxu3 %v6508_v23 }
 0x43d   : > { %v2502_v27 = vpack.c.bf16 %v2494_v37, %v2494_v37  ;;  %v6499_v37 = vld [vmem:[%s7975_s0 + $0x80] sm:$0xf] }
 0x43e   : > { %v2556_v45 = vunpack.c.l.b16 %v2501_v28  ;;  %v7373_v28 = vld [vmem:[%s7975_s0 + $0x84] sm:$0xf0] }
 0x43f   : > { %v2557_v6 = vunpack.c.l.b16 %v2502_v27  ;;  %2946 = vmatpush.bf16.msra.mxu2 %v6512_v7  ;;  %v6501_v27 = vld [vmem:[%s7975_s0 + $0x88] sm:$0xf0] }
 0x441   : > { %v2560_v34 = vpack.c.b16 %v2557_v6, %v2556_v45  ;;  %v7689_v20 = vpop.eup %7688  ;;  %v6504_v45 = vor.u32 %v7372_v24, %v6501_v27  ;;  %v6453_v24 = vld [vmem:[%s7975_s0 + $0x28] sm:$0xf0] }
 0x442   : > { %6430 = vmatmul.msk.bf16.gmra.mxu0 %vm1784_vm3, %v2514_v55  ;;  %v7691_v31 = vpop.eup %7690  ;;  %v2496_v62 = vmul.f32 %v7689_v20, %v8864_v12  ;;  %v6500_v55 = vor.u32 %v7373_v28, %v6499_v37  ;;  %v7371_v20 = vld [vmem:[%s7975_s0 + $0x74] sm:$0xf0]  ;;  %v7360_v37 = vld [vmem:[%s7975_s0 + $0x24] sm:$0xf] }
 0x443   : > { %v2495_v36 = vmul.f32 %v7691_v31, %v8856_v25  ;;  %2947 = vmatpush.bf16.msra.mxu2 %v6504_v45  ;;  %v7370_v31 = vld [vmem:[%s7975_s0 + $0x74] sm:$0xf]  ;;  %v6456_v45 = vor.u32 %v7360_v37, %v6453_v24  ;;  %v2715_v24 = vld [vmem:[%s10811_s21] sm:$0x3] }
 0x444   : > { %v2504_v5 = vpack.c.bf16 %v2496_v62, %v2496_v62  ;;  %2889 = vmatpush.bf16.msrb.mxu3 %v6500_v55 }
 0x445   : > { %v2503_v41 = vpack.c.bf16 %v2495_v36, %v2495_v36  ;;  %v6493_v36 = vld [vmem:[%s7975_s0 + $0x78] sm:$0xf0] }
 0x446   : > { %v2559_v13 = vunpack.c.l.b16 %v2504_v5 }
 0x447   : > { %v2558_v14 = vunpack.c.l.b16 %v2503_v41  ;;  %v6496_v41 = vor.u32 %v7370_v31, %v6493_v36  ;;  %v6445_v36 = vld [vmem:[%s7975_s0 + $0x18] sm:$0xf0] }
 0x449   : > { %v2561_v42 = vpack.c.b16 %v2559_v13, %v2558_v14  ;;  %2911 = vmatpush.bf16.msra.mxu0 %v6496_v41 }
 0x44a   : > { %6431 = vmatmul.msk.bf16.vlgmr.msrb.gmra.mxu2 %vm1784_vm3, %v2560_v34  ;;  %v6491_v34 = vld [vmem:[%s7975_s0 + $0x70] sm:$0xf] }
 0x44b   : > { %v6492_v62 = vor.u32 %v7371_v20, %v6491_v34  ;;  %v7359_v34 = vld [vmem:[%s7975_s0 + $0x14] sm:$0xf0]  ;;  %v7358_v20 = vld [vmem:[%s7975_s0 + $0x14] sm:$0xf] }
 0x44c   : > { %v6448_v41 = vor.u32 %v7358_v20, %v6445_v36 }
 0x44d   : > { %2853 = vmatpush.bf16.msrb.mxu1 %v6492_v62 }
 0x451   : > { %v8931_v40 = vpop.f32.mrf.mxu0 }
 0x459   : > { %v8933_v32 = vpop.f32.mrf.mxu0 }
 0x45a   : > { %6432 = vmatmul.msk.bf16.gmra.mxu2 %vm1784_vm3, %v2561_v42  ;;  %v6483_v42 = vld [vmem:[%s7975_s0 + $0x60] sm:$0xf] }
 0x461   : > { %v8936_v63 = vpop.f32.mrf.mxu0 }
 0x469   : > { %v8938_v61 = vpop.f32.mrf.mxu0 }
 0x46f   : > { %v8940_v44 = vpop.f32.mrf.mxu2 }
 0x471   : > { %v2230_v12 = vpop.f32.mrf.mxu0 }
 0x472   : > { %v2295_v25 = vpack.c.bf16 %v2230_v12, %v2230_v12  ;;  %v7369_v12 = vld [vmem:[%s7975_s0 + $0x64] sm:$0xf0] }
 0x474   : > { %v2635_v15 = vunpack.c.l.b16 %v2295_v25  ;;  %v7368_v25 = vld [vmem:[%s7975_s0 + $0x64] sm:$0xf] }
 0x477   : > { %v8942_v49 = vpop.f32.mrf.mxu2 }
 0x479   : > { %v2232_v8 = vpop.f32.mrf.mxu0 }
 0x47a   : > { %v2296_v52 = vpack.c.bf16 %v2232_v8, %v2232_v8  ;;  %v6484_v8 = vor.u32 %v7369_v12, %v6483_v42  ;;  %v7356_v42 = vld [vmem:[%s7975_s0 + $0x4] sm:$0xf] }
 0x47c   : > { %v2636_v50 = vunpack.c.l.b16 %v2296_v52  ;;  %v6485_v52 = vld [vmem:[%s7975_s0 + $0x68] sm:$0xf0]  ;;  %2854 = vmatpush.bf16.msrb.mxu1 %v6484_v8 }
 0x47e   : > { %v2643_v17 = vpack.c.b16 %v2636_v50, %v2635_v15 }
 0x47f   : > { %v8944_v19 = vpop.f32.mrf.mxu2 }
 0x480   : > { %2647 = vrot.lane.b32.xlu1 %v2643_v17, %s7848_s24  ;;  %v6488_v17 = vor.u32 %v7368_v25, %v6485_v52  ;;  %v6437_v25 = vld [vmem:[%s7975_s0 + $0x8] sm:$0xf0] }
 0x481   : > { %v2235_v18 = vpop.f32.mrf.mxu0  ;;  %v6440_v8 = vor.u32 %v7356_v42, %v6437_v25 }
 0x482   : > { %v2297_v30 = vpack.c.bf16 %v2235_v18, %v2235_v18  ;;  %2912 = vmatpush.bf16.msra.mxu0 %v6488_v17 }
 0x484   : > { %v2637_v0 = vunpack.c.l.b16 %v2297_v30  ;;  %v6475_v30 = vld [vmem:[%s7975_s0 + $0x50] sm:$0xf] }
 0x487   : > { %v8947_v1 = vpop.f32.mrf.mxu2 }
 0x489   : > { %v2237_v39 = vpop.f32.mrf.mxu0 }
 0x48a   : > { %v2298_v9 = vpack.c.bf16 %v2237_v39, %v2237_v39  ;;  %v7367_v39 = vld [vmem:[%s7975_s0 + $0x54] sm:$0xf0] }
 0x48c   : > { %v2638_v47 = vunpack.c.l.b16 %v2298_v9  ;;  %v7366_v9 = vld [vmem:[%s7975_s0 + $0x54] sm:$0xf] }
 0x48d   : > { %v6480_v58 = vor.u32 %v7366_v9, %v6477_v60 }
 0x48e   : > { %v2644_v4 = vpack.c.b16 %v2638_v47, %v2637_v0  ;;  %v6476_v47 = vor.u32 %v7367_v39, %v6475_v30 }
 0x48f   : > { %v2285_v35 = vpop.f32.mrf.mxu2  ;;  %2913 = vmatpush.bf16.msra.mxu0 %v6480_v58  ;;  %v1984_v58 = vpack.c.bf16 %v8933_v32, %v8933_v32  ;;  %v1986_v32 = vpack.c.bf16 %v8938_v61, %v8938_v61 }
 0x490   : > { %2649 = vrot.lane.b32.xlu2 %v2644_v4, %s7848_s24  ;;  %v2299_v2 = vpack.c.bf16 %v2285_v35, %v2285_v35  ;;  %2855 = vmatpush.bf16.msrb.mxu1 %v6476_v47  ;;  %v6467_v35 = vld [vmem:[%s7975_s0 + $0x40] sm:$0xf]  ;;  %v7365_v4 = vld [vmem:[%s7975_s0 + $0x44] sm:$0xf0] }
 0x491   : > { %v6468_v51 = vor.u32 %v7365_v4, %v6467_v35  ;;  %v1983_v35 = vpack.c.bf16 %v8931_v40, %v8931_v40  ;;  %v2616_v33 = vunpack.c.l.b16 %v1984_v58  ;;  %v2618_v40 = vunpack.c.l.b16 %v1986_v32  ;;  %v7827_v32 = vld [vmem:[#allocation2 + $0x28] sm:$0xff] }
 0x492   : > { %v2639_v21 = vunpack.c.l.b16 %v2299_v2  ;;  %v6460_v2 = vor.u32 %v7363_v54, %v6459_v10  ;;  %v1985_v10 = vpack.c.bf16 %v8936_v63, %v8936_v63 }
 0x493   : > { %2914 = vmatpush.bf16.msra.mxu0 %v6472_v38 }
 0x494   : > { %2856 = vmatpush.bf16.msrb.mxu1 %v6468_v51  ;;  %v2615_v51 = vunpack.c.l.b16 %v1983_v35  ;;  %v2617_v54 = vunpack.c.l.b16 %v1985_v10 }
 0x496   : > { %v2623_v22 = vpack.c.b16 %v2616_v33, %v2615_v51 }
 0x497   : > { %v2287_v59 = vpop.f32.mrf.mxu2 }
 0x498   : > { %v2300_v48 = vpack.c.bf16 %v2287_v59, %v2287_v59  ;;  %v6464_v59 = vor.u32 %v7362_v53, %v6461_v57  ;;  %2857 = vmatpush.bf16.msrb.mxu1 %v6460_v2  ;;  %v1988_v57 = vpack.c.bf16 %v8942_v49, %v8942_v49 }
 0x49a   : > { %v2640_v46 = vunpack.c.l.b16 %v2300_v48  ;;  %2915 = vmatpush.bf16.msra.mxu0 %v6464_v59 }
 0x49c   : > { %v2645_v56 = vpack.c.b16 %v2640_v46, %v2639_v21  ;;  %v6451_v21 = vld [vmem:[%s7975_s0 + $0x20] sm:$0xf]  ;;  %v7361_v46 = vld [vmem:[%s7975_s0 + $0x24] sm:$0xf0] }
 0x49d   : > { %v6452_v28 = vor.u32 %v7361_v46, %v6451_v21 }
 0x49e   : > { %2651 = vrot.lane.b32.xlu0 %v2645_v56, %s7848_s24  ;;  %2916 = vmatpush.bf16.msra.mxu0 %v6456_v45 }
 0x49f   : > { %2858 = vmatpush.bf16.msrb.mxu1 %v6452_v28 }
 0x4a2   : > { %2917 = vmatpush.bf16.msra.mxu0 %v6448_v41 }
 0x4a6   : > { %2918 = vmatpush.bf16.msra.mxu0 %v6440_v8 }
 0x4af   : > { %v2542_v6 = vpop.f32.mrf.mxu0 }
 0x4b0   : > { %v2599_v5 = vpack.c.bf16 %v2542_v6, %v2542_v6  ;;  %v6443_v6 = vld [vmem:[%s7975_s0 + $0x10] sm:$0xf] }
 0x4b1   : > { %v6444_v62 = vor.u32 %v7359_v34, %v6443_v6 }
 0x4b2   : > { %v2663_v15 = vunpack.c.l.b16 %v2599_v5 }
 0x4b3   : > { %2859 = vmatpush.bf16.msrb.mxu1 %v6444_v62  ;;  %v7822_v62 = vld [vmem:[#allocation2] sm:$0xff] }
 0x4b7   : > { %v2544_v13 = vpop.f32.mrf.mxu0 }
 0x4b8   : > { %v2600_v14 = vpack.c.bf16 %v2544_v13, %v2544_v13  ;;  %v6435_v13 = vld [vmem:[%s7975_s0] sm:$0xf] }
 0x4ba   : > { %v2664_v50 = vunpack.c.l.b16 %v2600_v14  ;;  %v7357_v14 = vld [vmem:[%s7975_s0 + $0x4] sm:$0xf0] }
 0x4bb   : > { %v6436_v12 = vor.u32 %v7357_v14, %v6435_v13 }
 0x4bc   : > { %v2671_v18 = vpack.c.b16 %v2664_v50, %v2663_v15 }
 0x4bd   : > { %v2290_v0 = vpop.f32.mrf.mxu2  ;;  %2860 = vmatpush.bf16.msrb.mxu1 %v6436_v12 }
 0x4be   : > { %6529 = vmatmul.msk.bf16.vlgmr.msrb.gmra.mxu3 %vm1318_vm1, %v2671_v18  ;;  %6533 = vmatmul.msk.bf16.vlgmr.msra.gmra.mxu2 %vm1318_vm1, %v2671_v18  ;;  %v2301_v26 = vpack.c.bf16 %v2290_v0, %v2290_v0 }
 0x4bf   : > { %v2547_v11 = vpop.f32.mrf.mxu0 }
 0x4c0   : > { %v2601_v29 = vpack.c.bf16 %v2547_v11, %v2547_v11  ;;  %v2641_v3 = vunpack.c.l.b16 %v2301_v26 }
 0x4c2   : > { %v2665_v55 = vunpack.c.l.b16 %v2601_v29  ;;  %v1987_v29 = vpack.c.bf16 %v8940_v44, %v8940_v44 }
 0x4c4   : > { %v2619_v59 = vunpack.c.l.b16 %v1987_v29 }
 0x4c5   : > { %v2292_v16 = vpop.f32.mrf.mxu2 }
 0x4c6   : > { %v2302_v43 = vpack.c.bf16 %v2292_v16, %v2292_v16  ;;  %v2624_v16 = vpack.c.b16 %v2618_v40, %v2617_v54 }
 0x4c7   : > { %v2549_v23 = vpop.f32.mrf.mxu0 }
 0x4c8   : > { %v2642_v48 = vunpack.c.l.b16 %v2302_v43  ;;  %v2602_v7 = vpack.c.bf16 %v2549_v23, %v2549_v23  ;;  %v2620_v43 = vunpack.c.l.b16 %v1988_v57 }
 0x4ca   : > { %v2666_v27 = vunpack.c.l.b16 %v2602_v7  ;;  %v2646_v56 = vpack.c.b16 %v2642_v48, %v2641_v3  ;;  %v2625_v23 = vpack.c.b16 %v2620_v43, %v2619_v59  ;;  %v1990_v3 = vpack.c.bf16 %v8947_v1, %v8947_v1  ;;  %v7828_v59 = vld [vmem:[#allocation2 + $0x30] sm:$0xff] }
 0x4cb   : > { %v1989_v48 = vpack.c.bf16 %v8944_v19, %v8944_v19  ;;  %v9035_v1 = vperm.slane %v2715_v24, 1 }
 0x4cc   : > { %v2672_v31 = vpack.c.b16 %v2666_v27, %v2665_v55  ;;  %2653 = vrot.lane.b32.xlu1 %v2646_v56, %s7848_s24  ;;  %v2622_v7 = vunpack.c.l.b16 %v1990_v3  ;;  %v9033_v55 = vperm.slane %v2715_v24, 0 }
 0x4cd   : > { %v2589_v5 = vpop.f32.mrf.mxu2  ;;  %v2621_v49 = vunpack.c.l.b16 %v1989_v48 }
 0x4ce   : > { %6530 = vmatmul.msk.bf16.gmra.mxu3 %vm1318_vm1, %v2672_v31  ;;  %6534 = vmatmul.msk.bf16.gmra.mxu2 %vm1318_vm1, %v2672_v31  ;;  %v2603_v15 = vpack.c.bf16 %v2589_v5, %v2589_v5  ;;  %v7823_v5 = vld [vmem:[#allocation2 + $0x8] sm:$0xff] }
 0x4cf   : > { %v2626_v21 = vpack.c.b16 %v2622_v7, %v2621_v49 }
 0x4d0   : > { %v2667_v18 = vunpack.c.l.b16 %v2603_v15 }
 0x4d5   : > { %v2591_v52 = vpop.f32.mrf.mxu2 }
 0x4d6   : > { %v2604_v50 = vpack.c.bf16 %v2591_v52, %v2591_v52 }
 0x4d8   : > { %v2668_v17 = vunpack.c.l.b16 %v2604_v50 }
 0x4da   : > { %v2673_v30 = vpack.c.b16 %v2668_v17, %v2667_v18  ;;  %v7824_v18 = vld [vmem:[#allocation2 + $0x10] sm:$0xff] }
 0x4dd   : > { %v2594_v39 = vpop.f32.mrf.mxu2 }
 0x4de   : > { %6531 = vmatmul.msk.bf16.gmra.mxu3 %vm1318_vm1, %v2673_v30  ;;  %6535 = vmatmul.msk.bf16.gmra.mxu2 %vm1318_vm1, %v2673_v30  ;;  %v2605_v0 = vpack.c.bf16 %v2594_v39, %v2594_v39  ;;  %v7825_v39 = vld [vmem:[#allocation2 + $0x18] sm:$0xff] }
 0x4e0   : > { %v2669_v11 = vunpack.c.l.b16 %v2605_v0 }
 0x4e5   : > { %v2596_v9 = vpop.f32.mrf.mxu2 }
 0x4e6   : > { %v2606_v47 = vpack.c.bf16 %v2596_v9, %v2596_v9 }
 0x4e8   : > { %v2670_v60 = vunpack.c.l.b16 %v2606_v47 }
 0x4ea   : > { %v2674_v4 = vpack.c.b16 %v2670_v60, %v2669_v11  ;;  %v2650_v53 = vpop.permute.xlu2 %2649 }
 0x4eb   : > { %v2681_v2 = vsel %vm1318_vm1, %v2624_v16, %v2650_v53 }
 0x4ee   : > { %6532 = vmatmul.msk.bf16.gmra.mxu3 %vm1318_vm1, %v2674_v4  ;;  %6536 = vmatmul.msk.bf16.gmra.mxu2 %vm1318_vm1, %v2674_v4 }
 0x4f2   : > { %v2648_v38 = vpop.permute.xlu1 %2647 }
 0x4f3   : > { %v2677_v26 = vsel %vm1318_vm1, %v2623_v22, %v2648_v38  ;;  %v7826_v38 = vld [vmem:[#allocation2 + $0x20] sm:$0xff] }
 0x4f4   : > { %2861 = vmatmul.bf16.vlgmr.msrb.gmra.mxu1 %v2677_v26  ;;  %2919 = vmatmul.bf16.vlgmr.msra.gmra.mxu0 %v2677_v26 }
 0x504   : > { %2866 = vmatmul.bf16.gmra.mxu1 %v2681_v2  ;;  %2924 = vmatmul.bf16.gmra.mxu0 %v2681_v2 }
 0x510   : > { %v2652_v61 = vpop.permute.xlu0 %2651 }
 0x511   : > { %v2685_v63 = vsel %vm1318_vm1, %v2625_v23, %v2652_v61  ;;  %v7829_v23 = vld [vmem:[#allocation2 + $0x38] sm:$0xff] }
 0x514   : > { %2871 = vmatmul.bf16.gmra.mxu1 %v2685_v63  ;;  %2929 = vmatmul.bf16.gmra.mxu0 %v2685_v63 }
 0x53e   : > { %v2654_v46 = vpop.permute.xlu1 %2653 }
 0x53f   : > { %v2689_v44 = vsel %vm1318_vm1, %v2626_v21, %v2654_v46 }
 0x540   : > { %2876 = vmatmul.bf16.gmra.mxu1 %v2689_v44  ;;  %2934 = vmatmul.bf16.gmra.mxu0 %v2689_v44 }
 0x541   : > { %v2891_v37 = vpop.f32.mrf.mxu3  ;;  %v2949_v28 = vpop.f32.mrf.mxu2 }
 0x549   : > { %v2893_v56 = vpop.f32.mrf.mxu3  ;;  %v2951_v45 = vpop.f32.mrf.mxu2 }
 0x551   : > { %v2896_v52 = vpop.f32.mrf.mxu3  ;;  %v2954_v15 = vpop.f32.mrf.mxu2 }
 0x559   : > { %v2898_v51 = vpop.f32.mrf.mxu3  ;;  %v2956_v22 = vpop.f32.mrf.mxu2 }
 0x561   : > { %v2901_v3 = vpop.f32.mrf.mxu3  ;;  %v2959_v48 = vpop.f32.mrf.mxu2 }
 0x571   : > { %v2862_v19 = vpop.f32.mrf.mxu1  ;;  %v2920_v27 = vpop.f32.mrf.mxu0 }
 0x572   : > { %v2863_v6 = vadd.f32 %v2862_v19, %v9033_v55  ;;  %v2921_v34 = vadd.f32 %v2920_v27, %v9035_v1  ;;  %v7830_v19 = vld [vmem:[#allocation2 + $0x40] sm:$0xff] }
 0x574   : > { %v2892_v20 = vadd.f32 %v2891_v37, %v2863_v6  ;;  %v2950_v31 = vadd.f32 %v2949_v28, %v2921_v34 }
 0x576   : > { %v9039_v36 = vadd.f32 %v7822_v62, %v2892_v20  ;;  %v9041_v41 = vadd.f32 %v7823_v5, %v2950_v31 }
 0x578   : > { %v2987_v13 = vsel %vm1318_vm1, %v9041_v41, 0.0 }
 0x579   : > { %v2864_v14 = vpop.f32.mrf.mxu1  ;;  %v2922_v42 = vpop.f32.mrf.mxu0  ;;  %v2988_v12 = vadd.f32 %v2987_v13, %v9039_v36 }
 0x57a   : > { %v2865_v25 = vadd.f32 %v2864_v14, %v9033_v55  ;;  %v2923_v8 = vadd.f32 %v2922_v42, %v9035_v1  ;;  %v2903_v13 = vpop.f32.mrf.mxu3  ;;  %v2961_v14 = vpop.f32.mrf.mxu2 }
 0x57b   : > { %2989 = vadd.xlane.f32.xlu0 %v2988_v12 }
 0x57c   : > { %v2894_v50 = vadd.f32 %v2893_v56, %v2865_v25  ;;  %v2952_v17 = vadd.f32 %v2951_v45, %v2923_v8  ;;  %v7831_v56 = vld [vmem:[#allocation2 + $0x48] sm:$0xff]  ;;  %v7832_v25 = vld [vmem:[#allocation2 + $0x50] sm:$0xff] }
 0x57e   : > { %v9048_v30 = vadd.f32 %v7824_v18, %v2894_v50  ;;  %v9050_v9 = vadd.f32 %v7825_v39, %v2952_v17 }
 0x580   : > { %v2991_v0 = vsel %vm1318_vm1, %v9050_v9, 0.0 }
 0x581   : > { %v2867_v47 = vpop.f32.mrf.mxu1  ;;  %v2925_v60 = vpop.f32.mrf.mxu0  ;;  %v2992_v58 = vadd.f32 %v2991_v0, %v9048_v30 }
 0x582   : > { %v2868_v11 = vadd.f32 %v2867_v47, %v9033_v55  ;;  %v2926_v35 = vadd.f32 %v2925_v60, %v9035_v1  ;;  %v2906_v18 = vpop.f32.mrf.mxu3  ;;  %v2964_v39 = vpop.f32.mrf.mxu2 }
 0x583   : > { %2993 = vadd.xlane.f32.xlu2 %v2992_v58 }
 0x584   : > { %v2897_v4 = vadd.f32 %v2896_v52, %v2868_v11  ;;  %v2955_v33 = vadd.f32 %v2954_v15, %v2926_v35  ;;  %v7833_v52 = vld [vmem:[#allocation2 + $0x58] sm:$0xff] }
 0x586   : > { %v9057_v26 = vadd.f32 %v7826_v38, %v2897_v4  ;;  %v9059_v10 = vadd.f32 %v7827_v32, %v2955_v33  ;;  %v7834_v4 = vld [vmem:[#allocation2 + $0x60] sm:$0xff] }
 0x588   : > { %v2995_v40 = vsel %vm1318_vm1, %v9059_v10, 0.0 }
 0x589   : > { %v2869_v54 = vpop.f32.mrf.mxu1  ;;  %v2927_v53 = vpop.f32.mrf.mxu0  ;;  %v2996_v16 = vadd.f32 %v2995_v40, %v9057_v26 }
 0x58a   : > { %v2870_v2 = vadd.f32 %v2869_v54, %v9033_v55  ;;  %v2928_v57 = vadd.f32 %v2927_v53, %v9035_v1 }
 0x58b   : > { %2997 = vadd.xlane.f32.xlu1 %v2996_v16 }
 0x58c   : > { %v2899_v29 = vadd.f32 %v2898_v51, %v2870_v2  ;;  %v2957_v43 = vadd.f32 %v2956_v22, %v2928_v57  ;;  %v7835_v51 = vld [vmem:[#allocation2 + $0x68] sm:$0xff]  ;;  %v2908_v2 = vpop.f32.mrf.mxu3  ;;  %v2966_v57 = vpop.f32.mrf.mxu2 }
 0x58e   : > { %v9066_v61 = vadd.f32 %v7828_v59, %v2899_v29  ;;  %v9068_v63 = vadd.f32 %v7829_v23, %v2957_v43  ;;  %v7836_v59 = vld [vmem:[#allocation2 + $0x70] sm:$0xff] }
 0x590   : > { %v2999_v7 = vsel %vm1318_vm1, %v9068_v63, 0.0 }
 0x591   : > { %v2872_v49 = vpop.f32.mrf.mxu1  ;;  %v2930_v21 = vpop.f32.mrf.mxu0  ;;  %v3000_v46 = vadd.f32 %v2999_v7, %v9066_v61 }
 0x592   : > { %v2873_v44 = vadd.f32 %v2872_v49, %v9033_v55  ;;  %v2931_v37 = vadd.f32 %v2930_v21, %v9035_v1 }
 0x593   : > { %3001 = vadd.xlane.f32.xlu0 %v3000_v46 }
 0x594   : > { %v2902_v28 = vadd.f32 %v2901_v3, %v2873_v44  ;;  %v2960_v24 = vadd.f32 %v2959_v48, %v2931_v37  ;;  %v7837_v3 = vld [vmem:[#allocation2 + $0x78] sm:$0xff] }
 0x596   : > { %v9075_v27 = vadd.f32 %v7830_v19, %v2902_v28  ;;  %v9077_v45 = vadd.f32 %v7831_v56, %v2960_v24 }
 0x598   : > { %v3003_v6 = vsel %vm1318_vm1, %v9077_v45, 0.0 }
 0x599   : > { %v2874_v34 = vpop.f32.mrf.mxu1  ;;  %v2932_v20 = vpop.f32.mrf.mxu0  ;;  %v3004_v31 = vadd.f32 %v3003_v6, %v9075_v27 }
 0x59a   : > { %v2875_v62 = vadd.f32 %v2874_v34, %v9033_v55  ;;  %v2933_v5 = vadd.f32 %v2932_v20, %v9035_v1 }
 0x59b   : > { %3005 = vadd.xlane.f32.xlu2 %v3004_v31 }
 0x59c   : > { %v2904_v42 = vadd.f32 %v2903_v13, %v2875_v62  ;;  %v2962_v12 = vadd.f32 %v2961_v14, %v2933_v5 }
 0x59e   : > { %v9084_v8 = vadd.f32 %v7832_v25, %v2904_v42  ;;  %v9086_v15 = vadd.f32 %v7833_v52, %v2962_v12 }
 0x5a0   : > { %v3007_v50 = vsel %vm1318_vm1, %v9086_v15, 0.0 }
 0x5a1   : > { %v3008_v17 = vadd.f32 %v3007_v50, %v9084_v8 }
 0x5a3   : > { %3009 = vadd.xlane.f32.xlu1 %v3008_v17 }
 0x5bd   : > { %v2877_v0 = vpop.f32.mrf.mxu1  ;;  %v2935_v47 = vpop.f32.mrf.mxu0 }
 0x5be   : > { %v2878_v60 = vadd.f32 %v2877_v0, %v9033_v55  ;;  %v2936_v58 = vadd.f32 %v2935_v47, %v9035_v1 }
 0x5c0   : > { %v2907_v11 = vadd.f32 %v2906_v18, %v2878_v60  ;;  %v2965_v35 = vadd.f32 %v2964_v39, %v2936_v58 }
 0x5c2   : > { %v9093_v33 = vadd.f32 %v7834_v4, %v2907_v11  ;;  %v9095_v22 = vadd.f32 %v7835_v51, %v2965_v35 }
 0x5c4   : > { %v3011_v38 = vsel %vm1318_vm1, %v9095_v22, 0.0 }
 0x5c5   : > { %v2879_v32 = vpop.f32.mrf.mxu1  ;;  %v2937_v40 = vpop.f32.mrf.mxu0  ;;  %v3012_v54 = vadd.f32 %v3011_v38, %v9093_v33 }
 0x5c6   : > { %v2880_v53 = vadd.f32 %v2879_v32, %v9033_v55  ;;  %v2938_v16 = vadd.f32 %v2937_v40, %v9035_v1  ;;  %v7849_v55 = vmov 192.0  }
 0x5c7   : > { %3013 = vadd.xlane.f32.xlu0 %v3012_v54  ;;  %7692 = vrcp.f32 %v7849_v55 }
 0x5c8   : > { %v2909_v29 = vadd.f32 %v2908_v2, %v2880_v53  ;;  %v2967_v43 = vadd.f32 %v2966_v57, %v2938_v16 }
 0x5ca   : > { %v9102_v23 = vadd.f32 %v7836_v59, %v2909_v29  ;;  %v9104_v48 = vadd.f32 %v7837_v3, %v2967_v43 }
 0x5cc   : > { %v3015_v7 = vsel %vm1318_vm1, %v9104_v48, 0.0 }
 0x5cd   : > { %v3016_v49 = vadd.f32 %v3015_v7, %v9102_v23  ;;  %v7693_v1 = vpop.eup %7692 }
 0x5ce   : > { %v3020_v21 = vmul.f32 192.0, %v7693_v1  ;;  %vm3024_vm4 = vweird.f32 %v7693_v1 }
 0x5cf   : > { %3017 = vadd.xlane.f32.xlu2 %v3016_v49 }
 0x5d0   : > { %v3021_v46 = vsub.f32 1.0, %v3020_v21 }
 0x5d2   : > { %v3022_v44 = vmul.f32 %v7693_v1, %v3021_v46 }
 0x5d4   : > { %v3023_v37 = vadd.f32 %v7693_v1, %v3022_v44 }
 0x5d6   : > { %v9109_v28 = vsel %vm3024_vm4, %v7693_v1, %v3023_v37 }
 0x5d7   : > { %10812 = vst [vmem:[#allocation5_spill] sm:$0xff] %v9109_v28 }
 0x5ee   : > { %v2990_v24 = vpop.xlane.xlu0 %2989 }
 0x5ef   : > { %v3026_v19 = vmul.f32 %v9109_v28, %v2990_v24 }
 0x5f1   : > { %v9113_v56 = vsub.f32 %v9039_v36, %v3026_v19  ;;  %v9116_v6 = vsub.f32 %v9041_v41, %v3026_v19 }
 0x5f3   : > { %v3050_v34 = vmul.f32 %v9113_v56, %v9113_v56  ;;  %v3051_v20 = vmul.f32 %v9116_v6, %v9116_v6 }
 0x5f5   : > { %v3066_v31 = vsel %vm1318_vm1, %v3051_v20, 0.0  ;;  %v6707_v20 = vld [vmem:[%s7992_s2 + $0x150] sm:$0xf] }
 0x5f6   : > { %v2994_v62 = vpop.xlane.xlu2 %2993  ;;  %v3067_v5 = vadd.f32 %v3066_v31, %v3050_v34  ;;  %v7422_v31 = vld [vmem:[%s7992_s2 + $0x154] sm:$0xf] }
 0x5f7   : > { %v3027_v13 = vmul.f32 %v9109_v28, %v2994_v62  ;;  %v6709_v62 = vld [vmem:[%s7992_s2 + $0x168] sm:$0xf0] }
 0x5f8   : > { %3068 = vadd.xlane.f32.xlu1 %v3067_v5  ;;  %v6712_v5 = vor.u32 %v7422_v31, %v6709_v62  ;;  %v7389_v31 = vld [vmem:[%s7992_s2 + $0x44] sm:$0xf0] }
 0x5f9   : > { %v9125_v14 = vsub.f32 %v9048_v30, %v3027_v13  ;;  %v9128_v36 = vsub.f32 %v9050_v9, %v3027_v13  ;;  %v6683_v13 = vld [vmem:[%s7992_s2 + $0x120] sm:$0xf] }
 0x5fa   : > { %3776 = vmatpush.bf16.msrb.mxu0 %v6712_v5  ;;  %v7437_v5 = vld [vmem:[%s7992_s2 + $0x1c4] sm:$0xf0] }
 0x5fb   : > { %v3052_v41 = vmul.f32 %v9125_v14, %v9125_v14  ;;  %v3053_v42 = vmul.f32 %v9128_v36, %v9128_v36 }
 0x5fd   : > { %v3070_v12 = vsel %vm1318_vm1, %v3053_v42, 0.0  ;;  %v7416_v42 = vld [vmem:[%s7992_s2 + $0x124] sm:$0xf] }
 0x5fe   : > { %v2998_v25 = vpop.xlane.xlu1 %2997  ;;  %v3071_v52 = vadd.f32 %v3070_v12, %v3052_v41  ;;  %v7419_v41 = vld [vmem:[%s7992_s2 + $0x134] sm:$0xf0] }
 0x5ff   : > { %v3028_v50 = vmul.f32 %v9109_v28, %v2998_v25  ;;  %v6684_v12 = vor.u32 %v7419_v41, %v6683_v13  ;;  %v6685_v25 = vld [vmem:[%s7992_s2 + $0x138] sm:$0xf0]  ;;  %v7386_v13 = vld [vmem:[%s7992_s2 + $0x34] sm:$0xf]  ;;  %v6565_v41 = vld [vmem:[%s7992_s2 + $0x48] sm:$0xf0] }
 0x600   : > { %3072 = vadd.xlane.f32.xlu0 %v3071_v52  ;;  %v6688_v52 = vor.u32 %v7416_v42, %v6685_v25  ;;  %v6568_v25 = vor.u32 %v7386_v13, %v6565_v41 }
 0x601   : > { %v9137_v17 = vsub.f32 %v9057_v26, %v3028_v50  ;;  %v9140_v30 = vsub.f32 %v9059_v10, %v3028_v50  ;;  %v6659_v50 = vld [vmem:[%s7992_s2 + $0xf0] sm:$0xf] }
 0x602   : > { %3777 = vmatpush.bf16.msrb.mxu0 %v6688_v52  ;;  %v7434_v52 = vld [vmem:[%s7992_s2 + $0x1b4] sm:$0xf] }
 0x603   : > { %v3054_v9 = vmul.f32 %v9137_v17, %v9137_v17  ;;  %v3055_v18 = vmul.f32 %v9140_v30, %v9140_v30 }
 0x605   : > { %v3074_v39 = vsel %vm1318_vm1, %v3055_v18, 0.0  ;;  %v7410_v18 = vld [vmem:[%s7992_s2 + $0xf4] sm:$0xf] }
 0x606   : > { %v3002_v0 = vpop.xlane.xlu0 %3001  ;;  %v3075_v47 = vadd.f32 %v3074_v39, %v3054_v9  ;;  %v7413_v9 = vld [vmem:[%s7992_s2 + $0x104] sm:$0xf0] }
 0x607   : > { %v3029_v60 = vmul.f32 %v9109_v28, %v3002_v0  ;;  %v6660_v39 = vor.u32 %v7413_v9, %v6659_v50  ;;  %v6661_v0 = vld [vmem:[%s7992_s2 + $0x108] sm:$0xf0] }
 0x608   : > { %3076 = vadd.xlane.f32.xlu2 %v3075_v47  ;;  %v6664_v47 = vor.u32 %v7410_v18, %v6661_v0  ;;  %v6757_v50 = vld [vmem:[%s7992_s2 + $0x1c8] sm:$0xf0]  ;;  %v7383_v0 = vld [vmem:[%s7992_s2 + $0x14] sm:$0xf0] }
 0x609   : > { %v9149_v58 = vsub.f32 %v9066_v61, %v3029_v60  ;;  %v9152_v26 = vsub.f32 %v9068_v63, %v3029_v60  ;;  %v6635_v60 = vld [vmem:[%s7992_s2 + $0xc0] sm:$0xf]  ;;  %v6760_v18 = vor.u32 %v7434_v52, %v6757_v50 }
 0x60a   : > { %3778 = vmatpush.bf16.msrb.mxu0 %v6664_v47  ;;  %v6731_v47 = vld [vmem:[%s7992_s2 + $0x180] sm:$0xf] }
 0x60b   : > { %v3056_v10 = vmul.f32 %v9149_v58, %v9149_v58  ;;  %v3057_v11 = vmul.f32 %v9152_v26, %v9152_v26 }
 0x60d   : > { %v3078_v35 = vsel %vm1318_vm1, %v3057_v11, 0.0  ;;  %v7404_v11 = vld [vmem:[%s7992_s2 + $0xc4] sm:$0xf] }
 0x60e   : > { %v3006_v4 = vpop.xlane.xlu2 %3005  ;;  %v3079_v51 = vadd.f32 %v3078_v35, %v3056_v10  ;;  %v7407_v10 = vld [vmem:[%s7992_s2 + $0xd4] sm:$0xf0] }
 0x60f   : > { %v3030_v38 = vmul.f32 %v9109_v28, %v3006_v4  ;;  %v6636_v35 = vor.u32 %v7407_v10, %v6635_v60  ;;  %v6637_v4 = vld [vmem:[%s7992_s2 + $0xd8] sm:$0xf0] }
 0x610   : > { %3080 = vadd.xlane.f32.xlu1 %v3079_v51  ;;  %v6640_v51 = vor.u32 %v7404_v11, %v6637_v4  ;;  %v7431_v11 = vld [vmem:[%s7992_s2 + $0x194] sm:$0xf0] }
 0x611   : > { %v9161_v32 = vsub.f32 %v9075_v27, %v3030_v38  ;;  %v9164_v61 = vsub.f32 %v9077_v45, %v3030_v38  ;;  %v6611_v38 = vld [vmem:[%s7992_s2 + $0x90] sm:$0xf]  ;;  %v6732_v4 = vor.u32 %v7431_v11, %v6731_v47 }
 0x612   : > { %3779 = vmatpush.bf16.msrb.mxu0 %v6640_v51  ;;  %v6541_v51 = vld [vmem:[%s7992_s2 + $0x18] sm:$0xf0] }
 0x613   : > { %v3058_v63 = vmul.f32 %v9161_v32, %v9161_v32  ;;  %v3059_v40 = vmul.f32 %v9164_v61, %v9164_v61 }
 0x615   : > { %v3082_v54 = vsel %vm1318_vm1, %v3059_v40, 0.0  ;;  %v6803_v40 = vld [vmem:[%s7992_s2 + $0x210] sm:$0xf] }
 0x616   : > { %v3010_v53 = vpop.xlane.xlu1 %3009  ;;  %v3083_v16 = vadd.f32 %v3082_v54, %v3058_v63  ;;  %v7401_v63 = vld [vmem:[%s7992_s2 + $0xa4] sm:$0xf0] }
 0x617   : > { %v3031_v2 = vmul.f32 %v9109_v28, %v3010_v53  ;;  %v6612_v54 = vor.u32 %v7401_v63, %v6611_v38  ;;  %v7449_v53 = vld [vmem:[%s7992_s2 + $0x224] sm:$0xf0]  ;;  %v7428_v38 = vld [vmem:[%s7992_s2 + $0x184] sm:$0xf]  ;;  %v6733_v63 = vld [vmem:[%s7992_s2 + $0x198] sm:$0xf0] }
 0x618   : > { %3084 = vadd.xlane.f32.xlu0 %v3083_v16  ;;  %v7398_v16 = vld [vmem:[%s7992_s2 + $0x94] sm:$0xf] }
 0x619   : > { %v9173_v57 = vsub.f32 %v9084_v8, %v3031_v2  ;;  %v9176_v27 = vsub.f32 %v9086_v15, %v3031_v2  ;;  %v6613_v2 = vld [vmem:[%s7992_s2 + $0xa8] sm:$0xf0] }
 0x61b   : > { %v3060_v45 = vmul.f32 %v9173_v57, %v9173_v57  ;;  %v3061_v29 = vmul.f32 %v9176_v27, %v9176_v27 }
 0x61d   : > { %v3086_v43 = vsel %vm1318_vm1, %v3061_v29, 0.0  ;;  %v6616_v29 = vor.u32 %v7398_v16, %v6613_v2 }
 0x61e   : > { %v3087_v59 = vadd.f32 %v3086_v43, %v3060_v45  ;;  %v6804_v45 = vor.u32 %v7449_v53, %v6803_v40  ;;  %v7446_v43 = vld [vmem:[%s7992_s2 + $0x214] sm:$0xf] }
 0x61f   : > { %3780 = vmatpush.bf16.msrb.mxu0 %v6616_v29 }
 0x620   : > { %3088 = vadd.xlane.f32.xlu2 %v3087_v59  ;;  %v6805_v59 = vld [vmem:[%s7992_s2 + $0x228] sm:$0xf0]  ;;  %3751 = vmatpush.bf16.msra.mxu3 %v6804_v45 }
 0x63a   : > { %v3014_v3 = vpop.xlane.xlu0 %3013 }
 0x63b   : > { %v3032_v7 = vmul.f32 %v9109_v28, %v3014_v3  ;;  %v6808_v3 = vor.u32 %v7446_v43, %v6805_v59 }
 0x63d   : > { %v9185_v49 = vsub.f32 %v9093_v33, %v3032_v7  ;;  %v9188_v8 = vsub.f32 %v9095_v22, %v3032_v7  ;;  %v6587_v7 = vld [vmem:[%s7992_s2 + $0x60] sm:$0xf]  ;;  %3809 = vmatpush.bf16.msrb.mxu2 %v6808_v3 }
 0x63f   : > { %v3062_v15 = vmul.f32 %v9185_v49, %v9185_v49  ;;  %v3063_v55 = vmul.f32 %v9188_v8, %v9188_v8 }
 0x641   : > { %v3090_v1 = vsel %vm1318_vm1, %v3063_v55, 0.0  ;;  %v6779_v55 = vld [vmem:[%s7992_s2 + $0x1e0] sm:$0xf] }
 0x642   : > { %v3018_v21 = vpop.xlane.xlu2 %3017  ;;  %v3091_v46 = vadd.f32 %v3090_v1, %v3062_v15  ;;  %v7395_v15 = vld [vmem:[%s7992_s2 + $0x74] sm:$0xf0] }
 0x643   : > { %v3033_v33 = vmul.f32 %v9109_v28, %v3018_v21  ;;  %v6588_v1 = vor.u32 %v7395_v15, %v6587_v7  ;;  %v7443_v21 = vld [vmem:[%s7992_s2 + $0x1f4] sm:$0xf0] }
 0x644   : > { %3092 = vadd.xlane.f32.xlu1 %v3091_v46  ;;  %v7392_v46 = vld [vmem:[%s7992_s2 + $0x64] sm:$0xf] }
 0x645   : > { %v9197_v22 = vsub.f32 %v9102_v23, %v3033_v33  ;;  %v9200_v44 = vsub.f32 %v9104_v48, %v3033_v33  ;;  %v7425_v23 = vld [vmem:[%s7992_s2 + $0x164] sm:$0xf0]  ;;  %v6589_v33 = vld [vmem:[%s7992_s2 + $0x78] sm:$0xf0] }
 0x646   : > { %v6708_v48 = vor.u32 %v7425_v23, %v6707_v20  ;;  %v6563_v23 = vld [vmem:[%s7992_s2 + $0x30] sm:$0xf] }
 0x647   : > { %v3064_v37 = vmul.f32 %v9197_v22, %v9197_v22  ;;  %v3065_v24 = vmul.f32 %v9200_v44, %v9200_v44  ;;  %v6564_v62 = vor.u32 %v7389_v31, %v6563_v23 }
 0x648   : > { %3718 = vmatpush.bf16.msra.mxu1 %v6708_v48  ;;  %v6755_v48 = vld [vmem:[%s7992_s2 + $0x1b0] sm:$0xf] }
 0x649   : > { %v3094_v19 = vsel %vm1318_vm1, %v3065_v24, 0.0  ;;  %v6592_v24 = vor.u32 %v7392_v46, %v6589_v33  ;;  %v2985_v33 = vld [vmem:[%s10813_s25] sm:$0x3] }
 0x64a   : > { %v3095_v34 = vadd.f32 %v3094_v19, %v3064_v37  ;;  %v6780_v37 = vor.u32 %v7443_v21, %v6779_v55  ;;  %v7440_v19 = vld [vmem:[%s7992_s2 + $0x1e4] sm:$0xf]  ;;  %v9265_v23 = vperm.slane %v2985_v33, 1 }
 0x64b   : > { %3781 = vmatpush.bf16.msrb.mxu0 %v6592_v24 }
 0x64c   : > { %3096 = vadd.xlane.f32.xlu0 %v3095_v34  ;;  %3719 = vmatpush.bf16.msra.mxu1 %v6684_v12  ;;  %v6781_v34 = vld [vmem:[%s7992_s2 + $0x1f8] sm:$0xf0]  ;;  %v6756_v12 = vor.u32 %v7437_v5, %v6755_v48  ;;  %v2986_v48 = vld [vmem:[%s10814_s15] sm:$0x3] }
 0x64d   : > { %v6784_v20 = vor.u32 %v7440_v19, %v6781_v34  ;;  %3752 = vmatpush.bf16.msra.mxu3 %v6780_v37  ;;  %v9275_v52 = vperm.slane %v2986_v48, 0  ;;  %v9277_v50 = vperm.slane %v2986_v48, 1 }
 0x64f   : > { %3810 = vmatpush.bf16.msrb.mxu2 %v6784_v20  ;;  %3782 = vmatpush.bf16.msrb.mxu0 %v6568_v25  ;;  %v9263_v20 = vperm.slane %v2985_v33, 0 }
 0x650   : > { %3720 = vmatpush.bf16.msra.mxu1 %v6660_v39  ;;  %v6539_v39 = vld [vmem:[%s7992_s2] sm:$0xf] }
 0x651   : > { %3753 = vmatpush.bf16.msra.mxu3 %v6756_v12  ;;  %v6540_v10 = vor.u32 %v7383_v0, %v6539_v39 }
 0x653   : > { %3811 = vmatpush.bf16.msrb.mxu2 %v6760_v18 }
 0x654   : > { %3721 = vmatpush.bf16.msra.mxu1 %v6636_v35  ;;  %v7380_v35 = vld [vmem:[%s7992_s2 + $0x4] sm:$0xf] }
 0x655   : > { %v6544_v40 = vor.u32 %v7380_v35, %v6541_v51  ;;  %3754 = vmatpush.bf16.msra.mxu3 %v6732_v4 }
 0x657   : > { %3783 = vmatpush.bf16.msrb.mxu0 %v6544_v40 }
 0x658   : > { %3722 = vmatpush.bf16.msra.mxu1 %v6612_v54  ;;  %v6736_v54 = vor.u32 %v7428_v38, %v6733_v63 }
 0x65a   : > { %3812 = vmatpush.bf16.msrb.mxu2 %v6736_v54 }
 0x65c   : > { %3723 = vmatpush.bf16.msra.mxu1 %v6588_v1 }
 0x660   : > { %3724 = vmatpush.bf16.msra.mxu1 %v6564_v62 }
 0x664   : > { %3725 = vmatpush.bf16.msra.mxu1 %v6540_v10 }
 0x66b   : > { %v3069_v42 = vpop.xlane.xlu1 %3068 }
 0x66c   : > { %v3098_v9 = vmul.f32 %v3069_v42, %v9109_v28 }
 0x66e   : > { %v3106_v60 = vadd.f32 1e-05, %v3098_v9 }
 0x670   : > { %7694 = vrsqrt.f32 %v3106_v60  ;;  %vm3120_vm6 = vweird.f32 %v3106_v60 }
 0x673   : > { %v3073_v53 = vpop.xlane.xlu0 %3072 }
 0x674   : > { %v3099_v16 = vmul.f32 %v3073_v53, %v9109_v28 }
 0x676   : > { %v7695_v2 = vpop.eup %7694  ;;  %v3107_v45 = vadd.f32 1e-05, %v3099_v16 }
 0x677   : > { %v3115_v29 = vmul.f32 %v7695_v2, %v3106_v60  ;;  %vm3121_vm5 = vweird.f32 %v7695_v2 }
 0x678   : > { %7696 = vrsqrt.f32 %v3107_v45  ;;  %vm3122_vm7 = vmor %vm3120_vm6, %vm3121_vm5  ;;  %vm3130_vm9 = vweird.f32 %v3107_v45 }
 0x679   : > { %v3116_v43 = vmul.f32 %v7695_v2, %v3115_v29 }
 0x67b   : > { %v3117_v59 = vmul.f32 0.5, %v3116_v43  ;;  %v3077_v3 = vpop.xlane.xlu2 %3076 }
 0x67c   : > { %v3100_v7 = vmul.f32 %v3077_v3, %v9109_v28 }
 0x67d   : > { %v3118_v15 = vsub.f32 1.5, %v3117_v59 }
 0x67e   : > { %v7697_v55 = vpop.eup %7696  ;;  %v3108_v1 = vadd.f32 1e-05, %v3100_v7 }
 0x67f   : > { %v3119_v21 = vmul.f32 %v7695_v2, %v3118_v15  ;;  %v3125_v46 = vmul.f32 %v7697_v55, %v3107_v45  ;;  %vm3131_vm8 = vweird.f32 %v7697_v55 }
 0x680   : > { %7698 = vrsqrt.f32 %v3108_v1  ;;  %vm3132_vm10 = vmor %vm3130_vm9, %vm3131_vm8  ;;  %vm3140_vm12 = vweird.f32 %v3108_v1 }
 0x681   : > { %v3126_v37 = vmul.f32 %v7697_v55, %v3125_v46  ;;  %v3123_v24 = vsel %vm3122_vm7, %v7695_v2, %v3119_v21 }
 0x682   : > { %v3194_v62 = vmul.f32 %v3123_v24, %v9113_v56  ;;  %v3195_v5 = vmul.f32 %v3123_v24, %v9116_v6 }
 0x683   : > { %v3127_v19 = vmul.f32 0.5, %v3126_v37  ;;  %v3081_v34 = vpop.xlane.xlu1 %3080 }
 0x684   : > { %v3101_v31 = vmul.f32 %v3081_v34, %v9109_v28  ;;  %v3215_v9 = vmul.f32 %v9263_v20, %v3194_v62  ;;  %v3216_v18 = vmul.f32 %v9265_v23, %v3195_v5 }
 0x685   : > { %v3128_v13 = vsub.f32 1.5, %v3127_v19 }
 0x686   : > { %v7699_v41 = vpop.eup %7698  ;;  %v3109_v42 = vadd.f32 1e-05, %v3101_v31  ;;  %v9287_v4 = vadd.f32 %v9275_v52, %v3215_v9  ;;  %v9290_v51 = vadd.f32 %v9277_v50, %v3216_v18 }
 0x687   : > { %v3129_v12 = vmul.f32 %v7697_v55, %v3128_v13  ;;  %v3135_v25 = vmul.f32 %v7699_v41, %v3108_v1  ;;  %vm3141_vm11 = vweird.f32 %v7699_v41 }
 0x688   : > { %7700 = vrsqrt.f32 %v3109_v42  ;;  %vm3142_vm13 = vmor %vm3140_vm12, %vm3141_vm11  ;;  %vm3150_vm15 = vweird.f32 %v3109_v42 }
 0x689   : > { %v3133_v56 = vsel %vm3132_vm10, %v7697_v55, %v3129_v12  ;;  %v3136_v39 = vmul.f32 %v7699_v41, %v3135_v25 }
 0x68a   : > { %v3196_v6 = vmul.f32 %v3133_v56, %v9125_v14  ;;  %v3197_v0 = vmul.f32 %v3133_v56, %v9128_v36 }
 0x68b   : > { %v3137_v47 = vmul.f32 0.5, %v3136_v39  ;;  %v3085_v60 = vpop.xlane.xlu0 %3084 }
 0x68c   : > { %v3217_v10 = vmul.f32 %v9263_v20, %v3196_v6  ;;  %v3218_v11 = vmul.f32 %v9265_v23, %v3197_v0  ;;  %v3102_v35 = vmul.f32 %v3085_v60, %v9109_v28 }
 0x68d   : > { %v3138_v38 = vsub.f32 1.5, %v3137_v47 }
 0x68e   : > { %v7701_v63 = vpop.eup %7700  ;;  %v9293_v14 = vadd.f32 %v9275_v52, %v3217_v10  ;;  %v9296_v36 = vadd.f32 %v9277_v50, %v3218_v11  ;;  %v3110_v40 = vadd.f32 1e-05, %v3102_v35 }
 0x68f   : > { %v3139_v54 = vmul.f32 %v7699_v41, %v3138_v38  ;;  %v3145_v53 = vmul.f32 %v7701_v63, %v3109_v42  ;;  %vm3151_vm14 = vweird.f32 %v7701_v63 }
 0x690   : > { %v9300_v16 = vpack.c.bf16 %v9293_v14, %v9287_v4  ;;  %v9304_v2 = vpack.c.bf16 %v9296_v36, %v9290_v51  ;;  %7702 = vrsqrt.f32 %v3110_v40  ;;  %vm3152_vm0 = vmor %vm3150_vm15, %vm3151_vm14  ;;  %vm3160_vm3 = vweird.f32 %v3110_v40 }
 0x691   : > { %v3146_v45 = vmul.f32 %v7701_v63, %v3145_v53  ;;  %v3143_v29 = vsel %vm3142_vm13, %v7699_v41, %v3139_v54  ;;  %v7423_v53 = vld [vmem:[%s7992_s2 + $0x15c] sm:$0xf] }
 0x692   : > { %3726 = vmatmul.bf16.vlgmr.msra.gmra.mxu1 %v9300_v16  ;;  %6825 = vmatmul.msk.bf16.vlgmr.msra.gmra.mxu3 %vm1318_vm1, %v9304_v2  ;;  %v3198_v7 = vmul.f32 %v3143_v29, %v9137_v17  ;;  %v3199_v1 = vmul.f32 %v3143_v29, %v9140_v30  ;;  %v6715_v29 = vld [vmem:[%s7992_s2 + $0x158] sm:$0xf] }
 0x693   : > { %v3147_v43 = vmul.f32 0.5, %v3146_v45  ;;  %3784 = vmatmul.bf16.vlgmr.msrb.gmra.mxu0 %v9300_v16  ;;  %6829 = vmatmul.msk.bf16.vlgmr.msrb.gmra.mxu2 %vm1318_vm1, %v9304_v2  ;;  %v3089_v59 = vpop.xlane.xlu2 %3088  ;;  %v6717_v45 = vld [vmem:[%s7992_s2 + $0x170] sm:$0xf0] }
 0x694   : > { %v3103_v3 = vmul.f32 %v3089_v59, %v9109_v28  ;;  %v3219_v37 = vmul.f32 %v9263_v20, %v3198_v7  ;;  %v3220_v34 = vmul.f32 %v9265_v23, %v3199_v1  ;;  %v6720_v59 = vor.u32 %v7423_v53, %v6717_v45  ;;  %v7417_v1 = vld [vmem:[%s7992_s2 + $0x12c] sm:$0xf]  ;;  %v6619_v53 = vld [vmem:[%s7992_s2 + $0x98] sm:$0xf] }
 0x695   : > { %v3148_v15 = vsub.f32 1.5, %v3147_v43 }
 0x696   : > { %v7703_v55 = vpop.eup %7702  ;;  %v3111_v21 = vadd.f32 1e-05, %v3103_v3  ;;  %v9322_v5 = vadd.f32 %v9275_v52, %v3219_v37  ;;  %v9325_v42 = vadd.f32 %v9277_v50, %v3220_v34  ;;  %v7426_v3 = vld [vmem:[%s7992_s2 + $0x16c] sm:$0xf0]  ;;  %3892 = vmatpush.bf16.msra.mxu0 %v6720_v59  ;;  %v7420_v37 = vld [vmem:[%s7992_s2 + $0x13c] sm:$0xf0] }
 0x697   : > { %v3149_v46 = vmul.f32 %v7701_v63, %v3148_v15  ;;  %v3155_v33 = vmul.f32 %v7703_v55, %v3110_v40  ;;  %vm3161_vm2 = vweird.f32 %v7703_v55  ;;  %v6716_v7 = vor.u32 %v7426_v3, %v6715_v29  ;;  %v7414_v34 = vld [vmem:[%s7992_s2 + $0x10c] sm:$0xf0]  ;;  %v7399_v3 = vld [vmem:[%s7992_s2 + $0x9c] sm:$0xf] }
 0x698   : > { %7704 = vrsqrt.f32 %v3111_v21  ;;  %vm3162_vm4 = vmor %vm3160_vm3, %vm3161_vm2  ;;  %vm3170_vm6 = vweird.f32 %v3111_v21  ;;  %v7402_v59 = vld [vmem:[%s7992_s2 + $0xac] sm:$0xf0] }
 0x699   : > { %v3153_v24 = vsel %vm3152_vm0, %v7701_v63, %v3149_v46  ;;  %v3156_v19 = vmul.f32 %v7703_v55, %v3155_v33  ;;  %3834 = vmatpush.bf16.msrb.mxu1 %v6716_v7  ;;  %v6691_v46 = vld [vmem:[%s7992_s2 + $0x128] sm:$0xf]  ;;  %v6621_v7 = vld [vmem:[%s7992_s2 + $0xb0] sm:$0xf0] }
 0x69a   : > { %v3200_v31 = vmul.f32 %v3153_v24, %v9149_v58  ;;  %v3201_v17 = vmul.f32 %v3153_v24, %v9152_v26  ;;  %v6692_v24 = vor.u32 %v7420_v37, %v6691_v46  ;;  %v6620_v46 = vor.u32 %v7402_v59, %v6619_v53  ;;  %v6595_v37 = vld [vmem:[%s7992_s2 + $0x68] sm:$0xf]  ;;  %v7381_v53 = vld [vmem:[%s7992_s2 + $0xc] sm:$0xf]  ;;  %v6549_v59 = vld [vmem:[%s7992_s2 + $0x20] sm:$0xf0] }
 0x69b   : > { %v3157_v48 = vmul.f32 0.5, %v3156_v19  ;;  %v6667_v19 = vld [vmem:[%s7992_s2 + $0xf8] sm:$0xf] }
 0x69c   : > { %v3221_v62 = vmul.f32 %v9263_v20, %v3200_v31  ;;  %v3222_v30 = vmul.f32 %v9265_v23, %v3201_v17  ;;  %v7411_v31 = vld [vmem:[%s7992_s2 + $0xfc] sm:$0xf] }
 0x69d   : > { %v3158_v13 = vsub.f32 1.5, %v3157_v48  ;;  %3835 = vmatpush.bf16.msrb.mxu1 %v6692_v24  ;;  %v6668_v48 = vor.u32 %v7414_v34, %v6667_v19  ;;  %v7396_v24 = vld [vmem:[%s7992_s2 + $0x7c] sm:$0xf0]  ;;  %v7393_v19 = vld [vmem:[%s7992_s2 + $0x6c] sm:$0xf] }
 0x69e   : > { %v7705_v41 = vpop.eup %7704  ;;  %v9328_v12 = vadd.f32 %v9275_v52, %v3221_v62  ;;  %v9331_v58 = vadd.f32 %v9277_v50, %v3222_v30  ;;  %v6669_v62 = vld [vmem:[%s7992_s2 + $0x110] sm:$0xf0]  ;;  %v6597_v34 = vld [vmem:[%s7992_s2 + $0x80] sm:$0xf0] }
 0x69f   : > { %v3159_v26 = vmul.f32 %v7703_v55, %v3158_v13  ;;  %v3165_v25 = vmul.f32 %v7705_v41, %v3111_v21  ;;  %vm3171_vm5 = vweird.f32 %v7705_v41  ;;  %v6693_v21 = vld [vmem:[%s7992_s2 + $0x140] sm:$0xf0]  ;;  %v6672_v13 = vor.u32 %v7411_v31, %v6669_v62  ;;  %v7435_v31 = vld [vmem:[%s7992_s2 + $0x1bc] sm:$0xf] }
 0x6a0   : > { %v9335_v9 = vpack.c.bf16 %v9328_v12, %v9322_v5  ;;  %v9339_v18 = vpack.c.bf16 %v9331_v58, %v9325_v42  ;;  %vm3172_vm7 = vmor %vm3170_vm6, %vm3171_vm5  ;;  %v6696_v33 = vor.u32 %v7417_v1, %v6693_v21 }
 0x6a1   : > { %v3166_v56 = vmul.f32 %v7705_v41, %v3165_v25  ;;  %v3163_v39 = vsel %vm3162_vm4, %v7703_v55, %v3159_v26  ;;  %3836 = vmatpush.bf16.msrb.mxu1 %v6668_v48  ;;  %v6643_v26 = vld [vmem:[%s7992_s2 + $0xc8] sm:$0xf]  ;;  %v7408_v25 = vld [vmem:[%s7992_s2 + $0xdc] sm:$0xf0] }
 0x6a2   : > { %3731 = vmatmul.bf16.gmra.mxu1 %v9335_v9  ;;  %6826 = vmatmul.msk.bf16.gmra.mxu3 %vm1318_vm1, %v9339_v18  ;;  %v3202_v0 = vmul.f32 %v3163_v39, %v9161_v32  ;;  %v3203_v60 = vmul.f32 %v3163_v39, %v9164_v61  ;;  %v7405_v39 = vld [vmem:[%s7992_s2 + $0xcc] sm:$0xf] }
 0x6a3   : > { %v3167_v6 = vmul.f32 0.5, %v3166_v56  ;;  %3789 = vmatmul.bf16.gmra.mxu0 %v9335_v9  ;;  %6830 = vmatmul.msk.bf16.gmra.mxu2 %vm1318_vm1, %v9339_v18  ;;  %v6644_v56 = vor.u32 %v7408_v25, %v6643_v26  ;;  %v6571_v26 = vld [vmem:[%s7992_s2 + $0x38] sm:$0xf]  ;;  %v7390_v25 = vld [vmem:[%s7992_s2 + $0x4c] sm:$0xf0] }
 0x6a4   : > { %v3223_v11 = vmul.f32 %v9263_v20, %v3202_v0  ;;  %v3224_v38 = vmul.f32 %v9265_v23, %v3203_v60  ;;  %3893 = vmatpush.bf16.msra.mxu0 %v6696_v33  ;;  %v7447_v0 = vld [vmem:[%s7992_s2 + $0x21c] sm:$0xf]  ;;  %v6811_v60 = vld [vmem:[%s7992_s2 + $0x218] sm:$0xf]  ;;  %v6624_v33 = vor.u32 %v7399_v3, %v6621_v7  ;;  %v6741_v3 = vld [vmem:[%s7992_s2 + $0x1a0] sm:$0xf0] }
 0x6a5   : > { %v3168_v47 = vsub.f32 1.5, %v3167_v6  ;;  %v6645_v6 = vld [vmem:[%s7992_s2 + $0xe0] sm:$0xf0]  ;;  %3837 = vmatpush.bf16.msrb.mxu1 %v6644_v56 }
 0x6a6   : > { %v9356_v61 = vadd.f32 %v9275_v52, %v3223_v11  ;;  %v9362_v43 = vadd.f32 %v9277_v50, %v3224_v38  ;;  %v7441_v38 = vld [vmem:[%s7992_s2 + $0x1ec] sm:$0xf] }
 0x6a7   : > { %v3169_v10 = vmul.f32 %v7705_v41, %v3168_v47  ;;  %v6813_v47 = vld [vmem:[%s7992_s2 + $0x230] sm:$0xf0] }
 0x6a8   : > { %3894 = vmatpush.bf16.msra.mxu0 %v6672_v13  ;;  %v6816_v11 = vor.u32 %v7447_v0, %v6813_v47  ;;  %v6600_v13 = vor.u32 %v7393_v19, %v6597_v34  ;;  %v7438_v0 = vld [vmem:[%s7992_s2 + $0x1cc] sm:$0xf0]  ;;  %v7387_v47 = vld [vmem:[%s7992_s2 + $0x3c] sm:$0xf] }
 0x6a9   : > { %v3173_v35 = vsel %vm3172_vm7, %v7705_v41, %v3169_v10  ;;  %v6648_v10 = vor.u32 %v7405_v39, %v6645_v6  ;;  %3838 = vmatpush.bf16.msrb.mxu1 %v6620_v46  ;;  %v6763_v6 = vld [vmem:[%s7992_s2 + $0x1b8] sm:$0xf] }
 0x6aa   : > { %v3204_v63 = vmul.f32 %v3173_v35, %v9173_v57  ;;  %v3205_v40 = vmul.f32 %v3173_v35, %v9176_v27  ;;  %v7450_v35 = vld [vmem:[%s7992_s2 + $0x22c] sm:$0xf0]  ;;  %3925 = vmatpush.bf16.msra.mxu2 %v6816_v11 }
 0x6ac   : > { %v3225_v32 = vmul.f32 %v9263_v20, %v3204_v63  ;;  %v3226_v54 = vmul.f32 %v9265_v23, %v3205_v40  ;;  %v6789_v63 = vld [vmem:[%s7992_s2 + $0x200] sm:$0xf0]  ;;  %v6812_v40 = vor.u32 %v7450_v35, %v6811_v60  ;;  %3895 = vmatpush.bf16.msra.mxu0 %v6648_v10  ;;  %v6764_v60 = vor.u32 %v7438_v0, %v6763_v6  ;;  %v6573_v10 = vld [vmem:[%s7992_s2 + $0x50] sm:$0xf0]  ;;  %v6547_v35 = vld [vmem:[%s7992_s2 + $0x8] sm:$0xf] }
 0x6ad   : > { %v6792_v29 = vor.u32 %v7441_v38, %v6789_v63  ;;  %v6739_v38 = vld [vmem:[%s7992_s2 + $0x188] sm:$0xf]  ;;  %v7432_v63 = vld [vmem:[%s7992_s2 + $0x19c] sm:$0xf0] }
 0x6ae   : > { %v9365_v57 = vadd.f32 %v9275_v52, %v3225_v32  ;;  %v9368_v27 = vadd.f32 %v9277_v50, %v3226_v54  ;;  %v6787_v32 = vld [vmem:[%s7992_s2 + $0x1e8] sm:$0xf]  ;;  %v7444_v54 = vld [vmem:[%s7992_s2 + $0x1fc] sm:$0xf0]  ;;  %3867 = vmatpush.bf16.msrb.mxu3 %v6812_v40  ;;  %v6572_v40 = vor.u32 %v7390_v25, %v6571_v26  ;;  %v6740_v7 = vor.u32 %v7432_v63, %v6739_v38 }
 0x6af   : > { %v6788_v21 = vor.u32 %v7444_v54, %v6787_v32  ;;  %3926 = vmatpush.bf16.msra.mxu2 %v6792_v29  ;;  %v6576_v32 = vor.u32 %v7387_v47, %v6573_v10  ;;  %v7384_v54 = vld [vmem:[%s7992_s2 + $0x1c] sm:$0xf0]  ;;  %v7451_v10 = vld [vmem:[%s7992_s2 + $0x234] sm:$0xf0] }
 0x6b0   : > { %v9373_v15 = vpack.c.bf16 %v9365_v57, %v9356_v61  ;;  %v9377_v55 = vpack.c.bf16 %v9368_v27, %v9362_v43  ;;  %3896 = vmatpush.bf16.msra.mxu0 %v6624_v33  ;;  %v6548_v33 = vor.u32 %v7384_v54, %v6547_v35  ;;  %v6725_v35 = vld [vmem:[%s7992_s2 + $0x178] sm:$0xf0] }
 0x6b2   : > { %3736 = vmatmul.bf16.gmra.mxu1 %v9373_v15  ;;  %6827 = vmatmul.msk.bf16.gmra.mxu3 %vm1318_vm1, %v9377_v55 }
 0x6b3   : > { %3794 = vmatmul.bf16.gmra.mxu0 %v9373_v15  ;;  %6831 = vmatmul.msk.bf16.gmra.mxu2 %vm1318_vm1, %v9377_v55 }
 0x6b4   : > { %3868 = vmatpush.bf16.msrb.mxu3 %v6788_v21  ;;  %3897 = vmatpush.bf16.msra.mxu0 %v6600_v13 }
 0x6b7   : > { %v3093_v17 = vpop.xlane.xlu1 %3092 }
 0x6b8   : > { %v3104_v30 = vmul.f32 %v3093_v17, %v9109_v28  ;;  %v6765_v17 = vld [vmem:[%s7992_s2 + $0x1d0] sm:$0xf0]  ;;  %3869 = vmatpush.bf16.msrb.mxu3 %v6764_v60  ;;  %3898 = vmatpush.bf16.msra.mxu0 %v6576_v32  ;;  %v7427_v32 = vld [vmem:[%s7992_s2 + $0x174] sm:$0xf0] }
 0x6b9   : > { %v6768_v39 = vor.u32 %v7435_v31, %v6765_v17 }
 0x6ba   : > { %v9394_v41 = vadd.f32 1e-05, %v3104_v30  ;;  %v6596_v30 = vor.u32 %v7396_v24, %v6595_v37  ;;  %v6552_v37 = vor.u32 %v7381_v53, %v6549_v59  ;;  %v7418_v53 = vld [vmem:[%s7992_s2 + $0x134] sm:$0xf] }
 0x6bb   : > { %3927 = vmatpush.bf16.msra.mxu2 %v6768_v39 }
 0x6bc   : > { %7706 = vrsqrt.f32 %v9394_v41  ;;  %3839 = vmatpush.bf16.msrb.mxu1 %v6596_v30  ;;  %3870 = vmatpush.bf16.msrb.mxu3 %v6740_v7  ;;  %vm3180_vm9 = vweird.f32 %v9394_v41 }
 0x6bd   : > { %3899 = vmatpush.bf16.msra.mxu0 %v6552_v37  ;;  %v6677_v37 = vld [vmem:[%s7992_s2 + $0x118] sm:$0xf0] }
 0x6bf   : > { %v3097_v45 = vpop.xlane.xlu0 %3096 }
 0x6c0   : > { %v3105_v1 = vmul.f32 %v3097_v45, %v9109_v28  ;;  %v7429_v45 = vld [vmem:[%s7992_s2 + $0x18c] sm:$0xf]  ;;  %3840 = vmatpush.bf16.msrb.mxu1 %v6572_v40  ;;  %v6723_v40 = vld [vmem:[%s7992_s2 + $0x160] sm:$0xf] }
 0x6c1   : > { %v6724_v54 = vor.u32 %v7427_v32, %v6723_v40  ;;  %v7436_v40 = vld [vmem:[%s7992_s2 + $0x1c4] sm:$0xf]  ;;  %v6773_v32 = vld [vmem:[%s7992_s2 + $0x1d8] sm:$0xf0] }
 0x6c2   : > { %v7707_v48 = vpop.eup %7706  ;;  %v3113_v62 = vadd.f32 1e-05, %v3105_v1  ;;  %v6744_v1 = vor.u32 %v7429_v45, %v6741_v3  ;;  %v6701_v45 = vld [vmem:[%s7992_s2 + $0x148] sm:$0xf0]  ;;  %v7421_v3 = vld [vmem:[%s7992_s2 + $0x144] sm:$0xf0] }
 0x6c3   : > { %v3175_v56 = vmul.f32 %v7707_v48, %v9394_v41  ;;  %vm3181_vm8 = vweird.f32 %v7707_v48  ;;  %v6704_v59 = vor.u32 %v7418_v53, %v6701_v45  ;;  %v6776_v53 = vor.u32 %v7436_v40, %v6773_v32  ;;  %v7391_v45 = vld [vmem:[%s7992_s2 + $0x54] sm:$0xf0]  ;;  %v9555_v40 = vld [vmem:[%s7997_s18] sm:$0x3f] }
 0x6c4   : > { %7708 = vrsqrt.f32 %v3113_v62  ;;  %3928 = vmatpush.bf16.msra.mxu2 %v6744_v1  ;;  %vm3182_vm10 = vmor %vm3180_vm9, %vm3181_vm8  ;;  %3841 = vmatpush.bf16.msrb.mxu1 %v6548_v33  ;;  %vm3190_vm12 = vweird.f32 %v3113_v62  ;;  %v6675_v1 = vld [vmem:[%s7992_s2 + $0x100] sm:$0xf] }
 0x6c5   : > { %v3176_v11 = vmul.f32 %v7707_v48, %v3175_v56 }
 0x6c7   : > { %v3177_v29 = vmul.f32 0.5, %v3176_v11  ;;  %v7424_v11 = vld [vmem:[%s7992_s2 + $0x164] sm:$0xf] }
 0x6c8   : > { %v6728_v63 = vor.u32 %v7424_v11, %v6725_v35  ;;  %3950 = vmatpush.bf16.msra.mxu1 %v6724_v54  ;;  %v7394_v35 = vld [vmem:[%s7992_s2 + $0x74] sm:$0xf]  ;;  %v6579_v54 = vld [vmem:[%s7992_s2 + $0x40] sm:$0xf] }
 0x6c9   : > { %v3178_v21 = vsub.f32 1.5, %v3177_v29  ;;  %v6699_v29 = vld [vmem:[%s7992_s2 + $0x130] sm:$0xf] }
 0x6ca   : > { %v7709_v46 = vpop.eup %7708  ;;  %4008 = vmatpush.bf16.msrb.mxu0 %v6728_v63  ;;  %v6700_v7 = vor.u32 %v7421_v3, %v6699_v29  ;;  %v6771_v29 = vld [vmem:[%s7992_s2 + $0x1c0] sm:$0xf]  ;;  %v6580_v3 = vor.u32 %v7391_v45, %v6579_v54 }
 0x6cb   : > { %v3179_v24 = vmul.f32 %v7707_v48, %v3178_v21  ;;  %v3185_v19 = vmul.f32 %v7709_v46, %v3113_v62  ;;  %vm3191_vm11 = vweird.f32 %v7709_v46  ;;  %v7415_v21 = vld [vmem:[%s7992_s2 + $0x114] sm:$0xf0]  ;;  %v6963_v54 = vld [vmem:[%s8006_s4 + $0xe0] sm:$0xf] }
 0x6cc   : > { %vm3192_vm13 = vmor %vm3190_vm12, %vm3191_vm11  ;;  %3951 = vmatpush.bf16.msra.mxu1 %v6700_v7  ;;  %v6676_v33 = vor.u32 %v7415_v21, %v6675_v1  ;;  %v7388_v1 = vld [vmem:[%s7992_s2 + $0x44] sm:$0xf]  ;;  %v6581_v21 = vld [vmem:[%s7992_s2 + $0x58] sm:$0xf0] }
 0x6cd   : > { %v3186_v34 = vmul.f32 %v7709_v46, %v3185_v19  ;;  %v3183_v31 = vsel %vm3182_vm10, %v7707_v48, %v3179_v24  ;;  %v6651_v19 = vld [vmem:[%s7992_s2 + $0xd0] sm:$0xf] }
 0x6ce   : > { %v3206_v13 = vmul.f32 %v3183_v31, %v9185_v49  ;;  %v3207_v26 = vmul.f32 %v3183_v31, %v9188_v8  ;;  %4009 = vmatpush.bf16.msrb.mxu0 %v6704_v59  ;;  %v7406_v31 = vld [vmem:[%s7992_s2 + $0xd4] sm:$0xf]  ;;  %v7439_v59 = vld [vmem:[%s7992_s2 + $0x1d4] sm:$0xf0] }
 0x6cf   : > { %v3187_v17 = vmul.f32 0.5, %v3186_v34  ;;  %v7409_v34 = vld [vmem:[%s7992_s2 + $0xe4] sm:$0xf0]  ;;  %v6772_v7 = vor.u32 %v7439_v59, %v6771_v29  ;;  %v6891_v59 = vld [vmem:[%s8006_s4 + $0x50] sm:$0xf] }
 0x6d0   : > { %v3227_v39 = vmul.f32 %v9263_v20, %v3206_v13  ;;  %v3228_v41 = vmul.f32 %v9265_v23, %v3207_v26  ;;  %3952 = vmatpush.bf16.msra.mxu1 %v6676_v33  ;;  %v6627_v26 = vld [vmem:[%s7992_s2 + $0xa0] sm:$0xf]  ;;  %v6555_v33 = vld [vmem:[%s7992_s2 + $0x10] sm:$0xf] }
 0x6d1   : > { %v3188_v30 = vsub.f32 1.5, %v3187_v17  ;;  %v6653_v17 = vld [vmem:[%s7992_s2 + $0xe8] sm:$0xf0] }
 0x6d2   : > { %v9445_v8 = vadd.f32 %v9275_v52, %v3227_v39  ;;  %v9448_v62 = vadd.f32 %v9277_v50, %v3228_v41  ;;  %v6656_v13 = vor.u32 %v7406_v31, %v6653_v17  ;;  %v6629_v39 = vld [vmem:[%s7992_s2 + $0xb8] sm:$0xf0]  ;;  %v6557_v31 = vld [vmem:[%s7992_s2 + $0x28] sm:$0xf0] }
 0x6d3   : > { %v3189_v25 = vmul.f32 %v7709_v46, %v3188_v30  ;;  %v6652_v30 = vor.u32 %v7409_v34, %v6651_v19  ;;  %v7433_v19 = vld [vmem:[%s7992_s2 + $0x1a4] sm:$0xf0]  ;;  %v7382_v34 = vld [vmem:[%s7992_s2 + $0x14] sm:$0xf] }
 0x6d4   : > { %10815 = vst [vmem:[#allocation6_spill] sm:$0xff] %v9445_v8 }
 0x6d5   : > { %v3193_v56 = vsel %vm3192_vm13, %v7709_v46, %v3189_v25  ;;  %10816 = vst [vmem:[#allocation7_spill] sm:$0xff] %v9448_v62  ;;  %v7412_v46 = vld [vmem:[%s7992_s2 + $0x104] sm:$0xf]  ;;  %v7403_v25 = vld [vmem:[%s7992_s2 + $0xb4] sm:$0xf0]  ;;  %3953 = vmatpush.bf16.msra.mxu1 %v6652_v30 }
 0x6d6   : > { %v3208_v6 = vmul.f32 %v3193_v56, %v9197_v22  ;;  %v3209_v48 = vmul.f32 %v3193_v56, %v9200_v44  ;;  %v6680_v24 = vor.u32 %v7412_v46, %v6677_v37  ;;  %v7400_v56 = vld [vmem:[%s7992_s2 + $0xa4] sm:$0xf]  ;;  %v6628_v41 = vor.u32 %v7403_v25, %v6627_v26  ;;  %v7385_v37 = vld [vmem:[%s7992_s2 + $0x24] sm:$0xf0]  ;;  %v6749_v26 = vld [vmem:[%s7992_s2 + $0x1a8] sm:$0xf0] }
 0x6d7   : > { %v6584_v46 = vor.u32 %v7388_v1, %v6581_v21  ;;  %v6556_v17 = vor.u32 %v7385_v37, %v6555_v33  ;;  %v6560_v25 = vor.u32 %v7382_v34, %v6557_v31 }
 0x6d8   : > { %v3229_v0 = vmul.f32 %v9263_v20, %v3208_v6  ;;  %v3230_v49 = vmul.f32 %v9265_v23, %v3209_v48  ;;  %v7448_v23 = vld [vmem:[%s7992_s2 + $0x224] sm:$0xf]  ;;  %4010 = vmatpush.bf16.msrb.mxu0 %v6680_v24  ;;  %v6632_v6 = vor.u32 %v7400_v56, %v6629_v39  ;;  %v7442_v48 = vld [vmem:[%s7992_s2 + $0x1f4] sm:$0xf]  ;;  %v6747_v24 = vld [vmem:[%s7992_s2 + $0x190] sm:$0xf] }
 0x6d9   : > { %3954 = vmatpush.bf16.msra.mxu1 %v6628_v41  ;;  %v6748_v30 = vor.u32 %v7433_v19, %v6747_v24 }
 0x6da   : > { %v9451_v47 = vadd.f32 %v9275_v52, %v3229_v0  ;;  %v9454_v22 = vadd.f32 %v9277_v50, %v3230_v49  ;;  %v6821_v52 = vld [vmem:[%s7992_s2 + $0x238] sm:$0xf0]  ;;  %v6819_v50 = vld [vmem:[%s7992_s2 + $0x220] sm:$0xf]  ;;  %v6797_v0 = vld [vmem:[%s7992_s2 + $0x208] sm:$0xf0] }
 0x6db   : > { %v6824_v60 = vor.u32 %v7448_v23, %v6821_v52  ;;  %v6820_v38 = vor.u32 %v7451_v10, %v6819_v50  ;;  %v6795_v49 = vld [vmem:[%s7992_s2 + $0x1f0] sm:$0xf]  ;;  %v6800_v23 = vor.u32 %v7442_v48, %v6797_v0  ;;  %v7445_v52 = vld [vmem:[%s7992_s2 + $0x204] sm:$0xf0] }
 0x6dc   : > { %10817 = vst [vmem:[#allocation8_spill] sm:$0xff] %v9451_v47  ;;  %v9458_v44 = vpack.c.bf16 %v9451_v47, %v9445_v8  ;;  %v9462_v20 = vpack.c.bf16 %v9454_v22, %v9448_v62  ;;  %4011 = vmatpush.bf16.msrb.mxu0 %v6656_v13  ;;  %v6603_v50 = vld [vmem:[%s7992_s2 + $0x70] sm:$0xf]  ;;  %v6796_v10 = vor.u32 %v7445_v52, %v6795_v49  ;;  %v7430_v13 = vld [vmem:[%s7992_s2 + $0x194] sm:$0xf] }
 0x6dd   : > { %10818 = vst [vmem:[#allocation9_spill] sm:$0xff] %v9454_v22  ;;  %4041 = vmatpush.bf16.msrb.mxu2 %v6824_v60  ;;  %3983 = vmatpush.bf16.msra.mxu3 %v6820_v38  ;;  %v7397_v60 = vld [vmem:[%s7992_s2 + $0x84] sm:$0xf0]  ;;  %v6605_v38 = vld [vmem:[%s7992_s2 + $0x88] sm:$0xf0]  ;;  %v6752_v56 = vor.u32 %v7430_v13, %v6749_v26 }
 0x6de   : > { %3741 = vmatmul.bf16.gmra.mxu1 %v9458_v44  ;;  %6828 = vmatmul.msk.bf16.gmra.mxu3 %vm1318_vm1, %v9462_v20  ;;  %v6604_v11 = vor.u32 %v7397_v60, %v6603_v50  ;;  %v6608_v63 = vor.u32 %v7394_v35, %v6605_v38  ;;  %v7467_v52 = vld [vmem:[%s8006_s4 + $0x74] sm:$0xf0]  ;;  %v6971_v50 = vld [vmem:[%s8006_s4 + $0xf0] sm:$0xf]  ;;  %v6899_v38 = vld [vmem:[%s8006_s4 + $0x60] sm:$0xf] }
 0x6df   : > { %3799 = vmatmul.bf16.gmra.mxu0 %v9458_v44  ;;  %6832 = vmatmul.msk.bf16.gmra.mxu2 %vm1318_vm1, %v9462_v20  ;;  %v7483_v35 = vld [vmem:[%s8006_s4 + $0xf4] sm:$0xf0]  ;;  %v7461_v13 = vld [vmem:[%s8006_s4 + $0x44] sm:$0xf0]  ;;  %v6917_v22 = vld [vmem:[%s8006_s4 + $0x88] sm:$0xf0] }
 0x6e0   : > { %4012 = vmatpush.bf16.msrb.mxu0 %v6632_v6  ;;  %3955 = vmatpush.bf16.msra.mxu1 %v6604_v11  ;;  %v6972_v32 = vor.u32 %v7483_v35, %v6971_v50  ;;  %v6939_v35 = vld [vmem:[%s8006_s4 + $0xb0] sm:$0xf] }
 0x6e1   : > { %4042 = vmatpush.bf16.msrb.mxu2 %v6800_v23  ;;  %3984 = vmatpush.bf16.msra.mxu3 %v6796_v10  ;;  %v6907_v23 = vld [vmem:[%s8006_s4 + $0x70] sm:$0xf] }
 0x6e2   : > { %v6908_v11 = vor.u32 %v7467_v52, %v6907_v23  ;;  %v7477_v23 = vld [vmem:[%s8006_s4 + $0xc4] sm:$0xf0] }
 0x6e4   : > { %4013 = vmatpush.bf16.msrb.mxu0 %v6608_v63  ;;  %3956 = vmatpush.bf16.msra.mxu1 %v6580_v3  ;;  %v7465_v63 = vld [vmem:[%s8006_s4 + $0x64] sm:$0xf0]  ;;  %v9562_v3 = vperm.slane %v9555_v40, 0 }
 0x6e5   : > { %4043 = vmatpush.bf16.msrb.mxu2 %v6776_v53  ;;  %3985 = vmatpush.bf16.msra.mxu3 %v6772_v7  ;;  %v7481_v53 = vld [vmem:[%s8006_s4 + $0xe4] sm:$0xf0]  ;;  %v6900_v45 = vor.u32 %v7465_v63, %v6899_v38  ;;  %v7479_v7 = vld [vmem:[%s8006_s4 + $0xd4] sm:$0xf0] }
 0x6e6   : > { %v6964_v29 = vor.u32 %v7481_v53, %v6963_v54 }
 0x6e8   : > { %4014 = vmatpush.bf16.msrb.mxu0 %v6584_v46  ;;  %3957 = vmatpush.bf16.msra.mxu1 %v6556_v17  ;;  %v9567_v46 = vperm.slane %v9555_v40, 1 }
 0x6e9   : > { %3986 = vmatpush.bf16.msra.mxu3 %v6748_v30  ;;  %4044 = vmatpush.bf16.msrb.mxu2 %v6752_v56  ;;  %v6883_v30 = vld [vmem:[%s8006_s4 + $0x40] sm:$0xf] }
 0x6ea   : > { %v6947_v56 = vld [vmem:[%s8006_s4 + $0xc0] sm:$0xf] }
 0x6eb   : > { %v6948_v52 = vor.u32 %v7477_v23, %v6947_v56  ;;  %v6923_v56 = vld [vmem:[%s8006_s4 + $0x90] sm:$0xf] }
 0x6ec   : > { %4015 = vmatpush.bf16.msrb.mxu0 %v6560_v25  ;;  %v6884_v25 = vor.u32 %v7461_v13, %v6883_v30 }
 0x6ee   : > { %3842 = vmatmul.bf16.vlgmr.msrb.gmra.mxu1 %v9300_v16  ;;  %6833 = vmatmul.msk.bf16.vlgmr.msrb.gmra.mxu3 %vm1318_vm1, %v9304_v2 }
 0x6ef   : > { %3900 = vmatmul.bf16.vlgmr.msra.gmra.mxu0 %v9300_v16  ;;  %6837 = vmatmul.msk.bf16.vlgmr.msra.gmra.mxu2 %vm1318_vm1, %v9304_v2 }
 0x6f0   : > { %5104 = vmatpush.bf16.msrb.mxu1 %v6908_v11  ;;  %5133 = vmatpush.bf16.msrb.mxu3 %v6972_v32 }
 0x6f4   : > { %5105 = vmatpush.bf16.msrb.mxu1 %v6900_v45  ;;  %5134 = vmatpush.bf16.msrb.mxu3 %v6964_v29  ;;  %v6867_v45 = vld [vmem:[%s8006_s4 + $0x20] sm:$0xf] }
 0x6fe   : > { %3847 = vmatmul.bf16.gmra.mxu1 %v9335_v9  ;;  %6834 = vmatmul.msk.bf16.gmra.mxu3 %vm1318_vm1, %v9339_v18 }
 0x6ff   : > { %3905 = vmatmul.bf16.gmra.mxu0 %v9335_v9  ;;  %6838 = vmatmul.msk.bf16.gmra.mxu2 %vm1318_vm1, %v9339_v18 }
 0x70e   : > { %3852 = vmatmul.bf16.gmra.mxu1 %v9373_v15  ;;  %6835 = vmatmul.msk.bf16.gmra.mxu3 %vm1318_vm1, %v9377_v55 }
 0x70f   : > { %3910 = vmatmul.bf16.gmra.mxu0 %v9373_v15  ;;  %6839 = vmatmul.msk.bf16.gmra.mxu2 %vm1318_vm1, %v9377_v55  ;;  %v3727_v39 = vpop.f32.mrf.mxu1 }
 0x710   : > { %v3785_v41 = vpop.f32.mrf.mxu0  ;;  %v3728_v24 = vadd.f32 %v3727_v39, %v9562_v3 }
 0x711   : > { %v3786_v17 = vadd.f32 %v3785_v41, %v9567_v46 }
 0x715   : > { %v3756_v6 = vpop.f32.mrf.mxu3 }
 0x716   : > { %v3814_v48 = vpop.f32.mrf.mxu2  ;;  %v9572_v19 = vadd.f32 %v3756_v6, %v3728_v24 }
 0x717   : > { %v3729_v0 = vpop.f32.mrf.mxu1  ;;  %v9582_v39 = vadd.f32 %v3814_v48, %v3786_v17  ;;  %v7459_v48 = vld [vmem:[%s8006_s4 + $0x34] sm:$0xf0] }
 0x718   : > { %v3787_v49 = vpop.f32.mrf.mxu0  ;;  %v3730_v26 = vadd.f32 %v3729_v0, %v9562_v3  ;;  %v4114_v50 = vmul.f32 0.044715, %v9572_v19  ;;  %v6875_v0 = vld [vmem:[%s8006_s4 + $0x30] sm:$0xf] }
 0x719   : > { %v3788_v6 = vadd.f32 %v3787_v49, %v9567_v46  ;;  %v6876_v49 = vor.u32 %v7459_v48, %v6875_v0 }
 0x71a   : > { %v4162_v53 = vmul.f32 %v4114_v50, %v9572_v19 }
 0x71c   : > { %v4210_v13 = vmul.f32 %v4162_v53, %v9572_v19  ;;  %v6915_v53 = vld [vmem:[%s8006_s4 + $0x80] sm:$0xf] }
 0x71d   : > { %v3758_v60 = vpop.f32.mrf.mxu3 }
 0x71e   : > { %3857 = vmatmul.bf16.gmra.mxu1 %v9458_v44  ;;  %6836 = vmatmul.msk.bf16.gmra.mxu3 %vm1318_vm1, %v9462_v20  ;;  %v3816_v10 = vpop.f32.mrf.mxu2  ;;  %v9586_v41 = vadd.f32 %v3758_v60, %v3730_v26  ;;  %v7475_v60 = vld [vmem:[%s8006_s4 + $0xb4] sm:$0xf0]  ;;  %v6859_v26 = vld [vmem:[%s8006_s4 + $0x10] sm:$0xf] }
 0x71f   : > { %3915 = vmatmul.bf16.gmra.mxu0 %v9458_v44  ;;  %6840 = vmatmul.msk.bf16.gmra.mxu2 %vm1318_vm1, %v9462_v20  ;;  %v3732_v1 = vpop.f32.mrf.mxu1  ;;  %v9588_v11 = vadd.f32 %v3816_v10, %v3788_v6  ;;  %v4115_v10 = vmul.f32 0.044715, %v9582_v39  ;;  %v6940_v32 = vor.u32 %v7475_v60, %v6939_v35  ;;  %v7471_v6 = vld [vmem:[%s8006_s4 + $0x94] sm:$0xf0] }
 0x720   : > { %v9569_v33 = vpop.f32.mrf.mxu0  ;;  %v4120_v54 = vmul.f32 0.044715, %v9586_v41  ;;  %v3733_v29 = vadd.f32 %v3732_v1, %v9562_v3  ;;  %v6924_v50 = vor.u32 %v7471_v6, %v6923_v56 }
 0x722   : > { %v4168_v17 = vmul.f32 %v4120_v54, %v9586_v41  ;;  %v7453_v54 = vld [vmem:[%s8006_s4 + $0x4] sm:$0xf0] }
 0x725   : > { %v3761_v34 = vpop.f32.mrf.mxu3 }
 0x726   : > { %v9574_v31 = vpop.f32.mrf.mxu2  ;;  %v9613_v30 = vadd.f32 %v3761_v34, %v3733_v29  ;;  %v4216_v34 = vmul.f32 %v4168_v17, %v9586_v41  ;;  %v7469_v29 = vld [vmem:[%s8006_s4 + $0x84] sm:$0xf0] }
 0x727   : > { %v3734_v38 = vpop.f32.mrf.mxu1 }
 0x728   : > { %v9601_v63 = vpop.f32.mrf.mxu0  ;;  %v4126_v0 = vmul.f32 0.044715, %v9613_v30  ;;  %v3735_v48 = vadd.f32 %v3734_v38, %v9562_v3 }
 0x72e   : > { %3958 = vmatmul.bf16.vlgmr.msra.gmra.mxu1 %v9300_v16  ;;  %6841 = vmatmul.msk.bf16.vlgmr.msra.gmra.mxu3 %vm1318_vm1, %v9304_v2 }
 0x72f   : > { %4016 = vmatmul.bf16.vlgmr.msrb.gmra.mxu0 %v9300_v16  ;;  %6845 = vmatmul.msk.bf16.vlgmr.msrb.gmra.mxu2 %vm1318_vm1, %v9304_v2  ;;  %v7463_v16 = vld [vmem:[%s8006_s4 + $0x54] sm:$0xf0]  ;;  %v6955_v2 = vld [vmem:[%s8006_s4 + $0xd0] sm:$0xf]  ;;  %v3737_v35 = vpop.f32.mrf.mxu1 }
 0x730   : > { %v6892_v21 = vor.u32 %v7463_v16, %v6891_v59  ;;  %v6956_v37 = vor.u32 %v7479_v7, %v6955_v2  ;;  %v3763_v59 = vpop.f32.mrf.mxu3  ;;  %v3821_v16 = vpop.f32.mrf.mxu2  ;;  %v6931_v7 = vld [vmem:[%s8006_s4 + $0xa0] sm:$0xf] }
 0x732   : > { %5106 = vmatpush.bf16.msrb.mxu1 %v6892_v21  ;;  %5135 = vmatpush.bf16.msrb.mxu3 %v6956_v37  ;;  %v7473_v21 = vld [vmem:[%s8006_s4 + $0xa4] sm:$0xf0]  ;;  %v4163_v37 = vmul.f32 %v4115_v10, %v9582_v39  ;;  %v9627_v10 = vpop.f32.mrf.mxu0 }
 0x733   : > { %v6932_v24 = vor.u32 %v7473_v21, %v6931_v7  ;;  %v4264_v7 = vadd.f32 %v4216_v34, %v9586_v41  ;;  %v4174_v21 = vmul.f32 %v4126_v0, %v9613_v30  ;;  %v7035_v0 = vld [vmem:[%s8006_s4 + $0x170] sm:$0xf] }
 0x736   : > { %5107 = vmatpush.bf16.msrb.mxu1 %v6884_v25  ;;  %5136 = vmatpush.bf16.msrb.mxu3 %v6948_v52  ;;  %v7455_v25 = vld [vmem:[%s8006_s4 + $0x14] sm:$0xf0]  ;;  %v4211_v52 = vmul.f32 %v4163_v37, %v9582_v39 }
 0x737   : > { %v6860_v23 = vor.u32 %v7455_v25, %v6859_v26  ;;  %v3793_v25 = vadd.f32 %v9601_v63, %v9567_v46  ;;  %v3739_v34 = vpop.f32.mrf.mxu1  ;;  %v7499_v63 = vld [vmem:[%s8006_s4 + $0x174] sm:$0xf0] }
 0x738   : > { %v4259_v38 = vadd.f32 %v4211_v52, %v9582_v39  ;;  %v9643_v17 = vpop.f32.mrf.mxu2  ;;  %v4222_v52 = vmul.f32 %v4174_v21, %v9613_v30 }
 0x73a   : > { %5108 = vmatpush.bf16.msrb.mxu1 %v6876_v49  ;;  %5137 = vmatpush.bf16.msrb.mxu3 %v6940_v32  ;;  %v4258_v49 = vadd.f32 %v4210_v13, %v9572_v19  ;;  %v6851_v32 = vld [vmem:[%s8006_s4] sm:$0xf]  ;;  %v4307_v26 = vmul.f32 0.7978846, %v4259_v38 }
 0x73b   : > { %v7027_v38 = vld [vmem:[%s8006_s4 + $0x160] sm:$0xf] }
 0x73e   : > { %3963 = vmatmul.bf16.gmra.mxu1 %v9335_v9  ;;  %6842 = vmatmul.msk.bf16.gmra.mxu3 %vm1318_vm1, %v9339_v18 }
 0x73f   : > { %4021 = vmatmul.bf16.gmra.mxu0 %v9335_v9  ;;  %6846 = vmatmul.msk.bf16.gmra.mxu2 %vm1318_vm1, %v9339_v18  ;;  %v4121_v9 = vmul.f32 0.044715, %v9588_v11  ;;  %v7457_v18 = vld [vmem:[%s8006_s4 + $0x24] sm:$0xf0] }
 0x740   : > { %v6868_v2 = vor.u32 %v7457_v18, %v6867_v45  ;;  %5138 = vmatpush.bf16.msrb.mxu3 %v6932_v24  ;;  %v9634_v45 = vadd.f32 %v3763_v59, %v3735_v48  ;;  %v6852_v18 = vor.u32 %v7453_v54, %v6851_v32  ;;  %v3766_v24 = vpop.f32.mrf.mxu3  ;;  %v3797_v48 = vpop.f32.mrf.mxu0  ;;  %v3738_v54 = vadd.f32 %v3737_v35, %v9562_v3 }
 0x741   : > { %v4169_v1 = vmul.f32 %v4121_v9, %v9588_v11  ;;  %v3791_v9 = vadd.f32 %v9569_v33, %v9567_v46  ;;  %v4306_v33 = vmul.f32 0.7978846, %v4258_v49  ;;  %v7036_v49 = vor.u32 %v7499_v63, %v7035_v0  ;;  %v7083_v0 = vld [vmem:[%s8006_s4 + $0x1d0] sm:$0xf] }
 0x742   : > { %5109 = vmatpush.bf16.msrb.mxu1 %v6868_v2  ;;  %v6916_v2 = vor.u32 %v7469_v29, %v6915_v53  ;;  %v4132_v13 = vmul.f32 0.044715, %v9634_v45  ;;  %v7513_v29 = vld [vmem:[%s8006_s4 + $0x1e4] sm:$0xf0]  ;;  %v3798_v21 = vadd.f32 %v3797_v48, %v9567_v46 }
 0x743   : > { %v4217_v60 = vmul.f32 %v4169_v1, %v9588_v11  ;;  %v9641_v37 = vadd.f32 %v9574_v31, %v3791_v9  ;;  %v7099_v31 = vld [vmem:[%s8006_s4 + $0x1f0] sm:$0xf]  ;;  %v7515_v1 = vld [vmem:[%s8006_s4 + $0x1f4] sm:$0xf0]  ;;  %7710 = vtanh.f32 %v4306_v33  ;;  %5162 = vmatpush.bf16.msra.mxu0 %v7036_v49  ;;  %v3826_v9 = vpop.f32.mrf.mxu2  ;;  %v4066_v49 = vmul.f32 0.5, %v9572_v19 }
 0x744   : > { %5139 = vmatpush.bf16.msrb.mxu3 %v6924_v50  ;;  %v7100_v56 = vor.u32 %v7515_v1, %v7099_v31  ;;  %7712 = vtanh.f32 %v4307_v26  ;;  %v9675_v31 = vadd.f32 %v3766_v24, %v3738_v54  ;;  %v7019_v24 = vld [vmem:[%s8006_s4 + $0x150] sm:$0xf]  ;;  %v7511_v54 = vld [vmem:[%s8006_s4 + $0x1d4] sm:$0xf0] }
 0x745   : > { %v4265_v59 = vadd.f32 %v4217_v60, %v9588_v11  ;;  %v4127_v6 = vmul.f32 0.044715, %v9641_v37 }
 0x746   : > { %5110 = vmatpush.bf16.msrb.mxu1 %v6860_v23  ;;  %v4312_v23 = vmul.f32 0.7978846, %v4264_v7  ;;  %5191 = vmatpush.bf16.msra.mxu2 %v7100_v56  ;;  %v3740_v7 = vadd.f32 %v3739_v34, %v9562_v3  ;;  %v7495_v34 = vld [vmem:[%s8006_s4 + $0x154] sm:$0xf0] }
 0x747   : > { %v4313_v50 = vmul.f32 0.7978846, %v4265_v59  ;;  %v4175_v60 = vmul.f32 %v4127_v6, %v9641_v37  ;;  %v7497_v59 = vld [vmem:[%s8006_s4 + $0x164] sm:$0xf0] }
 0x748   : > { %5140 = vmatpush.bf16.msrb.mxu3 %v6916_v2  ;;  %7714 = vtanh.f32 %v4312_v23  ;;  %v3768_v53 = vpop.f32.mrf.mxu3  ;;  %v7028_v35 = vor.u32 %v7497_v59, %v7027_v38  ;;  %v3796_v23 = vadd.f32 %v9627_v10, %v9567_v46  ;;  %v4072_v59 = vmul.f32 0.5, %v9586_v41 }
 0x749   : > { %7716 = vtanh.f32 %v4313_v50  ;;  %v4223_v26 = vmul.f32 %v4175_v60, %v9641_v37  ;;  %v9681_v6 = vadd.f32 %v3768_v53, %v3740_v7 }
 0x74a   : > { %5111 = vmatpush.bf16.msrb.mxu1 %v6852_v18  ;;  %v7091_v18 = vld [vmem:[%s8006_s4 + $0x1e0] sm:$0xf]  ;;  %5163 = vmatpush.bf16.msra.mxu0 %v7028_v35  ;;  %v9691_v10 = vadd.f32 %v9643_v17, %v3796_v23 }
 0x74b   : > { %v7092_v33 = vor.u32 %v7513_v29, %v7091_v18  ;;  %v7084_v18 = vor.u32 %v7511_v54, %v7083_v0  ;;  %v4144_v29 = vmul.f32 0.044715, %v9681_v6  ;;  %v4271_v17 = vadd.f32 %v4223_v26, %v9641_v37 }
 0x74c   : > { %v4139_v35 = vmul.f32 0.044715, %v9691_v10  ;;  %v9727_v54 = vmul.f32 0.5, %v9634_v45 }
 0x74d   : > { %5192 = vmatpush.bf16.msra.mxu2 %v7092_v33  ;;  %v4192_v41 = vmul.f32 %v4144_v29, %v9681_v6 }
 0x74e   : > { %3968 = vmatmul.bf16.gmra.mxu1 %v9373_v15  ;;  %6843 = vmatmul.msk.bf16.gmra.mxu3 %vm1318_vm1, %v9377_v55 }
 0x74f   : > { %4026 = vmatmul.bf16.gmra.mxu0 %v9373_v15  ;;  %6847 = vmatmul.msk.bf16.gmra.mxu2 %vm1318_vm1, %v9377_v55  ;;  %v9659_v15 = vadd.f32 %v3821_v16, %v3793_v25  ;;  %v4180_v55 = vmul.f32 %v4132_v13, %v9634_v45  ;;  %v4270_v16 = vadd.f32 %v4222_v52, %v9613_v30  ;;  %v7711_v13 = vpop.eup %7710 }
 0x750   : > { %v7713_v25 = vpop.eup %7712  ;;  %v9683_v52 = vadd.f32 %v3826_v9, %v3798_v21  ;;  %v4402_v60 = vadd.f32 1.0, %v7711_v13  ;;  %v4138_v9 = vmul.f32 0.044715, %v9675_v31  ;;  %v4073_v13 = vmul.f32 0.5, %v9588_v11 }
 0x751   : > { %v4133_v32 = vmul.f32 0.044715, %v9659_v15  ;;  %v4228_v2 = vmul.f32 %v4180_v55, %v9634_v45  ;;  %v4318_v1 = vmul.f32 0.7978846, %v4270_v16  ;;  %v7715_v50 = vpop.eup %7714  ;;  %v4403_v53 = vadd.f32 1.0, %v7713_v25  ;;  %5193 = vmatpush.bf16.msra.mxu2 %v7084_v18 }
 0x752   : > { %v7717_v48 = vpop.eup %7716  ;;  %v4145_v38 = vmul.f32 0.044715, %v9683_v52  ;;  %v4408_v7 = vadd.f32 1.0, %v7715_v50  ;;  %v9716_v25 = vmul.f32 0.5, %v9641_v37  ;;  %v7075_v37 = vld [vmem:[%s8006_s4 + $0x1c0] sm:$0xf] }
 0x753   : > { %v4181_v56 = vmul.f32 %v4133_v32, %v9659_v15  ;;  %v4276_v63 = vadd.f32 %v4228_v2, %v9634_v45  ;;  %v7020_v32 = vor.u32 %v7495_v34, %v7019_v24  ;;  %7718 = vtanh.f32 %v4318_v1 }
 0x754   : > { %v4067_v2 = vmul.f32 0.5, %v9582_v39  ;;  %v4409_v21 = vadd.f32 1.0, %v7717_v48  ;;  %v9712_v1 = vmul.f32 0.5, %v9613_v30  ;;  %v4186_v39 = vmul.f32 %v4138_v9, %v9675_v31  ;;  %v7011_v48 = vld [vmem:[%s8006_s4 + $0x140] sm:$0xf] }
 0x755   : > { %v4229_v19 = vmul.f32 %v4181_v56, %v9659_v15  ;;  %v4324_v33 = vmul.f32 0.7978846, %v4276_v63  ;;  %5164 = vmatpush.bf16.msra.mxu0 %v7020_v32  ;;  %v4193_v11 = vmul.f32 %v4145_v38, %v9683_v52  ;;  %v4319_v30 = vmul.f32 0.7978846, %v4271_v17 }
 0x756   : > { %v4451_v26 = vmul.f32 %v4403_v53, %v4067_v2  ;;  %v4456_v0 = vmul.f32 %v4408_v7, %v4072_v59  ;;  %v4457_v63 = vmul.f32 %v4409_v21, %v4073_v13  ;;  %v9730_v53 = vmul.f32 0.5, %v9659_v15  ;;  %v7491_v59 = vld [vmem:[%s8006_s4 + $0x134] sm:$0xf0]  ;;  %v7067_v13 = vld [vmem:[%s8006_s4 + $0x1b0] sm:$0xf] }
 0x757   : > { %v4277_v23 = vadd.f32 %v4229_v19, %v9659_v15  ;;  %7720 = vtanh.f32 %v4324_v33  ;;  %v9736_v38 = vmul.f32 0.5, %v9675_v31  ;;  %v4234_v19 = vmul.f32 %v4186_v39, %v9675_v31  ;;  %v7003_v33 = vld [vmem:[%s8006_s4 + $0x130] sm:$0xf] }
 0x758   : > { %v4240_v15 = vmul.f32 %v4192_v41, %v9681_v6  ;;  %v4241_v2 = vmul.f32 %v4193_v11, %v9683_v52  ;;  %v9745_v21 = vpack.c.bf16 %v4457_v63, %v4451_v26  ;;  %7722 = vtanh.f32 %v4319_v30  ;;  %v7507_v41 = vld [vmem:[%s8006_s4 + $0x1b4] sm:$0xf0]  ;;  %v7489_v11 = vld [vmem:[%s8006_s4 + $0x124] sm:$0xf0]  ;;  %v7059_v63 = vld [vmem:[%s8006_s4 + $0x1a0] sm:$0xf] }
 0x759   : > { %v7719_v50 = vpop.eup %7718  ;;  %v4325_v45 = vmul.f32 0.7978846, %v4277_v23  ;;  %v6995_v23 = vld [vmem:[%s8006_s4 + $0x120] sm:$0xf] }
 0x75a   : > { %v9739_v17 = vadd.f32 1.0, %v7719_v50 }
 0x75b   : > { %v3742_v55 = vpop.f32.mrf.mxu1  ;;  %7724 = vtanh.f32 %v4325_v45 }
 0x75c   : > { %v9693_v16 = vpop.f32.mrf.mxu0  ;;  %v3743_v24 = vadd.f32 %v3742_v55, %v9562_v3  ;;  %v7509_v55 = vld [vmem:[%s8006_s4 + $0x1c4] sm:$0xf0] }
 0x75d   : > { %v7076_v29 = vor.u32 %v7509_v55, %v7075_v37  ;;  %v7721_v26 = vpop.eup %7720  ;;  %v4288_v37 = vadd.f32 %v4240_v15, %v9681_v6 }
 0x75e   : > { %3973 = vmatmul.bf16.gmra.mxu1 %v9458_v44  ;;  %6844 = vmatmul.msk.bf16.gmra.mxu3 %vm1318_vm1, %v9462_v20  ;;  %v7723_v15 = vpop.eup %7722 }
 0x75f   : > { %4031 = vmatmul.bf16.gmra.mxu0 %v9458_v44  ;;  %6848 = vmatmul.msk.bf16.gmra.mxu2 %vm1318_vm1, %v9462_v20  ;;  %v4450_v20 = vmul.f32 %v4402_v60, %v4066_v49  ;;  %v7493_v49 = vld [vmem:[%s8006_s4 + $0x144] sm:$0xf0]  ;;  %v4187_v60 = vmul.f32 %v4139_v35, %v9691_v10  ;;  %v3801_v35 = vadd.f32 %v9693_v16, %v9567_v46 }
 0x760   : > { %v7012_v9 = vor.u32 %v7493_v49, %v7011_v48  ;;  %5194 = vmatpush.bf16.msra.mxu2 %v7076_v29  ;;  %v7505_v48 = vld [vmem:[%s8006_s4 + $0x1a4] sm:$0xf0]  ;;  %v4282_v49 = vadd.f32 %v4234_v19, %v9675_v31  ;;  %v9772_v31 = vperm.slane %v9555_v40, 2  ;;  %v4420_v19 = vadd.f32 1.0, %v7721_v26 }
 0x761   : > { %v3771_v44 = vpop.f32.mrf.mxu3  ;;  %v9743_v7 = vpack.c.bf16 %v4456_v0, %v4450_v20  ;;  %v4235_v20 = vmul.f32 %v4187_v60, %v9691_v10  ;;  %v7068_v0 = vor.u32 %v7507_v41, %v7067_v13  ;;  %v4289_v60 = vadd.f32 %v4241_v2, %v9683_v52 }
 0x762   : > { %v3829_v56 = vpop.f32.mrf.mxu2  ;;  %v9733_v18 = vadd.f32 %v3771_v44, %v3743_v24  ;;  %5165 = vmatpush.bf16.msra.mxu0 %v7012_v9  ;;  %v7004_v44 = vor.u32 %v7491_v59, %v7003_v33  ;;  %v9778_v59 = vperm.slane %v9555_v40, 3  ;;  %v4330_v13 = vmul.f32 0.7978846, %v4282_v49  ;;  %v6987_v40 = vld [vmem:[%s8006_s4 + $0x110] sm:$0xf] }
 0x763   : > { %v3744_v34 = vpop.f32.mrf.mxu1  ;;  %v9762_v16 = vadd.f32 %v3829_v56, %v3801_v35  ;;  %v4283_v33 = vadd.f32 %v4235_v20, %v9691_v10  ;;  %v4337_v41 = vmul.f32 0.7978846, %v4289_v60  ;;  %v7051_v20 = vld [vmem:[%s8006_s4 + $0x190] sm:$0xf]  ;;  %v7043_v60 = vld [vmem:[%s8006_s4 + $0x180] sm:$0xf] }
 0x764   : > { %v3802_v32 = vpop.f32.mrf.mxu0  ;;  %v3745_v39 = vadd.f32 %v3744_v34, %v9562_v3  ;;  %v4150_v30 = vmul.f32 0.044715, %v9733_v18  ;;  %5195 = vmatpush.bf16.msra.mxu2 %v7068_v0  ;;  %v7485_v0 = vld [vmem:[%s8006_s4 + $0x104] sm:$0xf0] }
 0x765   : > { %v3803_v50 = vadd.f32 %v3802_v32, %v9567_v46  ;;  %v6996_v46 = vor.u32 %v7489_v11, %v6995_v23  ;;  %v7060_v32 = vor.u32 %v7505_v48, %v7059_v63  ;;  %v4151_v35 = vmul.f32 0.044715, %v9762_v16  ;;  %v7487_v11 = vld [vmem:[%s8006_s4 + $0x114] sm:$0xf0]  ;;  %v7725_v63 = vpop.eup %7724 }
 0x766   : > { %5166 = vmatpush.bf16.msra.mxu0 %v7004_v44  ;;  %v4198_v2 = vmul.f32 %v4150_v30, %v9733_v18  ;;  %v4336_v44 = vmul.f32 0.7978846, %v4288_v37  ;;  %v6988_v30 = vor.u32 %v7487_v11, %v6987_v40  ;;  %v4331_v37 = vmul.f32 0.7978846, %v4283_v33 }
 0x768   : > { %5196 = vmatpush.bf16.msra.mxu2 %v7060_v32  ;;  %v4199_v32 = vmul.f32 %v4151_v35, %v9762_v16  ;;  %7726 = vtanh.f32 %v4336_v44  ;;  %v4421_v35 = vadd.f32 1.0, %v7725_v63 }
 0x769   : > { %v3773_v24 = vpop.f32.mrf.mxu3  ;;  %7728 = vtanh.f32 %v4337_v41  ;;  %v9814_v41 = vmul.f32 0.5, %v9691_v10  ;;  %v4096_v10 = vmul.f32 0.5, %v9681_v6 }
 0x76a   : > { %v9764_v3 = vadd.f32 %v3773_v24, %v3745_v39  ;;  %v3831_v34 = vpop.f32.mrf.mxu2  ;;  %5167 = vmatpush.bf16.msra.mxu0 %v6996_v46  ;;  %v6979_v24 = vld [vmem:[%s8006_s4 + $0x100] sm:$0xf]  ;;  %v4246_v46 = vmul.f32 %v4198_v2, %v9733_v18  ;;  %7730 = vtanh.f32 %v4330_v13  ;;  %v4469_v63 = vmul.f32 %v4421_v35, %v9730_v53 }
 0x76b   : > { %v9768_v9 = vadd.f32 %v3831_v34, %v3803_v50  ;;  %v3843_v55 = vpop.f32.mrf.mxu1  ;;  %v7503_v50 = vld [vmem:[%s8006_s4 + $0x194] sm:$0xf0]  ;;  %7732 = vtanh.f32 %v4331_v37 }
 0x76c   : > { %v4156_v29 = vmul.f32 0.044715, %v9764_v3  ;;  %v3901_v56 = vpop.f32.mrf.mxu0  ;;  %v3844_v26 = vadd.f32 %v3843_v55, %v9772_v31  ;;  %v7052_v34 = vor.u32 %v7503_v50, %v7051_v20  ;;  %v6980_v55 = vor.u32 %v7485_v0, %v6979_v24 }
 0x76d   : > { %v4157_v45 = vmul.f32 0.044715, %v9768_v9  ;;  %v3902_v48 = vadd.f32 %v3901_v56, %v9778_v59  ;;  %v4415_v50 = vadd.f32 1.0, %v7723_v15  ;;  %v4468_v15 = vmul.f32 %v4420_v19, %v9727_v54 }
 0x76e   : > { %v4204_v39 = vmul.f32 %v4156_v29, %v9764_v3  ;;  %5112 = vmatmul.bf16.vlgmr.msrb.gmra.mxu1 %v9743_v7  ;;  %5141 = vmatmul.bf16.vlgmr.msrb.gmra.mxu3 %v9745_v21  ;;  %v7501_v29 = vld [vmem:[%s8006_s4 + $0x184] sm:$0xf0] }
 0x76f   : > { %v4205_v23 = vmul.f32 %v4157_v45, %v9768_v9  ;;  %5168 = vmatpush.bf16.msra.mxu0 %v6988_v30  ;;  %5197 = vmatpush.bf16.msra.mxu2 %v7052_v34  ;;  %v7044_v56 = vor.u32 %v7501_v29, %v7043_v60  ;;  %v4463_v0 = vmul.f32 %v4415_v50, %v9716_v25 }
 0x770   : > { %v4252_v40 = vmul.f32 %v4204_v39, %v9764_v3  ;;  %v4462_v39 = vmul.f32 %v9739_v17, %v9712_v1 }
 0x771   : > { %v3872_v49 = vpop.f32.mrf.mxu3  ;;  %v4253_v33 = vmul.f32 %v4205_v23, %v9768_v9  ;;  %v4247_v23 = vmul.f32 %v4199_v32, %v9762_v16  ;;  %v9834_v35 = vpack.c.bf16 %v4469_v63, %v4463_v0 }
 0x772   : > { %v9797_v45 = vadd.f32 %v3872_v49, %v3844_v26  ;;  %v3930_v28 = vpop.f32.mrf.mxu2  ;;  %v4300_v44 = vadd.f32 %v4252_v40, %v9764_v3 }
 0x773   : > { %v9800_v11 = vadd.f32 %v3930_v28, %v3902_v48  ;;  %v3845_v47 = vpop.f32.mrf.mxu1  ;;  %v4294_v28 = vadd.f32 %v4246_v46, %v9733_v18  ;;  %5169 = vmatpush.bf16.msra.mxu0 %v6980_v55  ;;  %5198 = vmatpush.bf16.msra.mxu2 %v7044_v56  ;;  %v4301_v1 = vadd.f32 %v4253_v33, %v9768_v9  ;;  %v7727_v48 = vpop.eup %7726 }
 0x774   : > { %v4116_v20 = vmul.f32 0.044715, %v9797_v45  ;;  %v3903_v2 = vpop.f32.mrf.mxu0  ;;  %v3846_v13 = vadd.f32 %v3845_v47, %v9772_v31  ;;  %v7729_v37 = vpop.eup %7728  ;;  %v4348_v47 = vmul.f32 0.7978846, %v4300_v44  ;;  %v4295_v25 = vadd.f32 %v4247_v23, %v9762_v16 }
 0x775   : > { %v4117_v26 = vmul.f32 0.044715, %v9800_v11  ;;  %v3904_v54 = vadd.f32 %v3903_v2, %v9778_v59  ;;  %v4342_v34 = vmul.f32 0.7978846, %v4294_v28  ;;  %v7731_v32 = vpop.eup %7730  ;;  %v9831_v56 = vpack.c.bf16 %v4468_v15, %v4462_v39 }
 0x776   : > { %v4164_v30 = vmul.f32 %v4116_v20, %v9797_v45  ;;  %v4349_v33 = vmul.f32 0.7978846, %v4301_v1  ;;  %v7733_v6 = vpop.eup %7732  ;;  %v4433_v44 = vadd.f32 1.0, %v7729_v37  ;;  %v4426_v39 = vadd.f32 1.0, %v7731_v32 }
 0x777   : > { %v4165_v24 = vmul.f32 %v4117_v26, %v9800_v11  ;;  %v4432_v26 = vadd.f32 1.0, %v7727_v48  ;;  %7734 = vtanh.f32 %v4342_v34  ;;  %v4097_v1 = vmul.f32 0.5, %v9683_v52 }
 0x778   : > { %v4212_v17 = vmul.f32 %v4164_v30, %v9797_v45  ;;  %7736 = vtanh.f32 %v4348_v47 }
 0x779   : > { %v4213_v49 = vmul.f32 %v4165_v24, %v9800_v11  ;;  %v3874_v19 = vpop.f32.mrf.mxu3  ;;  %v4343_v24 = vmul.f32 0.7978846, %v4295_v25  ;;  %7738 = vtanh.f32 %v4349_v33  ;;  %v4480_v63 = vmul.f32 %v4432_v26, %v4096_v10 }
 0x77a   : > { %v4260_v60 = vadd.f32 %v4212_v17, %v9797_v45  ;;  %v9825_v29 = vadd.f32 %v3874_v19, %v3846_v13  ;;  %v3932_v46 = vpop.f32.mrf.mxu2  ;;  %v4427_v17 = vadd.f32 1.0, %v7733_v6  ;;  %v4481_v19 = vmul.f32 %v4433_v44, %v4097_v1 }
 0x77b   : > { %v4261_v53 = vadd.f32 %v4213_v49, %v9800_v11  ;;  %v9829_v55 = vadd.f32 %v3932_v46, %v3904_v54  ;;  %v3848_v40 = vpop.f32.mrf.mxu1  ;;  %v4108_v44 = vmul.f32 0.5, %v9764_v3  ;;  %v4109_v1 = vmul.f32 0.5, %v9768_v9 }
 0x77c   : > { %v4308_v20 = vmul.f32 0.7978846, %v4260_v60  ;;  %v4122_v2 = vmul.f32 0.044715, %v9825_v29  ;;  %v3906_v50 = vpop.f32.mrf.mxu0  ;;  %v3849_v0 = vadd.f32 %v3848_v40, %v9772_v31  ;;  %v4474_v60 = vmul.f32 %v4426_v39, %v9736_v38 }
 0x77d   : > { %v4309_v28 = vmul.f32 0.7978846, %v4261_v53  ;;  %v4123_v30 = vmul.f32 0.044715, %v9829_v55  ;;  %v3907_v49 = vadd.f32 %v3906_v50, %v9778_v59  ;;  %v7735_v46 = vpop.eup %7734  ;;  %v4475_v32 = vmul.f32 %v4427_v17, %v9814_v41 }
 0x77e   : > { %v4170_v23 = vmul.f32 %v4122_v2, %v9825_v29  ;;  %5117 = vmatmul.bf16.gmra.mxu1 %v9831_v56  ;;  %5146 = vmatmul.bf16.gmra.mxu3 %v9834_v35  ;;  %7740 = vtanh.f32 %v4308_v20  ;;  %v7737_v53 = vpop.eup %7736  ;;  %v9855_v20 = vpack.c.bf16 %v4480_v63, %v4474_v60  ;;  %v4438_v9 = vadd.f32 1.0, %v7735_v46 }
 0x77f   : > { %v4171_v15 = vmul.f32 %v4123_v30, %v9829_v55  ;;  %7742 = vtanh.f32 %v4309_v28  ;;  %v7739_v2 = vpop.eup %7738  ;;  %v9858_v26 = vpack.c.bf16 %v4481_v19, %v4475_v32  ;;  %v9861_v28 = vmul.f32 0.5, %v9733_v18 }
 0x780   : > { %v4218_v13 = vmul.f32 %v4170_v23, %v9825_v29  ;;  %7744 = vtanh.f32 %v4343_v24  ;;  %v9866_v23 = vmul.f32 0.5, %v9762_v16  ;;  %v4068_v24 = vmul.f32 0.5, %v9797_v45 }
 0x781   : > { %v4219_v48 = vmul.f32 %v4171_v15, %v9829_v55  ;;  %v3877_v54 = vpop.f32.mrf.mxu3  ;;  %v4069_v18 = vmul.f32 0.5, %v9800_v11  ;;  %v4074_v11 = vmul.f32 0.5, %v9825_v29 }
 0x782   : > { %v4266_v34 = vadd.f32 %v4218_v13, %v9825_v29  ;;  %v9847_v37 = vadd.f32 %v3877_v54, %v3849_v0  ;;  %v3935_v52 = vpop.f32.mrf.mxu2  ;;  %v4444_v0 = vadd.f32 1.0, %v7737_v53 }
 0x783   : > { %v4267_v47 = vadd.f32 %v4219_v48, %v9829_v55  ;;  %v9851_v25 = vadd.f32 %v3935_v52, %v3907_v49  ;;  %v3850_v10 = vpop.f32.mrf.mxu1  ;;  %v4445_v49 = vadd.f32 1.0, %v7739_v2 }
 0x784   : > { %v4314_v40 = vmul.f32 0.7978846, %v4266_v34  ;;  %v4128_v33 = vmul.f32 0.044715, %v9847_v37  ;;  %v3908_v6 = vpop.f32.mrf.mxu0  ;;  %v7741_v30 = vpop.eup %7740  ;;  %v3851_v13 = vadd.f32 %v3850_v10, %v9772_v31  ;;  %v4492_v2 = vmul.f32 %v4444_v0, %v4108_v44 }
 0x785   : > { %v4315_v50 = vmul.f32 0.7978846, %v4267_v47  ;;  %v4129_v38 = vmul.f32 0.044715, %v9851_v25  ;;  %v7743_v39 = vpop.eup %7742  ;;  %v4404_v3 = vadd.f32 1.0, %v7741_v30  ;;  %v3909_v16 = vadd.f32 %v3908_v6, %v9778_v59 }
 0x786   : > { %7746 = vtanh.f32 %v4314_v40  ;;  %v4176_v41 = vmul.f32 %v4128_v33, %v9847_v37  ;;  %v7745_v17 = vpop.eup %7744  ;;  %v4405_v54 = vadd.f32 1.0, %v7743_v39  ;;  %v4075_v40 = vmul.f32 0.5, %v9829_v55 }
 0x787   : > { %7748 = vtanh.f32 %v4315_v50  ;;  %v4177_v15 = vmul.f32 %v4129_v38, %v9851_v25  ;;  %v4439_v10 = vadd.f32 1.0, %v7745_v17  ;;  %v4452_v30 = vmul.f32 %v4404_v3, %v4068_v24  ;;  %v7227_v24 = vld [vmem:[%s8006_s4 + $0x2f0] sm:$0xf] }
 0x788   : > { %v4224_v63 = vmul.f32 %v4176_v41, %v9847_v37  ;;  %v4493_v41 = vmul.f32 %v4445_v49, %v4109_v1  ;;  %v4453_v44 = vmul.f32 %v4405_v54, %v4069_v18  ;;  %v7547_v1 = vld [vmem:[%s8006_s4 + $0x2f4] sm:$0xf0] }
 0x789   : > { %v3879_v48 = vpop.f32.mrf.mxu3  ;;  %v4225_v45 = vmul.f32 %v4177_v15, %v9851_v25  ;;  %v7531_v49 = vld [vmem:[%s8006_s4 + $0x274] sm:$0xf0] }
 0x78a   : > { %v9876_v19 = vadd.f32 %v3879_v48, %v3851_v13  ;;  %v3937_v34 = vpop.f32.mrf.mxu2  ;;  %v4272_v52 = vadd.f32 %v4224_v63, %v9847_v37  ;;  %v7163_v48 = vld [vmem:[%s8006_s4 + $0x270] sm:$0xf] }
 0x78b   : > { %v9880_v60 = vadd.f32 %v3937_v34, %v3909_v16  ;;  %v3853_v47 = vpop.f32.mrf.mxu1  ;;  %v4273_v32 = vadd.f32 %v4225_v45, %v9851_v25  ;;  %v7228_v16 = vor.u32 %v7547_v1, %v7227_v24  ;;  %v7482_v45 = vld [vmem:[%s8006_s4 + $0xf4] sm:$0xf] }
 0x78c   : > { %v7747_v53 = vpop.eup %7746  ;;  %v4134_v33 = vmul.f32 0.044715, %v9876_v19  ;;  %v3911_v6 = vpop.f32.mrf.mxu0  ;;  %v4320_v50 = vmul.f32 0.7978846, %v4272_v52  ;;  %v3854_v13 = vadd.f32 %v3853_v47, %v9772_v31  ;;  %v6973_v47 = vld [vmem:[%s8006_s4 + $0xf8] sm:$0xf0] }
 0x78d   : > { %v7749_v46 = vpop.eup %7748  ;;  %v4135_v38 = vmul.f32 0.044715, %v9880_v60  ;;  %v4410_v29 = vadd.f32 1.0, %v7747_v53  ;;  %v4321_v15 = vmul.f32 0.7978846, %v4273_v32  ;;  %v3912_v18 = vadd.f32 %v3911_v6, %v9778_v59  ;;  %5249 = vmatpush.bf16.msra.mxu3 %v7228_v16 }
 0x78e   : > { %v4182_v39 = vmul.f32 %v4134_v33, %v9876_v19  ;;  %5122 = vmatmul.bf16.gmra.mxu1 %v9855_v20  ;;  %5151 = vmatmul.bf16.gmra.mxu3 %v9858_v26  ;;  %v4411_v55 = vadd.f32 1.0, %v7749_v46  ;;  %7750 = vtanh.f32 %v4320_v50  ;;  %v6976_v50 = vor.u32 %v7482_v45, %v6973_v47 }
 0x78f   : > { %v4183_v17 = vmul.f32 %v4135_v38, %v9880_v60  ;;  %v4458_v0 = vmul.f32 %v4410_v29, %v4074_v11  ;;  %7752 = vtanh.f32 %v4321_v15  ;;  %v7164_v11 = vor.u32 %v7531_v49, %v7163_v48 }
 0x790   : > { %v4459_v63 = vmul.f32 %v4411_v55, %v4075_v40  ;;  %v4230_v3 = vmul.f32 %v4182_v39, %v9876_v19  ;;  %v4486_v39 = vmul.f32 %v4438_v9, %v9861_v28  ;;  %v4487_v55 = vmul.f32 %v4439_v10, %v9866_v23  ;;  %5307 = vmatpush.bf16.msrb.mxu2 %v6976_v50  ;;  %v7466_v9 = vld [vmem:[%s8006_s4 + $0x74] sm:$0xf]  ;;  %v6909_v10 = vld [vmem:[%s8006_s4 + $0x78] sm:$0xf0] }
 0x791   : > { %v3882_v54 = vpop.f32.mrf.mxu3  ;;  %v9898_v34 = vpack.c.bf16 %v4458_v0, %v4452_v30  ;;  %v4231_v52 = vmul.f32 %v4183_v17, %v9880_v60  ;;  %5220 = vmatpush.bf16.msra.mxu1 %v7164_v11  ;;  %v4080_v23 = vmul.f32 0.5, %v9847_v37  ;;  %v6912_v49 = vor.u32 %v7466_v9, %v6909_v10 }
 0x792   : > { %v3883_v32 = vadd.f32 %v3882_v54, %v3854_v13  ;;  %v3940_v53 = vpop.f32.mrf.mxu2  ;;  %v9902_v33 = vpack.c.bf16 %v4459_v63, %v4453_v44  ;;  %v4278_v40 = vadd.f32 %v4230_v3, %v9876_v19  ;;  %v9913_v1 = vpack.c.bf16 %v4492_v2, %v4486_v39 }
 0x793   : > { %v9905_v46 = vadd.f32 %v3940_v53, %v3912_v18  ;;  %v3855_v38 = vpop.f32.mrf.mxu1  ;;  %5170 = vmatmul.bf16.vlgmr.msra.gmra.mxu0 %v9898_v34  ;;  %v4279_v6 = vadd.f32 %v4231_v52, %v9880_v60  ;;  %v9915_v63 = vpack.c.bf16 %v4493_v41, %v4487_v55  ;;  %v4086_v18 = vmul.f32 0.5, %v9876_v19  ;;  %v7838_v53 = vld [vmem:[%s7997_s18] sm:$0x3f]  ;;  %s10828_s18 = sld [smem:[#allocation18_spill]] (!%p7233_p5) }
 0x794   : > { %v4140_v29 = vmul.f32 0.044715, %v3883_v32  ;;  %v3913_v30 = vpop.f32.mrf.mxu0  ;;  %5199 = vmatmul.bf16.vlgmr.msra.gmra.mxu2 %v9902_v33  ;;  %v4326_v44 = vmul.f32 0.7978846, %v4278_v40  ;;  %v7751_v15 = vpop.eup %7750  ;;  %v3856_v28 = vadd.f32 %v3855_v38, %v9772_v31  ;;  %v4081_v54 = vmul.f32 0.5, %v9851_v25  ;;  %5278 = vmatpush.bf16.msrb.mxu0 %v6912_v49 }
 0x795   : > { %v4141_v17 = vmul.f32 0.044715, %v9905_v46  ;;  %v4327_v13 = vmul.f32 0.7978846, %v4279_v6  ;;  %v7753_v0 = vpop.eup %7752  ;;  %v4416_v16 = vadd.f32 1.0, %v7751_v15  ;;  %v3914_v2 = vadd.f32 %v3913_v30, %v9778_v59 }
 0x796   : > { %v4188_v24 = vmul.f32 %v4140_v29, %v3883_v32  ;;  %7754 = vtanh.f32 %v4326_v44  ;;  %v4417_v48 = vadd.f32 1.0, %v7753_v0  ;;  %v4087_v47 = vmul.f32 0.5, %v9880_v60  ;;  %v7219_v25 = vld [vmem:[%s8006_s4 + $0x2e0] sm:$0xf]  ;;  %v7545_v29 = vld [vmem:[%s8006_s4 + $0x2e4] sm:$0xf0] }
 0x797   : > { %v4189_v3 = vmul.f32 %v4141_v17, %v9905_v46  ;;  %7756 = vtanh.f32 %v4327_v13  ;;  %v9930_v40 = vperm.slane %v7838_v53, 4  ;;  %v9934_v19 = vperm.slane %v7838_v53, 5  ;;  %v7155_v0 = vld [vmem:[%s8006_s4 + $0x260] sm:$0xf]  ;;  %v6901_v53 = vld [vmem:[%s8006_s4 + $0x68] sm:$0xf0] }
 0x798   : > { %v4236_v45 = vmul.f32 %v4188_v24, %v3883_v32  ;;  %v9938_v30 = vmul.f32 0.5, %v3883_v32  ;;  %v4464_v15 = vmul.f32 %v4416_v16, %v4080_v23  ;;  %v4465_v17 = vmul.f32 %v4417_v48, %v4081_v54  ;;  %v7529_v24 = vld [vmem:[%s8006_s4 + $0x264] sm:$0xf0]  ;;  %v7480_v48 = vld [vmem:[%s8006_s4 + $0xe4] sm:$0xf] }
 0x799   : > { %v3884_v41 = vpop.f32.mrf.mxu3  ;;  %v4237_v52 = vmul.f32 %v4189_v3, %v9905_v46  ;;  %v7220_v13 = vor.u32 %v7545_v29, %v7219_v25  ;;  %v7156_v54 = vor.u32 %v7529_v24, %v7155_v0  ;;  %v7211_v29 = vld [vmem:[%s8006_s4 + $0x2d0] sm:$0xf]  ;;  %v7527_v24 = vld [vmem:[%s8006_s4 + $0x254] sm:$0xf0] }
 0x79a   : > { %v9926_v37 = vadd.f32 %v3884_v41, %v3856_v28  ;;  %v3942_v11 = vpop.f32.mrf.mxu2  ;;  %v4284_v50 = vadd.f32 %v4236_v45, %v3883_v32 }
 0x79b   : > { %v9932_v38 = vadd.f32 %v3942_v11, %v3914_v2  ;;  %v3858_v6 = vpop.f32.mrf.mxu1  ;;  %v4285_v39 = vadd.f32 %v4237_v52, %v9905_v46  ;;  %5250 = vmatpush.bf16.msra.mxu3 %v7220_v13  ;;  %v6965_v52 = vld [vmem:[%s8006_s4 + $0xe8] sm:$0xf0]  ;;  %v7464_v11 = vld [vmem:[%s8006_s4 + $0x64] sm:$0xf]  ;;  %5221 = vmatpush.bf16.msra.mxu1 %v7156_v54  ;;  %v7525_v54 = vld [vmem:[%s8006_s4 + $0x244] sm:$0xf0] }
 0x79c   : > { %v7755_v55 = vpop.eup %7754  ;;  %v4146_v60 = vmul.f32 0.044715, %v9926_v37  ;;  %v3916_v44 = vpop.f32.mrf.mxu0  ;;  %v3859_v9 = vadd.f32 %v3858_v6, %v9772_v31  ;;  %v4332_v10 = vmul.f32 0.7978846, %v4284_v50  ;;  %v6968_v25 = vor.u32 %v7480_v48, %v6965_v52 }
 0x79d   : > { %v7757_v3 = vpop.eup %7756  ;;  %v4147_v28 = vmul.f32 0.044715, %v9932_v38  ;;  %v4422_v32 = vadd.f32 1.0, %v7755_v55  ;;  %v3917_v45 = vadd.f32 %v3916_v44, %v9778_v59  ;;  %v4333_v16 = vmul.f32 0.7978846, %v4285_v39 }
 0x79e   : > { %v4194_v49 = vmul.f32 %v4146_v60, %v9926_v37  ;;  %5127 = vmatmul.bf16.gmra.mxu1 %v9913_v1  ;;  %5156 = vmatmul.bf16.gmra.mxu3 %v9915_v63  ;;  %v4423_v23 = vadd.f32 1.0, %v7757_v3  ;;  %7758 = vtanh.f32 %v4332_v10  ;;  %v7543_v39 = vld [vmem:[%s8006_s4 + $0x2d4] sm:$0xf0]  ;;  %v7147_v55 = vld [vmem:[%s8006_s4 + $0x250] sm:$0xf]  ;;  %v6904_v13 = vor.u32 %v7464_v11, %v6901_v53 }
 0x79f   : > { %v4195_v2 = vmul.f32 %v4147_v28, %v9932_v38  ;;  %v4470_v41 = vmul.f32 %v4422_v32, %v4086_v18  ;;  %7760 = vtanh.f32 %v4333_v16  ;;  %v7212_v0 = vor.u32 %v7543_v39, %v7211_v29  ;;  %v6893_v3 = vld [vmem:[%s8006_s4 + $0x58] sm:$0xf0]  ;;  %5308 = vmatpush.bf16.msrb.mxu2 %v6968_v25 }
 0x7a0   : > { %v4471_v50 = vmul.f32 %v4423_v23, %v4087_v47  ;;  %v4242_v6 = vmul.f32 %v4194_v49, %v9926_v37  ;;  %v7462_v47 = vld [vmem:[%s8006_s4 + $0x54] sm:$0xf]  ;;  %v6957_v16 = vld [vmem:[%s8006_s4 + $0xd8] sm:$0xf0]  ;;  %5279 = vmatpush.bf16.msrb.mxu0 %v6904_v13  ;;  %v4093_v13 = vmul.f32 0.5, %v9905_v46 }
 0x7a1   : > { %v3887_v60 = vpop.f32.mrf.mxu3  ;;  %v9959_v18 = vpack.c.bf16 %v4470_v41, %v4464_v15  ;;  %v4243_v44 = vmul.f32 %v4195_v2, %v9932_v38  ;;  %v7148_v15 = vor.u32 %v7527_v24, %v7147_v55  ;;  %v7478_v23 = vld [vmem:[%s8006_s4 + $0xd4] sm:$0xf]  ;;  %5251 = vmatpush.bf16.msra.mxu3 %v7212_v0 }
 0x7a2   : > { %v9965_v28 = vadd.f32 %v3887_v60, %v3859_v9  ;;  %v3945_v32 = vpop.f32.mrf.mxu2  ;;  %v9967_v10 = vpack.c.bf16 %v4471_v50, %v4465_v17  ;;  %v4290_v49 = vadd.f32 %v4242_v6, %v9926_v37  ;;  %v7139_v9 = vld [vmem:[%s8006_s4 + $0x240] sm:$0xf]  ;;  %v6960_v50 = vor.u32 %v7478_v23, %v6957_v16  ;;  %v7541_v6 = vld [vmem:[%s8006_s4 + $0x2c4] sm:$0xf0]  ;;  %v7460_v60 = vld [vmem:[%s8006_s4 + $0x44] sm:$0xf] }
 0x7a3   : > { %v9972_v48 = vadd.f32 %v3945_v32, %v3917_v45  ;;  %v3860_v2 = vpop.f32.mrf.mxu1  ;;  %5175 = vmatmul.bf16.gmra.mxu0 %v9959_v18  ;;  %v4291_v41 = vadd.f32 %v4243_v44, %v9932_v38  ;;  %v7203_v17 = vld [vmem:[%s8006_s4 + $0x2c0] sm:$0xf]  ;;  %v6896_v45 = vor.u32 %v7462_v47, %v6893_v3  ;;  %5222 = vmatpush.bf16.msra.mxu1 %v7148_v15  ;;  %v6885_v47 = vld [vmem:[%s8006_s4 + $0x48] sm:$0xf0]  ;;  %v7476_v3 = vld [vmem:[%s8006_s4 + $0xc4] sm:$0xf] }
 0x7a4   : > { %v4152_v52 = vmul.f32 0.044715, %v9965_v28  ;;  %v3918_v11 = vpop.f32.mrf.mxu0  ;;  %5204 = vmatmul.bf16.gmra.mxu2 %v9967_v10  ;;  %v4338_v53 = vmul.f32 0.7978846, %v4290_v49  ;;  %v7759_v25 = vpop.eup %7758  ;;  %v7140_v55 = vor.u32 %v7525_v54, %v7139_v9  ;;  %v7204_v24 = vor.u32 %v7541_v6, %v7203_v17  ;;  %v6949_v23 = vld [vmem:[%s8006_s4 + $0xc8] sm:$0xf0] }
 0x7a5   : > { %v4153_v29 = vmul.f32 0.044715, %v9972_v48  ;;  %v4339_v39 = vmul.f32 0.7978846, %v4291_v41  ;;  %v7761_v44 = vpop.eup %7760  ;;  %5309 = vmatpush.bf16.msrb.mxu2 %v6960_v50  ;;  %v3861_v49 = vadd.f32 %v3860_v2, %v9772_v31  ;;  %v4098_v15 = vmul.f32 0.5, %v9926_v37  ;;  %5280 = vmatpush.bf16.msrb.mxu0 %v6896_v45 }
 0x7a6   : > { %v4200_v0 = vmul.f32 %v4152_v52, %v9965_v28  ;;  %7762 = vtanh.f32 %v4338_v53  ;;  %v7131_v16 = vld [vmem:[%s8006_s4 + $0x230] sm:$0xf]  ;;  %v4428_v41 = vadd.f32 1.0, %v7759_v25  ;;  %5252 = vmatpush.bf16.msra.mxu3 %v7204_v24  ;;  %v6888_v46 = vor.u32 %v7460_v60, %v6885_v47  ;;  %v7523_v17 = vld [vmem:[%s8006_s4 + $0x234] sm:$0xf0] }
 0x7a7   : > { %v4201_v32 = vmul.f32 %v4153_v29, %v9972_v48  ;;  %7764 = vtanh.f32 %v4339_v39  ;;  %v6952_v9 = vor.u32 %v7476_v3, %v6949_v23  ;;  %v7195_v52 = vld [vmem:[%s8006_s4 + $0x2b0] sm:$0xf]  ;;  %v3919_v31 = vadd.f32 %v3918_v11, %v9778_v59  ;;  %5223 = vmatpush.bf16.msra.mxu1 %v7140_v55  ;;  %v7539_v45 = vld [vmem:[%s8006_s4 + $0x2b4] sm:$0xf0]  ;;  %v7458_v6 = vld [vmem:[%s8006_s4 + $0x34] sm:$0xf] }
 0x7a8   : > { %v4248_v54 = vmul.f32 %v4200_v0, %v9965_v28  ;;  %v4429_v2 = vadd.f32 1.0, %v7761_v44  ;;  %v7132_v50 = vor.u32 %v7523_v17, %v7131_v16  ;;  %v7196_v60 = vor.u32 %v7539_v45, %v7195_v52  ;;  %v6877_v0 = vld [vmem:[%s8006_s4 + $0x38] sm:$0xf0]  ;;  %v7474_v24 = vld [vmem:[%s8006_s4 + $0xb4] sm:$0xf] }
 0x7a9   : > { %v3889_v37 = vpop.f32.mrf.mxu3  ;;  %v4249_v53 = vmul.f32 %v4201_v32, %v9972_v48  ;;  %5310 = vmatpush.bf16.msrb.mxu2 %v6952_v9  ;;  %v6941_v59 = vld [vmem:[%s8006_s4 + $0xb8] sm:$0xf0]  ;;  %v4099_v44 = vmul.f32 0.5, %v9932_v38  ;;  %v7123_v32 = vld [vmem:[%s8006_s4 + $0x220] sm:$0xf]  ;;  %5281 = vmatpush.bf16.msrb.mxu0 %v6888_v46  ;;  %v6880_v52 = vor.u32 %v7458_v6, %v6877_v0 }
 0x7aa   : > { %v10000_v25 = vadd.f32 %v3889_v37, %v3861_v49  ;;  %v3947_v29 = vpop.f32.mrf.mxu2  ;;  %v4296_v39 = vadd.f32 %v4248_v54, %v9965_v28  ;;  %v6944_v3 = vor.u32 %v7474_v24, %v6941_v59  ;;  %v7521_v49 = vld [vmem:[%s8006_s4 + $0x224] sm:$0xf0]  ;;  %v4476_v54 = vmul.f32 %v4428_v41, %v9938_v30  ;;  %5253 = vmatpush.bf16.msra.mxu3 %v7196_v60 }
 0x7ab   : > { %v10006_v11 = vadd.f32 %v3947_v29, %v3919_v31  ;;  %v3959_v55 = vpop.f32.mrf.mxu1  ;;  %v4297_v47 = vadd.f32 %v4249_v53, %v9972_v48  ;;  %v7187_v31 = vld [vmem:[%s8006_s4 + $0x2a0] sm:$0xf]  ;;  %v4477_v29 = vmul.f32 %v4429_v2, %v4093_v13  ;;  %5224 = vmatpush.bf16.msra.mxu1 %v7132_v50  ;;  %v7537_v24 = vld [vmem:[%s8006_s4 + $0x2a4] sm:$0xf0]  ;;  %v7124_v59 = vor.u32 %v7521_v49, %v7123_v32  ;;  %v7472_v13 = vld [vmem:[%s8006_s4 + $0xa4] sm:$0xf] }
 0x7ac   : > { %v7763_v23 = vpop.eup %7762  ;;  %v4158_v16 = vmul.f32 0.044715, %v10000_v25  ;;  %v4017_v9 = vpop.f32.mrf.mxu0  ;;  %v4344_v17 = vmul.f32 0.7978846, %v4296_v39  ;;  %v3960_v53 = vadd.f32 %v3959_v55, %v9930_v40  ;;  %v7456_v39 = vld [vmem:[%s8006_s4 + $0x24] sm:$0xf]  ;;  %v7188_v55 = vor.u32 %v7537_v24, %v7187_v31 }
 0x7ad   : > { %v7765_v37 = vpop.eup %7764  ;;  %v4159_v38 = vmul.f32 0.044715, %v10006_v11  ;;  %v4434_v45 = vadd.f32 1.0, %v7763_v23  ;;  %v4018_v41 = vadd.f32 %v4017_v9, %v9934_v19  ;;  %v4345_v6 = vmul.f32 0.7978846, %v4297_v47  ;;  %5311 = vmatpush.bf16.msrb.mxu2 %v6944_v3  ;;  %5282 = vmatpush.bf16.msrb.mxu0 %v6880_v52 }
 0x7ae   : > { %v4206_v30 = vmul.f32 %v4158_v16, %v10000_v25  ;;  %v4435_v46 = vadd.f32 1.0, %v7765_v37  ;;  %v6869_v23 = vld [vmem:[%s8006_s4 + $0x28] sm:$0xf0]  ;;  %7766 = vtanh.f32 %v4344_v17  ;;  %v7115_v47 = vld [vmem:[%s8006_s4 + $0x210] sm:$0xf]  ;;  %5254 = vmatpush.bf16.msra.mxu3 %v7188_v55 }
 0x7af   : > { %v4207_v60 = vmul.f32 %v4159_v38, %v10006_v11  ;;  %v4482_v0 = vmul.f32 %v4434_v45, %v4098_v15  ;;  %v6933_v2 = vld [vmem:[%s8006_s4 + $0xa8] sm:$0xf0]  ;;  %v6872_v9 = vor.u32 %v7456_v39, %v6869_v23  ;;  %v7519_v3 = vld [vmem:[%s8006_s4 + $0x214] sm:$0xf0]  ;;  %v7179_v37 = vld [vmem:[%s8006_s4 + $0x290] sm:$0xf]  ;;  %7768 = vtanh.f32 %v4345_v6  ;;  %5225 = vmatpush.bf16.msra.mxu1 %v7124_v59 }
 0x7b0   : > { %v4483_v50 = vmul.f32 %v4435_v46, %v4099_v44  ;;  %v4254_v16 = vmul.f32 %v4206_v30, %v10000_v25  ;;  %v6936_v44 = vor.u32 %v7472_v13, %v6933_v2  ;;  %v7535_v49 = vld [vmem:[%s8006_s4 + $0x294] sm:$0xf0]  ;;  %v7116_v24 = vor.u32 %v7519_v3, %v7115_v47  ;;  %v6861_v30 = vld [vmem:[%s8006_s4 + $0x18] sm:$0xf0]  ;;  %v7470_v46 = vld [vmem:[%s8006_s4 + $0x94] sm:$0xf] }
 0x7b1   : > { %v3988_v38 = vpop.f32.mrf.mxu3  ;;  %v10029_v15 = vpack.c.bf16 %v4482_v0, %v4476_v54  ;;  %v4255_v32 = vmul.f32 %v4207_v60, %v10006_v11  ;;  %v7454_v54 = vld [vmem:[%s8006_s4 + $0x14] sm:$0xf]  ;;  %v7180_v60 = vor.u32 %v7535_v49, %v7179_v37  ;;  %v7107_v0 = vld [vmem:[%s8006_s4 + $0x200] sm:$0xf]  ;;  %v7517_v59 = vld [vmem:[%s8006_s4 + $0x204] sm:$0xf0]  ;;  %5283 = vmatpush.bf16.msrb.mxu0 %v6872_v9 }
 0x7b2   : > { %v10033_v17 = vadd.f32 %v3988_v38, %v3960_v53  ;;  %v4046_v52 = vpop.f32.mrf.mxu2  ;;  %v10035_v31 = vpack.c.bf16 %v4483_v50, %v4477_v29  ;;  %v4302_v45 = vadd.f32 %v4254_v16, %v10000_v25  ;;  %5312 = vmatpush.bf16.msrb.mxu2 %v6936_v44  ;;  %v6925_v29 = vld [vmem:[%s8006_s4 + $0x98] sm:$0xf0]  ;;  %v7171_v13 = vld [vmem:[%s8006_s4 + $0x280] sm:$0xf]  ;;  %v7533_v50 = vld [vmem:[%s8006_s4 + $0x284] sm:$0xf0]  ;;  %v6864_v38 = vor.u32 %v7454_v54, %v6861_v30 }
 0x7b3   : > { %v10041_v6 = vadd.f32 %v4046_v52, %v4018_v41  ;;  %v3961_v39 = vpop.f32.mrf.mxu1  ;;  %5180 = vmatmul.bf16.gmra.mxu0 %v10029_v15  ;;  %v4303_v53 = vadd.f32 %v4255_v32, %v10006_v11  ;;  %5226 = vmatpush.bf16.msra.mxu1 %v7116_v24  ;;  %v7452_v16 = vld [vmem:[%s8006_s4 + $0x4] sm:$0xf]  ;;  %v6853_v32 = vld [vmem:[%s8006_s4 + $0x8] sm:$0xf0]  ;;  %v7172_v8 = vor.u32 %v7533_v50, %v7171_v13 }
 0x7b4   : > { %v4118_v55 = vmul.f32 0.044715, %v10033_v17  ;;  %v4019_v23 = vpop.f32.mrf.mxu0  ;;  %5209 = vmatmul.bf16.gmra.mxu2 %v10035_v31  ;;  %v4350_v41 = vmul.f32 0.7978846, %v4302_v45  ;;  %5255 = vmatpush.bf16.msra.mxu3 %v7180_v60  ;;  %v7767_v47 = vpop.eup %7766  ;;  %v7468_v44 = vld [vmem:[%s8006_s4 + $0x84] sm:$0xf]  ;;  %v3962_v9 = vadd.f32 %v3961_v39, %v9930_v40  ;;  %v6928_v45 = vor.u32 %v7470_v46, %v6925_v29 }
 0x7b5   : > { %v4119_v2 = vmul.f32 0.044715, %v10041_v6  ;;  %v4351_v37 = vmul.f32 0.7978846, %v4303_v53  ;;  %v7769_v49 = vpop.eup %7768  ;;  %5284 = vmatpush.bf16.msrb.mxu0 %v6864_v38  ;;  %v7108_v60 = vor.u32 %v7517_v59, %v7107_v0  ;;  %v4020_v53 = vadd.f32 %v4019_v23, %v9934_v19 }
 0x7b6   : > { %v4166_v3 = vmul.f32 %v4118_v55, %v10033_v17  ;;  %7770 = vtanh.f32 %v4350_v41  ;;  %5313 = vmatpush.bf16.msrb.mxu2 %v6928_v45  ;;  %v6856_v30 = vor.u32 %v7452_v16, %v6853_v32  ;;  %v6920_v41 = vor.u32 %v7468_v44, %v6917_v22 }
 0x7b7   : > { %v4167_v52 = vmul.f32 %v4119_v2, %v10041_v6  ;;  %7772 = vtanh.f32 %v4351_v37  ;;  %5227 = vmatpush.bf16.msra.mxu1 %v7108_v60  ;;  %v4440_v59 = vadd.f32 1.0, %v7767_v47  ;;  %v4441_v13 = vadd.f32 1.0, %v7769_v49 }
 0x7b8   : > { %v4214_v24 = vmul.f32 %v4166_v3, %v10033_v17  ;;  %5256 = vmatpush.bf16.msra.mxu3 %v7172_v8  ;;  %v4104_v38 = vmul.f32 0.5, %v9965_v28  ;;  %v4105_v8 = vmul.f32 0.5, %v9972_v48  ;;  %v4110_v47 = vmul.f32 0.5, %v10000_v25 }
 0x7b9   : > { %v4215_v55 = vmul.f32 %v4167_v52, %v10041_v6  ;;  %v3990_v54 = vpop.f32.mrf.mxu3  ;;  %5285 = vmatpush.bf16.msrb.mxu0 %v6856_v30  ;;  %v4111_v52 = vmul.f32 0.5, %v10006_v11 }
 0x7ba   : > { %v4262_v2 = vadd.f32 %v4214_v24, %v10033_v17  ;;  %v10064_v62 = vadd.f32 %v3990_v54, %v3962_v9  ;;  %v4048_v46 = vpop.f32.mrf.mxu2  ;;  %5314 = vmatpush.bf16.msrb.mxu2 %v6920_v41  ;;  %v4488_v45 = vmul.f32 %v4440_v59, %v4104_v38  ;;  %v4489_v60 = vmul.f32 %v4441_v13, %v4105_v8 }
 0x7bb   : > { %v4263_v39 = vadd.f32 %v4215_v55, %v10041_v6  ;;  %v10067_v29 = vadd.f32 %v4048_v46, %v4020_v53  ;;  %v3964_v0 = vpop.f32.mrf.mxu1 }
 0x7bc   : > { %v7771_v50 = vpop.eup %7770  ;;  %v4310_v23 = vmul.f32 0.7978846, %v4262_v2  ;;  %v4124_v3 = vmul.f32 0.044715, %v10064_v62  ;;  %v4022_v16 = vpop.f32.mrf.mxu0  ;;  %v3965_v28 = vadd.f32 %v3964_v0, %v9930_v40 }
 0x7bd   : > { %v4311_v22 = vmul.f32 0.7978846, %v4263_v39  ;;  %v4125_v37 = vmul.f32 0.044715, %v10067_v29  ;;  %v7773_v32 = vpop.eup %7772  ;;  %v4446_v49 = vadd.f32 1.0, %v7771_v50  ;;  %v4023_v54 = vadd.f32 %v4022_v16, %v9934_v19 }
 0x7be   : > { %v4172_v44 = vmul.f32 %v4124_v3, %v10064_v62  ;;  %v4447_v24 = vadd.f32 1.0, %v7773_v32  ;;  %7774 = vtanh.f32 %v4310_v23 }
 0x7bf   : > { %v4173_v9 = vmul.f32 %v4125_v37, %v10067_v29  ;;  %v4494_v48 = vmul.f32 %v4446_v49, %v4110_v47  ;;  %7776 = vtanh.f32 %v4311_v22 }
 0x7c0   : > { %v4220_v55 = vmul.f32 %v4172_v44, %v10064_v62  ;;  %v4495_v30 = vmul.f32 %v4447_v24, %v4111_v52 }
 0x7c1   : > { %v4221_v53 = vmul.f32 %v4173_v9, %v10067_v29  ;;  %v3993_v25 = vpop.f32.mrf.mxu3  ;;  %v10084_v46 = vpack.c.bf16 %v4494_v48, %v4488_v45  ;;  %v4070_v48 = vmul.f32 0.5, %v10033_v17 }
 0x7c2   : > { %v4268_v11 = vadd.f32 %v4220_v55, %v10064_v62  ;;  %v10082_v41 = vadd.f32 %v3993_v25, %v3965_v28  ;;  %v4051_v2 = vpop.f32.mrf.mxu2  ;;  %v10089_v13 = vpack.c.bf16 %v4495_v30, %v4489_v60 }
 0x7c3   : > { %v4269_v39 = vadd.f32 %v4221_v53, %v10067_v29  ;;  %v10087_v59 = vadd.f32 %v4051_v2, %v4023_v54  ;;  %v3966_v0 = vpop.f32.mrf.mxu1  ;;  %5185 = vmatmul.bf16.gmra.mxu0 %v10084_v46  ;;  %v4076_v2 = vmul.f32 0.5, %v10064_v62 }
 0x7c4   : > { %v4316_v50 = vmul.f32 0.7978846, %v4268_v11  ;;  %v4130_v23 = vmul.f32 0.044715, %v10082_v41  ;;  %v4024_v3 = vpop.f32.mrf.mxu0  ;;  %5214 = vmatmul.bf16.gmra.mxu2 %v10089_v13  ;;  %v7775_v37 = vpop.eup %7774  ;;  %v3967_v44 = vadd.f32 %v3966_v0, %v9930_v40  ;;  %v4071_v11 = vmul.f32 0.5, %v10041_v6 }
 0x7c5   : > { %v4317_v16 = vmul.f32 0.7978846, %v4269_v39  ;;  %v4131_v22 = vmul.f32 0.044715, %v10087_v59  ;;  %v7777_v8 = vpop.eup %7776  ;;  %v4406_v49 = vadd.f32 1.0, %v7775_v37  ;;  %v4025_v52 = vadd.f32 %v4024_v3, %v9934_v19 }
 0x7c6   : > { %7778 = vtanh.f32 %v4316_v50  ;;  %v4178_v38 = vmul.f32 %v4130_v23, %v10082_v41  ;;  %v4407_v24 = vadd.f32 1.0, %v7777_v8  ;;  %v4077_v3 = vmul.f32 0.5, %v10067_v29  ;;  %v7514_v29 = vld [vmem:[%s8006_s4 + $0x1f4] sm:$0xf] }
 0x7c7   : > { %7780 = vtanh.f32 %v4317_v16  ;;  %v4179_v32 = vmul.f32 %v4131_v22, %v10087_v59  ;;  %v4454_v22 = vmul.f32 %v4406_v49, %v4070_v48 }
 0x7c8   : > { %v4226_v47 = vmul.f32 %v4178_v38, %v10082_v41  ;;  %v4455_v62 = vmul.f32 %v4407_v24, %v4071_v11  ;;  %v7546_v24 = vld [vmem:[%s8006_s4 + $0x2f4] sm:$0xf]  ;;  %v7229_v11 = vld [vmem:[%s8006_s4 + $0x2f8] sm:$0xf0] }
 0x7c9   : > { %v3995_v9 = vpop.f32.mrf.mxu3  ;;  %v4227_v45 = vmul.f32 %v4179_v32, %v10087_v59 }
 0x7ca   : > { %v10101_v60 = vadd.f32 %v3995_v9, %v3967_v44  ;;  %v4053_v55 = vpop.f32.mrf.mxu2  ;;  %v4274_v28 = vadd.f32 %v4226_v47, %v10082_v41  ;;  %v7101_v47 = vld [vmem:[%s8006_s4 + $0x1f8] sm:$0xf0] }
 0x7cb   : > { %v10105_v53 = vadd.f32 %v4053_v55, %v4025_v52  ;;  %v3969_v54 = vpop.f32.mrf.mxu1  ;;  %v4275_v25 = vadd.f32 %v4227_v45, %v10087_v59  ;;  %v7104_v49 = vor.u32 %v7514_v29, %v7101_v47  ;;  %v7498_v45 = vld [vmem:[%s8006_s4 + $0x174] sm:$0xf]  ;;  %v7037_v55 = vld [vmem:[%s8006_s4 + $0x178] sm:$0xf0] }
 0x7cc   : > { %v7779_v30 = vpop.eup %7778  ;;  %v4136_v39 = vmul.f32 0.044715, %v10101_v60  ;;  %v4027_v0 = vpop.f32.mrf.mxu0  ;;  %v4322_v50 = vmul.f32 0.7978846, %v4274_v28  ;;  %v3970_v32 = vadd.f32 %v3969_v54, %v9930_v40 }
 0x7cd   : > { %v7781_v23 = vpop.eup %7780  ;;  %v4137_v17 = vmul.f32 0.044715, %v10105_v53  ;;  %v4412_v16 = vadd.f32 1.0, %v7779_v30  ;;  %v4323_v38 = vmul.f32 0.7978846, %v4275_v25  ;;  %v4028_v28 = vadd.f32 %v4027_v0, %v9934_v19  ;;  %5365 = vmatpush.bf16.msrb.mxu3 %v7104_v49 }
 0x7ce   : > { %v4184_v37 = vmul.f32 %v4136_v39, %v10101_v60  ;;  %v4413_v6 = vadd.f32 1.0, %v7781_v23  ;;  %7782 = vtanh.f32 %v4322_v50  ;;  %v7040_v30 = vor.u32 %v7498_v45, %v7037_v55  ;;  %v7530_v0 = vld [vmem:[%s8006_s4 + $0x274] sm:$0xf]  ;;  %v7029_v55 = vld [vmem:[%s8006_s4 + $0x168] sm:$0xf0] }
 0x7cf   : > { %v4185_v8 = vmul.f32 %v4137_v17, %v10105_v53  ;;  %v4460_v44 = vmul.f32 %v4412_v16, %v4076_v2  ;;  %7784 = vtanh.f32 %v4323_v38  ;;  %v7512_v17 = vld [vmem:[%s8006_s4 + $0x1e4] sm:$0xf]  ;;  %v7093_v16 = vld [vmem:[%s8006_s4 + $0x1e8] sm:$0xf0] }
 0x7d0   : > { %v4461_v52 = vmul.f32 %v4413_v6, %v4077_v3  ;;  %v4232_v9 = vmul.f32 %v4184_v37, %v10101_v60  ;;  %v7232_v3 = vor.u32 %v7546_v24, %v7229_v11  ;;  %v7096_v38 = vor.u32 %v7512_v17, %v7093_v16  ;;  %5336 = vmatpush.bf16.msrb.mxu1 %v7040_v30 }
 0x7d1   : > { %v3998_v48 = vpop.f32.mrf.mxu3  ;;  %v10123_v54 = vpack.c.bf16 %v4460_v44, %v4454_v22  ;;  %v4233_v25 = vmul.f32 %v4185_v8, %v10105_v53  ;;  %v7165_v8 = vld [vmem:[%s8006_s4 + $0x278] sm:$0xf0] }
 0x7d2   : > { %v10127_v2 = vadd.f32 %v3998_v48, %v3970_v32  ;;  %v4056_v39 = vpop.f32.mrf.mxu2  ;;  %v10129_v50 = vpack.c.bf16 %v4461_v52, %v4455_v62  ;;  %v4280_v23 = vadd.f32 %v4232_v9, %v10101_v60  ;;  %v7168_v29 = vor.u32 %v7530_v0, %v7165_v8  ;;  %5423 = vmatpush.bf16.msra.mxu2 %v7232_v3  ;;  %v7544_v48 = vld [vmem:[%s8006_s4 + $0x2e4] sm:$0xf]  ;;  %v7157_v3 = vld [vmem:[%s8006_s4 + $0x268] sm:$0xf0] }
 0x7d3   : > { %v10135_v37 = vadd.f32 %v4056_v39, %v4028_v28  ;;  %v3971_v22 = vpop.f32.mrf.mxu1  ;;  %5228 = vmatmul.bf16.vlgmr.msra.gmra.mxu1 %v10123_v54  ;;  %v4281_v6 = vadd.f32 %v4233_v25, %v10105_v53  ;;  %5286 = vmatmul.bf16.vlgmr.msrb.gmra.mxu0 %v9743_v7  ;;  %v7496_v7 = vld [vmem:[%s8006_s4 + $0x164] sm:$0xf] }
 0x7d4   : > { %v4142_v32 = vmul.f32 0.044715, %v10127_v2  ;;  %v4029_v62 = vpop.f32.mrf.mxu0  ;;  %5257 = vmatmul.bf16.vlgmr.msra.gmra.mxu3 %v10129_v50  ;;  %v4328_v44 = vmul.f32 0.7978846, %v4280_v23  ;;  %v7783_v47 = vpop.eup %7782  ;;  %5315 = vmatmul.bf16.vlgmr.msrb.gmra.mxu2 %v9745_v21  ;;  %v3972_v28 = vadd.f32 %v3971_v22, %v9930_v40  ;;  %v7221_v21 = vld [vmem:[%s8006_s4 + $0x2e8] sm:$0xf0]  ;;  %v7032_v11 = vor.u32 %v7496_v7, %v7029_v55 }
 0x7d5   : > { %v4143_v52 = vmul.f32 0.044715, %v10135_v37  ;;  %v4329_v9 = vmul.f32 0.7978846, %v4281_v6  ;;  %v7785_v49 = vpop.eup %7784  ;;  %5366 = vmatpush.bf16.msrb.mxu3 %v7096_v38  ;;  %5394 = vmatpush.bf16.msra.mxu0 %v7168_v29  ;;  %v4418_v25 = vadd.f32 1.0, %v7783_v47  ;;  %v7224_v39 = vor.u32 %v7544_v48, %v7221_v21 }
 0x7d6   : > { %v4190_v45 = vmul.f32 %v4142_v32, %v10127_v2  ;;  %7786 = vtanh.f32 %v4328_v44  ;;  %v7528_v23 = vld [vmem:[%s8006_s4 + $0x264] sm:$0xf]  ;;  %v4030_v17 = vadd.f32 %v4029_v62, %v9934_v19  ;;  %v4419_v0 = vadd.f32 1.0, %v7785_v49  ;;  %5337 = vmatpush.bf16.msrb.mxu1 %v7032_v11  ;;  %v7510_v47 = vld [vmem:[%s8006_s4 + $0x1d4] sm:$0xf] }
 0x7d7   : > { %v4191_v24 = vmul.f32 %v4143_v52, %v10135_v37  ;;  %7788 = vtanh.f32 %v4329_v9  ;;  %v7160_v22 = vor.u32 %v7528_v23, %v7157_v3  ;;  %v4082_v32 = vmul.f32 0.5, %v10082_v41  ;;  %5424 = vmatpush.bf16.msra.mxu2 %v7224_v39  ;;  %v7085_v52 = vld [vmem:[%s8006_s4 + $0x1d8] sm:$0xf0]  ;;  %v7494_v23 = vld [vmem:[%s8006_s4 + $0x154] sm:$0xf] }
 0x7d8   : > { %v4238_v30 = vmul.f32 %v4190_v45, %v10127_v2  ;;  %v4083_v44 = vmul.f32 0.5, %v10087_v59  ;;  %v4088_v49 = vmul.f32 0.5, %v10101_v60  ;;  %v7088_v7 = vor.u32 %v7510_v47, %v7085_v52  ;;  %v10185_v47 = vld [vmem:[%s10819_s19] sm:$0x3] }
 0x7d9   : > { %v4000_v16 = vpop.f32.mrf.mxu3  ;;  %v4239_v6 = vmul.f32 %v4191_v24, %v10135_v37  ;;  %5395 = vmatpush.bf16.msra.mxu0 %v7160_v22  ;;  %v4466_v24 = vmul.f32 %v4418_v25, %v4082_v32  ;;  %v7021_v25 = vld [vmem:[%s8006_s4 + $0x158] sm:$0xf0]  ;;  %v7526_v32 = vld [vmem:[%s8006_s4 + $0x254] sm:$0xf] }
 0x7da   : > { %v10157_v38 = vadd.f32 %v4000_v16, %v3972_v28  ;;  %v4058_v8 = vpop.f32.mrf.mxu2  ;;  %v4286_v29 = vadd.f32 %v4238_v30, %v10127_v2  ;;  %v4089_v28 = vmul.f32 0.5, %v10105_v53  ;;  %v4467_v39 = vmul.f32 %v4419_v0, %v4083_v44  ;;  %5367 = vmatpush.bf16.msrb.mxu3 %v7088_v7  ;;  %v7149_v0 = vld [vmem:[%s8006_s4 + $0x258] sm:$0xf0]  ;;  %v7542_v44 = vld [vmem:[%s8006_s4 + $0x2d4] sm:$0xf] }
 0x7db   : > { %v10164_v9 = vadd.f32 %v4058_v8, %v4030_v17  ;;  %v3974_v62 = vpop.f32.mrf.mxu1  ;;  %v4287_v45 = vadd.f32 %v4239_v6, %v10135_v37  ;;  %v7024_v8 = vor.u32 %v7494_v23, %v7021_v25  ;;  %v7013_v7 = vld [vmem:[%s8006_s4 + $0x148] sm:$0xf0] }
 0x7dc   : > { %v7787_v55 = vpop.eup %7786  ;;  %v4148_v41 = vmul.f32 0.044715, %v10157_v38  ;;  %v4032_v59 = vpop.f32.mrf.mxu0  ;;  %v4334_v48 = vmul.f32 0.7978846, %v4286_v29  ;;  %v3975_v60 = vadd.f32 %v3974_v62, %v9930_v40  ;;  %v7152_v62 = vor.u32 %v7526_v32, %v7149_v0  ;;  %v7205_v32 = vld [vmem:[%s8006_s4 + $0x2c8] sm:$0xf0] }
 0x7dd   : > { %v7789_v21 = vpop.eup %7788  ;;  %v4149_v30 = vmul.f32 0.044715, %v10164_v9  ;;  %v4424_v11 = vadd.f32 1.0, %v7787_v55  ;;  %v4335_v53 = vmul.f32 0.7978846, %v4287_v45  ;;  %v4033_v6 = vadd.f32 %v4032_v59, %v9934_v19  ;;  %5338 = vmatpush.bf16.msrb.mxu1 %v7024_v8 }
 0x7de   : > { %v4196_v3 = vmul.f32 %v4148_v41, %v10157_v38  ;;  %v4425_v17 = vadd.f32 1.0, %v7789_v21  ;;  %7790 = vtanh.f32 %v4334_v48  ;;  %v7213_v45 = vld [vmem:[%s8006_s4 + $0x2d8] sm:$0xf0]  ;;  %v7508_v21 = vld [vmem:[%s8006_s4 + $0x1c4] sm:$0xf]  ;;  %5396 = vmatpush.bf16.msra.mxu0 %v7152_v62  ;;  %v10215_v62 = vperm.slane %v10185_v47, 0 }
 0x7df   : > { %v4197_v16 = vmul.f32 %v4149_v30, %v10164_v9  ;;  %v4472_v22 = vmul.f32 %v4424_v11, %v4088_v49  ;;  %7792 = vtanh.f32 %v4335_v53  ;;  %v7492_v49 = vld [vmem:[%s8006_s4 + $0x144] sm:$0xf]  ;;  %v7077_v30 = vld [vmem:[%s8006_s4 + $0x1c8] sm:$0xf0] }
 0x7e0   : > { %v4473_v29 = vmul.f32 %v4425_v17, %v4089_v28  ;;  %v4244_v52 = vmul.f32 %v4196_v3, %v10157_v38  ;;  %v7216_v28 = vor.u32 %v7542_v44, %v7213_v45  ;;  %v7016_v48 = vor.u32 %v7492_v49, %v7013_v7  ;;  %v7524_v11 = vld [vmem:[%s8006_s4 + $0x244] sm:$0xf] }
 0x7e1   : > { %v4003_v55 = vpop.f32.mrf.mxu3  ;;  %v10191_v41 = vpack.c.bf16 %v4472_v22, %v4466_v24  ;;  %v4245_v59 = vmul.f32 %v4197_v16, %v10164_v9  ;;  %v7080_v25 = vor.u32 %v7508_v21, %v7077_v30  ;;  %v7141_v24 = vld [vmem:[%s8006_s4 + $0x248] sm:$0xf0]  ;;  %v7540_v22 = vld [vmem:[%s8006_s4 + $0x2c4] sm:$0xf]  ;;  %v4094_v45 = vmul.f32 0.5, %v10127_v2 }
 0x7e2   : > { %v10197_v23 = vadd.f32 %v4003_v55, %v3975_v60  ;;  %v4061_v3 = vpop.f32.mrf.mxu2  ;;  %v10199_v17 = vpack.c.bf16 %v4473_v29, %v4467_v39  ;;  %v4292_v53 = vadd.f32 %v4244_v52, %v10157_v38  ;;  %5425 = vmatpush.bf16.msra.mxu2 %v7216_v28  ;;  %v7144_v60 = vor.u32 %v7524_v11, %v7141_v24  ;;  %v7005_v2 = vld [vmem:[%s8006_s4 + $0x138] sm:$0xf0]  ;;  %v7522_v24 = vld [vmem:[%s8006_s4 + $0x234] sm:$0xf] }
 0x7e3   : > { %v10205_v0 = vadd.f32 %v4061_v3, %v4033_v6  ;;  %v3976_v16 = vpop.f32.mrf.mxu1  ;;  %5233 = vmatmul.bf16.gmra.mxu1 %v10191_v41  ;;  %v4293_v8 = vadd.f32 %v4245_v59, %v10164_v9  ;;  %5291 = vmatmul.bf16.gmra.mxu0 %v9831_v56  ;;  %v7208_v52 = vor.u32 %v7540_v22, %v7205_v32  ;;  %v10220_v59 = vmul.f32 0.5, %v10157_v38  ;;  %v7506_v38 = vld [vmem:[%s8006_s4 + $0x1b4] sm:$0xf]  ;;  %v7069_v11 = vld [vmem:[%s8006_s4 + $0x1b8] sm:$0xf0] }
 0x7e4   : > { %v7791_v44 = vpop.eup %7790  ;;  %v4154_v39 = vmul.f32 0.044715, %v10197_v23  ;;  %5262 = vmatmul.bf16.gmra.mxu3 %v10199_v17  ;;  %v4340_v29 = vmul.f32 0.7978846, %v4292_v53  ;;  %5320 = vmatmul.bf16.gmra.mxu2 %v9834_v35  ;;  %v4034_v55 = vpop.f32.mrf.mxu0  ;;  %v4095_v28 = vmul.f32 0.5, %v10135_v37  ;;  %v4101_v30 = vmul.f32 0.5, %v10164_v9 }
 0x7e5   : > { %v4155_v6 = vmul.f32 0.044715, %v10205_v0  ;;  %v4341_v49 = vmul.f32 0.7978846, %v4293_v8  ;;  %5339 = vmatpush.bf16.msrb.mxu1 %v7016_v48  ;;  %v7793_v7 = vpop.eup %7792  ;;  %5368 = vmatpush.bf16.msrb.mxu3 %v7080_v25  ;;  %v7490_v35 = vld [vmem:[%s8006_s4 + $0x134] sm:$0xf]  ;;  %v3977_v37 = vadd.f32 %v3976_v16, %v9930_v40  ;;  %v7072_v25 = vor.u32 %v7506_v38, %v7069_v11 }
 0x7e6   : > { %v4202_v56 = vmul.f32 %v4154_v39, %v10197_v23  ;;  %7794 = vtanh.f32 %v4340_v29  ;;  %5397 = vmatpush.bf16.msra.mxu0 %v7144_v60  ;;  %v4430_v21 = vadd.f32 1.0, %v7791_v44  ;;  %5426 = vmatpush.bf16.msra.mxu2 %v7208_v52  ;;  %v7008_v53 = vor.u32 %v7490_v35, %v7005_v2  ;;  %v7133_v22 = vld [vmem:[%s8006_s4 + $0x238] sm:$0xf0]  ;;  %v7538_v32 = vld [vmem:[%s8006_s4 + $0x2b4] sm:$0xf] }
 0x7e7   : > { %v4203_v48 = vmul.f32 %v4155_v6, %v10205_v0  ;;  %7796 = vtanh.f32 %v4341_v49  ;;  %v4035_v9 = vadd.f32 %v4034_v55, %v9934_v19  ;;  %v7136_v44 = vor.u32 %v7522_v24, %v7133_v22  ;;  %v7197_v39 = vld [vmem:[%s8006_s4 + $0x2b8] sm:$0xf0]  ;;  %v7488_v29 = vld [vmem:[%s8006_s4 + $0x124] sm:$0xf]  ;;  %v6997_v52 = vld [vmem:[%s8006_s4 + $0x128] sm:$0xf0] }
 0x7e8   : > { %v4250_v3 = vmul.f32 %v4202_v56, %v10197_v23  ;;  %v4431_v6 = vadd.f32 1.0, %v7793_v7  ;;  %v7200_v56 = vor.u32 %v7538_v32, %v7197_v39  ;;  %v7504_v19 = vld [vmem:[%s8006_s4 + $0x1a4] sm:$0xf]  ;;  %v7061_v55 = vld [vmem:[%s8006_s4 + $0x1a8] sm:$0xf0]  ;;  %v7000_v38 = vor.u32 %v7488_v29, %v6997_v52 }
 0x7e9   : > { %v4005_v8 = vpop.f32.mrf.mxu3  ;;  %v4251_v60 = vmul.f32 %v4203_v48, %v10205_v0  ;;  %5340 = vmatpush.bf16.msrb.mxu1 %v7008_v53  ;;  %5369 = vmatpush.bf16.msrb.mxu3 %v7072_v25  ;;  %v7064_v11 = vor.u32 %v7504_v19, %v7061_v55  ;;  %v7125_v24 = vld [vmem:[%s8006_s4 + $0x228] sm:$0xf0]  ;;  %v7536_v22 = vld [vmem:[%s8006_s4 + $0x2a4] sm:$0xf] }
 0x7ea   : > { %v10239_v40 = vadd.f32 %v4005_v8, %v3977_v37  ;;  %v4063_v16 = vpop.f32.mrf.mxu2  ;;  %v4298_v49 = vadd.f32 %v4250_v3, %v10197_v23  ;;  %5398 = vmatpush.bf16.msra.mxu0 %v7136_v44  ;;  %v7520_v37 = vld [vmem:[%s8006_s4 + $0x224] sm:$0xf]  ;;  %5427 = vmatpush.bf16.msra.mxu2 %v7200_v56  ;;  %v7189_v25 = vld [vmem:[%s8006_s4 + $0x2a8] sm:$0xf0]  ;;  %v4479_v52 = vmul.f32 %v4431_v6, %v4095_v28  ;;  %v6989_v56 = vld [vmem:[%s8006_s4 + $0x118] sm:$0xf0] }
 0x7eb   : > { %v10244_v35 = vadd.f32 %v4063_v16, %v4035_v9  ;;  %v5113_v2 = vpop.f32.mrf.mxu1  ;;  %v4299_v48 = vadd.f32 %v4251_v60, %v10205_v0  ;;  %v4478_v60 = vmul.f32 %v4430_v21, %v4094_v45  ;;  %v7128_v16 = vor.u32 %v7520_v37, %v7125_v24  ;;  %v7117_v37 = vld [vmem:[%s8006_s4 + $0x218] sm:$0xf0]  ;;  %v7534_v24 = vld [vmem:[%s8006_s4 + $0x294] sm:$0xf] }
 0x7ec   : > { %v7795_v7 = vpop.eup %7794  ;;  %v4160_v3 = vmul.f32 0.044715, %v10239_v40  ;;  %v4346_v53 = vmul.f32 0.7978846, %v4298_v49  ;;  %v7486_v49 = vld [vmem:[%s8006_s4 + $0x114] sm:$0xf]  ;;  %v5114_v55 = vadd.f32 %v5113_v2, %v10215_v62  ;;  %v7192_v21 = vor.u32 %v7536_v22, %v7189_v25 }
 0x7ed   : > { %v7797_v32 = vpop.eup %7796  ;;  %v4161_v9 = vmul.f32 0.044715, %v10244_v35  ;;  %v4436_v8 = vadd.f32 1.0, %v7795_v7  ;;  %v4347_v44 = vmul.f32 0.7978846, %v4299_v48  ;;  %5341 = vmatpush.bf16.msrb.mxu1 %v7000_v38  ;;  %5370 = vmatpush.bf16.msrb.mxu3 %v7064_v11  ;;  %v6992_v38 = vor.u32 %v7486_v49, %v6989_v56 }
 0x7ee   : > { %v4208_v39 = vmul.f32 %v4160_v3, %v10239_v40  ;;  %v4437_v29 = vadd.f32 1.0, %v7797_v32  ;;  %v7502_v48 = vld [vmem:[%s8006_s4 + $0x194] sm:$0xf]  ;;  %v7053_v7 = vld [vmem:[%s8006_s4 + $0x198] sm:$0xf0]  ;;  %5399 = vmatpush.bf16.msra.mxu0 %v7128_v16  ;;  %5428 = vmatpush.bf16.msra.mxu2 %v7192_v21  ;;  %7798 = vtanh.f32 %v4346_v53 }
 0x7ef   : > { %v4209_v19 = vmul.f32 %v4161_v9, %v10244_v35  ;;  %v4484_v45 = vmul.f32 %v4436_v8, %v10220_v59  ;;  %v7518_v3 = vld [vmem:[%s8006_s4 + $0x214] sm:$0xf]  ;;  %v7056_v11 = vor.u32 %v7502_v48, %v7053_v7  ;;  %v7181_v32 = vld [vmem:[%s8006_s4 + $0x298] sm:$0xf0]  ;;  %v7484_v9 = vld [vmem:[%s8006_s4 + $0x104] sm:$0xf]  ;;  %7800 = vtanh.f32 %v4347_v44 }
 0x7f0   : > { %v4485_v28 = vmul.f32 %v4437_v29, %v4101_v30  ;;  %v4256_v6 = vmul.f32 %v4208_v39, %v10239_v40  ;;  %v7120_v25 = vor.u32 %v7518_v3, %v7117_v37  ;;  %v7184_v30 = vor.u32 %v7534_v24, %v7181_v32  ;;  %v6981_v8 = vld [vmem:[%s8006_s4 + $0x108] sm:$0xf0]  ;;  %v7500_v39 = vld [vmem:[%s8006_s4 + $0x184] sm:$0xf] }
 0x7f1   : > { %v5142_v2 = vpop.f32.mrf.mxu3  ;;  %v10266_v59 = vpack.c.bf16 %v4484_v45, %v4478_v60  ;;  %v4257_v22 = vmul.f32 %v4209_v19, %v10244_v35  ;;  %5342 = vmatpush.bf16.msrb.mxu1 %v6992_v38  ;;  %5371 = vmatpush.bf16.msrb.mxu3 %v7056_v11  ;;  %v7045_v60 = vld [vmem:[%s8006_s4 + $0x188] sm:$0xf0]  ;;  %v7516_v56 = vld [vmem:[%s8006_s4 + $0x204] sm:$0xf]  ;;  %v6984_v48 = vor.u32 %v7484_v9, %v6981_v8  ;;  %v4107_v8 = vmul.f32 0.5, %v10205_v0 }
 0x7f2   : > { %v10272_v29 = vadd.f32 %v5142_v2, %v5114_v55  ;;  %v10274_v16 = vpack.c.bf16 %v4485_v28, %v4479_v52  ;;  %v4304_v49 = vadd.f32 %v4256_v6, %v10239_v40  ;;  %v7109_v19 = vld [vmem:[%s8006_s4 + $0x208] sm:$0xf0]  ;;  %v7048_v55 = vor.u32 %v7500_v39, %v7045_v60  ;;  %v7532_v7 = vld [vmem:[%s8006_s4 + $0x284] sm:$0xf]  ;;  %5400 = vmatpush.bf16.msra.mxu0 %v7120_v25 }
 0x7f3   : > { %v5115_v45 = vpop.f32.mrf.mxu1  ;;  %5238 = vmatmul.bf16.gmra.mxu1 %v10266_v59  ;;  %v4305_v21 = vadd.f32 %v4257_v22, %v10244_v35  ;;  %v7173_v3 = vld [vmem:[%s8006_s4 + $0x288] sm:$0xf0]  ;;  %5296 = vmatmul.bf16.gmra.mxu0 %v9855_v20  ;;  %v7112_v28 = vor.u32 %v7516_v56, %v7109_v19  ;;  %v4106_v25 = vmul.f32 0.5, %v10197_v23  ;;  %v4113_v39 = vmul.f32 0.5, %v10244_v35 }
 0x7f4   : > { %5267 = vmatmul.bf16.gmra.mxu3 %v10274_v16  ;;  %v4352_v53 = vmul.f32 0.7978846, %v4304_v49  ;;  %5325 = vmatmul.bf16.gmra.mxu2 %v9858_v26  ;;  %v7176_v6 = vor.u32 %v7532_v7, %v7173_v3  ;;  %v7799_v44 = vpop.eup %7798  ;;  %v5116_v38 = vadd.f32 %v5115_v45, %v10215_v62 }
 0x7f5   : > { %v4353_v52 = vmul.f32 0.7978846, %v4305_v21  ;;  %5429 = vmatpush.bf16.msra.mxu2 %v7184_v30  ;;  %5343 = vmatpush.bf16.msrb.mxu1 %v6984_v48  ;;  %v7801_v11 = vpop.eup %7800  ;;  %v4442_v32 = vadd.f32 1.0, %v7799_v44  ;;  %v4112_v30 = vmul.f32 0.5, %v10239_v40 }
 0x7f6   : > { %7802 = vtanh.f32 %v4352_v53  ;;  %5372 = vmatpush.bf16.msrb.mxu3 %v7048_v55  ;;  %5401 = vmatpush.bf16.msra.mxu0 %v7112_v28  ;;  %v4443_v2 = vadd.f32 1.0, %v7801_v11 }
 0x7f7   : > { %7804 = vtanh.f32 %v4353_v52  ;;  %v4490_v60 = vmul.f32 %v4442_v32, %v4106_v25 }
 0x7f8   : > { %v4491_v45 = vmul.f32 %v4443_v2, %v4107_v8 }
 0x7f9   : > { %v5144_v37 = vpop.f32.mrf.mxu3  ;;  %5430 = vmatpush.bf16.msra.mxu2 %v7176_v6 }
 0x7fa   : > { %v5145_v24 = vadd.f32 %v5144_v37, %v5116_v38 }
 0x7fb   : > { %v5118_v20 = vpop.f32.mrf.mxu1 }
 0x7fc   : > { %v7803_v26 = vpop.eup %7802  ;;  %v5119_v19 = vadd.f32 %v5118_v20, %v10215_v62 }
 0x7fd   : > { %v7805_v22 = vpop.eup %7804  ;;  %v4448_v9 = vadd.f32 1.0, %v7803_v26 }
 0x7fe   : > { %v4449_v49 = vadd.f32 1.0, %v7805_v22 }
 0x7ff   : > { %v4496_v56 = vmul.f32 %v4448_v9, %v4112_v30 }
 0x800   : > { %v4497_v21 = vmul.f32 %v4449_v49, %v4113_v39 }
 0x801   : > { %v5147_v48 = vpop.f32.mrf.mxu3  ;;  %v10293_v55 = vpack.c.bf16 %v4496_v56, %v4490_v60 }
 0x802   : > { %v5148_v7 = vadd.f32 %v5147_v48, %v5119_v19  ;;  %v10295_v3 = vpack.c.bf16 %v4497_v21, %v4491_v45 }
 0x803   : > { %v5120_v23 = vpop.f32.mrf.mxu1  ;;  %5243 = vmatmul.bf16.gmra.mxu1 %v10293_v55  ;;  %5301 = vmatmul.bf16.gmra.mxu0 %v9913_v1 }
 0x804   : > { %5272 = vmatmul.bf16.gmra.mxu3 %v10295_v3  ;;  %5330 = vmatmul.bf16.gmra.mxu2 %v9915_v63  ;;  %v5121_v0 = vadd.f32 %v5120_v23, %v10215_v62 }
 0x809   : > { %v5149_v40 = vpop.f32.mrf.mxu3 }
 0x80a   : > { %v5150_v35 = vadd.f32 %v5149_v40, %v5121_v0 }
 0x80b   : > { %v5123_v53 = vpop.f32.mrf.mxu1 }
 0x80c   : > { %v5124_v52 = vadd.f32 %v5123_v53, %v10215_v62 }
 0x810   : > { %v5171_v28 = vpop.f32.mrf.mxu0 }
 0x811   : > { %v5172_v6 = vadd.f32 %v5171_v28, %v10272_v29  ;;  %v5152_v44 = vpop.f32.mrf.mxu3 }
 0x812   : > { %v5153_v38 = vadd.f32 %v5152_v44, %v5124_v52 }
 0x813   : > { %v5125_v11 = vpop.f32.mrf.mxu1  ;;  %5344 = vmatmul.bf16.vlgmr.msrb.gmra.mxu1 %v9898_v34  ;;  %5402 = vmatmul.bf16.vlgmr.msra.gmra.mxu0 %v10123_v54 }
 0x814   : > { %5373 = vmatmul.bf16.vlgmr.msrb.gmra.mxu3 %v9902_v33  ;;  %5431 = vmatmul.bf16.vlgmr.msra.gmra.mxu2 %v10129_v50  ;;  %v5126_v63 = vadd.f32 %v5125_v11, %v10215_v62 }
 0x817   : > { %v5200_v1 = vpop.f32.mrf.mxu2 }
 0x818   : > { %v5201_v37 = vadd.f32 %v5200_v1, %v5172_v6  ;;  %v5173_v20 = vpop.f32.mrf.mxu0 }
 0x819   : > { %v5174_v32 = vadd.f32 %v5173_v20, %v5145_v24  ;;  %v5154_v26 = vpop.f32.mrf.mxu3 }
 0x81a   : > { %v5155_v2 = vadd.f32 %v5154_v26, %v5126_v63 }
 0x81b   : > { %v5128_v29 = vpop.f32.mrf.mxu1 }
 0x81c   : > { %v5129_v25 = vadd.f32 %v5128_v29, %v10215_v62 }
 0x81f   : > { %v5202_v22 = vpop.f32.mrf.mxu2 }
 0x820   : > { %v5203_v30 = vadd.f32 %v5202_v22, %v5174_v32  ;;  %v5176_v34 = vpop.f32.mrf.mxu0 }
 0x821   : > { %v5177_v9 = vadd.f32 %v5176_v34, %v5148_v7  ;;  %v5157_v33 = vpop.f32.mrf.mxu3 }
 0x822   : > { %v5158_v8 = vadd.f32 %v5157_v33, %v5129_v25 }
 0x823   : > { %5349 = vmatmul.bf16.gmra.mxu1 %v9959_v18  ;;  %5407 = vmatmul.bf16.gmra.mxu0 %v10191_v41  ;;  %v5130_v54 = vpop.f32.mrf.mxu1 }
 0x824   : > { %5378 = vmatmul.bf16.gmra.mxu3 %v9967_v10  ;;  %5436 = vmatmul.bf16.gmra.mxu2 %v10199_v17  ;;  %v5131_v24 = vadd.f32 %v5130_v54, %v10215_v62 }
 0x827   : > { %v5205_v50 = vpop.f32.mrf.mxu2 }
 0x828   : > { %v5206_v39 = vadd.f32 %v5205_v50, %v5177_v9  ;;  %v5178_v49 = vpop.f32.mrf.mxu0 }
 0x829   : > { %v5179_v60 = vadd.f32 %v5178_v49, %v5150_v35  ;;  %v5159_v56 = vpop.f32.mrf.mxu3 }
 0x82a   : > { %v5160_v19 = vadd.f32 %v5159_v56, %v5131_v24 }
 0x82f   : > { %v5207_v45 = vpop.f32.mrf.mxu2 }
 0x830   : > { %v5208_v21 = vadd.f32 %v5207_v45, %v5179_v60  ;;  %v5181_v48 = vpop.f32.mrf.mxu0 }
 0x831   : > { %v5182_v7 = vadd.f32 %v5181_v48, %v5153_v38 }
 0x833   : > { %5354 = vmatmul.bf16.gmra.mxu1 %v10029_v15  ;;  %5412 = vmatmul.bf16.gmra.mxu0 %v10266_v59 }
 0x834   : > { %5383 = vmatmul.bf16.gmra.mxu3 %v10035_v31  ;;  %5441 = vmatmul.bf16.gmra.mxu2 %v10274_v16 }
 0x837   : > { %v5210_v18 = vpop.f32.mrf.mxu2 }
 0x838   : > { %v5211_v10 = vadd.f32 %v5210_v18, %v5182_v7  ;;  %v5183_v41 = vpop.f32.mrf.mxu0 }
 0x839   : > { %v5184_v17 = vadd.f32 %v5183_v41, %v5155_v2 }
 0x83f   : > { %v5212_v62 = vpop.f32.mrf.mxu2 }
 0x840   : > { %v5213_v23 = vadd.f32 %v5212_v62, %v5184_v17  ;;  %v5186_v0 = vpop.f32.mrf.mxu0 }
 0x841   : > { %v5187_v40 = vadd.f32 %v5186_v0, %v5158_v8 }
 0x843   : > { %5359 = vmatmul.bf16.gmra.mxu1 %v10084_v46  ;;  %5417 = vmatmul.bf16.gmra.mxu0 %v10293_v55 }
 0x844   : > { %5388 = vmatmul.bf16.gmra.mxu3 %v10089_v13  ;;  %5446 = vmatmul.bf16.gmra.mxu2 %v10295_v3 }
 0x847   : > { %v5215_v15 = vpop.f32.mrf.mxu2 }
 0x848   : > { %v5216_v31 = vadd.f32 %v5215_v15, %v5187_v40  ;;  %v5188_v59 = vpop.f32.mrf.mxu0 }
 0x849   : > { %v5189_v16 = vadd.f32 %v5188_v59, %v5160_v19 }
 0x84f   : > { %v5217_v35 = vpop.f32.mrf.mxu2 }
 0x850   : > { %v5229_v53 = vpop.f32.mrf.mxu1  ;;  %v5218_v52 = vadd.f32 %v5217_v35, %v5189_v16  ;;  %v5287_v6 = vpop.f32.mrf.mxu0 }
 0x851   : > { %v5230_v28 = vadd.f32 %v5229_v53, %v5201_v37 }
 0x857   : > { %v5258_v44 = vpop.f32.mrf.mxu3  ;;  %v5316_v11 = vpop.f32.mrf.mxu2 }
 0x858   : > { %v5259_v38 = vadd.f32 %v5258_v44, %v5230_v28  ;;  %v5231_v1 = vpop.f32.mrf.mxu1  ;;  %v5289_v63 = vpop.f32.mrf.mxu0 }
 0x859   : > { %v5232_v46 = vadd.f32 %v5231_v1, %v5203_v30 }
 0x85f   : > { %v5260_v13 = vpop.f32.mrf.mxu3  ;;  %v5318_v55 = vpop.f32.mrf.mxu2 }
 0x860   : > { %v10323_v20 = vadd.f32 %v5260_v13, %v5232_v46  ;;  %v5234_v3 = vpop.f32.mrf.mxu1  ;;  %v5292_v26 = vpop.f32.mrf.mxu0 }
 0x861   : > { %v5235_v32 = vadd.f32 %v5234_v3, %v5206_v39 }
 0x867   : > { %v5263_v2 = vpop.f32.mrf.mxu3  ;;  %v5321_v22 = vpop.f32.mrf.mxu2 }
 0x868   : > { %v10325_v29 = vadd.f32 %v5263_v2, %v5235_v32  ;;  %v5236_v25 = vpop.f32.mrf.mxu1  ;;  %v10327_v34 = vpop.f32.mrf.mxu0 }
 0x869   : > { %v5237_v37 = vadd.f32 %v5236_v25, %v5208_v21 }
 0x86f   : > { %v5265_v9 = vpop.f32.mrf.mxu3  ;;  %v10331_v30 = vpop.f32.mrf.mxu2 }
 0x870   : > { %v10329_v33 = vadd.f32 %v5265_v9, %v5237_v37  ;;  %v5239_v8 = vpop.f32.mrf.mxu1  ;;  %v10333_v50 = vpop.f32.mrf.mxu0 }
 0x871   : > { %v5240_v54 = vadd.f32 %v5239_v8, %v5211_v10 }
 0x877   : > { %v5268_v24 = vpop.f32.mrf.mxu3  ;;  %v10337_v49 = vpop.f32.mrf.mxu2 }
 0x878   : > { %v10335_v39 = vadd.f32 %v5268_v24, %v5240_v54  ;;  %v5241_v60 = vpop.f32.mrf.mxu1  ;;  %v10339_v19 = vpop.f32.mrf.mxu0  ;;  %v10366_v54 = vadd.f32 %v5259_v38, %v9287_v4  ;;  %v10377_v38 = vadd.f32 %v10323_v20, %v9293_v14 }
 0x879   : > { %v5242_v56 = vadd.f32 %v5241_v60, %v5213_v23  ;;  %v10354_v23 = vperm.slane %v10185_v47, 1 }
 0x87b   : > { %v5288_v28 = vadd.f32 %v5287_v6, %v10354_v23  ;;  %v5290_v2 = vadd.f32 %v5289_v63, %v10354_v23 }
 0x87d   : > { %v5317_v44 = vadd.f32 %v5316_v11, %v5288_v28  ;;  %v5319_v25 = vadd.f32 %v5318_v55, %v5290_v2  ;;  %v5293_v55 = vadd.f32 %v5292_v26, %v10354_v23 }
 0x87f   : > { %v5270_v45 = vpop.f32.mrf.mxu3  ;;  %v10343_v48 = vpop.f32.mrf.mxu2 }
 0x880   : > { %v10341_v21 = vadd.f32 %v5270_v45, %v5242_v56  ;;  %v5244_v7 = vpop.f32.mrf.mxu1  ;;  %v10345_v41 = vpop.f32.mrf.mxu0 }
 0x881   : > { %v5245_v18 = vadd.f32 %v5244_v7, %v5216_v31 }
 0x887   : > { %v5273_v10 = vpop.f32.mrf.mxu3  ;;  %v10349_v62 = vpop.f32.mrf.mxu2 }
 0x888   : > { %v10347_v17 = vadd.f32 %v5273_v10, %v5245_v18  ;;  %v5246_v0 = vpop.f32.mrf.mxu1  ;;  %v10351_v15 = vpop.f32.mrf.mxu0 }
 0x889   : > { %v5247_v40 = vadd.f32 %v5246_v0, %v5218_v52 }
 0x88f   : > { %v5275_v59 = vpop.f32.mrf.mxu3  ;;  %v10358_v35 = vpop.f32.mrf.mxu2 }
 0x890   : > { %v10356_v16 = vadd.f32 %v5275_v59, %v5247_v40  ;;  %v5345_v31 = vpop.f32.mrf.mxu1  ;;  %v5403_v53 = vpop.f32.mrf.mxu0 }
 0x891   : > { %v5346_v1 = vadd.f32 %v5345_v31, %v5317_v44 }
 0x897   : > { %v5374_v46 = vpop.f32.mrf.mxu3  ;;  %v5432_v3 = vpop.f32.mrf.mxu2 }
 0x898   : > { %v5375_v13 = vadd.f32 %v5374_v46, %v5346_v1  ;;  %v5347_v52 = vpop.f32.mrf.mxu1  ;;  %v5405_v32 = vpop.f32.mrf.mxu0  ;;  %v10390_v46 = vadd.f32 %v10325_v29, %v9322_v5 }
 0x899   : > { %v5348_v8 = vadd.f32 %v5347_v52, %v5319_v25 }
 0x89a   : > { %v5404_v47 = vadd.f32 %v5403_v53, %v5375_v13 }
 0x89c   : > { %v5433_v37 = vadd.f32 %v5432_v3, %v5404_v47 }
 0x89e   : > { %v10363_v9 = vadd.f32 %v5433_v37, %v9290_v51  ;;  %v5322_v51 = vadd.f32 %v5321_v22, %v5293_v55  ;;  %v5295_v22 = vadd.f32 %v10327_v34, %v10354_v23 }
 0x89f   : > { %v5376_v6 = vpop.f32.mrf.mxu3  ;;  %v5434_v24 = vpop.f32.mrf.mxu2 }
 0x8a0   : > { %v5377_v11 = vadd.f32 %v5376_v6, %v5348_v8  ;;  %v5350_v60 = vpop.f32.mrf.mxu1  ;;  %v5470_v56 = vsel %vm1318_vm1, %v10363_v9, 0.0  ;;  %v5408_v45 = vpop.f32.mrf.mxu0  ;;  %v5324_v44 = vadd.f32 %v10331_v30, %v5295_v22  ;;  %v5298_v30 = vadd.f32 %v10333_v50, %v10354_v23 }
 0x8a1   : > { %v5471_v63 = vadd.f32 %v5470_v56, %v10366_v54  ;;  %v5351_v4 = vadd.f32 %v5350_v60, %v5322_v51  ;;  %v10403_v8 = vadd.f32 %v10329_v33, %v9328_v12 }
 0x8a2   : > { %v5406_v7 = vadd.f32 %v5405_v32, %v5377_v11  ;;  %v5327_v25 = vadd.f32 %v10337_v49, %v5298_v30  ;;  %v5300_v49 = vadd.f32 %v10339_v19, %v10354_v23 }
 0x8a3   : > { %5472 = vadd.xlane.f32.xlu2 %v5471_v63 }
 0x8a4   : > { %v5435_v18 = vadd.f32 %v5434_v24, %v5406_v7  ;;  %v10416_v7 = vadd.f32 %v10335_v39, %v9356_v61 }
 0x8a6   : > { %v10373_v10 = vadd.f32 %v5435_v18, %v9296_v36 }
 0x8a7   : > { %v5379_v0 = vpop.f32.mrf.mxu3  ;;  %v5437_v59 = vpop.f32.mrf.mxu2 }
 0x8a8   : > { %v5380_v40 = vadd.f32 %v5379_v0, %v5351_v4  ;;  %v5352_v31 = vpop.f32.mrf.mxu1  ;;  %v5474_v53 = vsel %vm1318_vm1, %v10373_v10, 0.0  ;;  %v5410_v26 = vpop.f32.mrf.mxu0 }
 0x8a9   : > { %v5475_v28 = vadd.f32 %v5474_v53, %v10377_v38  ;;  %v5353_v20 = vadd.f32 %v5352_v31, %v5324_v44  ;;  %v10429_v53 = vadd.f32 %v10341_v21, %v9365_v57  ;;  %v10820_v57 = vld [vmem:[#allocation7_spill] sm:$0xff] }
 0x8aa   : > { %v5409_v36 = vadd.f32 %v5408_v45, %v5380_v40 }
 0x8ab   : > { %5476 = vadd.xlane.f32.xlu1 %v5475_v28 }
 0x8ac   : > { %v5438_v1 = vadd.f32 %v5437_v59, %v5409_v36 }
 0x8ae   : > { %v10386_v14 = vadd.f32 %v5438_v1, %v9325_v42 }
 0x8af   : > { %v5381_v13 = vpop.f32.mrf.mxu3  ;;  %v5439_v52 = vpop.f32.mrf.mxu2 }
 0x8b0   : > { %v5382_v3 = vadd.f32 %v5381_v13, %v5353_v20  ;;  %v5355_v32 = vpop.f32.mrf.mxu1  ;;  %v5478_v34 = vsel %vm1318_vm1, %v10386_v14, 0.0  ;;  %v5413_v42 = vpop.f32.mrf.mxu0 }
 0x8b1   : > { %v5479_v2 = vadd.f32 %v5478_v34, %v10390_v46  ;;  %v5356_v29 = vadd.f32 %v5355_v32, %v5327_v25  ;;  %v10822_v25 = vld [vmem:[#allocation9_spill] sm:$0xff] }
 0x8b2   : > { %v5411_v47 = vadd.f32 %v5410_v26, %v5382_v3 }
 0x8b3   : > { %5480 = vadd.xlane.f32.xlu0 %v5479_v2 }
 0x8b4   : > { %v5440_v37 = vadd.f32 %v5439_v52, %v5411_v47  ;;  %v10821_v52 = vld [vmem:[#allocation6_spill] sm:$0xff] }
 0x8b5   : > { %v10442_v32 = vadd.f32 %v10347_v17, %v10821_v52 }
 0x8b6   : > { %v10399_v5 = vadd.f32 %v5440_v37, %v9331_v58  ;;  %v5329_v58 = vadd.f32 %v10343_v48, %v5300_v49  ;;  %v5303_v48 = vadd.f32 %v10345_v41, %v10354_v23 }
 0x8b7   : > { %v5384_v6 = vpop.f32.mrf.mxu3  ;;  %v5442_v24 = vpop.f32.mrf.mxu2 }
 0x8b8   : > { %v5385_v11 = vadd.f32 %v5384_v6, %v5356_v29  ;;  %v5357_v60 = vpop.f32.mrf.mxu1  ;;  %v5482_v50 = vsel %vm1318_vm1, %v10399_v5, 0.0  ;;  %v5415_v55 = vpop.f32.mrf.mxu0  ;;  %v10823_v29 = vld [vmem:[#allocation8_spill] sm:$0xff] }
 0x8b9   : > { %v5483_v56 = vadd.f32 %v5482_v50, %v10403_v8  ;;  %v5358_v33 = vadd.f32 %v5357_v60, %v5329_v58  ;;  %v10452_v6 = vadd.f32 %v10356_v16, %v10823_v29  ;;  %v10824_v60 = vld [vmem:[#allocation5_spill] sm:$0xff] }
 0x8ba   : > { %v5414_v45 = vadd.f32 %v5413_v42, %v5385_v11 }
 0x8bb   : > { %5484 = vadd.xlane.f32.xlu2 %v5483_v56 }
 0x8bc   : > { %v5443_v63 = vadd.f32 %v5442_v24, %v5414_v45 }
 0x8be   : > { %v10412_v12 = vadd.f32 %v5443_v63, %v9362_v43  ;;  %v5332_v43 = vadd.f32 %v10349_v62, %v5303_v48  ;;  %v5305_v62 = vadd.f32 %v10351_v15, %v10354_v23 }
 0x8bf   : > { %v5386_v51 = vpop.f32.mrf.mxu3  ;;  %v5444_v4 = vpop.f32.mrf.mxu2 }
 0x8c0   : > { %v5387_v18 = vadd.f32 %v5386_v51, %v5358_v33  ;;  %v5486_v19 = vsel %vm1318_vm1, %v10412_v12, 0.0  ;;  %v5360_v0 = vpop.f32.mrf.mxu1  ;;  %v5418_v26 = vpop.f32.mrf.mxu0  ;;  %v5334_v20 = vadd.f32 %v10358_v35, %v5305_v62 }
 0x8c1   : > { %v5487_v40 = vadd.f32 %v5486_v19, %v10416_v7  ;;  %v5361_v39 = vadd.f32 %v5360_v0, %v5332_v43 }
 0x8c2   : > { %v5416_v59 = vadd.f32 %v5415_v55, %v5387_v18 }
 0x8c3   : > { %5488 = vadd.xlane.f32.xlu1 %v5487_v40 }
 0x8c4   : > { %v5445_v31 = vadd.f32 %v5444_v4, %v5416_v59 }
 0x8c6   : > { %v10425_v61 = vadd.f32 %v5445_v31, %v9368_v27 }
 0x8c7   : > { %v5389_v28 = vpop.f32.mrf.mxu3  ;;  %v5447_v41 = vpop.f32.mrf.mxu2 }
 0x8c8   : > { %v5390_v22 = vadd.f32 %v5389_v28, %v5361_v39  ;;  %v5490_v36 = vsel %vm1318_vm1, %v10425_v61, 0.0  ;;  %v5362_v27 = vpop.f32.mrf.mxu1  ;;  %v5420_v15 = vpop.f32.mrf.mxu0 }
 0x8c9   : > { %v5491_v44 = vadd.f32 %v5490_v36, %v10429_v53  ;;  %v5363_v3 = vadd.f32 %v5362_v27, %v5334_v20 }
 0x8ca   : > { %v5419_v1 = vadd.f32 %v5418_v26, %v5390_v22 }
 0x8cb   : > { %5492 = vadd.xlane.f32.xlu0 %v5491_v44 }
 0x8cc   : > { %v5448_v13 = vadd.f32 %v5447_v41, %v5419_v1 }
 0x8ce   : > { %v10438_v21 = vadd.f32 %v5448_v13, %v10820_v57 }
 0x8cf   : > { %v5391_v34 = vpop.f32.mrf.mxu3  ;;  %v5449_v42 = vpop.f32.mrf.mxu2 }
 0x8d0   : > { %v5392_v2 = vadd.f32 %v5391_v34, %v5363_v3  ;;  %v5494_v30 = vsel %vm1318_vm1, %v10438_v21, 0.0 }
 0x8d1   : > { %v5495_v23 = vadd.f32 %v5494_v30, %v10442_v32 }
 0x8d2   : > { %v5421_v47 = vadd.f32 %v5420_v15, %v5392_v2 }
 0x8d3   : > { %5496 = vadd.xlane.f32.xlu2 %v5495_v23 }
 0x8d4   : > { %v5450_v35 = vadd.f32 %v5449_v42, %v5421_v47 }
 0x8d6   : > { %v10448_v37 = vadd.f32 %v5450_v35, %v10822_v25 }
 0x8d8   : > { %v5498_v17 = vsel %vm1318_vm1, %v10448_v37, 0.0 }
 0x8d9   : > { %v5499_v11 = vadd.f32 %v5498_v17, %v10452_v6 }
 0x8db   : > { %5500 = vadd.xlane.f32.xlu1 %v5499_v11 }
 0x916   : > { %v5473_v24 = vpop.xlane.xlu2 %5472 }
 0x917   : > { %v5502_v50 = vmul.f32 %v5473_v24, %v10824_v60 }
 0x919   : > { %v10459_v56 = vsub.f32 %v10366_v54, %v5502_v50  ;;  %v10462_v49 = vsub.f32 %v10363_v9, %v5502_v50 }
 0x91b   : > { %v5526_v45 = vmul.f32 %v10459_v56, %v10459_v56  ;;  %v5527_v16 = vmul.f32 %v10462_v49, %v10462_v49 }
 0x91d   : > { %v5542_v58 = vsel %vm1318_vm1, %v5527_v16, 0.0 }
 0x91e   : > { %v5477_v63 = vpop.xlane.xlu1 %5476  ;;  %v5543_v55 = vadd.f32 %v5542_v58, %v5526_v45 }
 0x91f   : > { %v5503_v33 = vmul.f32 %v5477_v63, %v10824_v60 }
 0x920   : > { %5544 = vadd.xlane.f32.xlu0 %v5543_v55 }
 0x921   : > { %v10471_v51 = vsub.f32 %v10377_v38, %v5503_v33  ;;  %v10474_v54 = vsub.f32 %v10373_v10, %v5503_v33 }
 0x923   : > { %v5528_v9 = vmul.f32 %v10471_v51, %v10471_v51  ;;  %v5529_v18 = vmul.f32 %v10474_v54, %v10474_v54 }
 0x925   : > { %v5546_v4 = vsel %vm1318_vm1, %v5529_v18, 0.0 }
 0x926   : > { %v5481_v19 = vpop.xlane.xlu0 %5480  ;;  %v5547_v0 = vadd.f32 %v5546_v4, %v5528_v9 }
 0x927   : > { %v5504_v40 = vmul.f32 %v5481_v19, %v10824_v60 }
 0x928   : > { %5548 = vadd.xlane.f32.xlu2 %v5547_v0 }
 0x929   : > { %v10483_v48 = vsub.f32 %v10390_v46, %v5504_v40  ;;  %v10486_v38 = vsub.f32 %v10386_v14, %v5504_v40  ;;  %v5468_v40 = vld [vmem:[%s725_s16] sm:$0x3] }
 0x92b   : > { %v5530_v10 = vmul.f32 %v10483_v48, %v10483_v48  ;;  %v5531_v59 = vmul.f32 %v10486_v38, %v10486_v38 }
 0x92d   : > { %v5550_v43 = vsel %vm1318_vm1, %v5531_v59, 0.0 }
 0x92e   : > { %v5485_v31 = vpop.xlane.xlu2 %5484  ;;  %v5551_v39 = vadd.f32 %v5550_v43, %v5530_v10 }
 0x92f   : > { %v5505_v26 = vmul.f32 %v5485_v31, %v10824_v60  ;;  %v5469_v31 = vld [vmem:[%s729_s3] sm:$0x3] }
 0x930   : > { %5552 = vadd.xlane.f32.xlu1 %v5551_v39 }
 0x931   : > { %v10495_v28 = vsub.f32 %v10403_v8, %v5505_v26  ;;  %v10498_v46 = vsub.f32 %v10399_v5, %v5505_v26 }
 0x933   : > { %v5532_v14 = vmul.f32 %v10495_v28, %v10495_v28  ;;  %v5533_v22 = vmul.f32 %v10498_v46, %v10498_v46 }
 0x935   : > { %v5554_v36 = vsel %vm1318_vm1, %v5533_v22, 0.0  ;;  %v10568_v22 = vperm.slane %v5468_v40, 1 }
 0x936   : > { %v5489_v41 = vpop.xlane.xlu1 %5488  ;;  %v5555_v44 = vadd.f32 %v5554_v36, %v5532_v14  ;;  %v10566_v14 = vperm.slane %v5468_v40, 0 }
 0x937   : > { %v5506_v62 = vmul.f32 %v5489_v41, %v10824_v60 }
 0x938   : > { %5556 = vadd.xlane.f32.xlu0 %v5555_v44  ;;  %v10570_v44 = vperm.slane %v5469_v31, 0 }
 0x939   : > { %v10507_v1 = vsub.f32 %v10416_v7, %v5506_v62  ;;  %v10510_v8 = vsub.f32 %v10412_v12, %v5506_v62  ;;  %v10572_v62 = vperm.slane %v5469_v31, 1 }
 0x93b   : > { %v5534_v5 = vmul.f32 %v10507_v1, %v10507_v1  ;;  %v5535_v27 = vmul.f32 %v10510_v8, %v10510_v8 }
 0x93d   : > { %v5558_v20 = vsel %vm1318_vm1, %v5535_v27, 0.0 }
 0x93e   : > { %v5493_v13 = vpop.xlane.xlu0 %5492  ;;  %v5559_v57 = vadd.f32 %v5558_v20, %v5534_v5 }
 0x93f   : > { %v5507_v3 = vmul.f32 %v5493_v13, %v10824_v60 }
 0x940   : > { %5560 = vadd.xlane.f32.xlu2 %v5559_v57 }
 0x941   : > { %v10519_v52 = vsub.f32 %v10429_v53, %v5507_v3  ;;  %v10522_v7 = vsub.f32 %v10425_v61, %v5507_v3 }
 0x943   : > { %v5536_v12 = vmul.f32 %v10519_v52, %v10519_v52  ;;  %v5537_v34 = vmul.f32 %v10522_v7, %v10522_v7 }
 0x945   : > { %v5562_v2 = vsel %vm1318_vm1, %v5537_v34, 0.0 }
 0x946   : > { %v5497_v30 = vpop.xlane.xlu2 %5496  ;;  %v5563_v15 = vadd.f32 %v5562_v2, %v5536_v12 }
 0x947   : > { %v5508_v23 = vmul.f32 %v5497_v30, %v10824_v60 }
 0x948   : > { %5564 = vadd.xlane.f32.xlu1 %v5563_v15 }
 0x949   : > { %v10531_v47 = vsub.f32 %v10442_v32, %v5508_v23  ;;  %v10534_v53 = vsub.f32 %v10438_v21, %v5508_v23 }
 0x94b   : > { %v5538_v61 = vmul.f32 %v10531_v47, %v10531_v47  ;;  %v5539_v42 = vmul.f32 %v10534_v53, %v10534_v53 }
 0x94d   : > { %v5566_v35 = vsel %vm1318_vm1, %v5539_v42, 0.0 }
 0x94e   : > { %v5501_v25 = vpop.xlane.xlu1 %5500  ;;  %v5567_v29 = vadd.f32 %v5566_v35, %v5538_v61 }
 0x94f   : > { %v5509_v17 = vmul.f32 %v5501_v25, %v10824_v60 }
 0x950   : > { %5568 = vadd.xlane.f32.xlu0 %v5567_v29 }
 0x951   : > { %v10543_v11 = vsub.f32 %v10452_v6, %v5509_v17  ;;  %v10546_v32 = vsub.f32 %v10448_v37, %v5509_v17 }
 0x953   : > { %v5540_v21 = vmul.f32 %v10543_v11, %v10543_v11  ;;  %v5541_v24 = vmul.f32 %v10546_v32, %v10546_v32 }
 0x955   : > { %v5570_v50 = vsel %vm1318_vm1, %v5541_v24, 0.0 }
 0x956   : > { %v5571_v45 = vadd.f32 %v5570_v50, %v5540_v21 }
 0x958   : > { %5572 = vadd.xlane.f32.xlu2 %v5571_v45 }
 0x993   : > { %v5545_v16 = vpop.xlane.xlu0 %5544 }
 0x994   : > { %v5574_v58 = vmul.f32 %v5545_v16, %v10824_v60 }
 0x996   : > { %v5582_v63 = vadd.f32 1e-05, %v5574_v58 }
 0x998   : > { %7806 = vrsqrt.f32 %v5582_v63  ;;  %vm5596_vm15 = vweird.f32 %v5582_v63 }
 0x99b   : > { %v5549_v6 = vpop.xlane.xlu2 %5548 }
 0x99c   : > { %v5575_v37 = vmul.f32 %v5549_v6, %v10824_v60 }
 0x99e   : > { %v7807_v55 = vpop.eup %7806  ;;  %v5583_v33 = vadd.f32 1e-05, %v5575_v37 }
 0x99f   : > { %v5591_v9 = vmul.f32 %v7807_v55, %v5582_v63  ;;  %vm5597_vm14 = vweird.f32 %v7807_v55 }
 0x9a0   : > { %7808 = vrsqrt.f32 %v5583_v33  ;;  %vm5598_vm0 = vmor %vm5596_vm15, %vm5597_vm14  ;;  %vm5606_vm3 = vweird.f32 %v5583_v33 }
 0x9a1   : > { %v5592_v18 = vmul.f32 %v7807_v55, %v5591_v9 }
 0x9a3   : > { %v5593_v4 = vmul.f32 0.5, %v5592_v18  ;;  %v5553_v19 = vpop.xlane.xlu1 %5552 }
 0x9a4   : > { %v5576_v0 = vmul.f32 %v5553_v19, %v10824_v60 }
 0x9a5   : > { %v5594_v10 = vsub.f32 1.5, %v5593_v4 }
 0x9a6   : > { %v7809_v59 = vpop.eup %7808  ;;  %v5584_v43 = vadd.f32 1e-05, %v5576_v0 }
 0x9a7   : > { %v5595_v39 = vmul.f32 %v7807_v55, %v5594_v10  ;;  %v5601_v26 = vmul.f32 %v7809_v59, %v5583_v33  ;;  %vm5607_vm2 = vweird.f32 %v7809_v59 }
 0x9a8   : > { %7810 = vrsqrt.f32 %v5584_v43  ;;  %vm5608_vm4 = vmor %vm5606_vm3, %vm5607_vm2  ;;  %vm5616_vm6 = vweird.f32 %v5584_v43 }
 0x9a9   : > { %v5599_v36 = vsel %vm5598_vm0, %v7807_v55, %v5595_v39  ;;  %v5602_v41 = vmul.f32 %v7809_v59, %v5601_v26 }
 0x9aa   : > { %v5670_v5 = vmul.f32 %v5599_v36, %v10459_v56  ;;  %v5671_v27 = vmul.f32 %v5599_v36, %v10462_v49 }
 0x9ab   : > { %v5603_v20 = vmul.f32 0.5, %v5602_v41  ;;  %v5557_v13 = vpop.xlane.xlu0 %5556 }
 0x9ac   : > { %v5691_v57 = vmul.f32 %v10566_v14, %v5670_v5  ;;  %v5692_v3 = vmul.f32 %v10568_v22, %v5671_v27  ;;  %v5577_v12 = vmul.f32 %v5557_v13, %v10824_v60 }
 0x9ad   : > { %v5604_v34 = vsub.f32 1.5, %v5603_v20 }
 0x9ae   : > { %v7811_v2 = vpop.eup %7810  ;;  %v10580_v30 = vadd.f32 %v10570_v44, %v5691_v57  ;;  %v10583_v15 = vadd.f32 %v10572_v62, %v5692_v3  ;;  %v5585_v56 = vadd.f32 1e-05, %v5577_v12 }
 0x9af   : > { %v5605_v23 = vmul.f32 %v7809_v59, %v5604_v34  ;;  %v5611_v49 = vmul.f32 %v7811_v2, %v5584_v43  ;;  %vm5617_vm5 = vweird.f32 %v7811_v2 }
 0x9b0   : > { %5728 = vst [vmem:[#allocation2] sm:$0xff] %v10580_v30  ;;  %7812 = vrsqrt.f32 %v5585_v56  ;;  %vm5618_vm7 = vmor %vm5616_vm6, %vm5617_vm5  ;;  %vm5626_vm9 = vweird.f32 %v5585_v56 }
 0x9b1   : > { %5729 = vst.msk [vmem:[#allocation2 + $0x8] sm:$0xff] %vm1318_vm1, %v10583_v15  ;;  %v5609_v61 = vsel %vm5608_vm4, %v7809_v59, %v5605_v23  ;;  %v5612_v42 = vmul.f32 %v7811_v2, %v5611_v49 }
 0x9b2   : > { %v5672_v35 = vmul.f32 %v5609_v61, %v10471_v51  ;;  %v5673_v25 = vmul.f32 %v5609_v61, %v10474_v54 }
 0x9b3   : > { %v5613_v29 = vmul.f32 0.5, %v5612_v42  ;;  %v5561_v17 = vpop.xlane.xlu2 %5560 }
 0x9b4   : > { %v5693_v21 = vmul.f32 %v10566_v14, %v5672_v35  ;;  %v5694_v24 = vmul.f32 %v10568_v22, %v5673_v25  ;;  %v5578_v50 = vmul.f32 %v5561_v17, %v10824_v60 }
 0x9b5   : > { %v5614_v45 = vsub.f32 1.5, %v5613_v29 }
 0x9b6   : > { %v7813_v16 = vpop.eup %7812  ;;  %v10594_v58 = vadd.f32 %v10570_v44, %v5693_v21  ;;  %v10597_v63 = vadd.f32 %v10572_v62, %v5694_v24  ;;  %v5586_v51 = vadd.f32 1e-05, %v5578_v50 }
 0x9b7   : > { %v5615_v6 = vmul.f32 %v7811_v2, %v5614_v45  ;;  %v5621_v54 = vmul.f32 %v7813_v16, %v5585_v56  ;;  %vm5627_vm8 = vweird.f32 %v7813_v16 }
 0x9b8   : > { %5730 = vst [vmem:[#allocation2 + $0x10] sm:$0xff] %v10594_v58  ;;  %7814 = vrsqrt.f32 %v5586_v51  ;;  %vm5628_vm10 = vmor %vm5626_vm9, %vm5627_vm8  ;;  %vm5636_vm12 = vweird.f32 %v5586_v51 }
 0x9b9   : > { %5731 = vst.msk [vmem:[#allocation2 + $0x18] sm:$0xff] %vm1318_vm1, %v10597_v63  ;;  %v5619_v37 = vsel %vm5618_vm7, %v7811_v2, %v5615_v6  ;;  %v5622_v55 = vmul.f32 %v7813_v16, %v5621_v54 }
 0x9ba   : > { %v5674_v33 = vmul.f32 %v5619_v37, %v10483_v48  ;;  %v5675_v9 = vmul.f32 %v5619_v37, %v10486_v38 }
 0x9bb   : > { %v5623_v18 = vmul.f32 0.5, %v5622_v55  ;;  %v5565_v4 = vpop.xlane.xlu1 %5564 }
 0x9bc   : > { %v5695_v19 = vmul.f32 %v10566_v14, %v5674_v33  ;;  %v5696_v0 = vmul.f32 %v10568_v22, %v5675_v9  ;;  %v5579_v40 = vmul.f32 %v5565_v4, %v10824_v60 }
 0x9bd   : > { %v5624_v10 = vsub.f32 1.5, %v5623_v18 }
 0x9be   : > { %v7815_v59 = vpop.eup %7814  ;;  %v10608_v43 = vadd.f32 %v10570_v44, %v5695_v19  ;;  %v10611_v31 = vadd.f32 %v10572_v62, %v5696_v0  ;;  %v5587_v48 = vadd.f32 1e-05, %v5579_v40 }
 0x9bf   : > { %v5625_v39 = vmul.f32 %v7813_v16, %v5624_v10  ;;  %v5631_v38 = vmul.f32 %v7815_v59, %v5586_v51  ;;  %vm5637_vm11 = vweird.f32 %v7815_v59 }
 0x9c0   : > { %5732 = vst [vmem:[#allocation2 + $0x20] sm:$0xff] %v10608_v43  ;;  %7816 = vrsqrt.f32 %v5587_v48  ;;  %vm5638_vm13 = vmor %vm5636_vm12, %vm5637_vm11  ;;  %vm5646_vm15 = vweird.f32 %v5587_v48 }
 0x9c1   : > { %5733 = vst.msk [vmem:[#allocation2 + $0x28] sm:$0xff] %vm1318_vm1, %v10611_v31  ;;  %v5629_v26 = vsel %vm5628_vm10, %v7813_v16, %v5625_v39  ;;  %v5632_v36 = vmul.f32 %v7815_v59, %v5631_v38 }
 0x9c2   : > { %v5676_v41 = vmul.f32 %v5629_v26, %v10495_v28  ;;  %v5677_v5 = vmul.f32 %v5629_v26, %v10498_v46 }
 0x9c3   : > { %v5633_v27 = vmul.f32 0.5, %v5632_v36  ;;  %v5569_v20 = vpop.xlane.xlu0 %5568 }
 0x9c4   : > { %v5697_v13 = vmul.f32 %v10566_v14, %v5676_v41  ;;  %v5698_v57 = vmul.f32 %v10568_v22, %v5677_v5  ;;  %v5580_v3 = vmul.f32 %v5569_v20, %v10824_v60 }
 0x9c5   : > { %v5634_v12 = vsub.f32 1.5, %v5633_v27 }
 0x9c6   : > { %v7817_v34 = vpop.eup %7816  ;;  %v10622_v2 = vadd.f32 %v10570_v44, %v5697_v13  ;;  %v10625_v56 = vadd.f32 %v10572_v62, %v5698_v57  ;;  %v5588_v28 = vadd.f32 1e-05, %v5580_v3 }
 0x9c7   : > { %v5635_v23 = vmul.f32 %v7815_v59, %v5634_v12  ;;  %v5641_v46 = vmul.f32 %v7817_v34, %v5587_v48  ;;  %vm5647_vm14 = vweird.f32 %v7817_v34 }
 0x9c8   : > { %5734 = vst [vmem:[#allocation2 + $0x30] sm:$0xff] %v10622_v2  ;;  %7818 = vrsqrt.f32 %v5588_v28  ;;  %vm5648_vm0 = vmor %vm5646_vm15, %vm5647_vm14  ;;  %vm5656_vm3 = vweird.f32 %v5588_v28 }
 0x9c9   : > { %5735 = vst.msk [vmem:[#allocation2 + $0x38] sm:$0xff] %vm1318_vm1, %v10625_v56  ;;  %v5639_v49 = vsel %vm5638_vm13, %v7815_v59, %v5635_v23  ;;  %v5642_v61 = vmul.f32 %v7817_v34, %v5641_v46 }
 0x9ca   : > { %v5678_v42 = vmul.f32 %v5639_v49, %v10507_v1  ;;  %v5679_v35 = vmul.f32 %v5639_v49, %v10510_v8 }
 0x9cb   : > { %v5643_v25 = vmul.f32 0.5, %v5642_v61  ;;  %v5573_v29 = vpop.xlane.xlu2 %5572 }
 0x9cc   : > { %v5699_v17 = vmul.f32 %v10566_v14, %v5678_v42  ;;  %v5700_v21 = vmul.f32 %v10568_v22, %v5679_v35  ;;  %v5581_v24 = vmul.f32 %v5573_v29, %v10824_v60 }
 0x9cd   : > { %v5644_v50 = vsub.f32 1.5, %v5643_v25 }
 0x9ce   : > { %v7819_v45 = vpop.eup %7818  ;;  %v10636_v16 = vadd.f32 %v10570_v44, %v5699_v17  ;;  %v10639_v51 = vadd.f32 %v10572_v62, %v5700_v21  ;;  %v5589_v1 = vadd.f32 1e-05, %v5581_v24 }
 0x9cf   : > { %v5645_v6 = vmul.f32 %v7817_v34, %v5644_v50  ;;  %v5651_v8 = vmul.f32 %v7819_v45, %v5588_v28  ;;  %vm5657_vm2 = vweird.f32 %v7819_v45 }
 0x9d0   : > { %5736 = vst [vmem:[#allocation2 + $0x40] sm:$0xff] %v10636_v16  ;;  %7820 = vrsqrt.f32 %v5589_v1  ;;  %vm5658_vm4 = vmor %vm5656_vm3, %vm5657_vm2  ;;  %vm5666_vm6 = vweird.f32 %v5589_v1 }
 0x9d1   : > { %5737 = vst.msk [vmem:[#allocation2 + $0x48] sm:$0xff] %vm1318_vm1, %v10639_v51  ;;  %v5649_v60 = vsel %vm5648_vm0, %v7817_v34, %v5645_v6  ;;  %v5652_v54 = vmul.f32 %v7819_v45, %v5651_v8 }
 0x9d2   : > { %v5680_v37 = vmul.f32 %v5649_v60, %v10519_v52  ;;  %v5681_v55 = vmul.f32 %v5649_v60, %v10522_v7 }
 0x9d3   : > { %v5653_v33 = vmul.f32 0.5, %v5652_v54 }
 0x9d4   : > { %v5701_v9 = vmul.f32 %v10566_v14, %v5680_v37  ;;  %v5702_v18 = vmul.f32 %v10568_v22, %v5681_v55 }
 0x9d5   : > { %v5654_v4 = vsub.f32 1.5, %v5653_v33 }
 0x9d6   : > { %v7821_v19 = vpop.eup %7820  ;;  %v10649_v0 = vadd.f32 %v10570_v44, %v5701_v9  ;;  %v10652_v40 = vadd.f32 %v10572_v62, %v5702_v18 }
 0x9d7   : > { %v5655_v10 = vmul.f32 %v7819_v45, %v5654_v4  ;;  %v5661_v59 = vmul.f32 %v7821_v19, %v5589_v1  ;;  %vm5667_vm5 = vweird.f32 %v7821_v19 }
 0x9d8   : > { %5738 = vst [vmem:[#allocation2 + $0x50] sm:$0xff] %v10649_v0  ;;  %vm5668_vm7 = vmor %vm5666_vm6, %vm5667_vm5 }
 0x9d9   : > { %5739 = vst.msk [vmem:[#allocation2 + $0x58] sm:$0xff] %vm1318_vm1, %v10652_v40  ;;  %v5659_v52 = vsel %vm5658_vm4, %v7819_v45, %v5655_v10  ;;  %v5662_v7 = vmul.f32 %v7821_v19, %v5661_v59 }
 0x9da   : > { %v5682_v48 = vmul.f32 %v5659_v52, %v10531_v47  ;;  %v5683_v39 = vmul.f32 %v5659_v52, %v10534_v53 }
 0x9db   : > { %v5663_v38 = vmul.f32 0.5, %v5662_v7 }
 0x9dc   : > { %v5703_v26 = vmul.f32 %v10566_v14, %v5682_v48  ;;  %v5704_v36 = vmul.f32 %v10568_v22, %v5683_v39 }
 0x9dd   : > { %v5664_v41 = vsub.f32 1.5, %v5663_v38 }
 0x9de   : > { %v10662_v5 = vadd.f32 %v10570_v44, %v5703_v26  ;;  %v10665_v27 = vadd.f32 %v10572_v62, %v5704_v36 }
 0x9df   : > { %v5665_v20 = vmul.f32 %v7821_v19, %v5664_v41 }
 0x9e0   : > { %5740 = vst [vmem:[#allocation2 + $0x60] sm:$0xff] %v10662_v5 }
 0x9e1   : > { %5741 = vst.msk [vmem:[#allocation2 + $0x68] sm:$0xff] %vm1318_vm1, %v10665_v27  ;;  %v5669_v47 = vsel %vm5668_vm7, %v7821_v19, %v5665_v20 }
 0x9e2   : > { %v5684_v53 = vmul.f32 %v5669_v47, %v10543_v11  ;;  %v5685_v13 = vmul.f32 %v5669_v47, %v10546_v32 }
 0x9e4   : > { %v5705_v57 = vmul.f32 %v10566_v14, %v5684_v53  ;;  %v5706_v3 = vmul.f32 %v10568_v22, %v5685_v13 }
 0x9e5   : > { %5747 = sbr.rel (%p7233_p5) target bundleno = 2732 (0xaac), region = 96 }
 0x9e6   : > { %v5726_v12 = vadd.f32 %v10570_v44, %v5705_v57  ;;  %v5727_v34 = vadd.f32 %v10572_v62, %v5706_v3 }
 0x9e8   : > { %5742 = vst [vmem:[#allocation2 + $0x70] sm:$0xff] %v5726_v12 }
 0x9e9   : > { %5743 = vst.msk [vmem:[#allocation2 + $0x78] sm:$0xff] %vm1318_vm1, %v5727_v34 }
 0x9ea   : > { %v7555_v11 = vld [vmem:[%s10826_s20 + $0x38] sm:$0xff]  ;;  %v7554_v14 = vld [vmem:[%s10826_s20 + $0x30] sm:$0xff]  ;;  %v7553_v44 = vld [vmem:[%s10826_s20 + $0x28] sm:$0xff]  ;;  %v5775_v46 = vpack.c.bf16 %v10625_v56, %v10611_v31  ;;  %v5773_v61 = vpack.c.bf16 %v10597_v63, %v10583_v15  ;;  %v5772_v63 = vpack.c.bf16 %v10594_v58, %v10580_v30  ;;  %v5776_v56 = vpack.c.bf16 %v10649_v0, %v10636_v16 }
 0x9eb   : > { %v7559_v32 = vld [vmem:[%s10826_s20 + $0x58] sm:$0xff]  ;;  %5868 = vmatpush.bf16.msra.mxu0 %v7555_v11  ;;  %7568 = vmatpush.bf16.msra.mxu2 %v7555_v11  ;;  %v7558_v22 = vld [vmem:[%s10826_s20 + $0x50] sm:$0xff]  ;;  %v7557_v62 = vld [vmem:[%s10826_s20 + $0x48] sm:$0xff]  ;;  %v5777_v35 = vpack.c.bf16 %v10652_v40, %v10639_v51  ;;  %v5774_v25 = vpack.c.bf16 %v10622_v2, %v10608_v43  ;;  %v5778_v29 = vpack.c.bf16 %v5726_v12, %v10662_v5 }
 0x9ec   : > { %7576 = vmatpush.bf16.msra.mxu3 %v7559_v32  ;;  %5901 = vmatpush.bf16.msra.mxu1 %v7559_v32  ;;  %v7552_v28 = vld [vmem:[%s10826_s20 + $0x20] sm:$0xff]  ;;  %v7551_v49 = vld [vmem:[%s10826_s20 + $0x18] sm:$0xff]  ;;  %v7550_v42 = vld [vmem:[%s10826_s20 + $0x10] sm:$0xff]  ;;  %v5779_v17 = vpack.c.bf16 %v5727_v34, %v10665_v27 }
 0x9ed   : > { %v7556_v23 = vld [vmem:[%s10826_s20 + $0x40] sm:$0xff]  ;;  %v7549_v31 = vld [vmem:[%s10826_s20 + $0x8] sm:$0xff] }
 0x9ee   : > { %v7548_v15 = vld [vmem:[%s10826_s20] sm:$0xff] }
 0x9ef   : > { %5869 = vmatpush.bf16.msra.mxu0 %v7554_v14  ;;  %7569 = vmatpush.bf16.msra.mxu2 %v7554_v14  ;;  %v7839_v58 = vld [vmem:[%s10827_s23] ss:$0 sm:$0xff] }
 0x9f0   : > { %7577 = vmatpush.bf16.msra.mxu3 %v7558_v22  ;;  %5902 = vmatpush.bf16.msra.mxu1 %v7558_v22 }
 0x9f3   : > { %5870 = vmatpush.bf16.msra.mxu0 %v7553_v44  ;;  %7570 = vmatpush.bf16.msra.mxu2 %v7553_v44 }
 0x9f4   : > { %7578 = vmatpush.bf16.msra.mxu3 %v7557_v62  ;;  %5903 = vmatpush.bf16.msra.mxu1 %v7557_v62 }
 0x9f7   : > { %5871 = vmatpush.bf16.msra.mxu0 %v7552_v28  ;;  %7571 = vmatpush.bf16.msra.mxu2 %v7552_v28 }
 0x9f8   : > { %7579 = vmatpush.bf16.msra.mxu3 %v7556_v23  ;;  %5904 = vmatpush.bf16.msra.mxu1 %v7556_v23 }
 0x9fb   : > { %7283 = vmatmul.msk.bf16.vlgmr.msra.gmra.mxu3 %vm1318_vm1, %v5775_v46  ;;  %5872 = vmatpush.bf16.msra.mxu0 %v7551_v49 }
 0x9fc   : > { %7572 = vmatpush.bf16.msra.mxu2 %v7551_v49  ;;  %7282 = vmatmul.msk.bf16.vlgmr.msra.gmra.mxu1 %vm1318_vm1, %v5773_v61 }
 0x9ff   : > { %5873 = vmatpush.bf16.msra.mxu0 %v7550_v42 }
 0xa00   : > { %7573 = vmatpush.bf16.msra.mxu2 %v7550_v42 }
 0xa03   : > { %5874 = vmatpush.bf16.msra.mxu0 %v7549_v31 }
 0xa04   : > { %7574 = vmatpush.bf16.msra.mxu2 %v7549_v31 }
 0xa07   : > { %5875 = vmatpush.bf16.msra.mxu0 %v7548_v15 }
 0xa08   : > { %7575 = vmatpush.bf16.msra.mxu2 %v7548_v15 }
 0xa0a   : > { %5876 = vmatmul.bf16.vlgmr.msra.gmra.mxu0 %v5772_v63 }
 0xa0b   : > { %5886 = vmatmul.bf16.vlgmr.msra.gmra.mxu2 %v5776_v56  ;;  %7284 = vmatmul.msk.bf16.gmra.mxu3 %vm1318_vm1, %v5777_v35 }
 0xa1a   : > { %5881 = vmatmul.bf16.gmra.mxu0 %v5774_v25 }
 0xa1b   : > { %5891 = vmatmul.bf16.gmra.mxu2 %v5778_v29  ;;  %7285 = vmatmul.msk.bf16.gmra.mxu3 %vm1318_vm1, %v5779_v17 }
 0xa79   : > { %v5906_v21 = vpop.f32.mrf.mxu1 }
 0xa7e   : > { %v5911_v30 = vpop.f32.mrf.mxu3 }
 0xa81   : > { %v5908_v6 = vpop.f32.mrf.mxu1 }
 0xa86   : > { %v5913_v24 = vpop.f32.mrf.mxu3 }
 0xa87   : > { %v5877_v50 = vpop.f32.mrf.mxu0 }
 0xa88   : > { %v5878_v45 = vadd.f32 %v7839_v58, %v5877_v50 }
 0xa8a   : > { %v5907_v16 = vadd.f32 %v5906_v21, %v5878_v45 }
 0xa8c   : > { %5926 = vst [vmem:[%s10828_s18] sm:$0xff] %v5907_v16 }
 0xa8e   : > { %v5887_v43 = vpop.f32.mrf.mxu2  ;;  %v5916_v2 = vpop.f32.mrf.mxu3 }
 0xa8f   : > { %v5888_v51 = vadd.f32 %v7839_v58, %v5887_v43  ;;  %v5879_v1 = vpop.f32.mrf.mxu0 }
 0xa90   : > { %v5880_v8 = vadd.f32 %v7839_v58, %v5879_v1 }
 0xa91   : > { %v5917_v60 = vadd.f32 %v5916_v2, %v5888_v51 }
 0xa92   : > { %v5909_v54 = vadd.f32 %v5908_v6, %v5880_v8 }
 0xa93   : > { %5930 = vst [vmem:[%s10828_s18 + $0x20] sm:$0xff] %v5917_v60 }
 0xa94   : > { %5927 = vst [vmem:[%s10828_s18 + $0x8] sm:$0xff] %v5909_v54 }
 0xa96   : > { %v5889_v37 = vpop.f32.mrf.mxu2  ;;  %v5918_v55 = vpop.f32.mrf.mxu3 }
 0xa97   : > { %v5890_v33 = vadd.f32 %v7839_v58, %v5889_v37  ;;  %v5882_v9 = vpop.f32.mrf.mxu0 }
 0xa98   : > { %v5883_v18 = vadd.f32 %v7839_v58, %v5882_v9 }
 0xa99   : > { %v5919_v4 = vadd.f32 %v5918_v55, %v5890_v33 }
 0xa9a   : > { %v5912_v19 = vadd.f32 %v5911_v30, %v5883_v18 }
 0xa9b   : > { %5931 = vst [vmem:[%s10828_s18 + $0x28] sm:$0xff] %v5919_v4 }
 0xa9c   : > { %5928 = vst [vmem:[%s10828_s18 + $0x10] sm:$0xff] %v5912_v19 }
 0xa9e   : > { %v5892_v0 = vpop.f32.mrf.mxu2  ;;  %v5921_v40 = vpop.f32.mrf.mxu3 }
 0xa9f   : > { %v5893_v10 = vadd.f32 %v7839_v58, %v5892_v0  ;;  %v5884_v59 = vpop.f32.mrf.mxu0 }
 0xaa0   : > { %v5885_v52 = vadd.f32 %v7839_v58, %v5884_v59 }
 0xaa1   : > { %v5922_v7 = vadd.f32 %v5921_v40, %v5893_v10 }
 0xaa2   : > { %v5914_v48 = vadd.f32 %v5913_v24, %v5885_v52 }
 0xaa3   : > { %5932 = vst [vmem:[%s10828_s18 + $0x30] sm:$0xff] %v5922_v7 }
 0xaa4   : > { %5929 = vst [vmem:[%s10828_s18 + $0x18] sm:$0xff] %v5914_v48 }
 0xaa6   : > { %v5894_v39 = vpop.f32.mrf.mxu2  ;;  %v5923_v26 = vpop.f32.mrf.mxu3 }
 0xaa7   : > { %v5895_v38 = vadd.f32 %v7839_v58, %v5894_v39 }
 0xaa9   : > { %v5924_v36 = vadd.f32 %v5923_v26, %v5895_v38 }
 0xaab   : > { %5933 = vst [vmem:[%s10828_s18 + $0x38] sm:$0xff] %v5924_v36 }
 0xaac PF: > { %s10829_s23 = sld [smem:[#allocation3_spill]] }
 0xab2   : > { %s27_s24 = sadd.s32 1, %s10829_s23  }
 0xab3   : > { %p24_p6 = scmp.ge.s32.totalorder %s27_s24, 6  }
 0xab5   :  { %26 = sbr.rel (!%p24_p6) target bundleno = 10 (0xa), region = 155 }

</bundles_post_ra>
